<compile_context>
chip_gen: v5e
topology: v5e:2x2
jax: 0.10.0
libtpu: 0.0.40
codegen_flags: <defaults>
</compile_context>

<pallas_src>
import jax
import jax.numpy as jnp
from jax import lax
from jax.experimental import pallas as pl
from jax.experimental.pallas import tpu as pltpu


def _silu(x):
    return x * jax.nn.sigmoid(x)


def _round_up(x, m):
    return ((x + m - 1) // m) * m


def conv_layer_kernel(idx_ref, atom_ref, edge_ref, wr_ref,
                      wf_a_ref, wf_b_ref, wf_e_ref, bf_ref,
                      w12_ref, b12_ref,
                      out_ref):
    """One edge tile: gather -> fc_full -> gates -> W_r gate -> scatter-add.

    out_ref is this core's [N_pad, A_pad] f32 partial output; it stays
    VMEM-resident across the edge-tile grid axis (accumulator pattern).
    """
    @pl.when(pl.program_id(1) == 0)
    def _():
        out_ref[...] = jnp.zeros_like(out_ref)

    atom = atom_ref[...]                        # [N_pad, A_pad] bf16
    idx = idx_ref[...]                          # [2, TE]        int32 (lane-major)
    n = atom.shape[0]
    te = idx.shape[1]

    # One-hot gather/scatter matrices in transposed [N, TE] layout so the
    # scatter is a plain matmul.  Sentinel index -1 (padding) -> all-zero.
    iota_n = lax.broadcasted_iota(jnp.int32, (n, te), 0)
    oh0_t = (iota_n == idx[0:1, :]).astype(jnp.bfloat16)    # center atoms
    oh1_t = (iota_n == idx[1:2, :]).astype(jnp.bfloat16)    # neighbor atoms

    contract0 = (((0,), (0,)), ((), ()))        # contract dim 0 of both operands
    # Gathered rows of a bf16 table are exact -> lossless bf16 recast.
    g0 = lax.dot_general(oh0_t, atom, contract0,
                         preferred_element_type=jnp.float32
                         ).astype(jnp.bfloat16)             # [TE, A_pad]
    g1 = lax.dot_general(oh1_t, atom, contract0,
                         preferred_element_type=jnp.float32
                         ).astype(jnp.bfloat16)             # [TE, A_pad]

    # fc_full(concat([g0, g1, edge])) with the weight split along its input
    # dim -> no lane-axis concatenate / VMEM relayout, same MXU push count.
    h = (jnp.dot(g0, wf_a_ref[...], preferred_element_type=jnp.float32)
         + jnp.dot(g1, wf_b_ref[...], preferred_element_type=jnp.float32)
         + jnp.dot(edge_ref[...], wf_e_ref[...],
                   preferred_element_type=jnp.float32)
         + bf_ref[...])                                     # [TE, H_pad] f32
    h = _silu(h).astype(jnp.bfloat16)

    # Fused W_1 || W_2; output columns split into the two gates.
    a12 = (jnp.dot(h, w12_ref[...], preferred_element_type=jnp.float32)
           + b12_ref[...])                                  # [TE, 2*A_pad] f32
    a_half = a12.shape[1] // 2
    nbr = _silu(a12[:, :a_half]) * jax.nn.sigmoid(a12[:, a_half:])
    nbr = nbr * wr_ref[...].astype(jnp.float32)             # W_r(bonds_r) gate

    # Scatter-add onto the center atoms of this core's partial output.
    # (bf16 scatter operand; f32 accumulation -> relaxed 5e-2 tolerance.)
    out_ref[...] += jnp.dot(oh0_t, nbr.astype(jnp.bfloat16),
                            preferred_element_type=jnp.float32)


def _chip_defaults():
    """Best-effort per-chip (n_cores, vmem_limit_bytes)."""
    kind = ""
    try:
        kind = jax.devices()[0].device_kind.lower()
    except Exception:
        pass
    if "v7" in kind:
        # v7x: 2 TensorCores/chip, only 64 MiB VMEM per core.
        return 2, 40 * 1024 * 1024
    # v5e / v6e: single TensorCore, 128 MiB VMEM.
    return 1, 64 * 1024 * 1024


def _vmem_estimate_bytes(te, n_pad, a_pad, h_pad, nbr_fea):
    """Rough per-core VMEM footprint for one edge tile."""
    one_hots = 2 * n_pad * te * 2                                 # oh0_t, oh1_t bf16
    acc = 2 * n_pad * a_pad * 4                                   # f32 accumulator (+wb)
    invariants = 2 * (n_pad * a_pad                               # atom table
                      + 2 * a_pad * h_pad                         # wf_a, wf_b
                      + nbr_fea * h_pad                           # wf_e
                      + h_pad * 2 * a_pad) * 2                    # w12 (bf16, 2 bufs)
    streamed = 2 * te * (2 * 4 + nbr_fea * 2 + a_pad * 2)         # idx / edge / wr (2 bufs)
    inter = te * (2 * a_pad * 2 + h_pad * 4 + 2 * a_pad * 4 + a_pad * 4)
    return one_hots + acc + invariants + streamed + inter


def conv_layer_forward(atom_fea, edge_ij, bonds_r, nbr_atoms, params, *,
                       edge_tile=512, n_cores=None, vmem_limit_bytes=None):
    n, a = atom_fea.shape
    e, nbr_fea = edge_ij.shape

    det_cores, det_vmem = _chip_defaults()
    if n_cores is None:
        n_cores = det_cores
    if vmem_limit_bytes is None:
        vmem_limit_bytes = det_vmem

    # Lane-dense feature padding (full 128-lane vregs, no masked stores).
    a_pad = _round_up(a, 128)
    h_dim = 2 * a
    h_pad = _round_up(h_dim, 128)
    n_pad = _round_up(n, 8)

    # Shrink the edge tile until it fits the chip's VMEM budget.
    edge_tile = max(128, _round_up(edge_tile, 128))
    while (edge_tile > 128 and
           _vmem_estimate_bytes(edge_tile, n_pad, a_pad, h_pad, nbr_fea)
           > (3 * vmem_limit_bytes) // 4):
        edge_tile //= 2

    # Precompute W_r(bonds_r) in XLA (K=16 matmul badly underfills the MXU);
    # stream it to the kernel in bf16 (largest per-tile DMA).
    wr_out = (bonds_r @ params["wr"] + params["br"]).astype(jnp.bfloat16)   # [E, A]

    # Pad edges so the (core, tile) grid divides evenly; sentinel index -1
    # gives all-zero one-hot rows/cols, so padded edges contribute nothing.
    # NOTE: genuinely out-of-range indices (>= N) are silently dropped by the
    # one-hot compare instead of raising like PyTorch indexing.
    chunk = edge_tile * n_cores
    e_pad = _round_up(e, chunk)
    pad_e = e_pad - e
    idx_t = jnp.pad(nbr_atoms.astype(jnp.int32), ((0, pad_e), (0, 0)),
                    constant_values=-1).T                                   # [2, E_pad]
    edge_p = jnp.pad(edge_ij, ((0, pad_e), (0, 0))).astype(jnp.bfloat16)    # [E_pad, NBR]
    wr_p = jnp.pad(wr_out, ((0, pad_e), (0, a_pad - a)))                    # [E_pad, A_pad]

    atom_p = jnp.pad(atom_fea, ((0, n_pad - n), (0, a_pad - a))
                     ).astype(jnp.bfloat16)                                 # [N_pad, A_pad]

    # Zero-padded weights (exact: padded h columns are silu(0)=0, padded gate
    # columns multiply a zero-padded W_r column).
    wf_a = jnp.pad(params["wf_a"], ((0, a_pad - a), (0, h_pad - h_dim))
                   ).astype(jnp.bfloat16)                                   # [A_pad, H_pad]
    wf_b = jnp.pad(params["wf_b"], ((0, a_pad - a), (0, h_pad - h_dim))
                   ).astype(jnp.bfloat16)                                   # [A_pad, H_pad]
    wf_e = jnp.pad(params["wf_e"], ((0, 0), (0, h_pad - h_dim))
                   ).astype(jnp.bfloat16)                                   # [NBR, H_pad]
    b_f = jnp.pad(params["b_f"], ((0, 0), (0, h_pad - h_dim))
                  ).astype(jnp.float32)                                     # [1, H_pad]
    w12 = jnp.concatenate(
        [jnp.pad(params["w1"], ((0, h_pad - h_dim), (0, a_pad - a))),
         jnp.pad(params["w2"], ((0, h_pad - h_dim), (0, a_pad - a)))],
        axis=1).astype(jnp.bfloat16)                                        # [H_pad, 2*A_pad]
    b12 = jnp.concatenate(
        [jnp.pad(params["b1"], ((0, 0), (0, a_pad - a))),
         jnp.pad(params["b2"], ((0, 0), (0, a_pad - a)))],
        axis=1).astype(jnp.float32)                                         # [1, 2*A_pad]

    tiles_per_core = e_pad // chunk
    grid = (n_cores, tiles_per_core)

    def eblk(c, t):
        return c * tiles_per_core + t

    in_specs = [
        pl.BlockSpec((2, edge_tile), lambda c, t: (0, eblk(c, t))),         # indices
        pl.BlockSpec((n_pad, a_pad), lambda c, t: (0, 0)),                  # atom table
        pl.BlockSpec((edge_tile, nbr_fea), lambda c, t: (eblk(c, t), 0)),   # edge tile
        pl.BlockSpec((edge_tile, a_pad), lambda c, t: (eblk(c, t), 0)),     # W_r(bonds) tile
        pl.BlockSpec((a_pad, h_pad), lambda c, t: (0, 0)),                  # wf_a
        pl.BlockSpec((a_pad, h_pad), lambda c, t: (0, 0)),                  # wf_b
        pl.BlockSpec((nbr_fea, h_pad), lambda c, t: (0, 0)),                # wf_e
        pl.BlockSpec((1, h_pad), lambda c, t: (0, 0)),                      # b_f
        pl.BlockSpec((h_pad, 2 * a_pad), lambda c, t: (0, 0)),              # w12
        pl.BlockSpec((1, 2 * a_pad), lambda c, t: (0, 0)),                  # b12
    ]
    # Per-core partial output (leading dim squeezed inside the kernel).
    out_spec = pl.BlockSpec((None, n_pad, a_pad), lambda c, t: (c, 0, 0))

    if n_cores > 1:
        # v7x only: actually shard the leading axis across the 2 TensorCores.
        dim_sem = (pltpu.CORE_PARALLEL, pltpu.ARBITRARY)
    else:
        dim_sem = ("arbitrary", "arbitrary")

    partials = pl.pallas_call(
        conv_layer_kernel,
        out_shape=jax.ShapeDtypeStruct((n_cores, n_pad, a_pad), jnp.float32),
        grid=grid,
        in_specs=in_specs,
        out_specs=out_spec,
        compiler_params=pltpu.CompilerParams(
            dimension_semantics=dim_sem,
            vmem_limit_bytes=vmem_limit_bytes),
    )(idx_t, atom_p, edge_p, wr_p, wf_a, wf_b, wf_e, b_f, w12, b12)

    scattered = partials[0] if n_cores == 1 else jnp.sum(partials, axis=0)
    return atom_fea + scattered[:n, :a]


def make_params(key, atom_fea_len, nbr_fea_len):
    """Deterministic synthetic init. Weights stored as [in, out] (x @ W + b)."""
    a, nbr = atom_fea_len, nbr_fea_len
    ks = jax.random.split(key, 9)
    scale = 0.1
    # fc_full: in = 2A + NBR, out = 2A; pre-split along the input dim.
    wf = scale * jax.random.normal(ks[0], (2 * a + nbr, 2 * a), jnp.float32)
    return {
        "wf_a": wf[:a],
        "wf_b": wf[a:2 * a],
        "wf_e": wf[2 * a:],
        "b_f": scale * jax.random.normal(ks[1], (1, 2 * a), jnp.float32),
        "w1": scale * jax.random.normal(ks[2], (2 * a, a), jnp.float32),
        "b1": scale * jax.random.normal(ks[3], (1, a), jnp.float32),
        "w2": scale * jax.random.normal(ks[4], (2 * a, a), jnp.float32),
        "b2": scale * jax.random.normal(ks[5], (1, a), jnp.float32),
        "wr": scale * jax.random.normal(ks[6], (16, a), jnp.float32),
        "br": scale * jax.random.normal(ks[7], (1, a), jnp.float32),
    }


def reference_forward(atom_fea, edge_ij, bonds_r, nbr_atoms, params):
    """Pure-JAX f32 reference mirroring the PyTorch forward."""
    g0 = atom_fea[nbr_atoms[:, 0]]
    g1 = atom_fea[nbr_atoms[:, 1]]
    x = jnp.concatenate([g0, g1, edge_ij], axis=-1)
    wf = jnp.concatenate([params["wf_a"], params["wf_b"], params["wf_e"]], axis=0)
    h = jax.nn.silu(x @ wf + params["b_f"][0])
    nbr_all = (jax.nn.silu(h @ params["w1"] + params["b1"][0])
               * jax.nn.sigmoid(h @ params["w2"] + params["b2"][0]))
    nbr_all = nbr_all * (bonds_r @ params["wr"] + params["br"][0])
    return atom_fea.at[nbr_atoms[:, 0]].add(nbr_all.astype(jnp.float32))


if __name__ == "__main__":
    ATOM_FEA_LEN = 32
    NBR_FEA_LEN = 16
    N_ATOMS = 16
    N_EDGES = 24

    key = jax.random.PRNGKey(0)
    k_atom, k_edge, k_bond, k_idx, k_param = jax.random.split(key, 5)

    atom_fea = jax.random.normal(k_atom, (N_ATOMS, ATOM_FEA_LEN), jnp.float32)
    edge_ij = jax.random.normal(k_edge, (N_EDGES, NBR_FEA_LEN), jnp.float32)
    bonds_r = jax.random.normal(k_bond, (N_EDGES, 16), jnp.float32)
    nbr_atoms = jax.random.randint(k_idx, (N_EDGES, 2), 0, N_ATOMS, jnp.int32)

    params = make_params(k_param, ATOM_FEA_LEN, NBR_FEA_LEN)

    out = conv_layer_forward(atom_fea, edge_ij, bonds_r, nbr_atoms, params)
    out = jax.block_until_ready(out)

    ref = reference_forward(atom_fea, edge_ij, bonds_r, nbr_atoms, params)
    assert out.shape == (N_ATOMS, ATOM_FEA_LEN) and out.dtype == jnp.float32
    # Tolerance relaxed vs the f32 reference because MXU operands are bf16.
    max_diff = jnp.max(jnp.abs(out - ref))
    assert jnp.allclose(out, ref, rtol=5e-2, atol=5e-2), (
        f"max abs diff {max_diff}")

    print("KERNEL_OK")
</pallas_src>

<mosaic_0001>
module attributes {stable_mosaic.version = 11 : i64} {
  func.func @conv_layer_kernel(%arg0: i32, %arg1: i32, %arg2: memref<2x512xi32, #tpu.memory_space<vmem>>, %arg3: memref<16x128xbf16, #tpu.memory_space<vmem>>, %arg4: memref<512x16xbf16, #tpu.memory_space<vmem>>, %arg5: memref<512x128xbf16, #tpu.memory_space<vmem>>, %arg6: memref<128x128xbf16, #tpu.memory_space<vmem>>, %arg7: memref<128x128xbf16, #tpu.memory_space<vmem>>, %arg8: memref<16x128xbf16, #tpu.memory_space<vmem>>, %arg9: memref<1x128xf32, #tpu.memory_space<vmem>>, %arg10: memref<128x256xbf16, #tpu.memory_space<vmem>>, %arg11: memref<1x256xf32, #tpu.memory_space<vmem>>, %arg12: memref<1x16x128xf32, #tpu.memory_space<vmem>>) attributes {dimension_semantics = [#tpu.dimension_semantics<arbitrary>, #tpu.dimension_semantics<arbitrary>], iteration_bounds = array<i64: 1, 1>, scalar_prefetch = 0 : i64, scratch_operands = 0 : i64, tpu.core_type = #tpu.core_type<tc>, window_params = [{transform_indices = @transform_0, window_bounds = array<i64: 2, 512>}, {pipeline_mode = #tpu.pipeline_mode<synchronous>, transform_indices = @transform_1, window_bounds = array<i64: 16, 128>}, {transform_indices = @transform_2, window_bounds = array<i64: 512, 16>}, {transform_indices = @transform_3, window_bounds = array<i64: 512, 128>}, {pipeline_mode = #tpu.pipeline_mode<synchronous>, transform_indices = @transform_4, window_bounds = array<i64: 128, 128>}, {pipeline_mode = #tpu.pipeline_mode<synchronous>, transform_indices = @transform_5, window_bounds = array<i64: 128, 128>}, {pipeline_mode = #tpu.pipeline_mode<synchronous>, transform_indices = @transform_6, window_bounds = array<i64: 16, 128>}, {pipeline_mode = #tpu.pipeline_mode<synchronous>, transform_indices = @transform_7, window_bounds = array<i64: 1, 128>}, {pipeline_mode = #tpu.pipeline_mode<synchronous>, transform_indices = @transform_8, window_bounds = array<i64: 128, 256>}, {pipeline_mode = #tpu.pipeline_mode<synchronous>, transform_indices = @transform_9, window_bounds = array<i64: 1, 256>}, {transform_indices = @transform_10, window_bounds = array<i64: 1, 16, 128>}]} {
    %c0_i32 = arith.constant 0 : i32
    %0 = arith.cmpi eq, %arg1, %c0_i32 : i32
    %1 = arith.extui %0 : i1 to i32
    %c0_i32_0 = arith.constant 0 : i32
    %2 = arith.cmpi ne, %1, %c0_i32_0 : i32
    scf.if %2 {
      %cst_35 = arith.constant 0.000000e+00 : f32
      %71 = vector.broadcast %cst_35 : f32 to vector<16x128xf32>
      %c0_36 = arith.constant 0 : index
      %c0_37 = arith.constant 0 : index
      %c0_38 = arith.constant 0 : index
      %72 = vector.load %arg12[%c0_36, %c0_37, %c0_38] : memref<1x16x128xf32, #tpu.memory_space<vmem>>, vector<1x16x128xf32>
      %73 = vector.shape_cast %72 : vector<1x16x128xf32> to vector<16x128xf32>
      %74 = vector.shape_cast %71 : vector<16x128xf32> to vector<1x16x128xf32>
      tpu.vector_store %arg12[%c0_36, %c0_37, %c0_38], %74 {strides = array<i32>} : memref<1x16x128xf32, #tpu.memory_space<vmem>>, vector<1x16x128xf32>,
    } else {
    }
    %c0 = arith.constant 0 : index
    %c0_1 = arith.constant 0 : index
    %3 = vector.load %arg3[%c0, %c0_1] : memref<16x128xbf16, #tpu.memory_space<vmem>>, vector<16x128xbf16>
    %c0_2 = arith.constant 0 : index
    %c0_3 = arith.constant 0 : index
    %4 = vector.load %arg2[%c0_2, %c0_3] : memref<2x512xi32, #tpu.memory_space<vmem>>, vector<2x512xi32>
    %5 = tpu.iota {dimensions = array<i32: 0>} : vector<16x512xi32>
    %6 = vector.extract_strided_slice %4 {offsets = [0, 0], sizes = [1, 512], strides = [1, 1]} : vector<2x512xi32> to vector<1x512xi32>
    %7 = vector.broadcast %6 : vector<1x512xi32> to vector<16x512xi32>
    %8 = arith.cmpi eq, %5, %7 : vector<16x512xi32>
    %9 = arith.extui %8 : vector<16x512xi1> to vector<16x512xi32>
    %10 = arith.sitofp %9 : vector<16x512xi32> to vector<16x512xf32>
    %11 = arith.truncf %10 : vector<16x512xf32> to vector<16x512xbf16>
    %12 = vector.extract_strided_slice %4 {offsets = [1, 0], sizes = [1, 512], strides = [1, 1]} : vector<2x512xi32> to vector<1x512xi32>
    %13 = vector.broadcast %12 : vector<1x512xi32> to vector<16x512xi32>
    %14 = arith.cmpi eq, %5, %13 : vector<16x512xi32>
    %15 = arith.extui %14 : vector<16x512xi1> to vector<16x512xi32>
    %16 = arith.sitofp %15 : vector<16x512xi32> to vector<16x512xf32>
    %17 = arith.truncf %16 : vector<16x512xf32> to vector<16x512xbf16>
    %cst = arith.constant dense<0.000000e+00> : vector<512x128xf32>
    %18 = tpu.matmul %11, %3, %cst {dimension_numbers = #tpu.dot_dimension_numbers<[0], [0], [1], [1], [0, 1, 1, 1], [], []>} : vector<16x512xbf16>, vector<16x128xbf16>, vector<512x128xf32> -> vector<512x128xf32>
    %19 = arith.truncf %18 : vector<512x128xf32> to vector<512x128xbf16>
    %cst_4 = arith.constant dense<0.000000e+00> : vector<512x128xf32>
    %20 = tpu.matmul %17, %3, %cst_4 {dimension_numbers = #tpu.dot_dimension_numbers<[0], [0], [1], [1], [0, 1, 1, 1], [], []>} : vector<16x512xbf16>, vector<16x128xbf16>, vector<512x128xf32> -> vector<512x128xf32>
    %21 = arith.truncf %20 : vector<512x128xf32> to vector<512x128xbf16>
    %c0_5 = arith.constant 0 : index
    %c0_6 = arith.constant 0 : index
    %22 = vector.load %arg6[%c0_5, %c0_6] : memref<128x128xbf16, #tpu.memory_space<vmem>>, vector<128x128xbf16>
    %cst_7 = arith.constant dense<0.000000e+00> : vector<512x128xf32>
    %23 = tpu.matmul %19, %22, %cst_7 {dimension_numbers = #tpu.dot_dimension_numbers<[1], [0], [0], [1], [0, 0, 1, 1], [], []>} : vector<512x128xbf16>, vector<128x128xbf16>, vector<512x128xf32> -> vector<512x128xf32>
    %c0_8 = arith.constant 0 : index
    %c0_9 = arith.constant 0 : index
    %24 = vector.load %arg7[%c0_8, %c0_9] : memref<128x128xbf16, #tpu.memory_space<vmem>>, vector<128x128xbf16>
    %cst_10 = arith.constant dense<0.000000e+00> : vector<512x128xf32>
    %25 = tpu.matmul %21, %24, %cst_10 {dimension_numbers = #tpu.dot_dimension_numbers<[1], [0], [0], [1], [0, 0, 1, 1], [], []>} : vector<512x128xbf16>, vector<128x128xbf16>, vector<512x128xf32> -> vector<512x128xf32>
    %26 = arith.addf %23, %25 : vector<512x128xf32>
    %c0_11 = arith.constant 0 : index
    %c0_12 = arith.constant 0 : index
    %27 = vector.load %arg4[%c0_11, %c0_12] : memref<512x16xbf16, #tpu.memory_space<vmem>>, vector<512x16xbf16>
    %c0_13 = arith.constant 0 : index
    %c0_14 = arith.constant 0 : index
    %28 = vector.load %arg8[%c0_13, %c0_14] : memref<16x128xbf16, #tpu.memory_space<vmem>>, vector<16x128xbf16>
    %cst_15 = arith.constant dense<0.000000e+00> : vector<512x128xf32>
    %29 = tpu.matmul %27, %28, %cst_15 {dimension_numbers = #tpu.dot_dimension_numbers<[1], [0], [0], [1], [0, 0, 1, 1], [], []>} : vector<512x16xbf16>, vector<16x128xbf16>, vector<512x128xf32> -> vector<512x128xf32>
    %30 = arith.addf %26, %29 : vector<512x128xf32>
    %c0_16 = arith.constant 0 : index
    %c0_17 = arith.constant 0 : index
    %31 = vector.load %arg9[%c0_16, %c0_17] : memref<1x128xf32, #tpu.memory_space<vmem>>, vector<1x128xf32>
    %32 = vector.broadcast %31 : vector<1x128xf32> to vector<512x128xf32>
    %33 = arith.addf %30, %32 : vector<512x128xf32>
    %34 = arith.negf %33 : vector<512x128xf32>
    %35 = math.exp %34 : vector<512x128xf32>
    %cst_18 = arith.constant 1.000000e+00 : f32
    %36 = vector.broadcast %cst_18 : f32 to vector<512x128xf32>
    %37 = arith.addf %36, %35 : vector<512x128xf32>
    %38 = arith.divf %36, %37 : vector<512x128xf32>
    %39 = arith.mulf %33, %38 : vector<512x128xf32>
    %40 = arith.truncf %39 : vector<512x128xf32> to vector<512x128xbf16>
    %c0_19 = arith.constant 0 : index
    %c0_20 = arith.constant 0 : index
    %41 = vector.load %arg10[%c0_19, %c0_20] : memref<128x256xbf16, #tpu.memory_space<vmem>>, vector<128x256xbf16>
    %cst_21 = arith.constant dense<0.000000e+00> : vector<512x256xf32>
    %42 = tpu.matmul %40, %41, %cst_21 {dimension_numbers = #tpu.dot_dimension_numbers<[1], [0], [0], [1], [0, 0, 1, 1], [], []>} : vector<512x128xbf16>, vector<128x256xbf16>, vector<512x256xf32> -> vector<512x256xf32>
    %c0_22 = arith.constant 0 : index
    %c0_23 = arith.constant 0 : index
    %43 = vector.load %arg11[%c0_22, %c0_23] : memref<1x256xf32, #tpu.memory_space<vmem>>, vector<1x256xf32>
    %44 = vector.broadcast %43 : vector<1x256xf32> to vector<512x256xf32>
    %45 = arith.addf %42, %44 : vector<512x256xf32>
    %46 = vector.extract_strided_slice %45 {offsets = [0, 0], sizes = [512, 128], strides = [1, 1]} : vector<512x256xf32> to vector<512x128xf32>
    %47 = arith.negf %46 : vector<512x128xf32>
    %48 = math.exp %47 : vector<512x128xf32>
    %cst_24 = arith.constant 1.000000e+00 : f32
    %49 = vector.broadcast %cst_24 : f32 to vector<512x128xf32>
    %50 = arith.addf %49, %48 : vector<512x128xf32>
    %51 = arith.divf %49, %50 : vector<512x128xf32>
    %52 = arith.mulf %46, %51 : vector<512x128xf32>
    %53 = vector.extract_strided_slice %45 {offsets = [0, 128], sizes = [512, 128], strides = [1, 1]} : vector<512x256xf32> to vector<512x128xf32>
    %54 = arith.negf %53 : vector<512x128xf32>
    %55 = math.exp %54 : vector<512x128xf32>
    %cst_25 = arith.constant 1.000000e+00 : f32
    %56 = vector.broadcast %cst_25 : f32 to vector<512x128xf32>
    %57 = arith.addf %56, %55 : vector<512x128xf32>
    %58 = arith.divf %56, %57 : vector<512x128xf32>
    %59 = arith.mulf %52, %58 : vector<512x128xf32>
    %c0_26 = arith.constant 0 : index
    %c0_27 = arith.constant 0 : index
    %60 = vector.load %arg5[%c0_26, %c0_27] : memref<512x128xbf16, #tpu.memory_space<vmem>>, vector<512x128xbf16>
    %61 = arith.extf %60 : vector<512x128xbf16> to vector<512x128xf32>
    %62 = arith.mulf %59, %61 : vector<512x128xf32>
    %c0_28 = arith.constant 0 : index
    %c0_29 = arith.constant 0 : index
    %c0_30 = arith.constant 0 : index
    %63 = vector.load %arg12[%c0_28, %c0_29, %c0_30] : memref<1x16x128xf32, #tpu.memory_space<vmem>>, vector<1x16x128xf32>
    %64 = vector.shape_cast %63 : vector<1x16x128xf32> to vector<16x128xf32>
    %65 = arith.truncf %62 : vector<512x128xf32> to vector<512x128xbf16>
    %cst_31 = arith.constant dense<0.000000e+00> : vector<16x128xf32>
    %66 = tpu.matmul %11, %65, %cst_31 {dimension_numbers = #tpu.dot_dimension_numbers<[1], [0], [0], [1], [0, 0, 1, 1], [], []>} : vector<16x512xbf16>, vector<512x128xbf16>, vector<16x128xf32> -> vector<16x128xf32>
    %67 = arith.addf %64, %66 : vector<16x128xf32>
    %c0_32 = arith.constant 0 : index
    %c0_33 = arith.constant 0 : index
    %c0_34 = arith.constant 0 : index
    %68 = vector.load %arg12[%c0_32, %c0_33, %c0_34] : memref<1x16x128xf32, #tpu.memory_space<vmem>>, vector<1x16x128xf32>
    %69 = vector.shape_cast %68 : vector<1x16x128xf32> to vector<16x128xf32>
    %70 = vector.shape_cast %67 : vector<16x128xf32> to vector<1x16x128xf32>
    tpu.vector_store %arg12[%c0_32, %c0_33, %c0_34], %70 {strides = array<i32>} : memref<1x16x128xf32, #tpu.memory_space<vmem>>, vector<1x16x128xf32>,
    return
  }
  func.func @transform_0(%arg0: i32, %arg1: i32) -> (i32, i32) {
    %c1_i32 = arith.constant 1 : i32
    %0 = arith.muli %arg0, %c1_i32 : i32
    %1 = arith.addi %0, %arg1 : i32
    %c0_i32 = arith.constant 0 : i32
    %c0_i32_0 = arith.constant 0 : i32
    return %c0_i32, %1 : i32, i32
  }
  func.func @transform_1(%arg0: i32, %arg1: i32) -> (i32, i32) {
    %c0_i32 = arith.constant 0 : i32
    %c0_i32_0 = arith.constant 0 : i32
    %c0_i32_1 = arith.constant 0 : i32
    return %c0_i32, %c0_i32_0 : i32, i32
  }
  func.func @transform_2(%arg0: i32, %arg1: i32) -> (i32, i32) {
    %c1_i32 = arith.constant 1 : i32
    %0 = arith.muli %arg0, %c1_i32 : i32
    %1 = arith.addi %0, %arg1 : i32
    %c0_i32 = arith.constant 0 : i32
    %c0_i32_0 = arith.constant 0 : i32
    return %1, %c0_i32 : i32, i32
  }
  func.func @transform_3(%arg0: i32, %arg1: i32) -> (i32, i32) {
    %c1_i32 = arith.constant 1 : i32
    %0 = arith.muli %arg0, %c1_i32 : i32
    %1 = arith.addi %0, %arg1 : i32
    %c0_i32 = arith.constant 0 : i32
    %c0_i32_0 = arith.constant 0 : i32
    return %1, %c0_i32 : i32, i32
  }
  func.func @transform_4(%arg0: i32, %arg1: i32) -> (i32, i32) {
    %c0_i32 = arith.constant 0 : i32
    %c0_i32_0 = arith.constant 0 : i32
    %c0_i32_1 = arith.constant 0 : i32
    return %c0_i32, %c0_i32_0 : i32, i32
  }
  func.func @transform_5(%arg0: i32, %arg1: i32) -> (i32, i32) {
    %c0_i32 = arith.constant 0 : i32
    %c0_i32_0 = arith.constant 0 : i32
    %c0_i32_1 = arith.constant 0 : i32
    return %c0_i32, %c0_i32_0 : i32, i32
  }
  func.func @transform_6(%arg0: i32, %arg1: i32) -> (i32, i32) {
    %c0_i32 = arith.constant 0 : i32
    %c0_i32_0 = arith.constant 0 : i32
    %c0_i32_1 = arith.constant 0 : i32
    return %c0_i32, %c0_i32_0 : i32, i32
  }
  func.func @transform_7(%arg0: i32, %arg1: i32) -> (i32, i32) {
    %c0_i32 = arith.constant 0 : i32
    %c0_i32_0 = arith.constant 0 : i32
    %c0_i32_1 = arith.constant 0 : i32
    return %c0_i32, %c0_i32_0 : i32, i32
  }
  func.func @transform_8(%arg0: i32, %arg1: i32) -> (i32, i32) {
    %c0_i32 = arith.constant 0 : i32
    %c0_i32_0 = arith.constant 0 : i32
    %c0_i32_1 = arith.constant 0 : i32
    return %c0_i32, %c0_i32_0 : i32, i32
  }
  func.func @transform_9(%arg0: i32, %arg1: i32) -> (i32, i32) {
    %c0_i32 = arith.constant 0 : i32
    %c0_i32_0 = arith.constant 0 : i32
    %c0_i32_1 = arith.constant 0 : i32
    return %c0_i32, %c0_i32_0 : i32, i32
  }
  func.func @transform_10(%arg0: i32, %arg1: i32) -> (i32, i32, i32) {
    %c0_i32 = arith.constant 0 : i32
    %c0_i32_0 = arith.constant 0 : i32
    %c0_i32_1 = arith.constant 0 : i32
    return %arg0, %c0_i32, %c0_i32_0 : i32, i32, i32
  }
}

</mosaic_0001>

<bundles_post_ra>
// kernel: tpu_custom_call.1
= control target key start
LH: loop header
LB: loop body
LE: loop exit
PB: predicated region body
PF: predicated region fallthrough
CT: control target
= control target key end

     0   :  { %15 = vsyncpa [#allocation3], 0  ;;  %s15057_s0 = inlined_call_operand.vmem [shape: s32[2,512], index: 0, kind: input, shape index: {}]   ;;  %s15058_s1 = inlined_call_operand.vmem [shape: bf16[16,128], index: 1, kind: input, shape index: {}]   ;;  %s15059_s2 = inlined_call_operand.vmem [shape: bf16[512,16], index: 2, kind: input, shape index: {}]   ;;  %s15060_s3 = inlined_call_operand.vmem [shape: bf16[512,128], index: 3, kind: input, shape index: {}]   ;;  %s15061_s4 = inlined_call_operand.hbm [shape: bf16[128,128], index: 4, kind: input, shape index: {}]   ;;  %s15062_s5 = inlined_call_operand.hbm [shape: bf16[128,128], index: 5, kind: input, shape index: {}]   ;;  %s15063_s6 = inlined_call_operand.vmem [shape: bf16[16,128], index: 6, kind: input, shape index: {}]   ;;  %s15064_s7 = inlined_call_operand.vmem [shape: f32[1,128], index: 7, kind: input, shape index: {}]   ;;  %s15065_s8 = inlined_call_operand.hbm [shape: bf16[128,256], index: 8, kind: input, shape index: {}]   ;;  %s15066_s9 = inlined_call_operand.vmem [shape: f32[1,256], index: 9, kind: input, shape index: {}]   ;;  %s15067_s10 = inlined_call_operand.hbm [shape: f32[1,16,128], index: 10, kind: output, shape index: {}]  }
   0x1   :  { %16 = vsyncpa [#allocation6], 0 }
   0x2   :  { %17 = vsyncpa [#allocation4], 0  ;;  %s67_s15 = sshll.u32 %s15062_s5, 4  ;;  %s8361_s16 = smov [#allocation5]   ;;  %s68_s15 = int_to_ptr.hbm [resolvable:$true] %s67_s15 }
   0x3   :  { %s69_s17 = sshll.u32 %s8361_s16, 4  ;;  %s54_s20 = sshll.u32 %s15061_s4, 4  ;;  %s70_s17 = int_to_ptr.vmem [resolvable:$true] %s69_s17  ;;  %s55_s20 = int_to_ptr.hbm [resolvable:$true] %s54_s20 }
   0x4   :  { %s8362_s21 = smov 64   ;;  %s8363_s22 = smov 4  }
   0x5   :  { %75 = dma.hbm_to_vmem [thread:$0]  %s68_s15, 1024, %s70_s17, [#allocation6], %s8362_s21, %s8362_s21, %s8363_s22  }
   0x6   :  { %s8364_s23 = smov [#allocation2]   ;;  %s84_s27 = sshll.u32 %s15065_s8, 4  ;;  %s85_s27 = int_to_ptr.hbm [resolvable:$true] %s84_s27 }
   0x7   :  { %s56_s24 = sshll.u32 %s8364_s23, 4  ;;  %s8365_s5 = smov [#allocation7]   ;;  %s57_s24 = int_to_ptr.vmem [resolvable:$true] %s56_s24 }
   0x8   :  { %62 = dma.hbm_to_vmem [thread:$0]  %s55_s20, 1024, %s57_s24, [#allocation3], %s8362_s21, %s8362_s21, %s8363_s22  }
   0x9   :  { %s86_s28 = sshll.u32 %s8365_s5, 4  ;;  %s8366_s29 = smov 128   ;;  %s87_s28 = int_to_ptr.vmem [resolvable:$true] %s86_s28 }
   0xa   :  { %s8367_s30 = smov 8  }
   0xb   :  { %92 = dma.hbm_to_vmem [thread:$0]  %s85_s27, 2048, %s87_s28, [#allocation6], %s8366_s29, %s8366_s29, %s8367_s30  }
   0xc   :  { %8355 = dma.done.wait [#allocation3], 1024  }
   0xd   :  { %8356 = vsyncadd [#allocation3], 4294966272 }
   0xe   :  { %8357 = dma.done.wait [#allocation6], 3072  }
   0xf   :  { %8358 = vsyncadd [#allocation6], 4294964224  ;;  %v159_v0 = vlaneseq  ;;  %v158_v2 = vld [vmem:[%s15057_s0] sm:$0xff]  ;;  %v8368_v16 = vmov 0.0   ;;  %v15260_v29 = vmov 0  ;;  %v15263_v30 = vmov 0 }
  0x10   :  { %v200_v4 = vperm.slane %v158_v2, 5  ;;  %v201_v5 = vperm.slane %v158_v2, 7  ;;  %v198_v6 = vperm.slane %v158_v2, 1  ;;  %v199_v7 = vperm.slane %v158_v2, 3  ;;  %v7238_v37 = vld [vmem:[%s15058_s1] sm:$0xff]  ;;  %s6630_s4 = sshll.u32 %s15067_s10, 4  ;;  %s6631_s4 = int_to_ptr.hbm [resolvable:$true] %s6630_s4 }
  0x11   :  { %v8438_v1 = vshrl.u32 %v159_v0, 7  ;;  %v164_v8 = vperm.slane %v158_v2, 4  ;;  %v165_v9 = vperm.slane %v158_v2, 6  ;;  %v162_v31 = vperm.slane %v158_v2, 0  ;;  %737 = vmatpush.bf16.msra.mxu1 %v7238_v37  ;;  %392 = vmatpush.bf16.msra.mxu0 %v7238_v37 }
  0x12   :  { %v204_v10 = vperm.slane %v200_v4, 1  ;;  %v205_v11 = vperm.slane %v201_v5, 1  ;;  %v202_v12 = vperm.slane %v198_v6, 1  ;;  %v203_v13 = vperm.slane %v199_v7, 1  ;;  %7463 = vmatpush.bf16.msra.mxu3 %v7238_v37  ;;  %v8544_v6 = vld [vmem:[#allocation5 + $0x38] sm:$0xff]  ;;  %v8547_v7 = vld [vmem:[#allocation5 + $0x30] sm:$0xff] }
  0x13   :  { %v8444_v3 = vadd.s32 8, %v8438_v1  ;;  %v168_v14 = vperm.slane %v164_v8, 0  ;;  %v169_v15 = vperm.slane %v165_v9, 0  ;;  %v163_v32 = vperm.slane %v158_v2, 2  ;;  %1011 = vmatpush.bf16.msra.mxu2 %v8544_v6 }
  0x14   :  { %vm208_vm0 = vcmp.eq.s32.totalorder %v8438_v1, %v204_v10  ;;  %vm209_vm1 = vcmp.eq.s32.totalorder %v8438_v1, %v205_v11  ;;  %vm206_vm4 = vcmp.eq.s32.totalorder %v8438_v1, %v202_v12  ;;  %vm207_vm5 = vcmp.eq.s32.totalorder %v8438_v1, %v203_v13 }
  0x15   :  { %vm212_vm2 = vcmp.eq.s32.totalorder %v8444_v3, %v204_v10  ;;  %vm213_vm3 = vcmp.eq.s32.totalorder %v8444_v3, %v205_v11  ;;  %v6672_v17 = vsel %vm208_vm0, 1.0, %v8368_v16  ;;  %v6673_v18 = vsel %vm209_vm1, 1.0, %v8368_v16  ;;  %v8552_v10 = vld [vmem:[#allocation5 + $0x28] sm:$0xff]  ;;  %v8556_v11 = vld [vmem:[#allocation5 + $0x20] sm:$0xff] }
  0x16   :  { %v6676_v19 = vsel %vm212_vm2, 1.0, %v8368_v16  ;;  %v6677_v20 = vsel %vm213_vm3, 1.0, %v8368_v16  ;;  %vm210_vm6 = vcmp.eq.s32.totalorder %v8444_v3, %v202_v12  ;;  %vm211_vm7 = vcmp.eq.s32.totalorder %v8444_v3, %v203_v13  ;;  %7464 = vmatpush.bf16.msrb.mxu3 %v7238_v37 }
  0x17   :  { %v232_v21 = vpack.c.bf16 %v6676_v19, %v6672_v17  ;;  %v233_v22 = vpack.c.bf16 %v6677_v20, %v6673_v18  ;;  %v6670_v23 = vsel %vm206_vm4, 1.0, %v8368_v16  ;;  %v6671_v24 = vsel %vm207_vm5, 1.0, %v8368_v16  ;;  %1012 = vmatpush.bf16.msra.mxu2 %v8547_v7  ;;  %v8571_v18 = vld [vmem:[#allocation5 + $0x8] sm:$0xff]  ;;  %v8575_v19 = vld [vmem:[#allocation5] sm:$0xff] }
  0x18   :  { %v6674_v25 = vsel %vm210_vm6, 1.0, %v8368_v16  ;;  %v6675_v26 = vsel %vm211_vm7, 1.0, %v8368_v16  ;;  %vm172_vm8 = vcmp.eq.s32.totalorder %v8438_v1, %v168_v14  ;;  %vm176_vm9 = vcmp.eq.s32.totalorder %v8444_v3, %v168_v14  ;;  %v8563_v14 = vld [vmem:[#allocation5 + $0x18] sm:$0xff] }
  0x19   :  { %610 = vxpose.binary.xlu1.c.b16.start.end [1/2] (short) %v233_v22, %v232_v21, 128  ;;  %v230_v27 = vpack.c.bf16 %v6674_v25, %v6670_v23  ;;  %v231_v28 = vpack.c.bf16 %v6675_v26, %v6671_v24  ;;  %vm173_vm10 = vcmp.eq.s32.totalorder %v8438_v1, %v169_v15  ;;  %vm8462_vm12 = vmpackc.low %vm176_vm9, %vm172_vm8  ;;  %v166_v33 = vperm.slane %v162_v31, 0 }
  0x1a   :  { %vm177_vm11 = vcmp.eq.s32.totalorder %v8444_v3, %v169_v15  ;;  %v15261_v29 = vsel %vm8462_vm12, 4294967295, %v15260_v29  ;;  %v167_v34 = vperm.slane %v163_v32, 0  ;;  %v15266_v35 = vmov 0  ;;  %v8566_v15 = vld [vmem:[#allocation5 + $0x10] sm:$0xff] }
  0x1b   :  { %15262 = vst [vmem:[#allocation12_spill] sm:$0xff] %v15261_v29  ;;  %586 = vxpose.binary.xlu0.c.b16.start.end [1/2] (short) %v231_v28, %v230_v27, 128  ;;  %vm8470_vm13 = vmpackc.low %vm177_vm11, %vm173_vm10  ;;  %vm170_vm14 = vcmp.eq.s32.totalorder %v8438_v1, %v166_v33  ;;  %vm174_vm15 = vcmp.eq.s32.totalorder %v8444_v3, %v166_v33  ;;  %v15269_v36 = vmov 0  ;;  %v6664_v38 = vsel %vm172_vm8, 1.0, %v8368_v16 }
  0x1c   :  { %v15264_v30 = vsel %vm8470_vm13, 4294967295, %v15263_v30  ;;  %vm171_vm0 = vcmp.eq.s32.totalorder %v8438_v1, %v167_v34  ;;  %vm175_vm1 = vcmp.eq.s32.totalorder %v8444_v3, %v167_v34  ;;  %vm8482_vm2 = vmpackc.low %vm174_vm15, %vm170_vm14  ;;  %v6665_v39 = vsel %vm173_vm10, 1.0, %v8368_v16  ;;  %1013 = vmatpush.bf16.msra.mxu2 %v8552_v10 }
  0x1d   :  { %15265 = vst [vmem:[#allocation13_spill] sm:$0xff] %v15264_v30  ;;  %v15267_v35 = vsel %vm8482_vm2, 4294967295, %v15266_v35  ;;  %vm8490_vm3 = vmpackc.low %vm175_vm1, %vm171_vm0  ;;  %v6668_v40 = vsel %vm176_vm9, 1.0, %v8368_v16  ;;  %v6669_v41 = vsel %vm177_vm11, 1.0, %v8368_v16  ;;  %v6662_v44 = vsel %vm170_vm14, 1.0, %v8368_v16 }
  0x1e   :  { %15268 = vst [vmem:[#allocation14_spill] sm:$0xff] %v15267_v35  ;;  %v15270_v36 = vsel %vm8490_vm3, 4294967295, %v15269_v36  ;;  %v196_v42 = vpack.c.bf16 %v6668_v40, %v6664_v38  ;;  %v197_v43 = vpack.c.bf16 %v6669_v41, %v6665_v39  ;;  %v6663_v45 = vsel %vm171_vm0, 1.0, %v8368_v16 }
  0x1f   :  { %15271 = vst [vmem:[#allocation15_spill] sm:$0xff] %v15270_v36  ;;  %v6666_v46 = vsel %vm174_vm15, 1.0, %v8368_v16  ;;  %v6667_v47 = vsel %vm175_vm1, 1.0, %v8368_v16  ;;  %vm288_vm4 = vcmask 130048  }
  0x20   :  { %v194_v48 = vpack.c.bf16 %v6666_v46, %v6662_v44  ;;  %v195_v49 = vpack.c.bf16 %v6667_v47, %v6663_v45  ;;  %1014 = vmatpush.bf16.msra.mxu2 %v8556_v11 }
  0x24   :  { %1015 = vmatpush.bf16.msra.mxu2 %v8563_v14 }
  0x28   :  { %1016 = vmatpush.bf16.msra.mxu2 %v8566_v15 }
  0x2c   :  { %1017 = vmatpush.bf16.msra.mxu2 %v8571_v18 }
  0x30   :  { %1018 = vmatpush.bf16.msra.mxu2 %v8575_v19 }
  0x99   :  { %258 = vxpose.binary.xlu1.c.b16.start.end [1/2] (short) %v197_v43, %v196_v42, 128 }
  0x9b   :  { %234 = vxpose.binary.xlu0.c.b16.start.end [1/2] (short) %v195_v49, %v194_v48, 128 }
  0xc5   :  { %v8513_v50 = vpop.trf.xlu1 }
  0xc7   :  { %v594_v51 = vpop.trf.xlu0 }
  0xc8   :  { %6714 = vmatmul.msk.bf16.vlgmr.msra.gmra.mxu1 %vm288_vm4, %v594_v51 }
  0xcd   :  { %v8516_v52 = vpop.trf.xlu1 }
  0xcf   :  { %v595_v53 = vpop.trf.xlu0 }
  0xd5   :  { %v8518_v54 = vpop.trf.xlu1 }
  0xd7   :  { %v596_v55 = vpop.trf.xlu0 }
  0xd8   :  { %6715 = vmatmul.msk.bf16.gmra.mxu1 %vm288_vm4, %v596_v55 }
  0xdd   :  { %v8521_v56 = vpop.trf.xlu1 }
  0xdf   :  { %v597_v57 = vpop.trf.xlu0 }
  0xe5   :  { %v8523_v58 = vpop.trf.xlu1 }
  0xe7   :  { %v598_v59 = vpop.trf.xlu0 }
  0xe8   :  { %6716 = vmatmul.msk.bf16.gmra.mxu1 %vm288_vm4, %v598_v59 }
  0xed   :  { %v8526_v60 = vpop.trf.xlu1 }
  0xef   :  { %v8528_v61 = vpop.trf.xlu0 }
  0xf5   :  { %v8530_v62 = vpop.trf.xlu1 }
  0xf7   :  { %v600_v63 = vpop.trf.xlu0 }
  0xf8   :  { %6717 = vmatmul.msk.bf16.gmra.mxu1 %vm288_vm4, %v600_v63 }
  0xfd   :  { %v8533_v0 = vpop.trf.xlu1 }
  0xff   :  { %v8535_v1 = vpop.trf.xlu0 }
 0x105   :  { %v8537_v2 = vpop.trf.xlu1 }
 0x107   :  { %v602_v3 = vpop.trf.xlu0 }
 0x108   :  { %6718 = vmatmul.msk.bf16.gmra.mxu1 %vm288_vm4, %v602_v3 }
 0x10d   :  { %v8540_v4 = vpop.trf.xlu1 }
 0x10f   :  { %v8542_v5 = vpop.trf.xlu0 }
 0x115   :  { %v8549_v8 = vpop.trf.xlu1 }
 0x117   :  { %v604_v9 = vpop.trf.xlu0 }
 0x118   :  { %6719 = vmatmul.msk.bf16.gmra.mxu1 %vm288_vm4, %v604_v9 }
 0x11d   :  { %v8558_v12 = vpop.trf.xlu1 }
 0x11f   :  { %v8561_v13 = vpop.trf.xlu0 }
 0x125   :  { %v8568_v16 = vpop.trf.xlu1 }
 0x127   :  { %v606_v17 = vpop.trf.xlu0 }
 0x128   :  { %6720 = vmatmul.msk.bf16.gmra.mxu1 %vm288_vm4, %v606_v17 }
 0x12d   :  { %v8577_v20 = vpop.trf.xlu1 }
 0x12f   :  { %v8580_v21 = vpop.trf.xlu0 }
 0x135   :  { %v8582_v22 = vpop.trf.xlu1 }
 0x137   :  { %v608_v23 = vpop.trf.xlu0 }
 0x138   :  { %6721 = vmatmul.msk.bf16.gmra.mxu1 %vm288_vm4, %v608_v23 }
 0x13d   :  { %v8585_v24 = vpop.trf.xlu1 }
 0x13f   :  { %v8587_v25 = vpop.trf.xlu0 }
 0x145   :  { %v8589_v26 = vpop.trf.xlu1  ;;  %v739_v27 = vpop.f32.mrf.mxu1 }
 0x147   :  { %v242_v28 = vpop.trf.xlu0 }
 0x148   :  { %6682 = vmatmul.msk.bf16.vlgmr.msra.gmra.mxu0 %vm288_vm4, %v242_v28  ;;  %6722 = vmatmul.msk.bf16.gmra.mxu1 %vm288_vm4, %v595_v53 }
 0x14d   :  { %v8593_v31 = vpop.trf.xlu1  ;;  %v741_v32 = vpop.f32.mrf.mxu1 }
 0x14e   :  { %v899_v33 = vpack.c.bf16 %v741_v32, %v739_v27 }
 0x14f   :  { %v8595_v34 = vpop.trf.xlu0 }
 0x150   :  { %1019 = vmatmul.bf16.vlgmr.msra.gmra.mxu2 %v899_v33 }
 0x155   :  { %v8597_v37 = vpop.trf.xlu1  ;;  %v744_v38 = vpop.f32.mrf.mxu1 }
 0x157   :  { %v244_v39 = vpop.trf.xlu0 }
 0x158   :  { %6683 = vmatmul.msk.bf16.gmra.mxu0 %vm288_vm4, %v244_v39  ;;  %6723 = vmatmul.msk.bf16.gmra.mxu1 %vm288_vm4, %v597_v57 }
 0x15d   :  { %v8601_v40 = vpop.trf.xlu1  ;;  %v746_v41 = vpop.f32.mrf.mxu1 }
 0x15e   :  { %v900_v42 = vpack.c.bf16 %v746_v41, %v744_v38 }
 0x15f   :  { %v8603_v43 = vpop.trf.xlu0 }
 0x160   :  { %1024 = vmatmul.bf16.gmra.mxu2 %v900_v42 }
 0x165   :  { %v8605_v44 = vpop.trf.xlu1  ;;  %v749_v45 = vpop.f32.mrf.mxu1 }
 0x167   :  { %v246_v46 = vpop.trf.xlu0 }
 0x168   :  { %6684 = vmatmul.msk.bf16.gmra.mxu0 %vm288_vm4, %v246_v46  ;;  %6724 = vmatmul.msk.bf16.gmra.mxu1 %vm288_vm4, %v8528_v61 }
 0x16d   :  { %v8610_v47 = vpop.trf.xlu1  ;;  %v751_v48 = vpop.f32.mrf.mxu1 }
 0x16e   :  { %v901_v49 = vpack.c.bf16 %v751_v48, %v749_v45 }
 0x16f   :  { %v8612_v51 = vpop.trf.xlu0 }
 0x170   :  { %1029 = vmatmul.bf16.gmra.mxu2 %v901_v49 }
 0x175   :  { %v8614_v53 = vpop.trf.xlu1  ;;  %v754_v55 = vpop.f32.mrf.mxu1 }
 0x177   :  { %v248_v57 = vpop.trf.xlu0 }
 0x178   :  { %6685 = vmatmul.msk.bf16.gmra.mxu0 %vm288_vm4, %v248_v57  ;;  %6725 = vmatmul.msk.bf16.gmra.mxu1 %vm288_vm4, %v8535_v1 }
 0x17d   :  { %v273_v59 = vpop.trf.xlu1  ;;  %v756_v63 = vpop.f32.mrf.mxu1 }
 0x17e   :  { %6709 = vmatmul.msk.bf16.vlgmr.msra.gmra.mxu3 %vm288_vm4, %v273_v59  ;;  %v902_v61 = vpack.c.bf16 %v756_v63, %v754_v55 }
 0x17f   :  { %7465 = vmatpush.bf16.msra.mxu3 %v8544_v6  ;;  %v8621_v3 = vpop.trf.xlu0 }
 0x180   :  { %1034 = vmatmul.bf16.gmra.mxu2 %v902_v61 }
 0x183   :  { %7466 = vmatpush.bf16.msra.mxu3 %v8547_v7 }
 0x185   :  { %v8624_v9 = vpop.trf.xlu1  ;;  %v759_v17 = vpop.f32.mrf.mxu1 }
 0x187   :  { %7467 = vmatpush.bf16.msra.mxu3 %v8552_v10  ;;  %v250_v23 = vpop.trf.xlu0 }
 0x188   :  { %6686 = vmatmul.msk.bf16.gmra.mxu0 %vm288_vm4, %v250_v23  ;;  %6726 = vmatmul.msk.bf16.gmra.mxu1 %vm288_vm4, %v8542_v5 }
 0x18b   :  { %7468 = vmatpush.bf16.msra.mxu3 %v8556_v11 }
 0x18d   :  { %v275_v1 = vpop.trf.xlu1  ;;  %v761_v6 = vpop.f32.mrf.mxu1 }
 0x18e   :  { %6710 = vmatmul.msk.bf16.gmra.mxu3 %vm288_vm4, %v275_v1  ;;  %v903_v27 = vpack.c.bf16 %v761_v6, %v759_v17 }
 0x18f   :  { %7469 = vmatpush.bf16.msra.mxu3 %v8563_v14  ;;  %v8633_v7 = vpop.trf.xlu0 }
 0x190   :  { %1039 = vmatmul.bf16.gmra.mxu2 %v903_v27 }
 0x193   :  { %7470 = vmatpush.bf16.msra.mxu3 %v8566_v15 }
 0x195   :  { %v8636_v10 = vpop.trf.xlu1  ;;  %v764_v28 = vpop.f32.mrf.mxu1 }
 0x197   :  { %7471 = vmatpush.bf16.msra.mxu3 %v8571_v18  ;;  %v252_v5 = vpop.trf.xlu0 }
 0x198   :  { %6687 = vmatmul.msk.bf16.gmra.mxu0 %vm288_vm4, %v252_v5  ;;  %6727 = vmatmul.msk.bf16.gmra.mxu1 %vm288_vm4, %v8561_v13 }
 0x19b   :  { %7472 = vmatpush.bf16.msra.mxu3 %v8575_v19 }
 0x19d   :  { %v277_v11 = vpop.trf.xlu1  ;;  %v766_v14 = vpop.f32.mrf.mxu1 }
 0x19e   :  { %6711 = vmatmul.msk.bf16.gmra.mxu3 %vm288_vm4, %v277_v11  ;;  %v904_v32 = vpack.c.bf16 %v766_v14, %v764_v28 }
 0x19f   :  { %v8644_v33 = vpop.trf.xlu0 }
 0x1a0   :  { %1044 = vmatmul.bf16.gmra.mxu2 %v904_v32 }
 0x1a5   :  { %v8646_v15 = vpop.trf.xlu1  ;;  %v769_v38 = vpop.f32.mrf.mxu1 }
 0x1a7   :  { %v254_v18 = vpop.trf.xlu0 }
 0x1a8   :  { %6688 = vmatmul.msk.bf16.gmra.mxu0 %vm288_vm4, %v254_v18  ;;  %6728 = vmatmul.msk.bf16.gmra.mxu1 %vm288_vm4, %v8580_v21 }
 0x1ad   :  { %v279_v13 = vpop.trf.xlu1  ;;  %v771_v39 = vpop.f32.mrf.mxu1 }
 0x1ae   :  { %6712 = vmatmul.msk.bf16.gmra.mxu3 %vm288_vm4, %v279_v13  ;;  %v905_v19 = vpack.c.bf16 %v771_v39, %v769_v38 }
 0x1af   :  { %v8652_v41 = vpop.trf.xlu0 }
 0x1b0   :  { %1049 = vmatmul.bf16.gmra.mxu2 %v905_v19 }
 0x1b5   :  { %v8654_v42 = vpop.trf.xlu1  ;;  %v774_v45 = vpop.f32.mrf.mxu1 }
 0x1b7   :  { %v256_v46 = vpop.trf.xlu0 }
 0x1b8   :  { %6689 = vmatmul.msk.bf16.gmra.mxu0 %vm288_vm4, %v256_v46  ;;  %6729 = vmatmul.msk.bf16.gmra.mxu1 %vm288_vm4, %v8587_v25 }
 0x1bd   :  { %v281_v48 = vpop.trf.xlu1  ;;  %v776_v49 = vpop.f32.mrf.mxu1 }
 0x1be   :  { %6713 = vmatmul.msk.bf16.gmra.mxu3 %vm288_vm4, %v281_v48  ;;  %v906_v21 = vpack.c.bf16 %v776_v49, %v774_v45 }
 0x1c0   :  { %1054 = vmatmul.bf16.gmra.mxu2 %v906_v21 }
 0x1c5   :  { %v8660_v55 = vpop.f32.mrf.mxu0  ;;  %v779_v57 = vpop.f32.mrf.mxu1 }
 0x1c8   :  { %6690 = vmatmul.msk.bf16.gmra.mxu0 %vm288_vm4, %v8595_v34  ;;  %6730 = vmatmul.msk.bf16.gmra.mxu1 %vm288_vm4, %v8513_v50 }
 0x1cd   :  { %v8666_v59 = vpop.f32.mrf.mxu0  ;;  %v781_v63 = vpop.f32.mrf.mxu1 }
 0x1ce   :  { %6741 = vmatmul.msk.bf16.vlgmr.msrb.gmra.mxu3 %vm288_vm4, %v8533_v0  ;;  %v907_v61 = vpack.c.bf16 %v781_v63, %v779_v57 }
 0x1d0   :  { %1059 = vmatmul.bf16.gmra.mxu2 %v907_v61 }
 0x1d3   :  { %v8674_v1 = vpop.f32.mrf.mxu2 }
 0x1d5   :  { %v8672_v17 = vpop.f32.mrf.mxu0  ;;  %v784_v23 = vpop.f32.mrf.mxu1 }
 0x1d8   :  { %6691 = vmatmul.msk.bf16.gmra.mxu0 %vm288_vm4, %v8603_v43  ;;  %6731 = vmatmul.msk.bf16.gmra.mxu1 %vm288_vm4, %v8518_v54 }
 0x1db   :  { %v8686_v27 = vpop.f32.mrf.mxu2 }
 0x1dd   :  { %v8680_v50 = vpop.f32.mrf.mxu0  ;;  %v786_v34 = vpop.f32.mrf.mxu1 }
 0x1de   :  { %6742 = vmatmul.msk.bf16.gmra.mxu3 %vm288_vm4, %v8540_v4  ;;  %v908_v6 = vpack.c.bf16 %v786_v34, %v784_v23 }
 0x1e0   :  { %1064 = vmatmul.bf16.gmra.mxu2 %v908_v6 }
 0x1e3   :  { %v8694_v54 = vpop.f32.mrf.mxu2 }
 0x1e5   :  { %v8688_v28 = vpop.f32.mrf.mxu0  ;;  %v789_v5 = vpop.f32.mrf.mxu1 }
 0x1e8   :  { %6692 = vmatmul.msk.bf16.gmra.mxu0 %vm288_vm4, %v8612_v51  ;;  %6732 = vmatmul.msk.bf16.gmra.mxu1 %vm288_vm4, %v8523_v58 }
 0x1eb   :  { %v8702_v32 = vpop.f32.mrf.mxu2 }
 0x1ed   :  { %v8696_v43 = vpop.f32.mrf.mxu0  ;;  %v791_v4 = vpop.f32.mrf.mxu1 }
 0x1ee   :  { %6743 = vmatmul.msk.bf16.gmra.mxu3 %vm288_vm4, %v8558_v12  ;;  %v909_v14 = vpack.c.bf16 %v791_v4, %v789_v5 }
 0x1f0   :  { %1069 = vmatmul.bf16.gmra.mxu2 %v909_v14 }
 0x1f3   :  { %v8714_v12 = vpop.f32.mrf.mxu2 }
 0x1f5   :  { %v8704_v38 = vpop.f32.mrf.mxu0  ;;  %v794_v51 = vpop.f32.mrf.mxu1 }
 0x1f8   :  { %6693 = vmatmul.msk.bf16.gmra.mxu0 %vm288_vm4, %v8621_v3  ;;  %6733 = vmatmul.msk.bf16.gmra.mxu1 %vm288_vm4, %v8530_v62 }
 0x1fb   :  { %v8720_v3 = vpop.f32.mrf.mxu2 }
 0x1fd   :  { %v8710_v58 = vpop.f32.mrf.mxu0  ;;  %v796_v18 = vpop.f32.mrf.mxu1 }
 0x1fe   :  { %6744 = vmatmul.msk.bf16.gmra.mxu3 %vm288_vm4, %v8577_v20  ;;  %v910_v39 = vpack.c.bf16 %v796_v18, %v794_v51  ;;  %v257_v18 = vpop.trf.xlu0 }
 0x200   :  { %1074 = vmatmul.bf16.gmra.mxu2 %v910_v39 }
 0x203   :  { %v8732_v49 = vpop.f32.mrf.mxu2 }
 0x205   :  { %v8718_v19 = vpop.f32.mrf.mxu0  ;;  %v799_v45 = vpop.f32.mrf.mxu1 }
 0x208   :  { %6694 = vmatmul.msk.bf16.gmra.mxu0 %vm288_vm4, %v8633_v7  ;;  %6734 = vmatmul.msk.bf16.gmra.mxu1 %vm288_vm4, %v8537_v2  ;;  %v7287_v2 = vld [vmem:[%s15063_s6] sm:$0xff] }
 0x209   :  { %1732 = vmatpush.bf16.msrb.mxu0 %v7287_v2 }
 0x20d   :  { %v8726_v62 = vpop.f32.mrf.mxu0  ;;  %v801_v20 = vpop.f32.mrf.mxu1 }
 0x20e   :  { %6745 = vmatmul.msk.bf16.gmra.mxu3 %vm288_vm4, %v8585_v24  ;;  %v911_v48 = vpack.c.bf16 %v801_v20, %v799_v45  ;;  %v8743_v24 = vpop.f32.mrf.mxu2 }
 0x210   :  { %1079 = vmatmul.bf16.gmra.mxu2 %v911_v48 }
 0x215   :  { %v8734_v21 = vpop.f32.mrf.mxu0  ;;  %v804_v57 = vpop.f32.mrf.mxu1 }
 0x216   :  { %v8751_v6 = vpop.f32.mrf.mxu2 }
 0x218   :  { %6695 = vmatmul.msk.bf16.gmra.mxu0 %vm288_vm4, %v8644_v33  ;;  %6735 = vmatmul.msk.bf16.gmra.mxu1 %vm288_vm4, %v8549_v8 }
 0x21d   :  { %v8745_v7 = vpop.f32.mrf.mxu0  ;;  %v806_v63 = vpop.f32.mrf.mxu1 }
 0x21e   :  { %v912_v23 = vpack.c.bf16 %v806_v63, %v804_v57  ;;  %v8761_v51 = vpop.f32.mrf.mxu2 }
 0x220   :  { %1084 = vmatmul.bf16.gmra.mxu2 %v912_v23 }
 0x225   :  { %v8749_v34 = vpop.f32.mrf.mxu0  ;;  %v809_v33 = vpop.f32.mrf.mxu1 }
 0x228   :  { %6696 = vmatmul.msk.bf16.gmra.mxu0 %vm288_vm4, %v8652_v41  ;;  %6736 = vmatmul.msk.bf16.gmra.mxu1 %vm288_vm4, %v8568_v16  ;;  %v8768_v16 = vpop.f32.mrf.mxu2 }
 0x22d   :  { %v8757_v8 = vpop.f32.mrf.mxu0  ;;  %v811_v5 = vpop.f32.mrf.mxu1 }
 0x22e   :  { %v913_v14 = vpack.c.bf16 %v811_v5, %v809_v33 }
 0x230   :  { %1089 = vmatmul.bf16.gmra.mxu2 %v913_v14  ;;  %v8774_v2 = vpop.f32.mrf.mxu2 }
 0x235   :  { %v8763_v39 = vpop.f32.mrf.mxu0  ;;  %v814_v45 = vpop.f32.mrf.mxu1 }
 0x238   :  { %6697 = vmatmul.msk.bf16.gmra.mxu0 %vm288_vm4, %v257_v18  ;;  %6737 = vmatmul.msk.bf16.gmra.mxu1 %vm288_vm4, %v8582_v22  ;;  %v8784_v5 = vpop.f32.mrf.mxu2 }
 0x23d   :  { %v8770_v41 = vpop.f32.mrf.mxu0  ;;  %v816_v20 = vpop.f32.mrf.mxu1 }
 0x23e   :  { %v914_v57 = vpack.c.bf16 %v816_v20, %v814_v45 }
 0x240   :  { %1094 = vmatmul.bf16.gmra.mxu2 %v914_v57  ;;  %v8790_v57 = vpop.f32.mrf.mxu2 }
 0x245   :  { %v8776_v63 = vpop.f32.mrf.mxu0  ;;  %v819_v23 = vpop.f32.mrf.mxu1 }
 0x248   :  { %6698 = vmatmul.msk.bf16.gmra.mxu0 %vm288_vm4, %v8589_v26  ;;  %6738 = vmatmul.msk.bf16.gmra.mxu1 %vm288_vm4, %v8516_v52 }
 0x24d   :  { %v8782_v22 = vpop.f32.mrf.mxu0  ;;  %v821_v33 = vpop.f32.mrf.mxu1 }
 0x24e   :  { %v915_v18 = vpack.c.bf16 %v821_v33, %v819_v23  ;;  %v8800_v23 = vpop.f32.mrf.mxu2 }
 0x250   :  { %1099 = vmatmul.bf16.gmra.mxu2 %v915_v18 }
 0x255   :  { %v8788_v45 = vpop.f32.mrf.mxu0  ;;  %v824_v20 = vpop.f32.mrf.mxu1 }
 0x258   :  { %6699 = vmatmul.msk.bf16.gmra.mxu0 %vm288_vm4, %v8597_v37  ;;  %6739 = vmatmul.msk.bf16.gmra.mxu1 %vm288_vm4, %v8521_v56  ;;  %v8808_v56 = vpop.f32.mrf.mxu2 }
 0x259   :  { %15272 = vst [vmem:[#allocation16_spill] sm:$0xff] %v8808_v56 }
 0x25d   :  { %v8796_v52 = vpop.f32.mrf.mxu0  ;;  %v826_v26 = vpop.f32.mrf.mxu1 }
 0x25e   :  { %v916_v14 = vpack.c.bf16 %v826_v26, %v824_v20 }
 0x260   :  { %1104 = vmatmul.bf16.gmra.mxu2 %v916_v14  ;;  %v8816_v61 = vpop.f32.mrf.mxu2 }
 0x261   :  { %15273 = vst [vmem:[#allocation17_spill] sm:$0xff] %v8816_v61 }
 0x265   :  { %v8802_v33 = vpop.f32.mrf.mxu0  ;;  %v829_v18 = vpop.f32.mrf.mxu1 }
 0x268   :  { %6700 = vmatmul.msk.bf16.gmra.mxu0 %vm288_vm4, %v8605_v44  ;;  %6740 = vmatmul.msk.bf16.gmra.mxu1 %vm288_vm4, %v8526_v60  ;;  %v8820_v44 = vpop.f32.mrf.mxu3  ;;  %v8826_v20 = vpop.f32.mrf.mxu2 }
 0x269   :  { %15274 = vst [vmem:[#allocation18_spill] sm:$0xff] %v8820_v44 }
 0x26a   :  { %15275 = vst [vmem:[#allocation19_spill] sm:$0xff] %v8826_v20 }
 0x26d   :  { %v8810_v37 = vpop.f32.mrf.mxu0  ;;  %v831_v4 = vpop.f32.mrf.mxu1 }
 0x26e   :  { %v917_v14 = vpack.c.bf16 %v831_v4, %v829_v18 }
 0x270   :  { %1109 = vmatmul.bf16.gmra.mxu2 %v917_v14  ;;  %v8830_v14 = vpop.f32.mrf.mxu3 }
 0x271   :  { %15276 = vst [vmem:[#allocation20_spill] sm:$0xff] %v8830_v14 }
 0x275   :  { %v8814_v26 = vpop.f32.mrf.mxu0  ;;  %v834_v48 = vpop.f32.mrf.mxu1 }
 0x278   :  { %6701 = vmatmul.msk.bf16.gmra.mxu0 %vm288_vm4, %v8614_v53  ;;  %v8834_v53 = vpop.f32.mrf.mxu2 }
 0x279   :  { %15277 = vst [vmem:[#allocation21_spill] sm:$0xff] %v8834_v53 }
 0x27d   :  { %v8822_v60 = vpop.f32.mrf.mxu0  ;;  %v836_v46 = vpop.f32.mrf.mxu1 }
 0x27e   :  { %v918_v11 = vpack.c.bf16 %v836_v46, %v834_v48  ;;  %v8840_v48 = vpop.f32.mrf.mxu3 }
 0x27f   :  { %15278 = vst [vmem:[#allocation22_spill] sm:$0xff] %v8840_v48 }
 0x280   :  { %1114 = vmatmul.bf16.gmra.mxu2 %v918_v11  ;;  %v8842_v11 = vpop.f32.mrf.mxu2 }
 0x281   :  { %15279 = vst [vmem:[#allocation23_spill] sm:$0xff] %v8842_v11 }
 0x285   :  { %v8828_v4 = vpop.f32.mrf.mxu0  ;;  %v839_v18 = vpop.f32.mrf.mxu1 }
 0x288   :  { %6702 = vmatmul.msk.bf16.gmra.mxu0 %vm288_vm4, %v8624_v9  ;;  %v8848_v9 = vpop.f32.mrf.mxu3  ;;  %v8852_v14 = vpop.f32.mrf.mxu2 }
 0x289   :  { %15280 = vst [vmem:[#allocation24_spill] sm:$0xff] %v8848_v9 }
 0x28a   :  { %15281 = vst [vmem:[#allocation25_spill] sm:$0xff] %v8852_v14 }
 0x28d   :  { %v8836_v0 = vpop.f32.mrf.mxu0  ;;  %v841_v25 = vpop.f32.mrf.mxu1 }
 0x28e   :  { %v919_v46 = vpack.c.bf16 %v841_v25, %v839_v18 }
 0x290   :  { %1119 = vmatmul.bf16.gmra.mxu2 %v919_v46  ;;  %v8856_v46 = vpop.f32.mrf.mxu3  ;;  %v8860_v44 = vpop.f32.mrf.mxu2 }
 0x291   :  { %15282 = vst [vmem:[#allocation26_spill] sm:$0xff] %v8856_v46 }
 0x292   :  { %15283 = vst [vmem:[#allocation27_spill] sm:$0xff] %v8860_v44 }
 0x295   :  { %v8844_v30 = vpop.f32.mrf.mxu0  ;;  %v844_v29 = vpop.f32.mrf.mxu1 }
 0x298   :  { %6703 = vmatmul.msk.bf16.gmra.mxu0 %vm288_vm4, %v8636_v10  ;;  %v8868_v25 = vpop.f32.mrf.mxu3 }
 0x299   :  { %15284 = vst [vmem:[#allocation28_spill] sm:$0xff] %v8868_v25 }
 0x29d   :  { %v8850_v36 = vpop.f32.mrf.mxu0  ;;  %v846_v35 = vpop.f32.mrf.mxu1 }
 0x29e   :  { %v920_v18 = vpack.c.bf16 %v846_v35, %v844_v29  ;;  %v8870_v29 = vpop.f32.mrf.mxu2 }
 0x29f   :  { %15285 = vst [vmem:[#allocation29_spill] sm:$0xff] %v8870_v29 }
 0x2a0   :  { %1124 = vmatmul.bf16.gmra.mxu2 %v920_v18  ;;  %v8874_v18 = vpop.f32.mrf.mxu3 }
 0x2a1   :  { %15286 = vst [vmem:[#allocation30_spill] sm:$0xff] %v8874_v18 }
 0x2a5   :  { %v8858_v13 = vpop.f32.mrf.mxu0  ;;  %v849_v48 = vpop.f32.mrf.mxu1 }
 0x2a6   :  { %v8876_v46 = vpop.f32.mrf.mxu2 }
 0x2a7   :  { %15287 = vst [vmem:[#allocation31_spill] sm:$0xff] %v8876_v46 }
 0x2a8   :  { %6704 = vmatmul.msk.bf16.gmra.mxu0 %vm288_vm4, %v8646_v15  ;;  %v8880_v14 = vpop.f32.mrf.mxu3 }
 0x2a9   :  { %15288 = vst [vmem:[#allocation32_spill] sm:$0xff] %v8880_v14 }
 0x2ad   :  { %v8864_v10 = vpop.f32.mrf.mxu0  ;;  %v851_v9 = vpop.f32.mrf.mxu1 }
 0x2ae   :  { %v921_v11 = vpack.c.bf16 %v851_v9, %v849_v48  ;;  %v7096_v9 = vld [vmem:[#allocation7 + $0x70] sm:$0xf]  ;;  %v8882_v25 = vpop.f32.mrf.mxu2 }
 0x2af   :  { %15289 = vst [vmem:[#allocation33_spill] sm:$0xff] %v8882_v25  ;;  %v7098_v25 = vld [vmem:[#allocation7 + $0x78] sm:$0xf0] }
 0x2b0   :  { %1129 = vmatmul.bf16.gmra.mxu2 %v921_v11  ;;  %v7303_v11 = vld [vmem:[#allocation7 + $0x74] sm:$0xf0]  ;;  %v8888_v18 = vpop.f32.mrf.mxu3 }
 0x2b1   :  { %v7097_v29 = vor.u32 %v7303_v11, %v7096_v9  ;;  %15290 = vst [vmem:[#allocation34_spill] sm:$0xff] %v8888_v18  ;;  %v7302_v18 = vld [vmem:[#allocation7 + $0x74] sm:$0xf] }
 0x2b3   :  { %3440 = vmatpush.bf16.msrb.mxu1 %v7097_v29 }
 0x2b5   :  { %v854_v35 = vpop.f32.mrf.mxu1  ;;  %v8878_v53 = vpop.f32.mrf.mxu0 }
 0x2b6   :  { %v8890_v46 = vpop.f32.mrf.mxu2 }
 0x2b7   :  { %15291 = vst [vmem:[#allocation35_spill] sm:$0xff] %v8890_v46 }
 0x2b8   :  { %6705 = vmatmul.msk.bf16.gmra.mxu0 %vm288_vm4, %v8654_v42  ;;  %v8894_v20 = vpop.f32.mrf.mxu3 }
 0x2b9   :  { %15293 = vst [vmem:[#allocation37_spill] sm:$0xff] %v8894_v20 }
 0x2bd   :  { %v856_v15 = vpop.f32.mrf.mxu1  ;;  %v8886_v42 = vpop.f32.mrf.mxu0 }
 0x2be   :  { %v922_v44 = vpack.c.bf16 %v856_v15, %v854_v35 }
 0x2c0   :  { %1134 = vmatmul.bf16.gmra.mxu2 %v922_v44  ;;  %v874_v11 = vpop.f32.mrf.mxu3 }
 0x2c5   :  { %v859_v48 = vpop.f32.mrf.mxu1  ;;  %v8892_v44 = vpop.f32.mrf.mxu0 }
 0x2c6   :  { %15292 = vst [vmem:[#allocation36_spill] sm:$0xff] %v8892_v44  ;;  %v7301_v44 = vld [vmem:[#allocation7 + $0x64] sm:$0xf0] }
 0x2c8   :  { %6706 = vmatmul.msk.bf16.gmra.mxu0 %vm288_vm4, %v8593_v31  ;;  %v876_v20 = vpop.f32.mrf.mxu3 }
 0x2cd   :  { %v861_v35 = vpop.f32.mrf.mxu1  ;;  %v8898_v9 = vpop.f32.mrf.mxu0 }
 0x2ce   :  { %v923_v15 = vpack.c.bf16 %v861_v35, %v859_v48  ;;  %15294 = vst [vmem:[#allocation38_spill] sm:$0xff] %v8898_v9  ;;  %v7101_v48 = vor.u32 %v7302_v18, %v7098_v25 }
 0x2d0   :  { %1139 = vmatmul.bf16.gmra.mxu2 %v923_v15  ;;  %v879_v9 = vpop.f32.mrf.mxu3 }
 0x2d1   :  { %3609 = vmatpush.bf16.msrb.mxu2 %v7101_v48 }
 0x2d5   :  { %v864_v14 = vpop.f32.mrf.mxu1  ;;  %v8900_v15 = vpop.f32.mrf.mxu0 }
 0x2d6   :  { %15295 = vst [vmem:[#allocation39_spill] sm:$0xff] %v8900_v15 }
 0x2d8   :  { %6707 = vmatmul.msk.bf16.gmra.mxu0 %vm288_vm4, %v8601_v40  ;;  %v881_v25 = vpop.f32.mrf.mxu3 }
 0x2dd   :  { %v866_v31 = vpop.f32.mrf.mxu1  ;;  %v8904_v40 = vpop.f32.mrf.mxu0 }
 0x2de   :  { %v924_v29 = vpack.c.bf16 %v866_v31, %v864_v14  ;;  %15296 = vst [vmem:[#allocation40_spill] sm:$0xff] %v8904_v40  ;;  %v926_v31 = vpack.c.bf16 %v876_v20, %v874_v11  ;;  %v7090_v20 = vld [vmem:[#allocation7 + $0x68] sm:$0xf0] }
 0x2df   :  { %v7244_v11 = vld [vmem:[#allocation2 + $0x28] sm:$0xff] }
 0x2e0   :  { %1144 = vmatmul.bf16.vlgmr.msra.gmra.mxu3 %v924_v29  ;;  %v7088_v29 = vld [vmem:[#allocation7 + $0x60] sm:$0xf]  ;;  %v884_v15 = vpop.f32.mrf.mxu3 }
 0x2e1   :  { %v7089_v18 = vor.u32 %v7301_v44, %v7088_v29 }
 0x2e3   :  { %3441 = vmatpush.bf16.msrb.mxu1 %v7089_v18 }
 0x2e5   :  { %v869_v35 = vpop.f32.mrf.mxu1  ;;  %v8906_v14 = vpop.f32.mrf.mxu0 }
 0x2e6   :  { %15297 = vst [vmem:[#allocation41_spill] sm:$0xff] %v8906_v14  ;;  %v7300_v14 = vld [vmem:[#allocation7 + $0x64] sm:$0xf] }
 0x2e7   :  { %v7093_v40 = vor.u32 %v7300_v14, %v7090_v20  ;;  %v7255_v20 = vld [vmem:[%s15059_s2] sm:$0xff] }
 0x2e8   :  { %6708 = vmatmul.msk.bf16.gmra.mxu0 %vm288_vm4, %v8610_v47  ;;  %v927_v47 = vpack.c.bf16 %v881_v25, %v879_v9  ;;  %v7242_v25 = vld [vmem:[#allocation2 + $0x18] sm:$0xff] }
 0x2e9   :  { %3610 = vmatpush.bf16.msrb.mxu2 %v7093_v40 }
 0x2ed   :  { %v871_v46 = vpop.f32.mrf.mxu1  ;;  %v8908_v48 = vpop.f32.mrf.mxu0 }
 0x2ee   :  { %v925_v61 = vpack.c.bf16 %v871_v46, %v869_v35  ;;  %v7246_v46 = vld [vmem:[#allocation2 + $0x38] sm:$0xff]  ;;  %v7245_v35 = vld [vmem:[#allocation2 + $0x30] sm:$0xff] }
 0x2ef   :  { %1228 = vmatpush.bf16.msrb.mxu3 %v7246_v46  ;;  %v7240_v46 = vld [vmem:[#allocation2 + $0x8] sm:$0xff] }
 0x2f0   :  { %1149 = vmatmul.bf16.gmra.mxu3 %v925_v61  ;;  %v886_v61 = vpop.f32.mrf.mxu3 }
 0x2f1   :  { %v928_v9 = vpack.c.bf16 %v886_v61, %v884_v15  ;;  %v7080_v61 = vld [vmem:[#allocation7 + $0x50] sm:$0xf] }
 0x2f3   :  { %1229 = vmatpush.bf16.msrb.mxu3 %v7245_v35 }
 0x2f5   :  { %v8910_v56 = vpop.f32.mrf.mxu0 }
 0x2f6   :  { %15298 = vst [vmem:[#allocation42_spill] sm:$0xff] %v8910_v56  ;;  %v7239_v56 = vld [vmem:[#allocation2] sm:$0xff] }
 0x2f7   :  { %1230 = vmatpush.bf16.msrb.mxu3 %v7244_v11  ;;  %v7299_v11 = vld [vmem:[#allocation7 + $0x54] sm:$0xf0] }
 0x2f8   :  { %v889_v29 = vpop.f32.mrf.mxu3  ;;  %6942 = vmatmul.msk.bf16.vlgmr.msrb.gmra.mxu0 %vm288_vm4, %v7255_v20 }
 0x2fd   :  { %v8912_v44 = vpop.f32.mrf.mxu0 }
 0x300   :  { %1154 = vmatmul.bf16.gmra.mxu3 %v926_v31  ;;  %v7243_v31 = vld [vmem:[#allocation2 + $0x20] sm:$0xff]  ;;  %v891_v35 = vpop.f32.mrf.mxu3 }
 0x301   :  { %1231 = vmatpush.bf16.msrb.mxu3 %v7243_v31  ;;  %v929_v40 = vpack.c.bf16 %v891_v35, %v889_v29  ;;  %v7081_v31 = vor.u32 %v7299_v11, %v7080_v61  ;;  %v7082_v35 = vld [vmem:[#allocation7 + $0x58] sm:$0xf0]  ;;  %v7257_v61 = vld [vmem:[%s15059_s2 + $0x10] sm:$0xff] }
 0x303   :  { %3442 = vmatpush.bf16.msrb.mxu1 %v7081_v31  ;;  %v7258_v31 = vld [vmem:[%s15059_s2 + $0x18] sm:$0xff] }
 0x305   :  { %1232 = vmatpush.bf16.msrb.mxu3 %v7242_v25  ;;  %v8914_v18 = vpop.f32.mrf.mxu0 }
 0x308   :  { %v894_v15 = vpop.f32.mrf.mxu3 }
 0x30d   :  { %v8916_v14 = vpop.f32.mrf.mxu0 }
 0x310   :  { %1159 = vmatmul.bf16.gmra.mxu3 %v927_v47  ;;  %v7241_v47 = vld [vmem:[#allocation2 + $0x10] sm:$0xff]  ;;  %v896_v25 = vpop.f32.mrf.mxu3 }
 0x311   :  { %1233 = vmatpush.bf16.msrb.mxu3 %v7241_v47  ;;  %v930_v47 = vpack.c.bf16 %v896_v25, %v894_v15  ;;  %v15299_v15 = vpack.c.bf16 %v8666_v59, %v8660_v55  ;;  %v7072_v55 = vld [vmem:[#allocation7 + $0x40] sm:$0xf]  ;;  %v7297_v59 = vld [vmem:[#allocation7 + $0x44] sm:$0xf0] }
 0x315   :  { %1234 = vmatpush.bf16.msrb.mxu3 %v7240_v46  ;;  %v7298_v46 = vld [vmem:[#allocation7 + $0x54] sm:$0xf] }
 0x319   :  { %1235 = vmatpush.bf16.msrb.mxu3 %v7239_v56  ;;  %v7256_v56 = vld [vmem:[%s15059_s2 + $0x8] sm:$0xff] }
 0x31a   :  { %6943 = vmatmul.msk.bf16.gmra.mxu0 %vm288_vm4, %v7256_v56 }
 0x320   :  { %1164 = vmatmul.bf16.gmra.mxu3 %v928_v9  ;;  %v8922_v9 = vpop.f32.mrf.mxu0 }
 0x328   :  { %v8928_v29 = vpop.f32.mrf.mxu0 }
 0x32a   :  { %6944 = vmatmul.msk.bf16.gmra.mxu0 %vm288_vm4, %v7257_v61  ;;  %v7259_v61 = vld [vmem:[%s15059_s2 + $0x20] sm:$0xff] }
 0x330   :  { %1169 = vmatmul.bf16.gmra.mxu3 %v929_v40  ;;  %v7085_v40 = vor.u32 %v7298_v46, %v7082_v35  ;;  %v8930_v20 = vpop.f32.mrf.mxu0  ;;  %v7073_v46 = vor.u32 %v7297_v59, %v7072_v55 }
 0x332   :  { %3611 = vmatpush.bf16.msrb.mxu2 %v7085_v40  ;;  %3443 = vmatpush.bf16.msrb.mxu1 %v7073_v46 }
 0x338   :  { %v8939_v11 = vpop.f32.mrf.mxu0 }
 0x33a   :  { %6945 = vmatmul.msk.bf16.gmra.mxu0 %vm288_vm4, %v7258_v31  ;;  %v7296_v31 = vld [vmem:[#allocation7 + $0x44] sm:$0xf] }
 0x340   :  { %1174 = vmatmul.bf16.gmra.mxu3 %v930_v47  ;;  %v8944_v25 = vpop.f32.mrf.mxu0  ;;  %v15300_v47 = vpack.c.bf16 %v8680_v50, %v8672_v17  ;;  %v15303_v17 = vpack.c.bf16 %v8696_v43, %v8688_v28  ;;  %v15308_v28 = vpack.c.bf16 %v8710_v58, %v8704_v38 }
 0x348   :  { %v8952_v35 = vpop.f32.mrf.mxu0 }
 0x34a   :  { %6946 = vmatmul.msk.bf16.gmra.mxu0 %vm288_vm4, %v7259_v61 }
 0x350   :  { %1236 = vmatmul.bf16.vlgmr.msrb.gmra.mxu3 %v15299_v15  ;;  %v8963_v50 = vpop.f32.mrf.mxu0 }
 0x351   :  { %15304 = vst [vmem:[#allocation45_spill] sm:$0xff] %v8963_v50  ;;  %v7042_v50 = vld [vmem:[#allocation7 + $0x8] sm:$0xf0] }
 0x358   :  { %v8969_v46 = vpop.f32.mrf.mxu0 }
 0x359   :  { %15307 = vst [vmem:[#allocation48_spill] sm:$0xff] %v8969_v46  ;;  %v7050_v46 = vld [vmem:[#allocation7 + $0x18] sm:$0xf0] }
 0x360   :  { %1241 = vmatmul.bf16.gmra.mxu3 %v15300_v47  ;;  %v7074_v47 = vld [vmem:[#allocation7 + $0x48] sm:$0xf0]  ;;  %v8980_v61 = vpop.f32.mrf.mxu0 }
 0x361   :  { %v7077_v55 = vor.u32 %v7296_v31, %v7074_v47  ;;  %15310 = vst [vmem:[#allocation50_spill] sm:$0xff] %v8980_v61  ;;  %v7261_v31 = vld [vmem:[%s15059_s2 + $0x30] sm:$0xff]  ;;  %v15312_v47 = vpack.c.bf16 %v8726_v62, %v8718_v19  ;;  %v15317_v19 = vpack.c.bf16 %v8745_v7, %v8734_v21  ;;  %v15321_v21 = vpack.c.bf16 %v8757_v8, %v8749_v34 }
 0x362   :  { %v7290_v61 = vld [vmem:[#allocation7 + $0x14] sm:$0xf] }
 0x363   :  { %v8950_v56 = vpop.f32.mrf.mxu3  ;;  %3612 = vmatpush.bf16.msrb.mxu2 %v7077_v55 }
 0x364   :  { %15301 = vst [vmem:[#allocation43_spill] sm:$0xff] %v8950_v56  ;;  %v7260_v56 = vld [vmem:[%s15059_s2 + $0x28] sm:$0xff] }
 0x365   :  { %6947 = vmatmul.msk.bf16.gmra.mxu0 %vm288_vm4, %v7260_v56 }
 0x368   :  { %v8991_v38 = vpop.f32.mrf.mxu0 }
 0x369   :  { %15313 = vst [vmem:[#allocation52_spill] sm:$0xff] %v8991_v38  ;;  %v7291_v38 = vld [vmem:[#allocation7 + $0x14] sm:$0xf0] }
 0x36b   :  { %v8954_v40 = vpop.f32.mrf.mxu3 }
 0x36c   :  { %15302 = vst [vmem:[#allocation44_spill] sm:$0xff] %v8954_v40 }
 0x370   :  { %1246 = vmatmul.bf16.gmra.mxu3 %v15303_v17  ;;  %v8995_v56 = vpop.f32.mrf.mxu0 }
 0x371   :  { %15315 = vst [vmem:[#allocation54_spill] sm:$0xff] %v8995_v56  ;;  %v7048_v56 = vld [vmem:[#allocation7 + $0x10] sm:$0xf] }
 0x373   :  { %v8965_v15 = vpop.f32.mrf.mxu3 }
 0x374   :  { %15305 = vst [vmem:[#allocation46_spill] sm:$0xff] %v8965_v15  ;;  %v7262_v15 = vld [vmem:[%s15059_s2 + $0x38] sm:$0xff] }
 0x375   :  { %6948 = vmatmul.msk.bf16.gmra.mxu0 %vm288_vm4, %v7261_v31 }
 0x378   :  { %v9008_v31 = vpop.f32.mrf.mxu0 }
 0x379   :  { %15319 = vst [vmem:[#allocation57_spill] sm:$0xff] %v9008_v31 }
 0x37b   :  { %v8967_v59 = vpop.f32.mrf.mxu3 }
 0x37c   :  { %15306 = vst [vmem:[#allocation47_spill] sm:$0xff] %v8967_v59  ;;  %v7058_v59 = vld [vmem:[#allocation7 + $0x28] sm:$0xf0] }
 0x380   :  { %1251 = vmatmul.bf16.gmra.mxu3 %v15308_v28  ;;  %v7064_v28 = vld [vmem:[#allocation7 + $0x30] sm:$0xf] }
 0x383   :  { %v8978_v43 = vpop.f32.mrf.mxu3 }
 0x384   :  { %15309 = vst [vmem:[#allocation49_spill] sm:$0xff] %v8978_v43 }
 0x385   :  { %6949 = vmatmul.msk.bf16.gmra.mxu0 %vm288_vm4, %v7262_v15 }
 0x38b   :  { %v8982_v17 = vpop.f32.mrf.mxu3 }
 0x38c   :  { %15311 = vst [vmem:[#allocation51_spill] sm:$0xff] %v8982_v17  ;;  %v7295_v17 = vld [vmem:[#allocation7 + $0x34] sm:$0xf0] }
 0x38d   :  { %v7065_v43 = vor.u32 %v7295_v17, %v7064_v28  ;;  %v7263_v28 = vld [vmem:[%s15059_s2 + $0x40] sm:$0xff] }
 0x38f   :  { %3444 = vmatpush.bf16.msrb.mxu1 %v7065_v43  ;;  %v1734_v43 = vpop.f32.mrf.mxu0 }
 0x390   :  { %1256 = vmatmul.bf16.gmra.mxu3 %v15312_v47 }
 0x393   :  { %v8993_v58 = vpop.f32.mrf.mxu3 }
 0x394   :  { %15314 = vst [vmem:[#allocation53_spill] sm:$0xff] %v8993_v58  ;;  %v7066_v58 = vld [vmem:[#allocation7 + $0x38] sm:$0xf0] }
 0x395   :  { %6950 = vmatmul.msk.bf16.gmra.mxu0 %vm288_vm4, %v7263_v28 }
 0x397   :  { %v1736_v15 = vpop.f32.mrf.mxu0 }
 0x39b   :  { %v8997_v55 = vpop.f32.mrf.mxu3 }
 0x39c   :  { %15316 = vst [vmem:[#allocation55_spill] sm:$0xff] %v8997_v55  ;;  %v7294_v55 = vld [vmem:[#allocation7 + $0x34] sm:$0xf] }
 0x39d   :  { %v7069_v17 = vor.u32 %v7294_v55, %v7066_v58  ;;  %v7264_v55 = vld [vmem:[%s15059_s2 + $0x48] sm:$0xff] }
 0x39f   :  { %3613 = vmatpush.bf16.msrb.mxu2 %v7069_v17  ;;  %v1739_v58 = vpop.f32.mrf.mxu0  ;;  %v15324_v17 = vpack.c.bf16 %v8770_v41, %v8763_v39  ;;  %v7265_v39 = vld [vmem:[%s15059_s2 + $0x50] sm:$0xff] }
 0x3a0   :  { %1261 = vmatmul.bf16.gmra.mxu3 %v15317_v19 }
 0x3a3   :  { %v9006_v62 = vpop.f32.mrf.mxu3 }
 0x3a4   :  { %15318 = vst [vmem:[#allocation56_spill] sm:$0xff] %v9006_v62 }
 0x3a5   :  { %6951 = vmatmul.msk.bf16.gmra.mxu0 %vm288_vm4, %v7264_v55 }
 0x3a7   :  { %v9036_v28 = vpop.f32.mrf.mxu0 }
 0x3ab   :  { %v9010_v47 = vpop.f32.mrf.mxu3 }
 0x3ac   :  { %15320 = vst [vmem:[#allocation58_spill] sm:$0xff] %v9010_v47  ;;  %v9023_v47 = vpop.f32.mrf.mxu2 }
 0x3af   :  { %v9045_v62 = vpop.f32.mrf.mxu0 }
 0x3b0   :  { %1266 = vmatmul.bf16.gmra.mxu3 %v15321_v21 }
 0x3b3   :  { %v9019_v7 = vpop.f32.mrf.mxu3 }
 0x3b4   :  { %15322 = vst [vmem:[#allocation59_spill] sm:$0xff] %v9019_v7  ;;  %v9034_v8 = vpop.f32.mrf.mxu2  ;;  %v15327_v7 = vpack.c.bf16 %v8782_v22, %v8776_v63  ;;  %v7293_v63 = vld [vmem:[#allocation7 + $0x24] sm:$0xf0]  ;;  %v7292_v22 = vld [vmem:[#allocation7 + $0x24] sm:$0xf] }
 0x3b5   :  { %6952 = vmatmul.msk.bf16.gmra.mxu0 %vm288_vm4, %v7265_v39  ;;  %v7061_v31 = vor.u32 %v7292_v22, %v7058_v59  ;;  %v7289_v22 = vld [vmem:[#allocation7 + $0x4] sm:$0xf0] }
 0x3b7   :  { %3614 = vmatpush.bf16.msrb.mxu2 %v7061_v31 }
 0x3bb   :  { %v9021_v19 = vpop.f32.mrf.mxu3 }
 0x3bc   :  { %15323 = vst [vmem:[#allocation60_spill] sm:$0xff] %v9021_v19  ;;  %v9040_v19 = vpop.f32.mrf.mxu2 }
 0x3c0   :  { %1271 = vmatmul.bf16.gmra.mxu3 %v15324_v17  ;;  %v9055_v17 = vld [vmem:[%s15064_s7] ss:$0 sm:$0xff] }
 0x3c3   :  { %v9032_v34 = vpop.f32.mrf.mxu3 }
 0x3c4   :  { %15325 = vst [vmem:[#allocation61_spill] sm:$0xff] %v9032_v34  ;;  %v7056_v34 = vld [vmem:[#allocation7 + $0x20] sm:$0xf]  ;;  %v9060_v39 = vpop.f32.mrf.mxu2 }
 0x3c5   :  { %15328 = vst [vmem:[#allocation63_spill] sm:$0xff] %v9060_v39 }
 0x3cb   :  { %v9038_v21 = vpop.f32.mrf.mxu3 }
 0x3cc   :  { %15326 = vst [vmem:[#allocation62_spill] sm:$0xff] %v9038_v21 }
 0x3d0   :  { %1276 = vmatmul.bf16.gmra.mxu3 %v15327_v7  ;;  %v7057_v7 = vor.u32 %v7293_v63, %v7056_v34  ;;  %v7040_v63 = vld [vmem:[#allocation7] sm:$0xf] }
 0x3d1   :  { %v7041_v39 = vor.u32 %v7289_v22, %v7040_v63 }
 0x3d2   :  { %3445 = vmatpush.bf16.msrb.mxu1 %v7057_v7  ;;  %v7288_v7 = vld [vmem:[#allocation7 + $0x4] sm:$0xf] }
 0x3d3   :  { %v1237_v41 = vpop.f32.mrf.mxu3 }
 0x3d4   :  { %v1238_v55 = vadd.f32 %v1237_v41, %v8674_v1  ;;  %v9063_v41 = vpop.f32.mrf.mxu0 }
 0x3d6   :  { %v1894_v21 = vadd.f32 %v1734_v43, %v1238_v55  ;;  %v7049_v55 = vor.u32 %v7291_v38, %v7048_v56  ;;  %v15329_v38 = vpack.c.bf16 %v8796_v52, %v8788_v45  ;;  %v7045_v56 = vor.u32 %v7288_v7, %v7042_v50 }
 0x3d8   :  { %v9058_v40 = vadd.f32 %v9055_v17, %v1894_v21  ;;  %v7053_v21 = vor.u32 %v7290_v61, %v7050_v46  ;;  %3446 = vmatpush.bf16.msrb.mxu1 %v7049_v55 }
 0x3da   :  { %v6974_v1 = vmul.f32 -1.442695, %v9058_v40  ;;  %3615 = vmatpush.bf16.msrb.mxu2 %v7053_v21 }
 0x3db   :  { %v1239_v43 = vpop.f32.mrf.mxu3 }
 0x3dc   :  { %7485 = vpow2.f32 %v6974_v1  ;;  %v1240_v34 = vadd.f32 %v1239_v43, %v8686_v27  ;;  %v7266_v27 = vld [vmem:[%s15059_s2 + $0x58] sm:$0xff]  ;;  %3447 = vmatpush.bf16.msrb.mxu1 %v7041_v39  ;;  %v9077_v43 = vpop.f32.mrf.mxu2  ;;  %v9080_v52 = vpop.f32.mrf.mxu0 }
 0x3dd   :  { %6953 = vmatmul.msk.bf16.gmra.mxu0 %vm288_vm4, %v7266_v27  ;;  %15330 = vst [vmem:[#allocation64_spill] sm:$0xff] %v9077_v43 }
 0x3de   :  { %v1895_v59 = vadd.f32 %v1736_v15, %v1240_v34  ;;  %3616 = vmatpush.bf16.msrb.mxu2 %v7045_v56 }
 0x3e0   :  { %v9067_v31 = vadd.f32 %v9055_v17, %v1895_v59  ;;  %1281 = vmatmul.bf16.gmra.mxu3 %v15329_v38 }
 0x3e2   :  { %v7486_v46 = vpop.eup %7485  ;;  %v6975_v61 = vmul.f32 -1.442695, %v9067_v31 }
 0x3e3   :  { %v2218_v15 = vadd.f32 1.0, %v7486_v46  ;;  %v1242_v1 = vpop.f32.mrf.mxu3 }
 0x3e4   :  { %7487 = vpow2.f32 %v6975_v61  ;;  %v1243_v45 = vadd.f32 %v1242_v1, %v8694_v54  ;;  %v9087_v38 = vpop.f32.mrf.mxu2  ;;  %v15332_v61 = vpack.c.bf16 %v8810_v37, %v8802_v33 }
 0x3e5   :  { %7489 = vrcp.f32 %v2218_v15  ;;  %15331 = vst [vmem:[#allocation65_spill] sm:$0xff] %v9087_v38  ;;  %vm2287_vm6 = vweird.f32 %v2218_v15  ;;  %v2291_v33 = vand.u32 2147483647, %v2218_v15 }
 0x3e6   :  { %v1896_v50 = vadd.f32 %v1739_v58, %v1243_v45  ;;  %v9090_v58 = vpop.f32.mrf.mxu0 }
 0x3e7   :  { %vm2292_vm9 = vcmp.eq.f32.partialorder %v2291_v33, 8.507059e+37 }
 0x3e8   :  { %v9083_v55 = vadd.f32 %v9055_v17, %v1896_v50 }
 0x3ea   :  { %v7488_v39 = vpop.eup %7487  ;;  %v6976_v34 = vmul.f32 -1.442695, %v9083_v55 }
 0x3eb   :  { %v7490_v21 = vpop.eup %7489  ;;  %v2219_v59 = vadd.f32 1.0, %v7488_v39  ;;  %v1244_v63 = vpop.f32.mrf.mxu3 }
 0x3ec   :  { %v2283_v22 = vmul.f32 %v7490_v21, %v2218_v15  ;;  %7491 = vpow2.f32 %v6976_v34  ;;  %v1245_v7 = vadd.f32 %v1244_v63, %v8702_v32  ;;  %v7267_v32 = vld [vmem:[%s15059_s2 + $0x60] sm:$0xff]  ;;  %vm2288_vm5 = vweird.f32 %v7490_v21 }
 0x3ed   :  { %7493 = vrcp.f32 %v2219_v59  ;;  %6954 = vmatmul.msk.bf16.gmra.mxu0 %vm288_vm4, %v7267_v32  ;;  %v2293_v63 = vand.u32 2147483648, %v2218_v15  ;;  %vm2289_vm7 = vmor %vm2287_vm6, %vm2288_vm5  ;;  %v2306_v38 = vand.u32 2147483647, %v2219_v59  ;;  %vm2302_vm10 = vweird.f32 %v2219_v59 }
 0x3ee   :  { %v2284_v54 = vsub.f32 1.0, %v2283_v22  ;;  %v1897_v56 = vadd.f32 %v9036_v28, %v1245_v7  ;;  %v9110_v43 = vpop.f32.mrf.mxu0 }
 0x3ef   :  { %v2294_v32 = vor.u32 1.1754944e-38, %v2293_v63  ;;  %vm2307_vm14 = vcmp.eq.f32.partialorder %v2306_v38, 8.507059e+37  ;;  %v15334_v38 = vpack.c.bf16 %v8822_v60, %v8814_v26 }
 0x3f0   :  { %v2285_v27 = vmul.f32 %v7490_v21, %v2284_v54  ;;  %v9093_v46 = vadd.f32 %v9055_v17, %v1897_v56  ;;  %1286 = vmatmul.bf16.gmra.mxu3 %v15332_v61  ;;  %v2308_v56 = vand.u32 2147483648, %v2219_v59 }
 0x3f2   :  { %v7492_v1 = vpop.eup %7491  ;;  %v6977_v45 = vmul.f32 -1.442695, %v9093_v46  ;;  %v2286_v50 = vadd.f32 %v7490_v21, %v2285_v27  ;;  %v9108_v27 = vpop.f32.mrf.mxu2 }
 0x3f3   :  { %v7494_v28 = vpop.eup %7493  ;;  %v9103_v39 = vadd.f32 1.0, %v7492_v1  ;;  %v1247_v34 = vpop.f32.mrf.mxu3  ;;  %15333 = vst [vmem:[#allocation66_spill] sm:$0xff] %v9108_v27 }
 0x3f4   :  { %v2298_v22 = vmul.f32 %v7494_v28, %v2219_v59  ;;  %7495 = vpow2.f32 %v6977_v45  ;;  %v1248_v37 = vadd.f32 %v1247_v34, %v8714_v12  ;;  %v2290_v54 = vsel %vm2289_vm7, %v7490_v21, %v2286_v50 }
 0x3f5   :  { %7497 = vrcp.f32 %v9103_v39  ;;  %vm2303_vm8 = vweird.f32 %v7494_v28  ;;  %v2295_v12 = vsel %vm2292_vm9, %v2294_v32, %v2290_v54  ;;  %v2309_v50 = vor.u32 1.1754944e-38, %v2308_v56 }
 0x3f6   :  { %v2299_v7 = vsub.f32 1.0, %v2298_v22  ;;  %v1898_v61 = vadd.f32 %v9045_v62, %v1248_v37  ;;  %vm2304_vm11 = vmor %vm2302_vm10, %vm2303_vm8  ;;  %vm2317_vm0 = vweird.f32 %v9103_v39 }
 0x3f8   :  { %v2300_v1 = vmul.f32 %v7494_v28, %v2299_v7  ;;  %v9113_v15 = vadd.f32 %v9055_v17, %v1898_v61  ;;  %v3242_v61 = vmul.f32 %v2295_v12, %v9058_v40  ;;  %v7268_v40 = vld [vmem:[%s15059_s2 + $0x68] sm:$0xff] }
 0x3fa   :  { %v7496_v45 = vpop.eup %7495  ;;  %v2301_v34 = vadd.f32 %v7494_v28, %v2300_v1  ;;  %v6978_v63 = vmul.f32 -1.442695, %v9113_v15  ;;  %v9133_v1 = vpop.f32.mrf.mxu2 }
 0x3fb   :  { %v7498_v21 = vpop.eup %7497  ;;  %v9115_v62 = vadd.f32 1.0, %v7496_v45  ;;  %v1249_v22 = vpop.f32.mrf.mxu3 }
 0x3fc   :  { %v2305_v37 = vsel %vm2304_vm11, %v7494_v28, %v2301_v34  ;;  %v1250_v7 = vadd.f32 %v1249_v22, %v8720_v3  ;;  %v2313_v33 = vmul.f32 %v7498_v21, %v9103_v39  ;;  %vm2318_vm15 = vweird.f32 %v7498_v21 }
 0x3fd   :  { %v2310_v27 = vsel %vm2307_vm14, %v2309_v50, %v2305_v37  ;;  %7499 = vrcp.f32 %v9115_v62  ;;  %6955 = vmatmul.msk.bf16.gmra.mxu0 %vm288_vm4, %v7268_v40  ;;  %v2321_v37 = vand.u32 2147483647, %v9103_v39  ;;  %vm9148_vm1 = vmor %vm2317_vm0, %vm2318_vm15  ;;  %vm2332_vm7 = vweird.f32 %v9115_v62 }
 0x3fe   :  { %v3243_v59 = vmul.f32 %v2310_v27, %v9067_v31  ;;  %7501 = vpow2.f32 %v6978_v63  ;;  %v1899_v54 = vadd.f32 %v9063_v41, %v1250_v7  ;;  %v2314_v56 = vsub.f32 1.0, %v2313_v33  ;;  %v9136_v41 = vpop.f32.mrf.mxu0 }
 0x3ff   :  { %v2323_v63 = vand.u32 2147483648, %v9103_v39  ;;  %vm2322_vm6 = vcmp.eq.f32.partialorder %v2321_v37, 8.507059e+37 }
 0x400   :  { %v9125_v32 = vadd.f32 %v9055_v17, %v1899_v54  ;;  %1291 = vmatmul.bf16.gmra.mxu3 %v15334_v38  ;;  %v3306_v3 = vpack.c.bf16 %v3243_v59, %v3242_v61  ;;  %v2315_v28 = vmul.f32 %v7498_v21, %v2314_v56  ;;  %v2338_v61 = vand.u32 2147483648, %v9115_v62 }
 0x401   :  { %v2324_v39 = vor.u32 1.1754944e-38, %v2323_v63 }
 0x402   :  { %v6979_v31 = vmul.f32 -1.442695, %v9125_v32  ;;  %3448 = vmatmul.bf16.vlgmr.msrb.gmra.mxu1 %v3306_v3  ;;  %3617 = vmatmul.bf16.vlgmr.msrb.gmra.mxu2 %v3306_v3  ;;  %v2316_v12 = vadd.f32 %v7498_v21, %v2315_v28 }
 0x403   :  { %v7500_v27 = vpop.eup %7499  ;;  %v1252_v45 = vpop.f32.mrf.mxu3 }
 0x404   :  { %v7502_v26 = vpop.eup %7501  ;;  %7503 = vpow2.f32 %v6979_v31  ;;  %v1253_v60 = vadd.f32 %v1252_v45, %v8732_v49  ;;  %v2328_v34 = vmul.f32 %v7500_v27, %v9115_v62  ;;  %v2336_v49 = vand.u32 2147483647, %v9115_v62 }
 0x405   :  { %v9141_v50 = vadd.f32 1.0, %v7502_v26  ;;  %vm2333_vm5 = vweird.f32 %v7500_v27  ;;  %v2339_v45 = vor.u32 1.1754944e-38, %v2338_v61  ;;  %v9163_v26 = vpop.f32.mrf.mxu2  ;;  %v7269_v61 = vld [vmem:[%s15059_s2 + $0x70] sm:$0xff] }
 0x406   :  { %v1900_v22 = vadd.f32 %v9080_v52, %v1253_v60  ;;  %v2329_v7 = vsub.f32 1.0, %v2328_v34  ;;  %v2320_v52 = vsel %vm9148_vm1, %v7498_v21, %v2316_v12  ;;  %vm2334_vm8 = vmor %vm2332_vm7, %vm2333_vm5  ;;  %vm2337_vm9 = vcmp.eq.f32.partialorder %v2336_v49, 8.507059e+37  ;;  %v9166_v12 = vpop.f32.mrf.mxu0 }
 0x407   :  { %7505 = vrcp.f32 %v9141_v50  ;;  %v2325_v31 = vsel %vm2322_vm6, %v2324_v39, %v2320_v52  ;;  %vm2347_vm11 = vweird.f32 %v9141_v50 }
 0x408   :  { %v9155_v59 = vadd.f32 %v9055_v17, %v1900_v22  ;;  %v2330_v54 = vmul.f32 %v7500_v27, %v2329_v7  ;;  %v3244_v22 = vmul.f32 %v2325_v31, %v9083_v55  ;;  %v2351_v31 = vand.u32 2147483647, %v9141_v50 }
 0x40a   :  { %v7504_v56 = vpop.eup %7503  ;;  %v6980_v38 = vmul.f32 -1.442695, %v9155_v59  ;;  %v2331_v3 = vadd.f32 %v7500_v27, %v2330_v54  ;;  %vm2352_vm0 = vcmp.eq.f32.partialorder %v2351_v31, 8.507059e+37 }
 0x40b   :  { %v9161_v28 = vadd.f32 1.0, %v7504_v56  ;;  %v1254_v40 = vpop.f32.mrf.mxu3 }
 0x40c   :  { %7507 = vpow2.f32 %v6980_v38  ;;  %v1255_v21 = vadd.f32 %v1254_v40, %v8743_v24  ;;  %v2335_v60 = vsel %vm2334_vm8, %v7500_v27, %v2331_v3  ;;  %v15337_v24 = vpack.c.bf16 %v8836_v0, %v8828_v4 }
 0x40d   :  { %v7506_v34 = vpop.eup %7505  ;;  %7509 = vrcp.f32 %v9161_v28  ;;  %v2340_v63 = vsel %vm2337_vm9, %v2339_v45, %v2335_v60  ;;  %6956 = vmatmul.msk.bf16.gmra.mxu0 %vm288_vm4, %v7269_v61  ;;  %v2353_v38 = vand.u32 2147483648, %v9141_v50  ;;  %v9190_v3 = vpop.f32.mrf.mxu2  ;;  %v2366_v60 = vand.u32 2147483647, %v9161_v28 }
 0x40e   :  { %v1901_v62 = vadd.f32 %v9090_v58, %v1255_v21  ;;  %v3245_v37 = vmul.f32 %v2340_v63, %v9093_v46  ;;  %v2343_v7 = vmul.f32 %v7506_v34, %v9141_v50  ;;  %vm2348_vm10 = vweird.f32 %v7506_v34  ;;  %v9195_v21 = vpop.f32.mrf.mxu0 }
 0x40f   :  { %vm9197_vm14 = vmor %vm2347_vm11, %vm2348_vm10  ;;  %v2368_v63 = vand.u32 2147483648, %v9161_v28  ;;  %v2354_v50 = vor.u32 1.1754944e-38, %v2353_v38  ;;  %vm2362_vm1 = vweird.f32 %v9161_v28  ;;  %vm2367_vm6 = vcmp.eq.f32.partialorder %v2366_v60, 8.507059e+37 }
 0x410   :  { %v9174_v33 = vadd.f32 %v9055_v17, %v1901_v62  ;;  %1296 = vmatmul.bf16.gmra.mxu3 %v15337_v24  ;;  %v3307_v27 = vpack.c.bf16 %v3245_v37, %v3244_v22  ;;  %v2344_v49 = vsub.f32 1.0, %v2343_v7 }
 0x412   :  { %v7508_v58 = vpop.eup %7507  ;;  %v6981_v55 = vmul.f32 -1.442695, %v9174_v33  ;;  %3453 = vmatmul.bf16.gmra.mxu1 %v3307_v27  ;;  %3622 = vmatmul.bf16.gmra.mxu2 %v3307_v27  ;;  %v2345_v46 = vmul.f32 %v7506_v34, %v2344_v49 }
 0x413   :  { %v7510_v52 = vpop.eup %7509  ;;  %v9183_v54 = vadd.f32 1.0, %v7508_v58  ;;  %v1257_v39 = vpop.f32.mrf.mxu3 }
 0x414   :  { %7511 = vpow2.f32 %v6981_v55  ;;  %v1258_v0 = vadd.f32 %v1257_v39, %v8751_v6  ;;  %v2346_v4 = vadd.f32 %v7506_v34, %v2345_v46  ;;  %v2358_v56 = vmul.f32 %v7510_v52, %v9161_v28 }
 0x415   :  { %7513 = vrcp.f32 %v9183_v54  ;;  %vm2363_vm15 = vweird.f32 %v7510_v52  ;;  %v2369_v55 = vor.u32 1.1754944e-38, %v2368_v63  ;;  %vm2377_vm8 = vweird.f32 %v9183_v54 }
 0x416   :  { %v1902_v40 = vadd.f32 %v9110_v43, %v1258_v0  ;;  %v2359_v45 = vsub.f32 1.0, %v2358_v56  ;;  %v2350_v43 = vsel %vm9197_vm14, %v7506_v34, %v2346_v4  ;;  %vm2364_vm5 = vmor %vm2362_vm1, %vm2363_vm15 }
 0x417   :  { %v2355_v58 = vsel %vm2352_vm0, %v2354_v50, %v2350_v43  ;;  %v2383_v50 = vand.u32 2147483648, %v9183_v54 }
 0x418   :  { %v9204_v62 = vadd.f32 %v9055_v17, %v1902_v40  ;;  %v2360_v22 = vmul.f32 %v7510_v52, %v2359_v45  ;;  %v3246_v4 = vmul.f32 %v2355_v58, %v9113_v15  ;;  %v9221_v40 = vpop.f32.mrf.mxu2  ;;  %v9229_v45 = vpop.f32.mrf.mxu0  ;;  %v7270_v15 = vld [vmem:[%s15059_s2 + $0x78] sm:$0xff] }
 0x41a   :  { %v7512_v37 = vpop.eup %7511  ;;  %v6982_v7 = vmul.f32 -1.442695, %v9204_v62  ;;  %v2361_v24 = vadd.f32 %v7510_v52, %v2360_v22 }
 0x41b   :  { %v9210_v27 = vpop.eup %7513  ;;  %v9212_v49 = vadd.f32 1.0, %v7512_v37  ;;  %v1259_v61 = vpop.f32.mrf.mxu3 }
 0x41c   :  { %7515 = vpow2.f32 %v6982_v7  ;;  %v1260_v34 = vadd.f32 %v1259_v61, %v8761_v51  ;;  %v2365_v46 = vsel %vm2364_vm5, %v7510_v52, %v2361_v24  ;;  %v2373_v39 = vmul.f32 %v9210_v27, %v9183_v54 }
 0x41d   :  { %7517 = vrcp.f32 %v9212_v49  ;;  %v2370_v0 = vsel %vm2367_vm6, %v2369_v55, %v2365_v46  ;;  %v15340_v51 = vpack.c.bf16 %v8850_v36, %v8844_v30  ;;  %vm2378_vm7 = vweird.f32 %v9210_v27  ;;  %6957 = vmatmul.msk.bf16.gmra.mxu0 %vm288_vm4, %v7270_v15 }
 0x41e   :  { %v1903_v28 = vadd.f32 %v9136_v41, %v1260_v34  ;;  %v3247_v56 = vmul.f32 %v2370_v0, %v9125_v32  ;;  %v2374_v38 = vsub.f32 1.0, %v2373_v39  ;;  %v2381_v7 = vand.u32 2147483647, %v9183_v54  ;;  %vm9248_vm9 = vmor %vm2377_vm8, %vm2378_vm7 }
 0x41f   :  { %v2398_v58 = vand.u32 2147483648, %v9212_v49  ;;  %v2384_v46 = vor.u32 1.1754944e-38, %v2383_v50  ;;  %vm2392_vm14 = vweird.f32 %v9212_v49  ;;  %v15344_v50 = vpack.c.bf16 %v8864_v10, %v8858_v13 }
 0x420   :  { %v9224_v31 = vadd.f32 %v9055_v17, %v1903_v28  ;;  %1301 = vmatmul.bf16.gmra.mxu3 %v15340_v51  ;;  %v3308_v52 = vpack.c.bf16 %v3247_v56, %v3246_v4  ;;  %v2375_v6 = vmul.f32 %v9210_v27, %v2374_v38  ;;  %v9260_v39 = vpop.f32.mrf.mxu2  ;;  %vm2382_vm11 = vcmp.eq.f32.partialorder %v2381_v7, 8.507059e+37  ;;  %v9264_v4 = vpop.f32.mrf.mxu0 }
 0x421   :  { %15343 = vst [vmem:[#allocation67_spill] sm:$0xff] %v9260_v39 }
 0x422   :  { %v7516_v32 = vpop.eup %7515  ;;  %v6983_v41 = vmul.f32 -1.442695, %v9224_v31  ;;  %3458 = vmatmul.bf16.gmra.mxu1 %v3308_v52  ;;  %3627 = vmatmul.bf16.gmra.mxu2 %v3308_v52  ;;  %v2376_v36 = vadd.f32 %v9210_v27, %v2375_v6 }
 0x423   :  { %v7518_v60 = vpop.eup %7517  ;;  %v9236_v63 = vadd.f32 1.0, %v7516_v32  ;;  %v1262_v43 = vpop.f32.mrf.mxu3 }
 0x424   :  { %7519 = vpow2.f32 %v6983_v41  ;;  %v1263_v30 = vadd.f32 %v1262_v43, %v8768_v16  ;;  %v2388_v22 = vmul.f32 %v7518_v60, %v9212_v49  ;;  %v2396_v16 = vand.u32 2147483647, %v9212_v49 }
 0x425   :  { %7521 = vrcp.f32 %v9236_v63  ;;  %vm2393_vm10 = vweird.f32 %v7518_v60  ;;  %vm2407_vm5 = vweird.f32 %v9236_v63 }
 0x426   :  { %v1904_v37 = vadd.f32 %v9166_v12, %v1263_v30  ;;  %v2389_v24 = vsub.f32 1.0, %v2388_v22  ;;  %v2380_v12 = vsel %vm9248_vm9, %v9210_v27, %v2376_v36  ;;  %vm2394_vm15 = vmor %vm2392_vm14, %vm2393_vm10  ;;  %vm2397_vm0 = vcmp.eq.f32.partialorder %v2396_v16, 8.507059e+37 }
 0x427   :  { %v2385_v52 = vsel %vm2382_vm11, %v2384_v46, %v2380_v12  ;;  %v2399_v27 = vor.u32 1.1754944e-38, %v2398_v58  ;;  %v2413_v12 = vand.u32 2147483648, %v9236_v63  ;;  %v2411_v46 = vand.u32 2147483647, %v9236_v63 }
 0x428   :  { %v9255_v55 = vadd.f32 %v9055_v17, %v1904_v37  ;;  %v2390_v34 = vmul.f32 %v7518_v60, %v2389_v24  ;;  %v3248_v49 = vmul.f32 %v2385_v52, %v9155_v59  ;;  %v7271_v37 = vld [vmem:[%s15059_s2 + $0x80] sm:$0xff]  ;;  %v9284_v13 = vpop.f32.mrf.mxu2  ;;  %v1769_v61 = vpop.f32.mrf.mxu0 }
 0x429   :  { %15345 = vst [vmem:[#allocation68_spill] sm:$0xff] %v9284_v13  ;;  %vm2412_vm8 = vcmp.eq.f32.partialorder %v2411_v46, 8.507059e+37 }
 0x42a   :  { %v7520_v54 = vpop.eup %7519  ;;  %v6984_v0 = vmul.f32 -1.442695, %v9255_v55  ;;  %v2391_v28 = vadd.f32 %v7518_v60, %v2390_v34 }
 0x42b   :  { %v7522_v56 = vpop.eup %7521  ;;  %v2227_v38 = vadd.f32 1.0, %v7520_v54  ;;  %v1264_v51 = vpop.f32.mrf.mxu3 }
 0x42c   :  { %7523 = vpow2.f32 %v6984_v0  ;;  %v1265_v6 = vadd.f32 %v1264_v51, %v8774_v2  ;;  %v2395_v15 = vsel %vm2394_vm15, %v7518_v60, %v2391_v28  ;;  %v2403_v32 = vmul.f32 %v7522_v56, %v9236_v63 }
 0x42d   :  { %7525 = vrcp.f32 %v2227_v38  ;;  %v2400_v41 = vsel %vm2397_vm0, %v2399_v27, %v2395_v15  ;;  %vm2408_vm1 = vweird.f32 %v7522_v56  ;;  %6958 = vmatmul.msk.bf16.gmra.mxu0 %vm288_vm4, %v7271_v37  ;;  %v2426_v28 = vand.u32 2147483647, %v2227_v38 }
 0x42e   :  { %v1905_v43 = vadd.f32 %v9195_v21, %v1265_v6  ;;  %v3249_v30 = vmul.f32 %v2400_v41, %v9174_v33  ;;  %v2404_v36 = vsub.f32 1.0, %v2403_v32  ;;  %vm9292_vm6 = vmor %vm2407_vm5, %vm2408_vm1  ;;  %vm2422_vm9 = vweird.f32 %v2227_v38 }
 0x42f   :  { %vm2427_vm11 = vcmp.eq.f32.partialorder %v2426_v28, 8.507059e+37 }
 0x430   :  { %v9272_v22 = vadd.f32 %v9055_v17, %v1905_v43  ;;  %1306 = vmatmul.bf16.gmra.mxu3 %v15344_v50  ;;  %v3309_v2 = vpack.c.bf16 %v3249_v30, %v3248_v49  ;;  %v2405_v60 = vmul.f32 %v7522_v56, %v2404_v36 }
 0x432   :  { %v7524_v7 = vpop.eup %7523  ;;  %v6985_v21 = vmul.f32 -1.442695, %v9272_v22  ;;  %3463 = vmatmul.bf16.gmra.mxu1 %v3309_v2  ;;  %3632 = vmatmul.bf16.gmra.mxu2 %v3309_v2  ;;  %v2406_v16 = vadd.f32 %v7522_v56, %v2405_v60  ;;  %v569_v2 = vpack.c.bf16 %v8886_v42, %v8878_v53  ;;  %v9312_v60 = vpop.f32.mrf.mxu2  ;;  %v7272_v42 = vld [vmem:[%s15059_s2 + $0x88] sm:$0xff] }
 0x433   :  { %v7526_v59 = vpop.eup %7525  ;;  %v9281_v33 = vadd.f32 1.0, %v7524_v7  ;;  %v1267_v24 = vpop.f32.mrf.mxu3  ;;  %15348 = vst [vmem:[#allocation69_spill] sm:$0xff] %v9312_v60 }
 0x434   :  { %7527 = vpow2.f32 %v6985_v21  ;;  %v1268_v10 = vadd.f32 %v1267_v24, %v8784_v5  ;;  %v2418_v58 = vmul.f32 %v7526_v59, %v2227_v38  ;;  %v2428_v5 = vand.u32 2147483648, %v2227_v38  ;;  %v1771_v24 = vpop.f32.mrf.mxu0 }
 0x435   :  { %7529 = vrcp.f32 %v9281_v33  ;;  %v2410_v52 = vsel %vm9292_vm6, %v7522_v56, %v2406_v16  ;;  %vm2423_vm7 = vweird.f32 %v7526_v59  ;;  %vm2437_vm15 = vweird.f32 %v9281_v33 }
 0x436   :  { %v1906_v34 = vadd.f32 %v9229_v45, %v1268_v10  ;;  %v2419_v54 = vsub.f32 1.0, %v2418_v58  ;;  %v2414_v45 = vor.u32 1.1754944e-38, %v2413_v12  ;;  %vm2424_vm10 = vmor %vm2422_vm9, %vm2423_vm7  ;;  %v2429_v30 = vor.u32 1.1754944e-38, %v2428_v5 }
 0x437   :  { %v2441_v28 = vand.u32 2147483647, %v9281_v33 }
 0x438   :  { %v9297_v51 = vadd.f32 %v9055_v17, %v1906_v34  ;;  %v2420_v27 = vmul.f32 %v7526_v59, %v2419_v54  ;;  %v2415_v49 = vsel %vm2412_vm8, %v2414_v45, %v2410_v52  ;;  %v2443_v54 = vand.u32 2147483648, %v9281_v33  ;;  %v15356_v52 = vld [vmem:[#allocation17_spill] sm:$0xff] }
 0x439   :  { %v3250_v7 = vmul.f32 %v2415_v49, %v9204_v62  ;;  %vm2442_vm5 = vcmp.eq.f32.partialorder %v2441_v28, 8.507059e+37 }
 0x43a   :  { %v7528_v6 = vpop.eup %7527  ;;  %v6986_v15 = vmul.f32 -1.442695, %v9297_v51  ;;  %v2421_v63 = vadd.f32 %v7526_v59, %v2420_v27  ;;  %v9342_v45 = vpop.f32.mrf.mxu2 }
 0x43b   :  { %v9302_v32 = vpop.eup %7529  ;;  %v9304_v41 = vadd.f32 1.0, %v7528_v6  ;;  %v1269_v43 = vpop.f32.mrf.mxu3  ;;  %15351 = vst [vmem:[#allocation70_spill] sm:$0xff] %v9342_v45 }
 0x43c   :  { %7531 = vpow2.f32 %v6986_v15  ;;  %v1270_v56 = vadd.f32 %v1269_v43, %v8790_v57  ;;  %v2425_v36 = vsel %vm2424_vm10, %v7526_v59, %v2421_v63  ;;  %v2433_v50 = vmul.f32 %v9302_v32, %v9281_v33  ;;  %v1774_v33 = vpop.f32.mrf.mxu0 }
 0x43d   :  { %7533 = vrcp.f32 %v9304_v41  ;;  %v2430_v38 = vsel %vm2427_vm11, %v2429_v30, %v2425_v36  ;;  %vm2438_vm14 = vweird.f32 %v9302_v32  ;;  %6959 = vmatmul.msk.bf16.gmra.mxu0 %vm288_vm4, %v7272_v42  ;;  %v2458_v27 = vand.u32 2147483648, %v9304_v41 }
 0x43e   :  { %v1907_v37 = vadd.f32 %v9264_v4, %v1270_v56  ;;  %v3251_v21 = vmul.f32 %v2430_v38, %v9224_v31  ;;  %v2434_v57 = vsub.f32 1.0, %v2433_v50  ;;  %vm9336_vm0 = vmor %vm2437_vm15, %vm2438_vm14  ;;  %v2444_v63 = vor.u32 1.1754944e-38, %v2443_v54 }
 0x43f   :  { %vm2452_vm6 = vweird.f32 %v9304_v41  ;;  %v2459_v38 = vor.u32 1.1754944e-38, %v2458_v27 }
 0x440   :  { %v9318_v59 = vadd.f32 %v9055_v17, %v1907_v37  ;;  %1311 = vmatmul.bf16.gmra.mxu3 %v569_v2  ;;  %v3310_v10 = vpack.c.bf16 %v3251_v21, %v3250_v7  ;;  %v2435_v53 = vmul.f32 %v9302_v32, %v2434_v57  ;;  %v15353_v57 = vld [vmem:[#allocation36_spill] sm:$0xff] }
 0x442   :  { %v7532_v16 = vpop.eup %7531  ;;  %v6987_v4 = vmul.f32 -1.442695, %v9318_v59  ;;  %3468 = vmatmul.bf16.gmra.mxu1 %v3310_v10  ;;  %3637 = vmatmul.bf16.gmra.mxu2 %v3310_v10  ;;  %v2436_v34 = vadd.f32 %v9302_v32, %v2435_v53  ;;  %v15354_v10 = vld [vmem:[#allocation38_spill] sm:$0xff] }
 0x443   :  { %v7534_v62 = vpop.eup %7533  ;;  %v9325_v31 = vadd.f32 1.0, %v7532_v16  ;;  %v1272_v58 = vpop.f32.mrf.mxu3  ;;  %v570_v53 = vpack.c.bf16 %v15354_v10, %v15353_v57 }
 0x444   :  { %7535 = vpow2.f32 %v6987_v4  ;;  %v1273_v12 = vadd.f32 %v1272_v58, %v8800_v23  ;;  %v2448_v46 = vmul.f32 %v7534_v62, %v9304_v41  ;;  %v2456_v23 = vand.u32 2147483647, %v9304_v41 }
 0x445   :  { %7537 = vrcp.f32 %v9325_v31  ;;  %vm2453_vm1 = vweird.f32 %v7534_v62  ;;  %vm2467_vm10 = vweird.f32 %v9325_v31 }
 0x446   :  { %v1908_v0 = vadd.f32 %v1769_v61, %v1273_v12  ;;  %v2449_v5 = vsub.f32 1.0, %v2448_v46  ;;  %v2440_v61 = vsel %vm9336_vm0, %v9302_v32, %v2436_v34  ;;  %vm2454_vm7 = vmor %vm2452_vm6, %vm2453_vm1  ;;  %vm2457_vm8 = vcmp.eq.f32.partialorder %v2456_v23, 8.507059e+37  ;;  %v15352_v32 = vld [vmem:[#allocation16_spill] sm:$0xff] }
 0x447   :  { %v2445_v2 = vsel %vm2442_vm5, %v2444_v63, %v2440_v61 }
 0x448   :  { %v9345_v6 = vadd.f32 %v9055_v17, %v1908_v0  ;;  %v2450_v15 = vmul.f32 %v7534_v62, %v2449_v5  ;;  %v3252_v41 = vmul.f32 %v2445_v2, %v9255_v55  ;;  %v9364_v0 = vpop.f32.mrf.mxu2  ;;  %v1776_v55 = vpop.f32.mrf.mxu0 }
 0x449   :  { %15355 = vst [vmem:[#allocation16_spill] sm:$0xff] %v9364_v0 }
 0x44a   :  { %v7536_v43 = vpop.eup %7535  ;;  %v6988_v49 = vmul.f32 -1.442695, %v9345_v6  ;;  %v2451_v30 = vadd.f32 %v7534_v62, %v2450_v15  ;;  %v2473_v15 = vand.u32 2147483648, %v9325_v31 }
 0x44b   :  { %v7538_v56 = vpop.eup %7537  ;;  %v2231_v36 = vadd.f32 1.0, %v7536_v43  ;;  %v1274_v50 = vpop.f32.mrf.mxu3  ;;  %v2471_v43 = vand.u32 2147483647, %v9325_v31 }
 0x44c   :  { %7539 = vpow2.f32 %v6988_v49  ;;  %v1275_v37 = vadd.f32 %v1274_v50, %v15352_v32  ;;  %v2455_v7 = vsel %vm2454_vm7, %v7534_v62, %v2451_v30  ;;  %v2463_v21 = vmul.f32 %v7538_v56, %v9325_v31  ;;  %v7273_v62 = vld [vmem:[%s15059_s2 + $0x90] sm:$0xff] }
 0x44d   :  { %7541 = vrcp.f32 %v2231_v36  ;;  %v2460_v42 = vsel %vm2457_vm8, %v2459_v38, %v2455_v7  ;;  %vm2468_vm9 = vweird.f32 %v7538_v56  ;;  %6960 = vmatmul.msk.bf16.gmra.mxu0 %vm288_vm4, %v7273_v62  ;;  %v2486_v50 = vand.u32 2147483647, %v2231_v36  ;;  %v15362_v62 = vld [vmem:[#allocation40_spill] sm:$0xff] }
 0x44e   :  { %v1909_v16 = vadd.f32 %v1771_v24, %v1275_v37  ;;  %v3253_v4 = vmul.f32 %v2460_v42, %v9272_v22  ;;  %v2464_v58 = vsub.f32 1.0, %v2463_v21  ;;  %vm9375_vm11 = vmor %vm2467_vm10, %vm2468_vm9  ;;  %v2488_v2 = vand.u32 2147483648, %v2231_v36 }
 0x44f   :  { %vm2472_vm15 = vcmp.eq.f32.partialorder %v2471_v43, 8.507059e+37  ;;  %vm2482_vm0 = vweird.f32 %v2231_v36  ;;  %vm2487_vm5 = vcmp.eq.f32.partialorder %v2486_v50, 8.507059e+37 }
 0x450   :  { %v9359_v12 = vadd.f32 %v9055_v17, %v1909_v16  ;;  %1316 = vmatmul.bf16.gmra.mxu3 %v570_v53  ;;  %v3311_v34 = vpack.c.bf16 %v3253_v4, %v3252_v41  ;;  %v2465_v46 = vmul.f32 %v7538_v56, %v2464_v58  ;;  %v2489_v16 = vor.u32 1.1754944e-38, %v2488_v2  ;;  %v9389_v41 = vpop.f32.mrf.mxu2  ;;  %v7274_v2 = vld [vmem:[%s15059_s2 + $0x98] sm:$0xff] }
 0x451   :  { %15359 = vst [vmem:[#allocation36_spill] sm:$0xff] %v9389_v41  ;;  %v15413_v41 = vld [vmem:[#allocation30_spill] sm:$0xff] }
 0x452   :  { %v7540_v54 = vpop.eup %7539  ;;  %v6989_v24 = vmul.f32 -1.442695, %v9359_v12  ;;  %3473 = vmatmul.bf16.gmra.mxu1 %v3311_v34  ;;  %3642 = vmatmul.bf16.gmra.mxu2 %v3311_v34  ;;  %v2466_v27 = vadd.f32 %v7538_v56, %v2465_v46  ;;  %v1779_v34 = vpop.f32.mrf.mxu0 }
 0x453   :  { %v7542_v22 = vpop.eup %7541  ;;  %v9367_v28 = vadd.f32 1.0, %v7540_v54  ;;  %v1277_v5 = vpop.f32.mrf.mxu3 }
 0x454   :  { %7543 = vpow2.f32 %v6989_v24  ;;  %v1278_v23 = vadd.f32 %v1277_v5, %v15356_v52  ;;  %v2478_v61 = vmul.f32 %v7542_v22, %v2231_v36  ;;  %v2470_v32 = vsel %vm9375_vm11, %v7538_v56, %v2466_v27  ;;  %v15360_v56 = vld [vmem:[#allocation19_spill] sm:$0xff] }
 0x455   :  { %7545 = vrcp.f32 %v9367_v28  ;;  %vm2483_vm14 = vweird.f32 %v7542_v22  ;;  %v15361_v36 = vld [vmem:[#allocation39_spill] sm:$0xff]  ;;  %vm2497_vm7 = vweird.f32 %v9367_v28 }
 0x456   :  { %v1910_v63 = vadd.f32 %v1774_v33, %v1278_v23  ;;  %v2479_v49 = vsub.f32 1.0, %v2478_v61  ;;  %v2474_v33 = vor.u32 1.1754944e-38, %v2473_v15  ;;  %vm2484_vm1 = vmor %vm2482_vm0, %vm2483_vm14  ;;  %v571_v54 = vpack.c.bf16 %v15362_v62, %v15361_v36 }
 0x458   :  { %v9380_v38 = vadd.f32 %v9055_v17, %v1910_v63  ;;  %v2480_v37 = vmul.f32 %v7542_v22, %v2479_v49  ;;  %v2475_v42 = vsel %vm2472_vm15, %v2474_v33, %v2470_v32  ;;  %v9412_v32 = vpop.f32.mrf.mxu2 }
 0x459   :  { %v3254_v52 = vmul.f32 %v2475_v42, %v9297_v51  ;;  %v15363_v51 = vld [vmem:[#allocation21_spill] sm:$0xff]  ;;  %15364 = vst [vmem:[#allocation38_spill] sm:$0xff] %v9412_v32  ;;  %v15414_v32 = vld [vmem:[#allocation32_spill] sm:$0xff] }
 0x45a   :  { %v7544_v7 = vpop.eup %7543  ;;  %v6990_v21 = vmul.f32 -1.442695, %v9380_v38  ;;  %v2481_v31 = vadd.f32 %v7542_v22, %v2480_v37  ;;  %v1781_v33 = vpop.f32.mrf.mxu0 }
 0x45b   :  { %v9385_v57 = vpop.eup %7545  ;;  %v9387_v10 = vadd.f32 1.0, %v7544_v7  ;;  %v1279_v53 = vpop.f32.mrf.mxu3 }
 0x45c   :  { %7547 = vpow2.f32 %v6990_v21  ;;  %v1280_v4 = vadd.f32 %v1279_v53, %v15360_v56  ;;  %v2485_v58 = vsel %vm2484_vm1, %v7542_v22, %v2481_v31  ;;  %v2493_v46 = vmul.f32 %v9385_v57, %v9367_v28 }
 0x45d   :  { %7549 = vrcp.f32 %v9387_v10  ;;  %v2490_v24 = vsel %vm2487_vm5, %v2489_v16, %v2485_v58  ;;  %vm2498_vm6 = vweird.f32 %v9385_v57  ;;  %v2501_v31 = vand.u32 2147483647, %v9367_v28  ;;  %6961 = vmatmul.msk.bf16.gmra.mxu0 %vm288_vm4, %v7274_v2 }
 0x45e   :  { %v1911_v5 = vadd.f32 %v1776_v55, %v1280_v4  ;;  %v3255_v23 = vmul.f32 %v2490_v24, %v9318_v59  ;;  %v2494_v27 = vsub.f32 1.0, %v2493_v46  ;;  %v2503_v53 = vand.u32 2147483648, %v9367_v28  ;;  %vm9423_vm8 = vmor %vm2497_vm7, %vm2498_vm6 }
 0x45f   :  { %v2516_v4 = vand.u32 2147483647, %v9387_v10  ;;  %v2518_v58 = vand.u32 2147483648, %v9387_v10  ;;  %vm2502_vm10 = vcmp.eq.f32.partialorder %v2501_v31, 8.507059e+37  ;;  %vm2512_vm11 = vweird.f32 %v9387_v10 }
 0x460   :  { %v9400_v61 = vadd.f32 %v9055_v17, %v1911_v5  ;;  %1321 = vmatmul.bf16.gmra.mxu3 %v571_v54  ;;  %v3312_v22 = vpack.c.bf16 %v3255_v23, %v3254_v52  ;;  %v2495_v43 = vmul.f32 %v9385_v57, %v2494_v27  ;;  %v2504_v24 = vor.u32 1.1754944e-38, %v2503_v53  ;;  %v15367_v52 = vld [vmem:[#allocation23_spill] sm:$0xff]  ;;  %v15368_v27 = vld [vmem:[#allocation41_spill] sm:$0xff] }
 0x461   :  { %vm2517_vm15 = vcmp.eq.f32.partialorder %v2516_v4, 8.507059e+37 }
 0x462   :  { %v7548_v15 = vpop.eup %7547  ;;  %v6991_v63 = vmul.f32 -1.442695, %v9400_v61  ;;  %3478 = vmatmul.bf16.gmra.mxu1 %v3312_v22  ;;  %3647 = vmatmul.bf16.gmra.mxu2 %v3312_v22  ;;  %v2496_v7 = vadd.f32 %v9385_v57, %v2495_v43 }
 0x463   :  { %v7550_v49 = vpop.eup %7549  ;;  %v9404_v30 = vadd.f32 1.0, %v7548_v15  ;;  %v1282_v55 = vpop.f32.mrf.mxu3  ;;  %v2519_v15 = vor.u32 1.1754944e-38, %v2518_v58 }
 0x464   :  { %7551 = vpow2.f32 %v6991_v63  ;;  %v1283_v59 = vadd.f32 %v1282_v55, %v15363_v51  ;;  %v2508_v50 = vmul.f32 %v7550_v49, %v9387_v10  ;;  %v2500_v36 = vsel %vm9423_vm8, %v9385_v57, %v2496_v7  ;;  %v9450_v10 = vld [vmem:[%s15064_s7] ss:$0 sm:$0xff] }
 0x465   :  { %7553 = vrcp.f32 %v9404_v30  ;;  %vm2513_vm9 = vweird.f32 %v7550_v49  ;;  %v572_v57 = vpack.c.bf16 %v8908_v48, %v15368_v27  ;;  %v2505_v22 = vsel %vm2502_vm10, %v2504_v24, %v2500_v36 }
 0x466   :  { %v1912_v37 = vadd.f32 %v1779_v34, %v1283_v59  ;;  %v2509_v21 = vsub.f32 1.0, %v2508_v50  ;;  %vm2514_vm14 = vmor %vm2512_vm11, %vm2513_vm9  ;;  %v9444_v59 = vpop.f32.mrf.mxu2  ;;  %v3256_v2 = vmul.f32 %v2505_v22, %v9345_v6  ;;  %v2533_v6 = vand.u32 2147483648, %v9404_v30 }
 0x467   :  { %15369 = vst [vmem:[#allocation17_spill] sm:$0xff] %v9444_v59  ;;  %vm2527_vm1 = vweird.f32 %v9404_v30 }
 0x468   :  { %v9420_v42 = vadd.f32 %v9055_v17, %v1912_v37  ;;  %v2510_v16 = vmul.f32 %v7550_v49, %v2509_v21 }
 0x46a   :  { %v7552_v34 = vpop.eup %7551  ;;  %v6992_v46 = vmul.f32 -1.442695, %v9420_v42  ;;  %v2511_v17 = vadd.f32 %v7550_v49, %v2510_v16 }
 0x46b   :  { %v9433_v62 = vpop.eup %7553  ;;  %v9435_v28 = vadd.f32 1.0, %v7552_v34  ;;  %v1284_v54 = vpop.f32.mrf.mxu3  ;;  %v15370_v34 = vld [vmem:[#allocation25_spill] sm:$0xff] }
 0x46c   :  { %v2523_v5 = vmul.f32 %v9433_v62, %v9404_v30  ;;  %7555 = vpow2.f32 %v6992_v46  ;;  %v1285_v23 = vadd.f32 %v1284_v54, %v15367_v52  ;;  %v2515_v55 = vsel %vm2514_vm14, %v7550_v49, %v2511_v17  ;;  %v1784_v49 = vpop.f32.mrf.mxu0 }
 0x46d   :  { %7557 = vrcp.f32 %v9435_v28  ;;  %v2520_v51 = vsel %vm2517_vm15, %v2519_v15, %v2515_v55  ;;  %vm2528_vm0 = vweird.f32 %v9433_v62  ;;  %v2546_v17 = vand.u32 2147483647, %v9435_v28 }
 0x46e   :  { %v2524_v63 = vsub.f32 1.0, %v2523_v5  ;;  %v1913_v43 = vadd.f32 %v1781_v33, %v1285_v23  ;;  %v3257_v37 = vmul.f32 %v2520_v51, %v9359_v12  ;;  %v2531_v12 = vand.u32 2147483647, %v9404_v30  ;;  %vm9468_vm5 = vmor %vm2527_vm1, %vm2528_vm0  ;;  %v9477_v27 = vpop.f32.mrf.mxu2 }
 0x46f   :  { %v2548_v54 = vand.u32 2147483648, %v9435_v28  ;;  %v2534_v23 = vor.u32 1.1754944e-38, %v2533_v6  ;;  %15373 = vst [vmem:[#allocation19_spill] sm:$0xff] %v9477_v27  ;;  %vm2542_vm8 = vweird.f32 %v9435_v28  ;;  %vm2547_vm10 = vcmp.eq.f32.partialorder %v2546_v17, 8.507059e+37 }
 0x470   :  { %v2525_v50 = vmul.f32 %v9433_v62, %v2524_v63  ;;  %v9453_v48 = vadd.f32 %v9450_v10, %v1913_v43  ;;  %1326 = vmatmul.bf16.gmra.mxu3 %v572_v57  ;;  %v3313_v21 = vpack.c.bf16 %v3257_v37, %v3256_v2  ;;  %vm2532_vm7 = vcmp.eq.f32.partialorder %v2531_v12, 8.507059e+37 }
 0x472   :  { %v7556_v33 = vpop.eup %7555  ;;  %v6993_v7 = vmul.f32 -1.442695, %v9453_v48  ;;  %v2526_v56 = vadd.f32 %v9433_v62, %v2525_v50  ;;  %3483 = vmatmul.bf16.gmra.mxu1 %v3313_v21  ;;  %3652 = vmatmul.bf16.gmra.mxu2 %v3313_v21  ;;  %v7275_v50 = vld [vmem:[%s15059_s2 + $0xa0] sm:$0xff] }
 0x473   :  { %v7558_v31 = vpop.eup %7557  ;;  %v9458_v53 = vadd.f32 1.0, %v7556_v33  ;;  %v1287_v16 = vpop.f32.mrf.mxu3  ;;  %6962 = vmatmul.msk.bf16.gmra.mxu0 %vm288_vm4, %v7275_v50  ;;  %v15374_v33 = vld [vmem:[#allocation42_spill] sm:$0xff] }
 0x474   :  { %v2538_v4 = vmul.f32 %v7558_v31, %v9435_v28  ;;  %7559 = vpow2.f32 %v6993_v7  ;;  %v1288_v46 = vadd.f32 %v1287_v16, %v15370_v34  ;;  %v2530_v24 = vsel %vm9468_vm5, %v9433_v62, %v2526_v56  ;;  %v1786_v15 = vpop.f32.mrf.mxu0 }
 0x475   :  { %7561 = vrcp.f32 %v9458_v53  ;;  %vm2543_vm6 = vweird.f32 %v7558_v31  ;;  %v2535_v43 = vsel %vm2532_vm7, %v2534_v23, %v2530_v24  ;;  %v2549_v62 = vor.u32 1.1754944e-38, %v2548_v54 }
 0x476   :  { %v2539_v58 = vsub.f32 1.0, %v2538_v4  ;;  %v1914_v52 = vadd.f32 %v1784_v49, %v1288_v46  ;;  %vm2544_vm9 = vmor %vm2542_vm8, %vm2543_vm6  ;;  %v573_v7 = vpack.c.bf16 %v8912_v44, %v15374_v33  ;;  %v3258_v21 = vmul.f32 %v2535_v43, %v9380_v38  ;;  %v9501_v44 = vpop.f32.mrf.mxu2 }
 0x477   :  { %15376 = vst [vmem:[#allocation39_spill] sm:$0xff] %v9501_v44  ;;  %v2563_v24 = vand.u32 2147483648, %v9458_v53  ;;  %vm2557_vm15 = vweird.f32 %v9458_v53  ;;  %v2561_v43 = vand.u32 2147483647, %v9458_v53 }
 0x478   :  { %v2540_v5 = vmul.f32 %v7558_v31, %v2539_v58  ;;  %v9481_v22 = vadd.f32 %v9450_v10, %v1914_v52 }
 0x479   :  { %v2564_v33 = vor.u32 1.1754944e-38, %v2563_v24  ;;  %vm2562_vm7 = vcmp.eq.f32.partialorder %v2561_v43, 8.507059e+37  ;;  %v15383_v43 = vld [vmem:[#allocation33_spill] sm:$0xff] }
 0x47a   :  { %v7560_v30 = vpop.eup %7559  ;;  %v2541_v57 = vadd.f32 %v7558_v31, %v2540_v5  ;;  %v6994_v37 = vmul.f32 -1.442695, %v9481_v22 }
 0x47b   :  { %v9483_v63 = vpop.eup %7561  ;;  %v2237_v55 = vadd.f32 1.0, %v7560_v30  ;;  %v1289_v51 = vpop.f32.mrf.mxu3 }
 0x47c   :  { %v2545_v2 = vsel %vm2544_vm9, %v7558_v31, %v2541_v57  ;;  %v2553_v28 = vmul.f32 %v9483_v63, %v9458_v53  ;;  %v15375_v31 = vld [vmem:[#allocation27_spill] sm:$0xff]  ;;  %vm2558_vm11 = vweird.f32 %v9483_v63 }
 0x47d   :  { %v2550_v49 = vsel %vm2547_vm10, %v2549_v62, %v2545_v2  ;;  %7563 = vrcp.f32 %v2237_v55  ;;  %v1290_v4 = vadd.f32 %v1289_v51, %v15375_v31  ;;  %v2578_v23 = vand.u32 2147483648, %v2237_v55  ;;  %vm9511_vm0 = vmor %vm2557_vm15, %vm2558_vm11  ;;  %v15380_v53 = vld [vmem:[#allocation31_spill] sm:$0xff] }
 0x47e   :  { %v3259_v16 = vmul.f32 %v2550_v49, %v9400_v61  ;;  %7565 = vpow2.f32 %v6994_v37  ;;  %v2554_v56 = vsub.f32 1.0, %v2553_v28  ;;  %v1789_v61 = vpop.f32.mrf.mxu0  ;;  %vm2572_vm1 = vweird.f32 %v2237_v55  ;;  %v15379_v28 = vld [vmem:[#allocation29_spill] sm:$0xff]  ;;  %v9523_v31 = vpop.f32.mrf.mxu2 }
 0x47f   :  { %v1915_v12 = vadd.f32 %v1786_v15, %v1290_v4  ;;  %v2576_v15 = vand.u32 2147483647, %v2237_v55  ;;  %v2579_v2 = vor.u32 1.1754944e-38, %v2578_v23  ;;  %15381 = vst [vmem:[#allocation40_spill] sm:$0xff] %v9523_v31  ;;  %v15408_v31 = vld [vmem:[#allocation20_spill] sm:$0xff] }
 0x480   :  { %1331 = vmatmul.bf16.gmra.mxu3 %v573_v7  ;;  %v3314_v6 = vpack.c.bf16 %v3259_v16, %v3258_v21  ;;  %v2555_v34 = vmul.f32 %v9483_v63, %v2554_v56 }
 0x481   :  { %v9499_v46 = vadd.f32 %v9450_v10, %v1915_v12  ;;  %vm2577_vm6 = vcmp.eq.f32.partialorder %v2576_v15, 8.507059e+37 }
 0x482   :  { %3488 = vmatmul.bf16.gmra.mxu1 %v3314_v6  ;;  %3657 = vmatmul.bf16.gmra.mxu2 %v3314_v6  ;;  %v2556_v52 = vadd.f32 %v9483_v63, %v2555_v34 }
 0x483   :  { %v7564_v58 = vpop.eup %7563  ;;  %v1292_v36 = vpop.f32.mrf.mxu3  ;;  %v6995_v54 = vmul.f32 -1.442695, %v9499_v46 }
 0x484   :  { %v7566_v17 = vpop.eup %7565  ;;  %v2568_v38 = vmul.f32 %v7564_v58, %v2237_v55  ;;  %vm2573_vm14 = vweird.f32 %v7564_v58  ;;  %v2560_v50 = vsel %vm9511_vm0, %v9483_v63, %v2556_v52  ;;  %v1293_v37 = vadd.f32 %v1292_v36, %v15379_v28 }
 0x485   :  { %v9507_v30 = vadd.f32 1.0, %v7566_v17  ;;  %7567 = vpow2.f32 %v6995_v54  ;;  %vm2574_vm5 = vmor %vm2572_vm1, %vm2573_vm14  ;;  %v574_v55 = vpack.c.bf16 %v8916_v14, %v8914_v18  ;;  %v2565_v63 = vsel %vm2562_vm7, %v2564_v33, %v2560_v50 }
 0x486   :  { %v2569_v5 = vsub.f32 1.0, %v2568_v38  ;;  %v1791_v4 = vpop.f32.mrf.mxu0  ;;  %v1916_v34 = vadd.f32 %v1789_v61, %v1293_v37  ;;  %v3260_v38 = vmul.f32 %v2565_v63, %v9420_v42  ;;  %v9540_v52 = vpop.f32.mrf.mxu2  ;;  %v575_v28 = vpack.c.bf16 %v8928_v29, %v8922_v9 }
 0x487   :  { %7569 = vrcp.f32 %v9507_v30  ;;  %15382 = vst [vmem:[#allocation21_spill] sm:$0xff] %v9540_v52  ;;  %vm2587_vm11 = vweird.f32 %v9507_v30  ;;  %v2591_v9 = vand.u32 2147483647, %v9507_v30 }
 0x488   :  { %v2570_v57 = vmul.f32 %v7564_v58, %v2569_v5  ;;  %v9535_v14 = vadd.f32 %v9450_v10, %v1916_v34 }
 0x489   :  { %vm2592_vm1 = vcmp.eq.f32.partialorder %v2591_v9, 8.507059e+37 }
 0x48a   :  { %v2571_v51 = vadd.f32 %v7564_v58, %v2570_v57  ;;  %v6996_v5 = vmul.f32 -1.442695, %v9535_v14 }
 0x48b   :  { %v1294_v49 = vpop.f32.mrf.mxu3  ;;  %v7568_v56 = vpop.eup %7567 }
 0x48c   :  { %v2575_v7 = vsel %vm2574_vm5, %v7564_v58, %v2571_v51  ;;  %v1295_v21 = vadd.f32 %v1294_v49, %v15380_v53  ;;  %v2239_v12 = vadd.f32 1.0, %v7568_v56  ;;  %v7276_v58 = vld [vmem:[%s15059_s2 + $0xa8] sm:$0xff]  ;;  %v2593_v56 = vand.u32 2147483648, %v9507_v30 }
 0x48d   :  { %v2580_v16 = vsel %vm2577_vm6, %v2579_v2, %v2575_v7  ;;  %v7570_v17 = vpop.eup %7569  ;;  %6963 = vmatmul.msk.bf16.gmra.mxu0 %vm288_vm4, %v7276_v58 }
 0x48e   :  { %v3261_v6 = vmul.f32 %v2580_v16, %v9453_v48  ;;  %v1917_v36 = vadd.f32 %v1791_v4, %v1295_v21  ;;  %7571 = vrcp.f32 %v2239_v12  ;;  %v2583_v61 = vmul.f32 %v7570_v17, %v9507_v30  ;;  %v1794_v2 = vpop.f32.mrf.mxu0  ;;  %v9547_v63 = vpop.f32.mrf.mxu2 }
 0x48f   :  { %v2608_v7 = vand.u32 2147483648, %v2239_v12  ;;  %vm2588_vm9 = vweird.f32 %v7570_v17  ;;  %vm2602_vm10 = vweird.f32 %v2239_v12  ;;  %v2606_v21 = vand.u32 2147483647, %v2239_v12  ;;  %15384 = vst [vmem:[#allocation23_spill] sm:$0xff] %v9547_v63 }
 0x490   :  { %1336 = vmatmul.bf16.gmra.mxu3 %v574_v55  ;;  %v9531_v18 = vadd.f32 %v9450_v10, %v1917_v36  ;;  %v3315_v48 = vpack.c.bf16 %v3261_v6, %v3260_v38  ;;  %v2584_v23 = vsub.f32 1.0, %v2583_v61  ;;  %vm2589_vm15 = vmor %vm2587_vm11, %vm2588_vm9  ;;  %v2594_v58 = vor.u32 1.1754944e-38, %v2593_v56 }
 0x491   :  { %vm2607_vm0 = vcmp.eq.f32.partialorder %v2606_v21, 8.507059e+37 }
 0x492   :  { %v6997_v54 = vmul.f32 -1.442695, %v9531_v18  ;;  %3493 = vmatmul.bf16.gmra.mxu1 %v3315_v48  ;;  %3662 = vmatmul.bf16.gmra.mxu2 %v3315_v48  ;;  %v2585_v51 = vmul.f32 %v7570_v17, %v2584_v23  ;;  %v9557_v48 = vpop.f32.mrf.mxu1 }
 0x493   :  { %v1297_v42 = vpop.f32.mrf.mxu3 }
 0x494   :  { %v7572_v24 = vpop.eup %7571  ;;  %7573 = vpow2.f32 %v6997_v54  ;;  %v1298_v62 = vadd.f32 %v1297_v42, %v15383_v43  ;;  %v2586_v53 = vadd.f32 %v7570_v17, %v2585_v51  ;;  %v15385_v54 = vld [vmem:[#allocation35_spill] sm:$0xff] }
 0x495   :  { %v2598_v57 = vmul.f32 %v7572_v24, %v2239_v12  ;;  %7575 = vpow2.f32 %v6996_v5  ;;  %vm2603_vm8 = vweird.f32 %v7572_v24  ;;  %v2609_v12 = vor.u32 1.1754944e-38, %v2608_v7 }
 0x496   :  { %v1918_v49 = vadd.f32 %v1794_v2, %v1298_v62  ;;  %vm2604_vm14 = vmor %vm2602_vm10, %vm2603_vm8  ;;  %v2590_v34 = vsel %vm2589_vm15, %v7570_v17, %v2586_v53  ;;  %v1796_v5 = vpop.f32.mrf.mxu0  ;;  %v9565_v23 = vpop.f32.mrf.mxu2 }
 0x497   :  { %v2599_v15 = vsub.f32 1.0, %v2598_v57  ;;  %v2595_v61 = vsel %vm2592_vm1, %v2594_v58, %v2590_v34  ;;  %v7277_v57 = vld [vmem:[%s15059_s2 + $0xb0] sm:$0xff] }
 0x498   :  { %v9553_v6 = vadd.f32 %v9450_v10, %v1918_v49  ;;  %v3262_v17 = vmul.f32 %v2595_v61, %v9481_v22  ;;  %v576_v22 = vpack.c.bf16 %v8939_v11, %v8930_v20 }
 0x499   :  { %v2600_v50 = vmul.f32 %v7572_v24, %v2599_v15 }
 0x49a   :  { %v7574_v33 = vpop.eup %7573  ;;  %v6998_v30 = vmul.f32 -1.442695, %v9553_v6  ;;  %v9578_v49 = vpop.f32.mrf.mxu1 }
 0x49b   :  { %v2601_v37 = vadd.f32 %v7572_v24, %v2600_v50  ;;  %v7576_v16 = vpop.eup %7575  ;;  %v1299_v55 = vpop.f32.mrf.mxu3  ;;  %v9550_v4 = vadd.f32 1.0, %v7574_v33 }
 0x49c   :  { %v9555_v36 = vadd.f32 1.0, %v7576_v16 }
 0x49d   :  { %v2605_v29 = vsel %vm2604_vm14, %v7572_v24, %v2601_v37  ;;  %7577 = vrcp.f32 %v9550_v4  ;;  %v1300_v24 = vadd.f32 %v1299_v55, %v15385_v54  ;;  %6964 = vmatmul.msk.bf16.gmra.mxu0 %vm288_vm4, %v7277_v57  ;;  %v2638_v61 = vand.u32 2147483648, %v9550_v4 }
 0x49e   :  { %v2610_v38 = vsel %vm2607_vm0, %v2609_v12, %v2605_v29  ;;  %7579 = vrcp.f32 %v9555_v36  ;;  %v1799_v7 = vpop.f32.mrf.mxu0  ;;  %v9583_v16 = vpop.f32.mrf.mxu2  ;;  %vm2632_vm7 = vweird.f32 %v9550_v4  ;;  %vm2617_vm9 = vweird.f32 %v9555_v36 }
 0x49f   :  { %v3263_v42 = vmul.f32 %v2610_v38, %v9499_v46  ;;  %7581 = vpow2.f32 %v6998_v30  ;;  %v1919_v15 = vadd.f32 %v1796_v5, %v1300_v24 }
 0x4a0   :  { %1341 = vmatmul.bf16.gmra.mxu3 %v575_v28 }
 0x4a1   :  { %v3316_v51 = vpack.c.bf16 %v3263_v42, %v3262_v17  ;;  %v9572_v50 = vadd.f32 %v9450_v10, %v1919_v15  ;;  %v577_v42 = vpack.c.bf16 %v8952_v35, %v8944_v25  ;;  %v2639_v35 = vor.u32 1.1754944e-38, %v2638_v61 }
 0x4a2   :  { %v9589_v34 = vpop.f32.mrf.mxu1 }
 0x4a3   :  { %v1302_v43 = vpop.f32.mrf.mxu3  ;;  %v7578_v62 = vpop.eup %7577  ;;  %3498 = vmatmul.bf16.gmra.mxu1 %v3316_v51  ;;  %3667 = vmatmul.bf16.gmra.mxu2 %v3316_v51  ;;  %v6999_v28 = vmul.f32 -1.442695, %v9572_v50 }
 0x4a4   :  { %v7580_v46 = vpop.eup %7579  ;;  %v2628_v2 = vmul.f32 %v7578_v62, %v9550_v4  ;;  %v1303_v58 = vadd.f32 %v1302_v43, %v9023_v47  ;;  %vm2633_vm5 = vweird.f32 %v7578_v62  ;;  %v2623_v47 = vand.u32 2147483648, %v9555_v36  ;;  %v7278_v43 = vld [vmem:[%s15059_s2 + $0xb8] sm:$0xff] }
 0x4a5   :  { %v7582_v37 = vpop.eup %7581  ;;  %v2613_v33 = vmul.f32 %v7580_v46, %v9555_v36  ;;  %7583 = vpow2.f32 %v6999_v28  ;;  %vm2618_vm6 = vweird.f32 %v7580_v46  ;;  %vm9601_vm8 = vmor %vm2632_vm7, %vm2633_vm5 }
 0x4a6   :  { %v2629_v53 = vsub.f32 1.0, %v2628_v2  ;;  %v9581_v21 = vadd.f32 1.0, %v7582_v37  ;;  %v1801_v30 = vpop.f32.mrf.mxu0  ;;  %v9605_v57 = vpop.f32.mrf.mxu2  ;;  %v1920_v15 = vadd.f32 %v1799_v7, %v1303_v58  ;;  %vm2619_vm10 = vmor %vm2617_vm9, %vm2618_vm6  ;;  %v2624_v37 = vor.u32 1.1754944e-38, %v2623_v47 }
 0x4a7   :  { %v2614_v20 = vsub.f32 1.0, %v2613_v33 }
 0x4a8   :  { %v2630_v56 = vmul.f32 %v7578_v62, %v2629_v53  ;;  %7585 = vrcp.f32 %v9581_v21  ;;  %v2653_v47 = vand.u32 2147483648, %v9581_v21  ;;  %vm2647_vm6 = vweird.f32 %v9581_v21 }
 0x4a9   :  { %v2615_v29 = vmul.f32 %v7580_v46, %v2614_v20 }
 0x4aa   :  { %v2631_v38 = vadd.f32 %v7578_v62, %v2630_v56  ;;  %v9624_v20 = vpop.f32.mrf.mxu1 }
 0x4ab   :  { %v1304_v11 = vpop.f32.mrf.mxu3  ;;  %v7584_v55 = vpop.eup %7583  ;;  %v2616_v5 = vadd.f32 %v7580_v46, %v2615_v29 }
 0x4ac   :  { %v1305_v9 = vadd.f32 %v1304_v11, %v9034_v8  ;;  %v9587_v12 = vadd.f32 1.0, %v7584_v55  ;;  %v2636_v8 = vand.u32 2147483647, %v9550_v4  ;;  %v2621_v4 = vand.u32 2147483647, %v9555_v36 }
 0x4ad   :  { %v2635_v25 = vsel %vm9601_vm8, %v7578_v62, %v2631_v38  ;;  %6965 = vmatmul.msk.bf16.gmra.mxu0 %vm288_vm4, %v7278_v43  ;;  %v2620_v28 = vsel %vm2619_vm10, %v7580_v46, %v2616_v5  ;;  %v9622_v62 = vadd.f32 %v9450_v10, %v1920_v15 }
 0x4ae   :  { %7587 = vrcp.f32 %v9587_v12  ;;  %v1921_v54 = vadd.f32 %v1801_v30, %v1305_v9  ;;  %v9594_v24 = vpop.eup %7585  ;;  %vm2637_vm11 = vcmp.eq.f32.partialorder %v2636_v8, 8.507059e+37  ;;  %vm2622_vm14 = vcmp.eq.f32.partialorder %v2621_v4, 8.507059e+37  ;;  %v9631_v30 = vpop.f32.mrf.mxu2  ;;  %v15390_v4 = vld [vmem:[#allocation45_spill] sm:$0xff] }
 0x4af   :  { %v2643_v51 = vmul.f32 %v9594_v24, %v9581_v21  ;;  %v2640_v33 = vsel %vm2637_vm11, %v2639_v35, %v2635_v25  ;;  %v2625_v7 = vsel %vm2622_vm14, %v2624_v37, %v2620_v28  ;;  %v7000_v46 = vmul.f32 -1.442695, %v9622_v62  ;;  %v15391_v25 = vld [vmem:[#allocation48_spill] sm:$0xff] }
 0x4b0   :  { %1346 = vmatmul.bf16.gmra.mxu3 %v576_v22  ;;  %v9617_v22 = vadd.f32 %v9450_v10, %v1921_v54  ;;  %v3265_v55 = vmul.f32 %v2640_v33, %v9531_v18  ;;  %v3264_v58 = vmul.f32 %v2625_v7, %v9535_v14  ;;  %v2668_v8 = vand.u32 2147483648, %v9587_v12 }
 0x4b1   :  { %v2644_v53 = vsub.f32 1.0, %v2643_v51  ;;  %vm2648_vm0 = vweird.f32 %v9594_v24  ;;  %vm2662_vm1 = vweird.f32 %v9587_v12  ;;  %v2666_v14 = vand.u32 2147483647, %v9587_v12 }
 0x4b2   :  { %v7001_v56 = vmul.f32 -1.442695, %v9617_v22  ;;  %v3317_v61 = vpack.c.bf16 %v3265_v55, %v3264_v58  ;;  %v578_v35 = vpack.c.bf16 %v15391_v25, %v15390_v4  ;;  %v9653_v28 = vpop.f32.mrf.mxu1  ;;  %vm2649_vm7 = vmor %vm2647_vm6, %vm2648_vm0  ;;  %v2669_v37 = vor.u32 1.1754944e-38, %v2668_v8 }
 0x4b3   :  { %v1307_v29 = vpop.f32.mrf.mxu3  ;;  %v2645_v38 = vmul.f32 %v9594_v24, %v2644_v53  ;;  %vm2667_vm8 = vcmp.eq.f32.partialorder %v2666_v14, 8.507059e+37 }
 0x4b4   :  { %v7588_v2 = vpop.eup %7587  ;;  %7589 = vpow2.f32 %v7001_v56  ;;  %v1308_v54 = vadd.f32 %v1307_v29, %v9040_v19  ;;  %3503 = vmatmul.bf16.gmra.mxu1 %v3317_v61  ;;  %3672 = vmatmul.bf16.gmra.mxu2 %v3317_v61  ;;  %v3354_v19 = vld [vmem:[%s15066_s9] sm:$0x3] }
 0x4b5   :  { %v2658_v36 = vmul.f32 %v7588_v2, %v9587_v12  ;;  %vm2663_vm15 = vweird.f32 %v7588_v2  ;;  %7591 = vpow2.f32 %v7000_v46  ;;  %v2646_v18 = vadd.f32 %v9594_v24, %v2645_v38  ;;  %v15393_v38 = vld [vmem:[#allocation63_spill] sm:$0xff] }
 0x4b6   :  { %vm9643_vm5 = vmor %vm2662_vm1, %vm2663_vm15  ;;  %v2651_v12 = vand.u32 2147483647, %v9581_v21  ;;  %v9676_v8 = vperm.slane %v3354_v19, 1 }
 0x4b7   :  { %v2659_v11 = vsub.f32 1.0, %v2658_v36  ;;  %v9655_v36 = vperm.slane %v3354_v19, 0  ;;  %v2650_v7 = vsel %vm2649_vm7, %v9594_v24, %v2646_v18 }
 0x4b8   :  { %vm2652_vm9 = vcmp.eq.f32.partialorder %v2651_v12, 8.507059e+37  ;;  %15394 = vst [vmem:[#allocation25_spill] sm:$0xff] %v9676_v8  ;;  %v15395_v12 = vld [vmem:[#allocation50_spill] sm:$0xff]  ;;  %v3624_v60 = vadd.f32 %v9605_v57, %v9676_v8 }
 0x4b9   :  { %v2660_v9 = vmul.f32 %v7588_v2, %v2659_v11  ;;  %15392 = vst [vmem:[#allocation41_spill] sm:$0xff] %v9655_v36  ;;  %v2654_v11 = vor.u32 1.1754944e-38, %v2653_v47  ;;  %v9669_v29 = vadd.f32 %v9557_v48, %v9655_v36  ;;  %v7279_v48 = vld [vmem:[%s15059_s2 + $0xc0] sm:$0xff]  ;;  %v9685_v14 = vadd.f32 %v9578_v49, %v9655_v36 }
 0x4ba   :  { %v7590_v43 = vpop.eup %7589  ;;  %v3619_v49 = vadd.f32 %v9565_v23, %v9676_v8  ;;  %v9792_v44 = vadd.f32 %v9624_v20, %v9655_v36 }
 0x4bb   :  { %v2661_v5 = vadd.f32 %v7588_v2, %v2660_v9  ;;  %v7592_v33 = vpop.eup %7591  ;;  %v9661_v21 = vadd.f32 1.0, %v7590_v43  ;;  %v1309_v55 = vpop.f32.mrf.mxu3  ;;  %v2655_v9 = vsel %vm2652_vm9, %v2654_v11, %v2650_v7  ;;  %v15397_v7 = vld [vmem:[#allocation64_spill] sm:$0xff] }
 0x4bc   :  { %v9665_v46 = vadd.f32 1.0, %v7592_v33  ;;  %v1310_v61 = vadd.f32 %v1309_v55, %v15393_v38  ;;  %15406 = vst [vmem:[#allocation27_spill] sm:$0xff] %v9792_v44 }
 0x4bd   :  { %v2665_v51 = vsel %vm9643_vm5, %v7588_v2, %v2661_v5  ;;  %v9663_v2 = vpop.f32.mrf.mxu2  ;;  %7593 = vrcp.f32 %v9661_v21  ;;  %6966 = vmatmul.msk.bf16.gmra.mxu0 %vm288_vm4, %v7279_v48  ;;  %vm2692_vm14 = vweird.f32 %v9661_v21 }
 0x4be   :  { %v2670_v56 = vsel %vm2667_vm8, %v2669_v37, %v2665_v51  ;;  %7595 = vrcp.f32 %v9665_v46  ;;  %v15396_v51 = vld [vmem:[#allocation52_spill] sm:$0xff]  ;;  %vm2677_vm0 = vweird.f32 %v9665_v46 }
 0x4bf   :  { %v3267_v24 = vmul.f32 %v2670_v56, %v9572_v50  ;;  %v7102_v50 = vmul.f32 -1.442695, %v9669_v29  ;;  %v579_v37 = vpack.c.bf16 %v15396_v51, %v15395_v12  ;;  %v7166_v56 = vmul.f32 -1.442695, %v3619_v49 }
 0x4c0   :  { %1351 = vmatmul.bf16.gmra.mxu3 %v577_v42  ;;  %v1804_v42 = vpop.f32.mrf.mxu0 }
 0x4c1   :  { %v1922_v15 = vadd.f32 %v1804_v42, %v1308_v54  ;;  %v3266_v54 = vmul.f32 %v2655_v9, %v9553_v6  ;;  %v9687_v42 = vpop.f32.mrf.mxu1 }
 0x4c3   :  { %v9659_v53 = vadd.f32 %v9450_v10, %v1922_v15  ;;  %v3318_v6 = vpack.c.bf16 %v3267_v24, %v3266_v54  ;;  %v9693_v47 = vpop.eup %7593  ;;  %v7103_v15 = vmul.f32 -1.442695, %v9685_v14  ;;  %v1312_v4 = vpop.f32.mrf.mxu3  ;;  %v3621_v54 = vadd.f32 %v9583_v16, %v9676_v8 }
 0x4c4   :  { %v9701_v25 = vpop.eup %7595  ;;  %v2688_v33 = vmul.f32 %v9693_v47, %v9661_v21  ;;  %v1313_v11 = vadd.f32 %v1312_v4, %v15397_v7  ;;  %v9727_v16 = vadd.f32 %v9589_v34, %v9655_v36  ;;  %vm2693_vm10 = vweird.f32 %v9693_v47 }
 0x4c5   :  { %v7002_v58 = vmul.f32 -1.442695, %v9659_v53  ;;  %3508 = vmatmul.bf16.gmra.mxu1 %v3318_v6  ;;  %3677 = vmatmul.bf16.gmra.mxu2 %v3318_v6  ;;  %v9699_v43 = vpop.f32.mrf.mxu2  ;;  %v2673_v23 = vmul.f32 %v9701_v25, %v9665_v46  ;;  %v7167_v4 = vmul.f32 -1.442695, %v3621_v54  ;;  %vm2678_vm11 = vweird.f32 %v9701_v25  ;;  %vm9758_vm15 = vmor %vm2692_vm14, %vm2693_vm10 }
 0x4c6   :  { %v2689_v24 = vsub.f32 1.0, %v2688_v33  ;;  %vm9778_vm1 = vmor %vm2677_vm0, %vm2678_vm11 }
 0x4c7   :  { %7597 = vpow2.f32 %v7002_v58 }
 0x4c8   :  { %v1806_v5 = vpop.f32.mrf.mxu0  ;;  %7599 = vpow2.f32 %v7102_v50 }
 0x4c9   :  { %v1923_v18 = vadd.f32 %v1806_v5, %v1310_v61  ;;  %v9712_v58 = vpop.f32.mrf.mxu1 }
 0x4cb   :  { %v9690_v19 = vadd.f32 %v9450_v10, %v1923_v18  ;;  %v2674_v18 = vsub.f32 1.0, %v2673_v23 }
 0x4cd   :  { %v7003_v17 = vmul.f32 -1.442695, %v9690_v19  ;;  %v9722_v49 = vpop.f32.mrf.mxu2  ;;  %v2675_v12 = vmul.f32 %v9701_v25, %v2674_v18  ;;  %v2696_v18 = vand.u32 2147483647, %v9661_v21 }
 0x4cf   :  { %7601 = vpow2.f32 %v7003_v17  ;;  %v2690_v17 = vmul.f32 %v9693_v47, %v2689_v24  ;;  %v7104_v24 = vmul.f32 -1.442695, %v9727_v16  ;;  %vm2697_vm5 = vcmp.eq.f32.partialorder %v2696_v18, 8.507059e+37  ;;  %v15409_v18 = vld [vmem:[#allocation22_spill] sm:$0xff] }
 0x4d0   :  { %1356 = vmatmul.bf16.gmra.mxu3 %v578_v35  ;;  %v7598_v35 = vpop.eup %7597  ;;  %7603 = vpow2.f32 %v7103_v15  ;;  %v1809_v38 = vpop.f32.mrf.mxu0 }
 0x4d1   :  { %v9710_v55 = vadd.f32 1.0, %v7598_v35  ;;  %v7600_v9 = vpop.eup %7599  ;;  %v1924_v5 = vadd.f32 %v1809_v38, %v1313_v11  ;;  %7605 = vpow2.f32 %v7166_v56  ;;  %v1314_v15 = vpop.f32.mrf.mxu3  ;;  %v15399_v11 = vld [vmem:[#allocation54_spill] sm:$0xff]  ;;  %v15400_v56 = vld [vmem:[#allocation57_spill] sm:$0xff]  ;;  %v2698_v38 = vand.u32 2147483648, %v9661_v21  ;;  %v7280_v21 = vld [vmem:[%s15059_s2 + $0xc8] sm:$0xff] }
 0x4d2   :  { %v9719_v6 = vadd.f32 1.0, %v7600_v9  ;;  %v580_v23 = vpack.c.bf16 %v15400_v56, %v15399_v11  ;;  %v2691_v9 = vadd.f32 %v9693_v47, %v2690_v17  ;;  %v2681_v11 = vand.u32 2147483647, %v9665_v46  ;;  %6967 = vmatmul.msk.bf16.gmra.mxu0 %vm288_vm4, %v7280_v21 }
 0x4d3   :  { %7607 = vrcp.f32 %v9710_v55  ;;  %v9730_v35 = vadd.f32 %v9450_v10, %v1924_v5  ;;  %v2676_v5 = vadd.f32 %v9701_v25, %v2675_v12  ;;  %vm2707_vm11 = vweird.f32 %v9710_v55 }
 0x4d4   :  { %v2695_v56 = vsel %vm9758_vm15, %v9693_v47, %v2691_v9  ;;  %vm2682_vm6 = vcmp.eq.f32.partialorder %v2681_v11, 8.507059e+37 }
 0x4d5   :  { %v7602_v61 = vpop.eup %7601  ;;  %v2680_v47 = vsel %vm9778_vm1, %v9701_v25, %v2676_v5  ;;  %v9788_v9 = vpop.f32.mrf.mxu2 }
 0x4d6   :  { %v9716_v48 = vadd.f32 1.0, %v7602_v61  ;;  %v7604_v50 = vpop.eup %7603  ;;  %v7004_v61 = vmul.f32 -1.442695, %v9730_v35 }
 0x4d7   :  { %v9733_v51 = vadd.f32 1.0, %v7604_v50  ;;  %v7606_v7 = vpop.eup %7605  ;;  %v9752_v50 = vpop.f32.mrf.mxu1 }
 0x4d8   :  { %7609 = vrcp.f32 %v9716_v48  ;;  %v1811_v17 = vpop.f32.mrf.mxu0  ;;  %v9774_v63 = vadd.f32 1.0, %v7606_v7  ;;  %vm2722_vm9 = vweird.f32 %v9716_v48  ;;  %v2726_v57 = vand.u32 2147483647, %v9716_v48 }
 0x4d9   :  { %7611 = vrcp.f32 %v9719_v6  ;;  %v9741_v34 = vpop.eup %7607 }
 0x4da   :  { %7613 = vpow2.f32 %v7167_v4  ;;  %v2703_v52 = vmul.f32 %v9741_v34, %v9710_v55  ;;  %15403 = vst [vmem:[#allocation42_spill] sm:$0xff] %v9774_v63  ;;  %vm2708_vm8 = vweird.f32 %v9741_v34  ;;  %vm2727_vm0 = vcmp.eq.f32.partialorder %v2726_v57, 8.507059e+37 }
 0x4db   :  { %7615 = vrcp.f32 %v9733_v51  ;;  %vm9861_vm14 = vmor %vm2707_vm11, %vm2708_vm8  ;;  %vm4054_vm8 = vweird.f32 %v9733_v51 }
 0x4dc   :  { %7617 = vpow2.f32 %v7004_v61  ;;  %v2704_v25 = vsub.f32 1.0, %v2703_v52 }
 0x4dd   :  { %7619 = vpow2.f32 %v7104_v24  ;;  %v15407_v24 = vld [vmem:[#allocation18_spill] sm:$0xff] }
 0x4de   :  { %v9746_v54 = vpop.eup %7609  ;;  %7621 = vrcp.f32 %v9774_v63  ;;  %v2705_v27 = vmul.f32 %v9741_v34, %v2704_v25 }
 0x4df   :  { %v2718_v12 = vmul.f32 %v9746_v54, %v9716_v48  ;;  %vm2723_vm7 = vweird.f32 %v9746_v54 }
 0x4e0   :  { %1361 = vmatmul.bf16.gmra.mxu3 %v579_v37  ;;  %v15398_v37 = vld [vmem:[#allocation65_spill] sm:$0xff]  ;;  %v1814_v45 = vpop.f32.mrf.mxu0  ;;  %vm9848_vm10 = vmor %vm2722_vm9, %vm2723_vm7 }
 0x4e1   :  { %v1315_v33 = vadd.f32 %v1314_v15, %v15398_v37  ;;  %v2683_v15 = vand.u32 2147483648, %v9665_v46  ;;  %v9783_v46 = vpop.eup %7611  ;;  %v2719_v7 = vsub.f32 1.0, %v2718_v12  ;;  %v15410_v12 = vld [vmem:[#allocation24_spill] sm:$0xff] }
 0x4e2   :  { %v7614_v4 = vpop.eup %7613  ;;  %vm4040_vm15 = vweird.f32 %v9783_v46 }
 0x4e3   :  { %v1925_v37 = vadd.f32 %v1811_v17, %v1315_v33  ;;  %v2699_v17 = vor.u32 1.1754944e-38, %v2698_v38  ;;  %v2684_v38 = vor.u32 1.1754944e-38, %v2683_v15  ;;  %v9799_v5 = vpop.eup %7615  ;;  %v4035_v33 = vmul.f32 %v9783_v46, %v9719_v6 }
 0x4e4   :  { %v2720_v11 = vmul.f32 %v9746_v54, %v2719_v7  ;;  %v7618_v0 = vpop.eup %7617  ;;  %v9824_v13 = vadd.f32 1.0, %v7614_v4  ;;  %v2706_v4 = vadd.f32 %v9741_v34, %v2705_v27  ;;  %vm4055_vm9 = vweird.f32 %v9799_v5 }
 0x4e5   :  { %v2700_v61 = vsel %vm2697_vm5, %v2699_v17, %v2695_v56  ;;  %v9795_v21 = vadd.f32 %v9450_v10, %v1925_v37  ;;  %v2685_v20 = vsel %vm2682_vm6, %v2684_v38, %v2680_v47  ;;  %v1317_v56 = vpop.f32.mrf.mxu3  ;;  %v15411_v17 = vld [vmem:[#allocation26_spill] sm:$0xff]  ;;  %v15412_v37 = vld [vmem:[#allocation28_spill] sm:$0xff]  ;;  %v7105_v47 = vmul.f32 -1.442695, %v9792_v44  ;;  %v7620_v38 = vpop.eup %7619 }
 0x4e6   :  { %v3269_v52 = vmul.f32 %v2700_v61, %v9617_v22  ;;  %v3268_v39 = vmul.f32 %v2685_v20, %v9622_v62  ;;  %v9820_v22 = vpop.f32.mrf.mxu1  ;;  %v4036_v7 = vsub.f32 1.0, %v4035_v33  ;;  %v4050_v61 = vmul.f32 %v9799_v5, %v9733_v51  ;;  %15417 = vst [vmem:[#allocation29_spill] sm:$0xff] %v9824_v13 }
 0x4e7   :  { %v7005_v15 = vmul.f32 -1.442695, %v9795_v21  ;;  %v9830_v62 = vadd.f32 1.0, %v7618_v0  ;;  %v9832_v20 = vadd.f32 1.0, %v7620_v38  ;;  %v2728_v33 = vand.u32 2147483648, %v9716_v48 }
 0x4e8   :  { %v3319_v25 = vpack.c.bf16 %v3269_v52, %v3268_v39  ;;  %v9842_v39 = vpop.eup %7621  ;;  %v4037_v0 = vmul.f32 %v9783_v46, %v4036_v7  ;;  %v4051_v52 = vsub.f32 1.0, %v4050_v61  ;;  %v2711_v48 = vand.u32 2147483647, %v9710_v55 }
 0x4e9   :  { %7623 = vpow2.f32 %v7005_v15  ;;  %v15418_v15 = vld [vmem:[#allocation66_spill] sm:$0xff]  ;;  %15419 = vst [vmem:[#allocation31_spill] sm:$0xff] %v9842_v39  ;;  %v2729_v7 = vor.u32 1.1754944e-38, %v2728_v33  ;;  %vm4039_vm5 = vweird.f32 %v9719_v6 }
 0x4ea   :  { %7625 = vpow2.f32 %v7105_v47  ;;  %v1318_v59 = vadd.f32 %v1317_v56, %v15418_v15  ;;  %3513 = vmatmul.bf16.gmra.mxu1 %v3319_v25  ;;  %3682 = vmatmul.bf16.gmra.mxu2 %v3319_v25  ;;  %v7168_v47 = vmul.f32 -1.442695, %v3624_v60  ;;  %v2713_v56 = vand.u32 2147483648, %v9710_v55  ;;  %vm9904_vm7 = vmor %vm4039_vm5, %vm4040_vm15 }
 0x4eb   :  { %7627 = vrcp.f32 %v9830_v62  ;;  %v2710_v55 = vsel %vm9861_vm14, %v9741_v34, %v2706_v4  ;;  %vm2712_vm1 = vcmp.eq.f32.partialorder %v2711_v48, 8.507059e+37  ;;  %v15425_v34 = vpack.c.bf16 %v15408_v31, %v15407_v24 }
 0x4ec   :  { %7629 = vrcp.f32 %v9832_v20  ;;  %v1926_v15 = vadd.f32 %v1814_v45, %v1318_v59  ;;  %v2714_v27 = vor.u32 1.1754944e-38, %v2713_v56  ;;  %v4038_v45 = vadd.f32 %v9783_v46, %v4037_v0  ;;  %v1816_v56 = vpop.f32.mrf.mxu0 }
 0x4ed   :  { %v1319_v44 = vpop.f32.mrf.mxu3  ;;  %7631 = vrcp.f32 %v9824_v13  ;;  %v4075_v48 = vand.u32 2147483648, %v9832_v20  ;;  %vm4069_vm15 = vweird.f32 %v9832_v20 }
 0x4ee   :  { %v9878_v59 = vpop.f32.mrf.mxu1  ;;  %v2715_v4 = vsel %vm2712_vm1, %v2714_v27, %v2710_v55  ;;  %v9887_v57 = vadd.f32 %v9450_v10, %v1926_v15  ;;  %v4042_v55 = vsel %vm9904_vm7, %v9783_v46, %v4038_v45 }
 0x4ef   :  { %v7624_v38 = vpop.eup %7623 }
 0x4f0   :  { %1366 = vmatmul.bf16.gmra.mxu3 %v580_v23  ;;  %v2721_v23 = vadd.f32 %v9746_v54, %v2720_v11  ;;  %v9840_v11 = vpop.f32.mrf.mxu2  ;;  %v9865_v61 = vadd.f32 1.0, %v7624_v38  ;;  %v1320_v38 = vadd.f32 %v1319_v44, %v9133_v1  ;;  %v7006_v46 = vmul.f32 -1.442695, %v9887_v57 }
 0x4f2   :  { %v2725_v25 = vsel %vm9848_vm10, %v9746_v54, %v2721_v23  ;;  %v7626_v54 = vpop.eup %7625  ;;  %v9874_v23 = vadd.f32 %v9653_v28, %v9655_v36  ;;  %7633 = vrcp.f32 %v9865_v61  ;;  %v4052_v28 = vmul.f32 %v9799_v5, %v4051_v52  ;;  %vm9962_vm10 = vmor %vm4054_vm8, %vm4055_vm9 }
 0x4f3   :  { %v2730_v33 = vsel %vm2727_vm0, %v2729_v7, %v2725_v25  ;;  %7635 = vpow2.f32 %v7168_v47  ;;  %v9889_v0 = vpop.eup %7627  ;;  %v15426_v47 = vand.u32 2147483647, %v9719_v6  ;;  %v9897_v1 = vadd.f32 1.0, %v7626_v54 }
 0x4f4   :  { %15424 = vst [vmem:[#allocation33_spill] sm:$0xff] %v9874_v23  ;;  %v3271_v44 = vmul.f32 %v2730_v33, %v9690_v19  ;;  %v1927_v31 = vadd.f32 %v1816_v56, %v1320_v38  ;;  %v9900_v24 = vpop.eup %7629  ;;  %v15431_v25 = vand.u32 2147483648, %v9719_v6  ;;  %v9912_v7 = vmul.f32 %v9842_v39, %v9774_v63 }
 0x4f5   :  { %vm9893_vm6 = vcmp.eq.f32.partialorder %v15426_v47, 8.507059e+37  ;;  %v7106_v19 = vmul.f32 -1.442695, %v9874_v23  ;;  %v9916_v15 = vpop.eup %7631  ;;  %v3270_v54 = vmul.f32 %v2715_v4, %v9659_v53  ;;  %v4053_v38 = vadd.f32 %v9799_v5, %v4052_v28  ;;  %v7281_v53 = vld [vmem:[%s15059_s2 + $0xd0] sm:$0xff] }
 0x4f6   :  { %v4046_v60 = vor.u32 1.1754944e-38, %v15431_v25  ;;  %15432 = vst [vmem:[#allocation35_spill] sm:$0xff] %v9912_v7  ;;  %v9926_v27 = vadd.f32 %v9450_v10, %v1927_v31  ;;  %v2733_v56 = vmul.f32 %v9889_v0, %v9830_v62  ;;  %v4065_v10 = vmul.f32 %v9900_v24, %v9832_v20  ;;  %6968 = vmatmul.msk.bf16.gmra.mxu0 %vm288_vm4, %v7281_v53 }
 0x4f7   :  { %15433 = vst [vmem:[#allocation45_spill] sm:$0xff] %v9916_v15  ;;  %7637 = vrcp.f32 %v9897_v1  ;;  %v3320_v4 = vpack.c.bf16 %v3271_v44, %v3270_v54  ;;  %v4060_v47 = vand.u32 2147483648, %v9733_v51  ;;  %v9952_v25 = vmul.f32 %v9916_v15, %v9824_v13  ;;  %v1322_v54 = vpop.f32.mrf.mxu3  ;;  %v9974_v13 = vpop.f32.mrf.mxu1 }
 0x4f8   :  { %v9923_v6 = vpop.f32.mrf.mxu2  ;;  %v9928_v33 = vpop.eup %7633  ;;  %7639 = vpow2.f32 %v7106_v19  ;;  %v7007_v31 = vmul.f32 -1.442695, %v9926_v27  ;;  %v4047_v52 = vsel %vm9893_vm6, %v4046_v60, %v4042_v55  ;;  %v9956_v63 = vadd.f32 %v9687_v42, %v9655_v36 }
 0x4f9   :  { %v7636_v45 = vpop.eup %7635  ;;  %v2748_v28 = vmul.f32 %v9928_v33, %v9865_v61  ;;  %15434 = vst [vmem:[#allocation48_spill] sm:$0xff] %v9952_v25  ;;  %v2734_v55 = vsub.f32 1.0, %v2733_v56  ;;  %7641 = vpow2.f32 %v7006_v46  ;;  %v4057_v42 = vsel %vm9962_vm10, %v9799_v5, %v4053_v38 }
 0x4fa   :  { %15435 = vst [vmem:[#allocation63_spill] sm:$0xff] %v9956_v63  ;;  %v9967_v60 = vadd.f32 1.0, %v7636_v45  ;;  %v4066_v53 = vsub.f32 1.0, %v4065_v10  ;;  %3518 = vmatmul.bf16.gmra.mxu1 %v3320_v4  ;;  %3687 = vmatmul.bf16.gmra.mxu2 %v3320_v4  ;;  %v4061_v45 = vor.u32 1.1754944e-38, %v4060_v47  ;;  %7643 = vpow2.f32 %v7007_v31 }
 0x4fb   :  { %v2749_v44 = vsub.f32 1.0, %v2748_v28  ;;  %v9981_v19 = vmul.f32 %v4047_v52, %v9669_v29  ;;  %v4073_v5 = vand.u32 2147483647, %v9832_v20  ;;  %v2735_v4 = vmul.f32 %v9889_v0, %v2734_v55  ;;  %v1819_v55 = vpop.f32.mrf.mxu0 }
 0x4fc   :  { %15438 = vst [vmem:[#allocation50_spill] sm:$0xff] %v9967_v60  ;;  %7645 = vrcp.f32 %v9967_v60  ;;  %v4067_v47 = vmul.f32 %v9900_v24, %v4066_v53  ;;  %v9989_v31 = vor.u32 1.1754944e-38, %v4075_v48  ;;  %vm2753_vm14 = vweird.f32 %v9928_v33 }
 0x4fd   :  { %v2750_v56 = vmul.f32 %v9928_v33, %v2749_v44  ;;  %v9978_v46 = vpop.eup %7637  ;;  %15439 = vst [vmem:[#allocation52_spill] sm:$0xff] %v9981_v19  ;;  %v10004_v48 = vadd.f32 %v9712_v58, %v9655_v36  ;;  %v2758_v53 = vand.u32 2147483648, %v9865_v61  ;;  %vm2738_vm0 = vweird.f32 %v9889_v0 }
 0x4fe   :  { %v7640_v38 = vpop.eup %7639  ;;  %v9995_v44 = vmul.f32 %v9978_v46, %v9897_v1  ;;  %vm2752_vm1 = vweird.f32 %v9865_v61  ;;  %v2743_v58 = vand.u32 2147483648, %v9830_v62  ;;  %vm2737_vm6 = vweird.f32 %v9830_v62 }
 0x4ff   :  { %v10000_v10 = vadd.f32 1.0, %v7640_v38  ;;  %15441 = vst [vmem:[#allocation65_spill] sm:$0xff] %v10004_v48  ;;  %vm10018_vm5 = vmor %vm2752_vm1, %vm2753_vm14  ;;  %v2741_v38 = vand.u32 2147483647, %v9830_v62  ;;  %v2759_v19 = vor.u32 1.1754944e-38, %v2758_v53  ;;  %v10043_v62 = vpop.f32.mrf.mxu1  ;;  %vm4070_vm9 = vweird.f32 %v9900_v24 }
 0x500   :  { %1371 = vmatmul.bf16.gmra.mxu3 %v15425_v34  ;;  %v3626_v34 = vadd.f32 %v9631_v30, %v9676_v8  ;;  %v4058_v30 = vand.u32 2147483647, %v9733_v51  ;;  %v3629_v51 = vadd.f32 %v9663_v2, %v9676_v8  ;;  %v7107_v2 = vmul.f32 -1.442695, %v9956_v63  ;;  %v9991_v52 = vpop.f32.mrf.mxu2  ;;  %vm10039_vm7 = vmor %vm2737_vm6, %vm2738_vm0 }
 0x501   :  { %15440 = vst [vmem:[#allocation64_spill] sm:$0xff] %v10000_v10  ;;  %vm10058_vm10 = vcmp.eq.f32.partialorder %v4073_v5, 8.507059e+37  ;;  %vm4084_vm14 = vweird.f32 %v9897_v1  ;;  %vm10089_vm0 = vmor %vm4069_vm15, %vm4070_vm9  ;;  %vm4085_vm15 = vweird.f32 %v9978_v46  ;;  %v15478_v63 = vpack.c.bf16 %v15414_v32, %v15413_v41 }
 0x502   :  { %v7169_v28 = vmul.f32 -1.442695, %v3626_v34  ;;  %vm4059_vm11 = vcmp.eq.f32.partialorder %v4058_v30, 8.507059e+37  ;;  %v7170_v29 = vmul.f32 -1.442695, %v3629_v51  ;;  %v7642_v30 = vpop.eup %7641 }
 0x503   :  { %v4062_v34 = vsel %vm4059_vm11, %v4061_v45, %v4057_v42  ;;  %v2751_v42 = vadd.f32 %v9928_v33, %v2750_v56  ;;  %v1323_v45 = vadd.f32 %v1322_v54, %v9163_v26  ;;  %v7644_v51 = vpop.eup %7643  ;;  %v2736_v56 = vadd.f32 %v9889_v0, %v2735_v4 }
 0x504   :  { %7647 = vpow2.f32 %v7169_v28  ;;  %v15442_v28 = vpack.c.bf16 %v15410_v12, %v15409_v18  ;;  %v2756_v26 = vand.u32 2147483647, %v9865_v61  ;;  %v10022_v18 = vadd.f32 1.0, %v7642_v30 }
 0x505   :  { %7649 = vpow2.f32 %v7107_v2  ;;  %v10024_v12 = vadd.f32 1.0, %v7644_v51  ;;  %v10026_v2 = vpop.eup %7645  ;;  %v2755_v61 = vsel %vm10018_vm5, %v9928_v33, %v2751_v42  ;;  %v1928_v4 = vadd.f32 %v1819_v55, %v1323_v45  ;;  %vm10152_vm5 = vmor %vm4084_vm14, %vm4085_vm15 }
 0x506   :  { %7651 = vpow2.f32 %v7170_v29  ;;  %15445 = vst [vmem:[#allocation54_spill] sm:$0xff] %v10026_v2  ;;  %v1324_v29 = vpop.f32.mrf.mxu3  ;;  %v10034_v15 = vmul.f32 %v4062_v34, %v9685_v14  ;;  %v4081_v30 = vsub.f32 1.0, %v9995_v44  ;;  %v7108_v33 = vmul.f32 -1.442695, %v10004_v48 }
 0x507   :  { %7653 = vrcp.f32 %v10024_v12  ;;  %v2740_v14 = vsel %vm10039_vm7, %v9889_v0, %v2736_v56  ;;  %vm2757_vm8 = vcmp.eq.f32.partialorder %v2756_v26, 8.507059e+37  ;;  %v10053_v44 = vadd.f32 %v9752_v50, %v9655_v36  ;;  %v10065_v0 = vld [vmem:[%s15064_s7] ss:$0 sm:$0xff]  ;;  %v10121_v25 = vpop.f32.mrf.mxu1 }
 0x508   :  { %15446 = vst [vmem:[#allocation57_spill] sm:$0xff] %v10034_v15  ;;  %7655 = vrcp.f32 %v10000_v10  ;;  %v2744_v42 = vor.u32 1.1754944e-38, %v2743_v58  ;;  %v2760_v45 = vsel %vm2757_vm8, %v2759_v19, %v2755_v61  ;;  %v4068_v55 = vadd.f32 %v9900_v24, %v4067_v47  ;;  %v10073_v26 = vpop.f32.mrf.mxu2  ;;  %v1821_v61 = vpop.f32.mrf.mxu0 }
 0x509   :  { %15449 = vst [vmem:[#allocation18_spill] sm:$0xff] %v10053_v44  ;;  %7657 = vrcp.f32 %v10022_v18  ;;  %vm2742_vm11 = vcmp.eq.f32.partialorder %v2741_v38, 8.507059e+37  ;;  %v10068_v50 = vadd.f32 %v10065_v0, %v1928_v4  ;;  %v1325_v5 = vadd.f32 %v1324_v29, %v9190_v3 }
 0x50a   :  { %v2745_v47 = vsel %vm2742_vm11, %v2744_v42, %v2740_v14  ;;  %7659 = vpow2.f32 %v7108_v33  ;;  %v10080_v54 = vadd.f32 %v9820_v22, %v9655_v36  ;;  %v3273_v38 = vmul.f32 %v2760_v45, %v9795_v21 }
 0x50b   :  { %v4082_v3 = vmul.f32 %v9978_v46, %v4081_v30  ;;  %v4088_v29 = vand.u32 2147483647, %v9897_v1  ;;  %v4090_v22 = vand.u32 2147483648, %v9897_v1  ;;  %v7109_v51 = vmul.f32 -1.442695, %v10053_v44 }
 0x50c   :  { %v4072_v33 = vsel %vm10089_vm0, %v9900_v24, %v4068_v55  ;;  %v10104_v20 = vmul.f32 %v10026_v2, %v9967_v60  ;;  %v3272_v14 = vmul.f32 %v2745_v47, %v9730_v35  ;;  %v7008_v30 = vmul.f32 -1.442695, %v10068_v50 }
 0x50d   :  { %v3631_v42 = vadd.f32 %v9699_v43, %v9676_v8  ;;  %v1929_v45 = vadd.f32 %v1821_v61, %v1325_v5  ;;  %v7110_v24 = vmul.f32 -1.442695, %v10080_v54  ;;  %v7282_v43 = vld [vmem:[%s15059_s2 + $0xd8] sm:$0xff]  ;;  %vm10138_vm1 = vcmp.eq.f32.partialorder %v4088_v29, 8.507059e+37 }
 0x50e   :  { %15457 = vst [vmem:[#allocation26_spill] sm:$0xff] %v10104_v20  ;;  %v3321_v35 = vpack.c.bf16 %v3273_v38, %v3272_v14  ;;  %v1327_v47 = vpop.f32.mrf.mxu3  ;;  %v3634_v38 = vadd.f32 %v9722_v49, %v9676_v8  ;;  %v4091_v14 = vor.u32 1.1754944e-38, %v4090_v22  ;;  %6969 = vmatmul.msk.bf16.gmra.mxu0 %vm288_vm4, %v7282_v43  ;;  %v15461_v49 = vpack.c.bf16 %v15412_v37, %v15411_v17 }
 0x50f   :  { %v10124_v39 = vadd.f32 %v10065_v0, %v1929_v45  ;;  %v3636_v45 = vadd.f32 %v9788_v9, %v9676_v8  ;;  %v7171_v53 = vmul.f32 -1.442695, %v3631_v42  ;;  %v4105_v37 = vand.u32 2147483648, %v10000_v10 }
 0x510   :  { %1376 = vmatmul.bf16.gmra.mxu3 %v15442_v28  ;;  %v7648_v28 = vpop.eup %7647  ;;  %3523 = vmatmul.bf16.gmra.mxu1 %v3321_v35  ;;  %v1824_v43 = vpop.f32.mrf.mxu0  ;;  %v1328_v7 = vadd.f32 %v1327_v47, %v9221_v40  ;;  %vm2782_vm8 = vweird.f32 %v10024_v12  ;;  %vm2767_vm9 = vweird.f32 %v10022_v18  ;;  %vm4099_vm11 = vweird.f32 %v10000_v10 }
 0x511   :  { %v7650_v34 = vpop.eup %7649  ;;  %v10071_v56 = vadd.f32 1.0, %v7648_v28  ;;  %v4083_v28 = vadd.f32 %v9978_v46, %v4082_v3  ;;  %3692 = vmatmul.bf16.gmra.mxu2 %v3321_v35  ;;  %v4077_v3 = vsel %vm10058_vm10, %v9989_v31, %v4072_v33  ;;  %v7009_v22 = vmul.f32 -1.442695, %v10124_v39 }
 0x512   :  { %v7652_v19 = vpop.eup %7651  ;;  %v10076_v58 = vadd.f32 1.0, %v7650_v34  ;;  %v10172_v33 = vmul.f32 %v4077_v3, %v9727_v16  ;;  %v3639_v31 = vadd.f32 %v9840_v11, %v9676_v8 }
 0x513   :  { %15452 = vst [vmem:[#allocation20_spill] sm:$0xff] %v10071_v56  ;;  %v10083_v4 = vpop.eup %7653  ;;  %7661 = vrcp.f32 %v10071_v56  ;;  %v10119_v15 = vadd.f32 1.0, %v7652_v19  ;;  %v4087_v17 = vsel %vm10152_vm5, %v9978_v46, %v4083_v28  ;;  %v7173_v28 = vmul.f32 -1.442695, %v3636_v45 }
 0x514   :  { %15453 = vst [vmem:[#allocation22_spill] sm:$0xff] %v10076_v58  ;;  %v10097_v21 = vpop.eup %7655  ;;  %7663 = vrcp.f32 %v10076_v58  ;;  %v2778_v55 = vmul.f32 %v10083_v4, %v10024_v12  ;;  %vm2783_vm6 = vweird.f32 %v10083_v4 }
 0x515   :  { %15456 = vst [vmem:[#allocation24_spill] sm:$0xff] %v10097_v21  ;;  %v10108_v34 = vpop.eup %7657  ;;  %7665 = vpow2.f32 %v7109_v51  ;;  %v4095_v61 = vmul.f32 %v10097_v21, %v10000_v10  ;;  %vm10227_vm10 = vmor %vm2782_vm8, %vm2783_vm6 }
 0x516   :  { %15458 = vst [vmem:[#allocation28_spill] sm:$0xff] %v10119_v15  ;;  %v7660_v5 = vpop.eup %7659  ;;  %v2763_v19 = vmul.f32 %v10108_v34, %v10022_v18  ;;  %7667 = vpow2.f32 %v7008_v30  ;;  %v2779_v29 = vsub.f32 1.0, %v2778_v55  ;;  %v10166_v30 = vpop.f32.mrf.mxu2  ;;  %vm2768_vm7 = vweird.f32 %v10108_v34 }
 0x517   :  { %7669 = vpow2.f32 %v7110_v24  ;;  %v10164_v1 = vadd.f32 1.0, %v7660_v5  ;;  %v4096_v42 = vsub.f32 1.0, %v4095_v61  ;;  %v7172_v24 = vmul.f32 -1.442695, %v3634_v38  ;;  %15466 = vst [vmem:[#allocation66_spill] sm:$0xff] %v10172_v33  ;;  %v1329_v47 = vpop.f32.mrf.mxu3  ;;  %vm10249_vm14 = vmor %vm2767_vm9, %vm2768_vm7 }
 0x518   :  { %7671 = vrcp.f32 %v10119_v15  ;;  %v2764_v55 = vsub.f32 1.0, %v2763_v19  ;;  %v2780_v61 = vmul.f32 %v10083_v4, %v2779_v29  ;;  %v4092_v38 = vsel %vm10138_vm1, %v4091_v14, %v4087_v17  ;;  %v10204_v29 = vpop.f32.mrf.mxu1 }
 0x519   :  { %v10157_v9 = vpop.eup %7661  ;;  %7673 = vpow2.f32 %v7009_v22  ;;  %v10185_v19 = vor.u32 1.1754944e-38, %v4105_v37  ;;  %v10189_v45 = vmul.f32 %v10097_v21, %v4096_v42  ;;  %v10200_v14 = vadd.f32 %v9878_v59, %v9655_v36 }
 0x51a   :  { %15464 = vst [vmem:[#allocation30_spill] sm:$0xff] %v10157_v9  ;;  %v10168_v35 = vpop.eup %7663  ;;  %7675 = vpow2.f32 %v7171_v53  ;;  %v10183_v16 = vmul.f32 %v10157_v9, %v10071_v56  ;;  %v2765_v40 = vmul.f32 %v10108_v34, %v2764_v55  ;;  %v7174_v17 = vmul.f32 -1.442695, %v3639_v31  ;;  %v1826_v56 = vpop.f32.mrf.mxu0 }
 0x51b   :  { %15465 = vst [vmem:[#allocation32_spill] sm:$0xff] %v10168_v35  ;;  %7677 = vrcp.f32 %v10164_v1  ;;  %v10193_v11 = vmul.f32 %v10168_v35, %v10076_v58  ;;  %v2781_v37 = vadd.f32 %v10083_v4, %v2780_v61  ;;  %v1930_v42 = vadd.f32 %v1824_v43, %v1328_v7 }
 0x51c   :  { %15467 = vst [vmem:[#allocation71_spill] sm:$0xff] %v10183_v16  ;;  %7679 = vpow2.f32 %v7172_v24  ;;  %v2788_v59 = vand.u32 2147483648, %v10024_v12  ;;  %v2766_v46 = vadd.f32 %v10108_v34, %v2765_v40  ;;  %v2786_v31 = vand.u32 2147483647, %v10024_v12 }
 0x51d   :  { %15468 = vst [vmem:[#allocation72_spill] sm:$0xff] %v10185_v19  ;;  %7681 = vpow2.f32 %v7173_v28  ;;  %v7111_v7 = vmul.f32 -1.442695, %v10200_v14  ;;  %v2773_v43 = vand.u32 2147483648, %v10022_v18  ;;  %v4111_v60 = vsub.f32 1.0, %v10193_v11 }
 0x51e   :  { %15470 = vst [vmem:[#allocation74_spill] sm:$0xff] %v10200_v14  ;;  %v10232_v40 = vpop.f32.mrf.mxu2  ;;  %v2770_v11 = vsel %vm10249_vm14, %v10108_v34, %v2766_v46  ;;  %vm2787_vm0 = vcmp.eq.f32.partialorder %v2786_v31, 8.507059e+37  ;;  %v4120_v46 = vand.u32 2147483648, %v10076_v58  ;;  %vm4100_vm1 = vweird.f32 %v10097_v21  ;;  %v15515_v58 = vld [vmem:[#allocation68_spill] sm:$0xff] }
 0x51f   :  { %vm10314_vm5 = vmor %vm4099_vm11, %vm4100_vm1 }
 0x520   :  { %1381 = vmatmul.bf16.gmra.mxu3 %v15461_v49  ;;  %v7666_v49 = vpop.eup %7665 }
 0x521   :  { %v7668_v5 = vpop.eup %7667  ;;  %v10196_v51 = vadd.f32 1.0, %v7666_v49  ;;  %v15472_v49 = vld [vmem:[#allocation67_spill] sm:$0xff] }
 0x522   :  { %v7670_v3 = vpop.eup %7669  ;;  %v10202_v53 = vadd.f32 1.0, %v7668_v5  ;;  %v1330_v28 = vadd.f32 %v1329_v47, %v15472_v49  ;;  %v2771_v47 = vand.u32 2147483647, %v10022_v18  ;;  %v10240_v49 = vadd.f32 %v10065_v0, %v1930_v42 }
 0x523   :  { %15469 = vst [vmem:[#allocation73_spill] sm:$0xff] %v10196_v51  ;;  %v10206_v22 = vpop.eup %7671  ;;  %v10210_v55 = vadd.f32 1.0, %v7670_v3  ;;  %v2774_v18 = vor.u32 1.1754944e-38, %v2773_v43  ;;  %v3484_v43 = vpop.f32.mrf.mxu1 }
 0x524   :  { %15471 = vst [vmem:[#allocation75_spill] sm:$0xff] %v10206_v22  ;;  %v7674_v24 = vpop.eup %7673  ;;  %7683 = vrcp.f32 %v10202_v53  ;;  %vm2772_vm15 = vcmp.eq.f32.partialorder %v2771_v47, 8.507059e+37  ;;  %v10272_v34 = vmul.f32 %v10206_v22, %v10119_v15  ;;  %v4112_v47 = vmul.f32 %v10168_v35, %v4111_v60 }
 0x525   :  { %v7676_v5 = vpop.eup %7675  ;;  %v10218_v61 = vadd.f32 1.0, %v7674_v24  ;;  %v2785_v24 = vsel %vm10227_vm10, %v10083_v4, %v2781_v37  ;;  %v2789_v4 = vor.u32 1.1754944e-38, %v2788_v59  ;;  %v1931_v37 = vadd.f32 %v1826_v56, %v1330_v28  ;;  %v15479_v56 = vld [vmem:[#allocation27_spill] sm:$0xff] }
 0x526   :  { %v10220_v33 = vpop.eup %7677  ;;  %v10265_v59 = vmul.f32 %v4092_v38, %v15479_v56  ;;  %15481 = vst [vmem:[#allocation76_spill] sm:$0xff] %v10272_v34  ;;  %v2775_v31 = vsel %vm2772_vm15, %v2774_v18, %v2770_v11  ;;  %v10305_v11 = vor.u32 1.1754944e-38, %v4120_v46  ;;  %v3653_v18 = vpop.f32.mrf.mxu2  ;;  %v10326_v16 = vadd.f32 %v10168_v35, %v4112_v47 }
 0x527   :  { %v7680_v12 = vpop.eup %7679  ;;  %7685 = vrcp.f32 %v10218_v61  ;;  %v4125_v42 = vmul.f32 %v10220_v33, %v10164_v1  ;;  %v2790_v20 = vsel %vm2787_vm0, %v2789_v4, %v2785_v24  ;;  %v10276_v41 = vadd.f32 %v10065_v0, %v1931_v37 }
 0x528   :  { %v7682_v9 = vpop.eup %7681  ;;  %7687 = vrcp.f32 %v10196_v51  ;;  %v10258_v2 = vadd.f32 1.0, %v7680_v12  ;;  %15480 = vst [vmem:[#allocation27_spill] sm:$0xff] %v10265_v59  ;;  %v10289_v24 = vadd.f32 1.0, %v7676_v5  ;;  %v3274_v37 = vmul.f32 %v2775_v31, %v9887_v57  ;;  %v10308_v57 = vpop.f32.mrf.mxu3 }
 0x529   :  { %7689 = vpow2.f32 %v7174_v17  ;;  %v7010_v17 = vmul.f32 -1.442695, %v10240_v49  ;;  %v4126_v38 = vsub.f32 1.0, %v4125_v42  ;;  %15484 = vst [vmem:[#allocation79_spill] sm:$0xff] %v10305_v11  ;;  %v7011_v56 = vmul.f32 -1.442695, %v10276_v41 }
 0x52a   :  { %15477 = vst [vmem:[#allocation67_spill] sm:$0xff] %v10258_v2  ;;  %7691 = vrcp.f32 %v10210_v55  ;;  %v10268_v28 = vpop.eup %7683  ;;  %v10329_v15 = vadd.f32 1.0, %v7682_v9  ;;  %v3641_v9 = vadd.f32 %v9923_v6, %v9676_v8  ;;  %v10360_v6 = vadd.f32 %v3484_v43, %v9655_v36 }
 0x52b   :  { %7693 = vpow2.f32 %v7111_v7  ;;  %v3275_v7 = vmul.f32 %v2790_v20, %v9926_v27  ;;  %15483 = vst [vmem:[#allocation78_spill] sm:$0xff] %v10289_v24  ;;  %v2793_v42 = vmul.f32 %v10268_v28, %v10202_v53  ;;  %v7283_v27 = vld [vmem:[%s15059_s2 + $0xe0] sm:$0xff]  ;;  %v4135_v20 = vand.u32 2147483648, %v10164_v1 }
 0x52c   :  { %7695 = vrcp.f32 %v10258_v2  ;;  %6970 = vmatmul.msk.bf16.gmra.mxu0 %vm288_vm4, %v7283_v27  ;;  %15488 = vst [vmem:[#allocation81_spill] sm:$0xff] %v10326_v16  ;;  %vm2798_vm7 = vweird.f32 %v10268_v28  ;;  %vm2812_vm8 = vweird.f32 %v10218_v61  ;;  %vm2797_vm9 = vweird.f32 %v10202_v53 }
 0x52d   :  { %v10278_v32 = vpop.eup %7685  ;;  %7697 = vpow2.f32 %v7010_v17  ;;  %v15485_v17 = vmov 0  ;;  %v3322_v5 = vpack.c.bf16 %v3275_v7, %v3274_v37  ;;  %15489 = vst [vmem:[#allocation82_spill] sm:$0xff] %v10329_v15  ;;  %v2794_v37 = vsub.f32 1.0, %v2793_v42  ;;  %vm10419_vm11 = vmor %vm2797_vm9, %vm2798_vm7 }
 0x52e   :  { %v10286_v12 = vpop.eup %7687  ;;  %v2808_v3 = vmul.f32 %v10278_v32, %v10218_v61  ;;  %v15486_v17 = vsel %vm10314_vm5, 4294967295, %v15485_v17  ;;  %7699 = vrcp.f32 %v10289_v24  ;;  %v10353_v42 = vadd.f32 %v9974_v13, %v9655_v36  ;;  %v15496_v24 = vld [vmem:[#allocation34_spill] sm:$0xff] }
 0x52f   :  { %v7690_v4 = vpop.eup %7689  ;;  %15487 = vst [vmem:[#allocation80_spill] sm:$0xff] %v15486_v17  ;;  %3528 = vmatmul.bf16.gmra.mxu1 %v3322_v5  ;;  %3697 = vmatmul.bf16.gmra.mxu2 %v3322_v5  ;;  %7701 = vpow2.f32 %v7011_v56  ;;  %v3486_v56 = vpop.f32.mrf.mxu1  ;;  %v2795_v13 = vmul.f32 %v10268_v28, %v2794_v37  ;;  %vm2813_vm6 = vweird.f32 %v10278_v32  ;;  %v2818_v37 = vand.u32 2147483648, %v10218_v61 }
 0x530   :  { %1386 = vmatmul.bf16.gmra.mxu3 %v15478_v63  ;;  %v10282_v63 = vadd.f32 %v10097_v21, %v10189_v45  ;;  %v10301_v60 = vpop.eup %7691  ;;  %v4127_v45 = vmul.f32 %v10220_v33, %v4126_v38  ;;  %v2809_v46 = vsub.f32 1.0, %v2808_v3  ;;  %v10334_v3 = vmul.f32 %v10286_v12, %v10196_v51  ;;  %v10384_v48 = vpop.f32.mrf.mxu3  ;;  %vm10401_vm10 = vmor %vm2812_vm8, %vm2813_vm6 }
 0x531   :  { %v7694_v31 = vpop.eup %7693  ;;  %v10336_v7 = vadd.f32 1.0, %v7690_v4  ;;  %v4155_v47 = vmul.f32 %v10301_v60, %v10210_v55  ;;  %v10349_v4 = vor.u32 1.1754944e-38, %v4135_v20  ;;  %7703 = vrcp.f32 %v10329_v15 }
 0x532   :  { %15482 = vst [vmem:[#allocation77_spill] sm:$0xff] %v10282_v63  ;;  %v10338_v27 = vpop.eup %7695  ;;  %v10342_v59 = vadd.f32 1.0, %v7694_v31  ;;  %v10347_v23 = vadd.f32 %v10220_v33, %v4127_v45  ;;  %v2810_v5 = vmul.f32 %v10278_v32, %v2809_v46  ;;  %v4141_v20 = vsub.f32 1.0, %v10334_v3 }
 0x533   :  { %15490 = vst [vmem:[#allocation83_spill] sm:$0xff] %v10338_v27  ;;  %v7698_v38 = vpop.eup %7697  ;;  %v10364_v45 = vmul.f32 %v10338_v27, %v10258_v2  ;;  %7705 = vrcp.f32 %v10336_v7  ;;  %v4156_v22 = vsub.f32 1.0, %v4155_v47  ;;  %v7175_v31 = vmul.f32 -1.442695, %v3641_v9 }
 0x534   :  { %15491 = vst [vmem:[#allocation84_spill] sm:$0xff] %v10347_v23  ;;  %v10369_v46 = vpop.eup %7699  ;;  %7707 = vrcp.f32 %v10342_v59  ;;  %v10372_v34 = vadd.f32 1.0, %v7698_v38  ;;  %v7112_v43 = vmul.f32 -1.442695, %v10353_v42  ;;  %v2811_v11 = vadd.f32 %v10278_v32, %v2810_v5  ;;  %v3655_v38 = vpop.f32.mrf.mxu2  ;;  %v15512_v23 = vld [vmem:[#allocation69_spill] sm:$0xff] }
 0x535   :  { %15492 = vst [vmem:[#allocation85_spill] sm:$0xff] %v10349_v4  ;;  %v10378_v3 = vadd.f32 %v3486_v56, %v9655_v36  ;;  %v7702_v44 = vpop.eup %7701  ;;  %v7116_v47 = vmul.f32 -1.442695, %v10360_v6  ;;  %v3654_v9 = vadd.f32 %v3653_v18, %v9676_v8  ;;  %v2796_v16 = vadd.f32 %v10268_v28, %v2795_v13 }
 0x536   :  { %15493 = vst [vmem:[#allocation86_spill] sm:$0xff] %v10364_v45  ;;  %v2816_v56 = vand.u32 2147483647, %v10218_v61  ;;  %v10392_v19 = vadd.f32 1.0, %v7702_v44  ;;  %v2801_v18 = vand.u32 2147483647, %v10202_v53  ;;  %7709 = vrcp.f32 %v10372_v34 }
 0x537   :  { %15494 = vst [vmem:[#allocation87_spill] sm:$0xff] %v10369_v46  ;;  %v15495_v46 = vld [vmem:[#allocation37_spill] sm:$0xff]  ;;  %v10394_v63 = vpop.eup %7703  ;;  %v2803_v21 = vand.u32 2147483648, %v10202_v53  ;;  %v2815_v44 = vsel %vm10401_vm10, %v10278_v32, %v2811_v11  ;;  %v7117_v61 = vmul.f32 -1.442695, %v10378_v3  ;;  %v3656_v53 = vadd.f32 %v3655_v38, %v9676_v8 }
 0x538   :  { %v15497_v5 = vpack.c.bf16 %v15495_v46, %v15496_v24  ;;  %15498 = vst [vmem:[#allocation37_spill] sm:$0xff] %v10394_v63  ;;  %7711 = vrcp.f32 %v10392_v19  ;;  %v2819_v4 = vor.u32 1.1754944e-38, %v2818_v37  ;;  %v7180_v24 = vmul.f32 -1.442695, %v3654_v9 }
 0x539   :  { %v10406_v13 = vpop.eup %7705  ;;  %7713 = vpow2.f32 %v7175_v31  ;;  %v10425_v32 = vadd.f32 %v10043_v62, %v9655_v36  ;;  %v2800_v11 = vsel %vm10419_vm11, %v10268_v28, %v2796_v16  ;;  %vm2817_vm14 = vcmp.eq.f32.partialorder %v2816_v56, 8.507059e+37 }
 0x53a   :  { %v10414_v46 = vpop.eup %7707  ;;  %7715 = vpow2.f32 %v7112_v43  ;;  %v2804_v31 = vor.u32 1.1754944e-38, %v2803_v21  ;;  %v2820_v38 = vsel %vm2817_vm14, %v2819_v4, %v2815_v44  ;;  %v3644_v37 = vadd.f32 %v9991_v52, %v9676_v8 }
 0x53b   :  { %7717 = vpow2.f32 %v7116_v47  ;;  %vm2802_vm0 = vcmp.eq.f32.partialorder %v2801_v18, 8.507059e+37  ;;  %v7181_v43 = vmul.f32 -1.442695, %v3656_v53  ;;  %v10441_v16 = vadd.f32 %v10204_v29, %v9655_v36 }
 0x53c   :  { %7719 = vpow2.f32 %v7117_v61  ;;  %v10436_v62 = vpop.eup %7709  ;;  %v2805_v17 = vsel %vm2802_vm0, %v2804_v31, %v2800_v11  ;;  %v10446_v21 = vmul.f32 %v10286_v12, %v4141_v20  ;;  %v4170_v52 = vmul.f32 %v10414_v46, %v10342_v59 }
 0x53d   :  { %7721 = vpow2.f32 %v7180_v24  ;;  %v7113_v28 = vmul.f32 -1.442695, %v10425_v32  ;;  %v3277_v4 = vmul.f32 %v2820_v38, %v10124_v39  ;;  %vm4160_vm15 = vweird.f32 %v10301_v60 }
 0x53e   :  { %15503 = vst [vmem:[#allocation34_spill] sm:$0xff] %v10446_v21  ;;  %v4165_v56 = vand.u32 2147483648, %v10210_v55  ;;  %v7176_v61 = vmul.f32 -1.442695, %v3644_v37  ;;  %v3276_v53 = vmul.f32 %v2805_v17, %v10068_v50  ;;  %7723 = vpow2.f32 %v7181_v43 }
 0x53f   :  { %vm4159_vm1 = vweird.f32 %v10210_v55  ;;  %v4163_v39 = vand.u32 2147483647, %v10210_v55  ;;  %v7115_v11 = vmul.f32 -1.442695, %v10441_v16  ;;  %v2823_v31 = vmul.f32 %v10436_v62, %v10372_v34 }
 0x540   :  { %1391 = vmatmul.bf16.gmra.mxu3 %v15497_v5  ;;  %v4157_v5 = vmul.f32 %v10301_v60, %v4156_v22  ;;  %v10432_v22 = vadd.f32 %v10121_v25, %v9655_v36  ;;  %v10443_v25 = vpop.eup %7711  ;;  %v4171_v9 = vsub.f32 1.0, %v4170_v52  ;;  %7725 = vpow2.f32 %v7113_v28  ;;  %vm10468_vm6 = vmor %vm4159_vm1, %vm4160_vm15 }
 0x541   :  { %v7714_v47 = vpop.eup %7713  ;;  %v2838_v18 = vmul.f32 %v10443_v25, %v10392_v19  ;;  %v4166_v43 = vor.u32 1.1754944e-38, %v4165_v56  ;;  %v2824_v56 = vsub.f32 1.0, %v2823_v31  ;;  %vm4164_vm7 = vcmp.eq.f32.partialorder %v4163_v39, 8.507059e+37 }
 0x542   :  { %v7114_v29 = vmul.f32 -1.442695, %v10432_v22  ;;  %v7716_v44 = vpop.eup %7715  ;;  %v4158_v20 = vadd.f32 %v10301_v60, %v4157_v5  ;;  %v10464_v2 = vadd.f32 1.0, %v7714_v47  ;;  %v3323_v5 = vpack.c.bf16 %v3277_v4, %v3276_v53 }
 0x543   :  { %v7718_v24 = vpop.eup %7717  ;;  %v10472_v55 = vadd.f32 1.0, %v7716_v44  ;;  %v2839_v17 = vsub.f32 1.0, %v2838_v18  ;;  %v4180_v47 = vand.u32 2147483648, %v10342_v59  ;;  %v10482_v4 = vmul.f32 %v10406_v13, %v10336_v7 }
 0x544   :  { %v7720_v38 = vpop.eup %7719  ;;  %15504 = vst [vmem:[#allocation88_spill] sm:$0xff] %v10464_v2  ;;  %7727 = vpow2.f32 %v7114_v29  ;;  %v4162_v52 = vsel %vm10468_vm6, %v10301_v60, %v4158_v20  ;;  %v10478_v28 = vadd.f32 1.0, %v7718_v24  ;;  %3533 = vmatmul.bf16.gmra.mxu1 %v3323_v5  ;;  %3702 = vmatmul.bf16.gmra.mxu2 %v3323_v5  ;;  %v4172_v18 = vmul.f32 %v10414_v46, %v4171_v9  ;;  %v10508_v5 = vpop.f32.mrf.mxu0 }
 0x545   :  { %v7722_v37 = vpop.eup %7721  ;;  %7729 = vpow2.f32 %v7176_v61  ;;  %v10484_v44 = vadd.f32 1.0, %v7720_v38  ;;  %v3649_v60 = vadd.f32 %v10166_v30, %v9676_v8  ;;  %v3651_v61 = vadd.f32 %v10232_v40, %v9676_v8 }
 0x546   :  { %7731 = vpow2.f32 %v7115_v11  ;;  %v7724_v29 = vpop.eup %7723  ;;  %v10490_v20 = vadd.f32 1.0, %v7722_v37  ;;  %v2840_v53 = vmul.f32 %v10443_v25, %v2839_v17  ;;  %v10496_v11 = vsel %vm4164_vm7, %v4166_v43, %v4162_v52 }
 0x547   :  { %7733 = vrcp.f32 %v10464_v2  ;;  %v7726_v24 = vpop.eup %7725  ;;  %v10499_v31 = vor.u32 1.1754944e-38, %v4180_v47  ;;  %vm4174_vm8 = vweird.f32 %v10342_v59  ;;  %v2825_v39 = vmul.f32 %v10436_v62, %v2824_v56 }
 0x548   :  { %7735 = vrcp.f32 %v10472_v55  ;;  %v10506_v40 = vadd.f32 1.0, %v7724_v29  ;;  %v10511_v50 = vadd.f32 %v10414_v46, %v4172_v18  ;;  %vm4175_vm9 = vweird.f32 %v10414_v46 }
 0x549   :  { %15507 = vst [vmem:[#allocation89_spill] sm:$0xff] %v10499_v31  ;;  %7737 = vrcp.f32 %v10478_v28  ;;  %v7178_v43 = vmul.f32 -1.442695, %v3649_v60  ;;  %v3646_v52 = vadd.f32 %v10073_v26, %v9676_v8  ;;  %v7179_v47 = vmul.f32 -1.442695, %v3651_v61  ;;  %vm10576_vm7 = vmor %vm4174_vm8, %vm4175_vm9 }
 0x54a   :  { %v7728_v30 = vpop.eup %7727  ;;  %7739 = vrcp.f32 %v10484_v44  ;;  %v2841_v56 = vadd.f32 %v10443_v25, %v2840_v53  ;;  %vm2843_vm10 = vweird.f32 %v10443_v25  ;;  %v10521_v38 = vadd.f32 1.0, %v7726_v24 }
 0x54b   :  { %v7730_v37 = vpop.eup %7729  ;;  %7741 = vrcp.f32 %v10490_v20  ;;  %v10523_v18 = vadd.f32 1.0, %v7728_v30  ;;  %vm2828_vm11 = vweird.f32 %v10436_v62  ;;  %v2848_v60 = vand.u32 2147483648, %v10392_v19 }
 0x54c   :  { %v7732_v17 = vpop.eup %7731  ;;  %v2826_v10 = vadd.f32 %v10436_v62, %v2825_v39  ;;  %vm2842_vm14 = vweird.f32 %v10392_v19  ;;  %v2846_v26 = vand.u32 2147483647, %v10392_v19  ;;  %7743 = vrcp.f32 %v10506_v40 }
 0x54d   :  { %v10519_v29 = vpop.eup %7733  ;;  %v10535_v53 = vadd.f32 1.0, %v7730_v37  ;;  %7745 = vpow2.f32 %v7178_v43  ;;  %v10537_v24 = vadd.f32 1.0, %v7732_v17  ;;  %v2833_v30 = vand.u32 2147483648, %v10372_v34  ;;  %vm10542_vm0 = vmor %vm2842_vm14, %vm2843_vm10 }
 0x54e   :  { %v10527_v9 = vpop.eup %7735  ;;  %7747 = vpow2.f32 %v7179_v47  ;;  %vm2827_vm15 = vweird.f32 %v10372_v34  ;;  %v2831_v19 = vand.u32 2147483647, %v10372_v34  ;;  %v2845_v37 = vsel %vm10542_vm0, %v10443_v25, %v2841_v56 }
 0x54f   :  { %v10533_v61 = vpop.eup %7737  ;;  %v4185_v17 = vmul.f32 %v10527_v9, %v10472_v55  ;;  %7749 = vrcp.f32 %v10521_v38  ;;  %vm10560_vm1 = vmor %vm2827_vm15, %vm2828_vm11  ;;  %v2849_v47 = vor.u32 1.1754944e-38, %v2848_v60  ;;  %v1335_v34 = vadd.f32 %v10384_v48, %v15512_v23 }
 0x550   :  { %v10546_v39 = vpop.eup %7739  ;;  %7751 = vrcp.f32 %v10523_v18  ;;  %v4245_v8 = vmul.f32 %v10533_v61, %v10478_v28  ;;  %v2830_v25 = vsel %vm10560_vm1, %v10436_v62, %v2826_v10  ;;  %vm2847_vm6 = vcmp.eq.f32.partialorder %v2846_v26, 8.507059e+37  ;;  %v1831_v62 = vpop.f32.mrf.mxu0 }
 0x551   :  { %v10553_v43 = vpop.eup %7741  ;;  %v2834_v60 = vor.u32 1.1754944e-38, %v2833_v30  ;;  %v4260_v23 = vmul.f32 %v10546_v39, %v10484_v44  ;;  %v2850_v48 = vsel %vm2847_vm6, %v2849_v47, %v2845_v37  ;;  %v1333_v27 = vadd.f32 %v10308_v57, %v15515_v58 }
 0x552   :  { %v10584_v45 = vpop.eup %7743  ;;  %7753 = vrcp.f32 %v10537_v24  ;;  %vm2832_vm8 = vcmp.eq.f32.partialorder %v2831_v19, 8.507059e+37  ;;  %v5525_v51 = vmul.f32 %v10553_v43, %v10490_v20  ;;  %v4195_v30 = vand.u32 2147483648, %v10472_v55 }
 0x553   :  { %v7746_v26 = vpop.eup %7745  ;;  %v7177_v37 = vmul.f32 -1.442695, %v3646_v52  ;;  %v2835_v47 = vsel %vm2832_vm8, %v2834_v60, %v2830_v25  ;;  %v1933_v58 = vadd.f32 %v1831_v62, %v1335_v34  ;;  %7755 = vrcp.f32 %v10535_v53 }
 0x554   :  { %v7748_v57 = vpop.eup %7747  ;;  %v4246_v35 = vsub.f32 1.0, %v4245_v8  ;;  %v3279_v10 = vmul.f32 %v2850_v48, %v10276_v41  ;;  %v4186_v19 = vsub.f32 1.0, %v4185_v17  ;;  %v4261_v15 = vsub.f32 1.0, %v4260_v23 }
 0x555   :  { %v10597_v63 = vpop.eup %7749  ;;  %v5540_v21 = vmul.f32 %v10584_v45, %v10506_v40  ;;  %v1932_v36 = vadd.f32 %v10508_v5, %v1333_v27  ;;  %v10606_v34 = vmul.f32 %v10519_v29, %v10464_v2  ;;  %v10608_v25 = vadd.f32 1.0, %v7746_v26 }
 0x556   :  { %v10602_v52 = vpop.eup %7751  ;;  %v3278_v8 = vmul.f32 %v2835_v47, %v10240_v49  ;;  %v5526_v41 = vsub.f32 1.0, %v5525_v51  ;;  %v10611_v60 = vor.u32 1.1754944e-38, %v4195_v30  ;;  %7757 = vpow2.f32 %v7177_v37 }
 0x557   :  { %v10613_v17 = vadd.f32 1.0, %v7748_v57  ;;  %v10616_v23 = vadd.f32 %v10065_v0, %v1933_v58  ;;  %v4247_v62 = vmul.f32 %v10533_v61, %v4246_v35  ;;  %v10624_v49 = vmul.f32 %v10527_v9, %v4186_v19 }
 0x558   :  { %v10618_v27 = vpop.eup %7753  ;;  %v3324_v26 = vpack.c.bf16 %v3279_v10, %v3278_v8  ;;  %v4262_v51 = vmul.f32 %v10546_v39, %v4261_v15  ;;  %v5541_v30 = vsub.f32 1.0, %v5540_v21  ;;  %v10628_v37 = vadd.f32 %v10065_v0, %v1932_v36 }
 0x559   :  { %15516 = vst [vmem:[#allocation69_spill] sm:$0xff] %v10616_v23  ;;  %v10630_v47 = vpop.eup %7755  ;;  %v10634_v58 = vmul.f32 %v10597_v63, %v10521_v38  ;;  %v10638_v57 = vmul.f32 %v10602_v52, %v10523_v18  ;;  %7759 = vrcp.f32 %v10608_v25  ;;  %v5527_v35 = vmul.f32 %v10553_v43, %v5526_v41 }
 0x55a   :  { %15517 = vst [vmem:[#allocation68_spill] sm:$0xff] %v10628_v37  ;;  %3538 = vmatmul.bf16.gmra.mxu1 %v3324_v26  ;;  %3707 = vmatmul.bf16.gmra.mxu2 %v3324_v26  ;;  %v10644_v36 = vmul.f32 %v10618_v27, %v10537_v24  ;;  %7761 = vrcp.f32 %v10613_v17  ;;  %v4253_v15 = vand.u32 2147483647, %v10478_v28  ;;  %v7013_v0 = vmul.f32 -1.442695, %v10616_v23 }
 0x55b   :  { %v4248_v21 = vadd.f32 %v10533_v61, %v4247_v62  ;;  %vm4249_vm9 = vweird.f32 %v10478_v28  ;;  %vm4250_vm10 = vweird.f32 %v10533_v61  ;;  %v4255_v10 = vand.u32 2147483648, %v10478_v28 }
 0x55c   :  { %v7758_v19 = vpop.eup %7757  ;;  %v4263_v8 = vadd.f32 %v10546_v39, %v4262_v51  ;;  %vm4265_vm11 = vweird.f32 %v10546_v39  ;;  %v5542_v41 = vmul.f32 %v10584_v45, %v5541_v30  ;;  %v7012_v26 = vmul.f32 -1.442695, %v10628_v37  ;;  %vm10661_vm0 = vmor %vm4249_vm9, %vm4250_vm10 }
 0x55d   :  { %vm5530_vm14 = vweird.f32 %v10553_v43  ;;  %v5535_v48 = vand.u32 2147483648, %v10490_v20  ;;  %v4270_v62 = vand.u32 2147483648, %v10484_v44  ;;  %v5528_v5 = vadd.f32 %v10553_v43, %v5527_v35 }
 0x55e   :  { %vm10665_vm15 = vcmp.eq.f32.partialorder %v4253_v15, 8.507059e+37  ;;  %vm4264_vm1 = vweird.f32 %v10484_v44  ;;  %v4268_v51 = vand.u32 2147483647, %v10484_v44  ;;  %7763 = vpow2.f32 %v7013_v0 }
 0x55f   :  { %v10671_v30 = vpop.eup %7759  ;;  %vm4189_vm6 = vweird.f32 %v10472_v55  ;;  %v4252_v35 = vsel %vm10661_vm0, %v10533_v61, %v4248_v21  ;;  %v4256_v2 = vor.u32 1.1754944e-38, %v4255_v10  ;;  %vm5529_vm8 = vweird.f32 %v10490_v20  ;;  %vm10680_vm9 = vmor %vm4264_vm1, %vm4265_vm11 }
 0x560   :  { %v5533_v44 = vand.u32 2147483647, %v10490_v20  ;;  %v10685_v0 = vpop.eup %7761  ;;  %vm10689_vm10 = vmor %vm5529_vm8, %vm5530_vm14  ;;  %v4267_v14 = vsel %vm10680_vm9, %v10546_v39, %v4263_v8  ;;  %7765 = vpow2.f32 %v7012_v26  ;;  %v5543_v61 = vadd.f32 %v10584_v45, %v5542_v41 }
 0x561   :  { %vm5545_vm11 = vweird.f32 %v10584_v45  ;;  %v5536_v21 = vor.u32 1.1754944e-38, %v5535_v48  ;;  %v4271_v10 = vor.u32 1.1754944e-38, %v4270_v62  ;;  %v5550_v20 = vand.u32 2147483648, %v10506_v40 }
 0x562   :  { %v5532_v23 = vsel %vm10689_vm10, %v10553_v43, %v5528_v5  ;;  %v4257_v31 = vsel %vm10665_vm15, %v4256_v2, %v4252_v35  ;;  %vm4269_vm14 = vcmp.eq.f32.partialorder %v4268_v51, 8.507059e+37  ;;  %vm5544_vm0 = vweird.f32 %v10506_v40 }
 0x563   :  { %v5548_v39 = vand.u32 2147483647, %v10506_v40  ;;  %vm4190_vm1 = vweird.f32 %v10527_v9  ;;  %v10707_v8 = vadd.f32 1.0, %v7758_v19  ;;  %v4272_v48 = vsel %vm4269_vm14, %v4271_v10, %v4267_v14  ;;  %vm10709_vm9 = vmor %vm5544_vm0, %vm5545_vm11  ;;  %v7438_v19 = vld [vmem:[%s15060_s3 + $0x38] sm:$0xff]  }
 0x564   :  { %vm5534_vm8 = vcmp.eq.f32.partialorder %v5533_v44, 8.507059e+37  ;;  %v7764_v37 = vpop.eup %7763  ;;  %v4216_v43 = vsub.f32 1.0, %v10638_v57  ;;  %v4231_v2 = vsub.f32 1.0, %v10644_v36  ;;  %v5547_v40 = vsel %vm10709_vm9, %v10584_v45, %v5543_v61  ;;  %vm10740_vm11 = vmor %vm4189_vm6, %vm4190_vm1 }
 0x565   :  { %v5537_v5 = vsel %vm5534_vm8, %v5536_v21, %v5532_v23  ;;  %v4188_v26 = vadd.f32 %v10527_v9, %v10624_v49  ;;  %v4201_v62 = vsub.f32 1.0, %v10634_v58  ;;  %v5008_v28 = vmul.f32 %v4257_v31, %v10360_v6 }
 0x566   :  { %v5551_v51 = vor.u32 1.1754944e-38, %v5550_v20  ;;  %v7766_v57 = vpop.eup %7765  ;;  %v15528_v36 = vand.u32 2147483647, %v10472_v55  ;;  %v5495_v45 = vmul.f32 %v10671_v30, %v10608_v25  ;;  %v5009_v35 = vmul.f32 %v4272_v48, %v10378_v3 }
 0x567   :  { %vm5549_vm10 = vcmp.eq.f32.partialorder %v5548_v39, 8.507059e+37  ;;  %v7335_v15 = vunpack.c.h.bf16 %v7438_v19  ;;  %v10734_v49 = vadd.f32 1.0, %v7764_v37  ;;  %v6288_v44 = vmul.f32 %v5537_v5, %v5008_v28 }
 0x568   :  { %vm10727_vm15 = vcmp.eq.f32.partialorder %v15528_v36, 8.507059e+37  ;;  %v5552_v58 = vsel %vm5549_vm10, %v5551_v51, %v5547_v40  ;;  %v7334_v6 = vunpack.c.l.bf16 %v7438_v19  ;;  %v10746_v14 = vmul.f32 %v10630_v47, %v10535_v53  ;;  %v1337_v36 = vpop.f32.mrf.mxu3  ;;  %v7284_v19 = vld [vmem:[%s15059_s2 + $0xe8] sm:$0xff] }
 0x569   :  { %vm4204_vm14 = vweird.f32 %v10521_v38  ;;  %v4217_v3 = vmul.f32 %v10602_v52, %v4216_v43  ;;  %v4232_v61 = vmul.f32 %v10618_v27, %v4231_v2  ;;  %v6289_v21 = vmul.f32 %v5552_v58, %v5009_v35  ;;  %6971 = vmatmul.msk.bf16.gmra.mxu0 %vm288_vm4, %v7284_v19 }
 0x56a   :  { %v4192_v10 = vsel %vm10740_vm11, %v10527_v9, %v4188_v26  ;;  %vm4205_vm6 = vweird.f32 %v10597_v63  ;;  %7767 = vrcp.f32 %v10707_v8  ;;  %v10756_v55 = vadd.f32 1.0, %v7766_v57 }
 0x56b   :  { %v4202_v20 = vmul.f32 %v10597_v63, %v4201_v62  ;;  %v5496_v39 = vsub.f32 1.0, %v5495_v45  ;;  %v5510_v48 = vmul.f32 %v10685_v0, %v10613_v17  ;;  %v6481_v41 = vmul.f32 %v7335_v15, %v6289_v21 }
 0x56c   :  { %vm4220_vm0 = vweird.f32 %v10602_v52  ;;  %v4225_v37 = vand.u32 2147483648, %v10523_v18  ;;  %7769 = vrcp.f32 %v10734_v49  ;;  %v6480_v9 = vmul.f32 %v7334_v6, %v6288_v44 }
 0x56d   :  { %v4218_v43 = vadd.f32 %v10602_v52, %v4217_v3  ;;  %v4233_v2 = vadd.f32 %v10618_v27, %v4232_v61  ;;  %vm4235_vm1 = vweird.f32 %v10618_v27  ;;  %v4240_v5 = vand.u32 2147483648, %v10537_v24 }
 0x56e   :  { %v15533_v40 = vand.u32 2147483647, %v10521_v38  ;;  %vm4219_vm9 = vweird.f32 %v10523_v18  ;;  %v4223_v26 = vand.u32 2147483647, %v10523_v18  ;;  %7771 = vrcp.f32 %v10756_v55 }
 0x56f   :  { %v6539_v62 = vpack.c.bf16 %v6481_v41, %v6480_v9  ;;  %vm10777_vm10 = vmor %vm4219_vm9, %vm4220_vm0  ;;  %vm4234_vm11 = vweird.f32 %v10537_v24  ;;  %v4238_v51 = vand.u32 2147483647, %v10537_v24  ;;  %v5511_v57 = vsub.f32 1.0, %v5510_v48 }
 0x570   :  { %vm10770_vm8 = vcmp.eq.f32.partialorder %v15533_v40, 8.507059e+37  ;;  %v5497_v45 = vmul.f32 %v10671_v30, %v5496_v39  ;;  %v10784_v35 = vpop.eup %7767  ;;  %v4197_v18 = vsel %vm10727_vm15, %v10611_v60, %v4192_v10  ;;  %v5466_v15 = vsub.f32 1.0, %v10746_v14  ;;  %vm10795_vm0 = vmor %vm4234_vm11, %vm4235_vm1  ;;  %v1339_v24 = vpop.f32.mrf.mxu3 }
 0x571   :  { %v4203_v58 = vadd.f32 %v10597_v63, %v4202_v20  ;;  %v15538_v44 = vand.u32 2147483648, %v10521_v38  ;;  %6564 = vmatpush.bf16.msra.mxu3 %v6539_v62  ;;  %v4222_v31 = vsel %vm10777_vm10, %v10602_v52, %v4218_v43  ;;  %v4226_v23 = vor.u32 1.1754944e-38, %v4225_v37  ;;  %vm10811_vm15 = vmor %vm4204_vm14, %vm4205_vm6  ;;  %v1834_v43 = vpop.f32.mrf.mxu0 }
 0x572   :  { %v4237_v60 = vsel %vm10795_vm0, %v10618_v27, %v4233_v2  ;;  %v4241_v14 = vor.u32 1.1754944e-38, %v4240_v5  ;;  %v10805_v3 = vpop.eup %7769  ;;  %v5498_v21 = vadd.f32 %v10671_v30, %v5497_v45  ;;  %vm5499_vm1 = vweird.f32 %v10608_v25  ;;  %v15546_v27 = vld [vmem:[#allocation16_spill] sm:$0xff] }
 0x573   :  { %v4211_v6 = vor.u32 1.1754944e-38, %v15538_v44  ;;  %vm5500_vm9 = vweird.f32 %v10671_v30  ;;  %v5503_v52 = vand.u32 2147483647, %v10608_v25  ;;  %vm4224_vm10 = vcmp.eq.f32.partialorder %v4223_v26, 8.507059e+37  ;;  %v15545_v44 = vld [vmem:[#allocation70_spill] sm:$0xff] }
 0x574   :  { %vm4239_vm11 = vcmp.eq.f32.partialorder %v4238_v51, 8.507059e+37  ;;  %vm10819_vm0 = vmor %vm5499_vm1, %vm5500_vm9  ;;  %v5505_v38 = vand.u32 2147483648, %v10608_v25  ;;  %v5512_v10 = vmul.f32 %v10685_v0, %v5511_v57  ;;  %v10825_v20 = vpop.eup %7771  ;;  %v4207_v39 = vsel %vm10811_vm15, %v10597_v63, %v4203_v58 }
 0x575   :  { %v4227_v48 = vsel %vm4224_vm10, %v4226_v23, %v4222_v31  ;;  %v4242_v41 = vsel %vm4239_vm11, %v4241_v14, %v4237_v60  ;;  %v5502_v37 = vsel %vm10819_vm0, %v10671_v30, %v5498_v21  ;;  %v2868_v9 = vmul.f32 %v10805_v3, %v10734_v49  ;;  %v7437_v30 = vld [vmem:[%s15060_s3 + $0x30] sm:$0xff]  }
 0x576   :  { %vm5504_vm14 = vcmp.eq.f32.partialorder %v5503_v52, 8.507059e+37  ;;  %v5506_v25 = vor.u32 1.1754944e-38, %v5505_v38  ;;  %v5513_v2 = vadd.f32 %v10685_v0, %v5512_v10  ;;  %vm5514_vm6 = vweird.f32 %v10613_v17 }
 0x577   :  { %vm5515_vm1 = vweird.f32 %v10685_v0  ;;  %v5518_v63 = vand.u32 2147483647, %v10613_v17  ;;  %v5520_v5 = vand.u32 2147483648, %v10613_v17  ;;  %v4212_v40 = vsel %vm10770_vm8, %v4211_v6, %v4207_v39 }
 0x578   :  { %v5480_v26 = vmul.f32 %v10784_v35, %v10707_v8  ;;  %v2853_v62 = vmul.f32 %v10825_v20, %v10756_v55  ;;  %v5507_v28 = vsel %vm5504_vm14, %v5506_v25, %v5502_v37  ;;  %vm5516_vm15 = vmor %vm5514_vm6, %vm5515_vm1  ;;  %v5006_v51 = vmul.f32 %v4227_v48, %v10432_v22 }
 0x579   :  { %v5007_v57 = vmul.f32 %v4242_v41, %v10441_v16  ;;  %v5517_v17 = vsel %vm5516_vm15, %v10685_v0, %v5513_v2  ;;  %v5521_v45 = vor.u32 1.1754944e-38, %v5520_v5  ;;  %v2869_v58 = vsub.f32 1.0, %v2868_v9  ;;  %v1836_v37 = vpop.f32.mrf.mxu0 }
 0x57a   :  { %v1338_v6 = vadd.f32 %v1337_v36, %v15545_v44  ;;  %vm5519_vm8 = vcmp.eq.f32.partialorder %v5518_v63, 8.507059e+37  ;;  %v7330_v31 = vunpack.c.l.bf16 %v7437_v30  ;;  %v6286_v60 = vmul.f32 %v5507_v28, %v5006_v51 }
 0x57b   :  { %v5522_v23 = vsel %vm5519_vm8, %v5521_v45, %v5517_v17  ;;  %v7331_v14 = vunpack.c.h.bf16 %v7437_v30  ;;  %v5467_v22 = vmul.f32 %v10630_v47, %v5466_v15  ;;  %v5004_v16 = vmul.f32 %v4197_v18, %v10353_v42  ;;  %v10899_v45 = vpop.f32.mrf.mxu3 }
 0x57c   :  { %v5481_v0 = vsub.f32 1.0, %v5480_v26  ;;  %v2854_v61 = vsub.f32 1.0, %v2853_v62  ;;  %v6287_v21 = vmul.f32 %v5522_v23, %v5007_v57  ;;  %v5005_v52 = vmul.f32 %v4212_v40, %v10425_v32 }
 0x57d   :  { %v1340_v38 = vadd.f32 %v1339_v24, %v15546_v27  ;;  %v5468_v36 = vadd.f32 %v10630_v47, %v5467_v22  ;;  %vm5470_vm9 = vweird.f32 %v10630_v47  ;;  %v2861_v10 = vand.u32 2147483647, %v10756_v55 }
 0x57e   :  { %v2863_v39 = vand.u32 2147483648, %v10756_v55  ;;  %v2870_v48 = vmul.f32 %v10805_v3, %v2869_v58  ;;  %v1934_v15 = vadd.f32 %v1834_v43, %v1338_v6  ;;  %vm2857_vm10 = vweird.f32 %v10756_v55  ;;  %v3489_v55 = vpop.f32.mrf.mxu1 }
 0x57f   :  { %v6478_v42 = vmul.f32 %v7330_v31, %v6286_v60  ;;  %v6479_v18 = vmul.f32 %v7331_v14, %v6287_v21  ;;  %vm5469_vm11 = vweird.f32 %v10535_v53  ;;  %v5473_v32 = vand.u32 2147483647, %v10535_v53  ;;  %v7434_v21 = vld [vmem:[%s15060_s3 + $0x18] sm:$0xff]  }
 0x580   :  { %v2855_v41 = vmul.f32 %v10825_v20, %v2854_v61  ;;  %vm2872_vm0 = vweird.f32 %v10734_v49  ;;  %vm10871_vm14 = vmor %vm5469_vm11, %vm5470_vm9  ;;  %v5475_v25 = vand.u32 2147483648, %v10535_v53  ;;  %v5482_v43 = vmul.f32 %v10784_v35, %v5481_v0  ;;  %v15568_v53 = vld [vmem:[#allocation88_spill] sm:$0xff] }
 0x581   :  { %v1935_v2 = vadd.f32 %v1836_v37, %v1340_v38  ;;  %v6538_v63 = vpack.c.bf16 %v6479_v18, %v6478_v42  ;;  %v5472_v5 = vsel %vm10871_vm14, %v10630_v47, %v5468_v36  ;;  %vm5485_vm6 = vweird.f32 %v10784_v35 }
 0x582   :  { %v5476_v30 = vor.u32 1.1754944e-38, %v5475_v25  ;;  %v5483_v40 = vadd.f32 %v10784_v35, %v5482_v43  ;;  %vm5484_vm1 = vweird.f32 %v10707_v8  ;;  %v5488_v26 = vand.u32 2147483647, %v10707_v8  ;;  %v15564_v43 = vld [vmem:[#allocation89_spill] sm:$0xff] }
 0x583   :  { %v2871_v62 = vadd.f32 %v10805_v3, %v2870_v48  ;;  %vm2873_vm15 = vweird.f32 %v10805_v3  ;;  %6565 = vmatpush.bf16.msra.mxu3 %v6538_v63  ;;  %vm5474_vm8 = vcmp.eq.f32.partialorder %v5473_v32, 8.507059e+37  ;;  %vm10886_vm9 = vmor %vm5484_vm1, %vm5485_vm6  ;;  %v5490_v47 = vand.u32 2147483648, %v10707_v8  ;;  %v7436_v8 = vld [vmem:[%s15060_s3 + $0x28] sm:$0xff]  }
 0x584   :  { %v15551_v28 = vand.u32 2147483647, %v10342_v59  ;;  %v2876_v57 = vand.u32 2147483647, %v10734_v49  ;;  %v2878_v17 = vand.u32 2147483648, %v10734_v49  ;;  %v5477_v19 = vsel %vm5474_vm8, %v5476_v30, %v5472_v5  ;;  %vm10913_vm6 = vmor %vm2872_vm0, %vm2873_vm15 }
 0x585   :  { %v5487_v58 = vsel %vm10886_vm9, %v10784_v35, %v5483_v40  ;;  %v2856_v59 = vadd.f32 %v10825_v20, %v2855_v41  ;;  %vm2858_vm14 = vweird.f32 %v10825_v20  ;;  %v5491_v44 = vor.u32 1.1754944e-38, %v5490_v47  ;;  %v10920_v35 = vld [vmem:[%s15064_s7] ss:$0 sm:$0xff]  ;;  %v1344_v40 = vpop.f32.mrf.mxu3 }
 0x586   :  { %vm10893_vm11 = vcmp.eq.f32.partialorder %v15551_v28, 8.507059e+37  ;;  %v6284_v6 = vmul.f32 %v5477_v19, %v5004_v16  ;;  %v10923_v31 = vadd.f32 %v10920_v35, %v1934_v15  ;;  %v10926_v23 = vadd.f32 %v10920_v35, %v1935_v2  ;;  %vm10940_vm15 = vmor %vm2857_vm10, %vm2858_vm14  ;;  %v7435_v28 = vld [vmem:[%s15060_s3 + $0x20] sm:$0xff]  }
 0x587   :  { %vm5489_vm1 = vcmp.eq.f32.partialorder %v5488_v26, 8.507059e+37  ;;  %v15556_v60 = vsub.f32 1.0, %v10482_v4  ;;  %v2875_v14 = vsel %vm10913_vm6, %v10805_v3, %v2871_v62  ;;  %v7326_v16 = vunpack.c.l.bf16 %v7436_v8 }
 0x588   :  { %v5492_v22 = vsel %vm5489_vm1, %v5491_v44, %v5487_v58  ;;  %v7327_v0 = vunpack.c.h.bf16 %v7436_v8  ;;  %vm4130_vm0 = vweird.f32 %v10220_v33  ;;  %v5451_v61 = vsub.f32 1.0, %v10606_v34  ;;  %v15573_v58 = vld [vmem:[#allocation82_spill] sm:$0xff]  ;;  %v15574_v8 = vld [vmem:[#allocation37_spill] sm:$0xff] }
 0x589   :  { %v5437_v49 = vmul.f32 %v10406_v13, %v15556_v60  ;;  %vm10944_vm8 = vcmp.eq.f32.partialorder %v2861_v10, 8.507059e+37  ;;  %v2864_v3 = vor.u32 1.1754944e-38, %v2863_v39  ;;  %v2879_v27 = vor.u32 1.1754944e-38, %v2878_v17  ;;  %v10956_v39 = vpop.f32.mrf.mxu0  ;;  %v15572_v17 = vld [vmem:[#allocation34_spill] sm:$0xff] }
 0x58a   :  { %v2860_v38 = vsel %vm10940_vm15, %v10825_v20, %v2856_v59  ;;  %vm2877_vm9 = vcmp.eq.f32.partialorder %v2876_v57, 8.507059e+37  ;;  %v6285_v34 = vmul.f32 %v5492_v22, %v5005_v52  ;;  %vm5440_vm6 = vweird.f32 %v10406_v13  ;;  %v15575_v44 = vld [vmem:[#allocation38_spill] sm:$0xff] }
 0x58b   :  { %vm4129_vm1 = vweird.f32 %v10164_v1  ;;  %vm4145_vm10 = vweird.f32 %v10286_v12  ;;  %v2880_v36 = vsel %vm2877_vm9, %v2879_v27, %v2875_v14  ;;  %v7014_v10 = vmul.f32 -1.442695, %v10923_v31  ;;  %v15579_v14 = vld [vmem:[#allocation74_spill] sm:$0xff] }
 0x58c   :  { %v7015_v48 = vmul.f32 -1.442695, %v10926_v23  ;;  %v5438_v15 = vadd.f32 %v10406_v13, %v5437_v49  ;;  %v6476_v42 = vmul.f32 %v7326_v16, %v6284_v6  ;;  %v6477_v20 = vmul.f32 %v7327_v0, %v6285_v34  ;;  %v15578_v49 = vld [vmem:[#allocation32_spill] sm:$0xff]  ;;  %v15582_v27 = vld [vmem:[#allocation86_spill] sm:$0xff]  ;;  %v15584_v34 = vld [vmem:[#allocation83_spill] sm:$0xff] }
 0x58d   :  { %vm5439_vm14 = vweird.f32 %v10336_v7  ;;  %v5443_v52 = vand.u32 2147483647, %v10336_v7  ;;  %v5002_v18 = vmul.f32 %v10496_v11, %v10080_v54  ;;  %v2865_v32 = vsel %vm10944_vm8, %v2864_v3, %v2860_v38  ;;  %v15565_v11 = vld [vmem:[#allocation41_spill] sm:$0xff] }
 0x58e   :  { %vm10967_vm15 = vmor %vm5439_vm14, %vm5440_vm6  ;;  %v5445_v37 = vand.u32 2147483648, %v10336_v7  ;;  %v5452_v9 = vmul.f32 %v10519_v29, %v5451_v61  ;;  %v15563_v25 = vsel %vm10576_vm7, %v10414_v46, %v10511_v50  ;;  %v10982_v2 = vadd.f32 %v3489_v55, %v15565_v11  ;;  %v15566_v7 = vld [vmem:[#allocation69_spill] sm:$0xff]  ;;  %v15567_v46 = vld [vmem:[#allocation68_spill] sm:$0xff] }
 0x58f   :  { %v4182_v54 = vsel %vm10893_vm11, %v15564_v43, %v15563_v25  ;;  %v6537_v63 = vpack.c.bf16 %v6477_v20, %v6476_v42  ;;  %v5442_v5 = vsel %vm10967_vm15, %v10406_v13, %v5438_v15  ;;  %v3281_v30 = vmul.f32 %v2880_v36, %v15566_v7  ;;  %vm11021_vm15 = vmor %vm4129_vm1, %vm4130_vm0  ;;  %v15597_v25 = vld [vmem:[#allocation36_spill] sm:$0xff] }
 0x590   :  { %7773 = vpow2.f32 %v7014_v10  ;;  %v5446_v56 = vor.u32 1.1754944e-38, %v5445_v37  ;;  %v5453_v26 = vadd.f32 %v10519_v29, %v5452_v9  ;;  %v3280_v50 = vmul.f32 %v2865_v32, %v15567_v46  ;;  %v15585_v10 = vld [vmem:[#allocation22_spill] sm:$0xff]  ;;  %v3491_v9 = vpop.f32.mrf.mxu1 }
 0x591   :  { %7775 = vpow2.f32 %v7015_v48  ;;  %6566 = vmatpush.bf16.msra.mxu3 %v6537_v63  ;;  %vm5444_vm7 = vcmp.eq.f32.partialorder %v5443_v52, 8.507059e+37  ;;  %vm5455_vm11 = vweird.f32 %v10519_v29  ;;  %vm5454_vm8 = vweird.f32 %v15568_v53  ;;  %v1841_v42 = vpop.f32.mrf.mxu0 }
 0x592   :  { %v5447_v62 = vsel %vm5444_vm7, %v5446_v56, %v5442_v5  ;;  %v5458_v47 = vand.u32 2147483647, %v15568_v53  ;;  %v5460_v13 = vand.u32 2147483648, %v15568_v53  ;;  %v15569_v51 = vand.u32 2147483647, %v10164_v1  ;;  %vm11008_vm6 = vmor %vm5454_vm8, %vm5455_vm11  ;;  %v15587_v1 = vld [vmem:[#allocation73_spill] sm:$0xff] }
 0x593   :  { %v4143_v19 = vadd.f32 %v10286_v12, %v15572_v17  ;;  %v5420_v59 = vmul.f32 %v15574_v8, %v15573_v58  ;;  %v1345_v6 = vadd.f32 %v1344_v40, %v15575_v44  ;;  %v6282_v60 = vmul.f32 %v5447_v62, %v5002_v18  ;;  %v15588_v18 = vld [vmem:[#allocation64_spill] sm:$0xff]  ;;  %v15599_v62 = vld [vmem:[#allocation67_spill] sm:$0xff]  ;;  %v15602_v17 = vld [vmem:[#allocation85_spill] sm:$0xff]  ;;  %v3658_v44 = vpop.f32.mrf.mxu2 }
 0x594   :  { %vm10999_vm9 = vcmp.eq.f32.partialorder %v15569_v51, 8.507059e+37  ;;  %vm4115_vm14 = vweird.f32 %v15578_v49  ;;  %v5003_v22 = vmul.f32 %v4182_v54, %v15579_v14  ;;  %v5457_v16 = vsel %vm11008_vm6, %v10519_v29, %v5453_v26  ;;  %v15586_v29 = vld [vmem:[#allocation84_spill] sm:$0xff] }
 0x595   :  { %v5461_v0 = vor.u32 1.1754944e-38, %v5460_v13  ;;  %v3325_v61 = vpack.c.bf16 %v3281_v30, %v3280_v50  ;;  %vm5459_vm7 = vcmp.eq.f32.partialorder %v5458_v47, 8.507059e+37  ;;  %v7322_v4 = vunpack.c.l.bf16 %v7435_v28 }
 0x596   :  { %v7323_v3 = vunpack.c.h.bf16 %v7435_v28  ;;  %v15583_v38 = vsub.f32 1.0, %v15582_v27  ;;  %v7774_v36 = vpop.eup %7773  ;;  %vm4114_vm11 = vweird.f32 %v15585_v10  ;;  %v4132_v48 = vsel %vm11021_vm15, %v10220_v33, %v15586_v29  ;;  %v15606_v27 = vld [vmem:[#allocation24_spill] sm:$0xff]  ;;  %v15610_v29 = vld [vmem:[#allocation81_spill] sm:$0xff] }
 0x597   :  { %vm4144_vm0 = vweird.f32 %v15587_v1  ;;  %v7118_v15 = vmul.f32 -1.442695, %v10982_v2  ;;  %v5462_v20 = vsel %vm5459_vm7, %v5461_v0, %v5457_v16  ;;  %3543 = vmatmul.bf16.gmra.mxu1 %v3325_v61  ;;  %3712 = vmatmul.bf16.gmra.mxu2 %v3325_v61  ;;  %v7776_v52 = vpop.eup %7775  ;;  %v15589_v32 = vand.u32 2147483647, %v15588_v18 }
 0x598   :  { %v5407_v55 = vmul.f32 %v15584_v34, %v15583_v38  ;;  %vm11043_vm8 = vmor %vm4144_vm0, %vm4145_vm10  ;;  %v15594_v33 = vand.u32 2147483647, %v15587_v1  ;;  %v1343_v43 = vadd.f32 %v10899_v45, %v15597_v25  ;;  %v1937_v54 = vadd.f32 %v1841_v42, %v1345_v6  ;;  %v15607_v38 = vld [vmem:[#allocation77_spill] sm:$0xff] }
 0x599   :  { %vm11037_vm1 = vcmp.eq.f32.partialorder %v15589_v32, 8.507059e+37  ;;  %v6283_v63 = vmul.f32 %v5462_v20, %v5003_v22  ;;  %v4147_v5 = vsel %vm11043_vm8, %v10286_v12, %v4143_v19  ;;  %v15598_v7 = vand.u32 2147483648, %v15587_v1  ;;  %vm11096_vm8 = vmor %vm4114_vm11, %vm4115_vm14  ;;  %v15612_v1 = vld [vmem:[#allocation87_spill] sm:$0xff]  ;;  %v15613_v42 = vld [vmem:[#allocation65_spill] sm:$0xff] }
 0x59a   :  { %vm11049_vm6 = vcmp.eq.f32.partialorder %v15594_v33, 8.507059e+37  ;;  %v5421_v40 = vsub.f32 1.0, %v5420_v59  ;;  %vm5410_vm10 = vweird.f32 %v15584_v34  ;;  %v11061_v56 = vadd.f32 1.0, %v7774_v36  ;;  %v15615_v32 = vld [vmem:[#allocation25_spill] sm:$0xff]  ;;  %v15623_v22 = vld [vmem:[#allocation28_spill] sm:$0xff] }
 0x59b   :  { %v4151_v30 = vor.u32 1.1754944e-38, %v15598_v7  ;;  %v6474_v26 = vmul.f32 %v7322_v4, %v6282_v60  ;;  %v6475_v46 = vmul.f32 %v7323_v3, %v6283_v63  ;;  %v5408_v50 = vadd.f32 %v15584_v34, %v5407_v55  ;;  %v15609_v55 = vld [vmem:[#allocation72_spill] sm:$0xff] }
 0x59c   :  { %7777 = vpow2.f32 %v7118_v15  ;;  %v11064_v45 = vadd.f32 1.0, %v7776_v52  ;;  %vm5409_vm15 = vweird.f32 %v15599_v62  ;;  %v5413_v53 = vand.u32 2147483647, %v15599_v62  ;;  %v15614_v52 = vld [vmem:[#allocation18_spill] sm:$0xff] }
 0x59d   :  { %v1936_v12 = vadd.f32 %v10956_v39, %v1343_v43  ;;  %v11070_v47 = vadd.f32 %v10920_v35, %v1937_v54  ;;  %v6536_v13 = vpack.c.bf16 %v6475_v46, %v6474_v26  ;;  %vm11072_vm7 = vmor %vm5409_vm15, %vm5410_vm10  ;;  %v5415_v51 = vand.u32 2147483648, %v15599_v62 }
 0x59e   :  { %v4137_v19 = vsel %vm10999_vm9, %v15602_v17, %v4132_v48  ;;  %v4152_v59 = vsel %vm11049_vm6, %v4151_v30, %v4147_v5  ;;  %v5412_v39 = vsel %vm11072_vm7, %v15584_v34, %v5408_v50  ;;  %v5422_v6 = vmul.f32 %v15574_v8, %v5421_v40  ;;  %v15617_v40 = vld [vmem:[#allocation79_spill] sm:$0xff]  ;;  %v15618_v50 = vld [vmem:[#allocation76_spill] sm:$0xff] }
 0x59f   :  { %7779 = vrcp.f32 %v11061_v56  ;;  %6567 = vmatpush.bf16.msra.mxu3 %v6536_v13  ;;  %v5416_v24 = vor.u32 1.1754944e-38, %v5415_v51  ;;  %vm5425_vm0 = vweird.f32 %v15574_v8  ;;  %v5430_v60 = vand.u32 2147483648, %v15573_v58  ;;  %v15621_v13 = vld [vmem:[#allocation33_spill] sm:$0xff] }
 0x5a0   :  { %7781 = vrcp.f32 %v11064_v45  ;;  %vm5414_vm9 = vcmp.eq.f32.partialorder %v5413_v53, 8.507059e+37  ;;  %v5423_v57 = vadd.f32 %v15574_v8, %v5422_v6  ;;  %v5428_v14 = vand.u32 2147483647, %v15573_v58  ;;  %v15620_v53 = vld [vmem:[#allocation75_spill] sm:$0xff] }
 0x5a1   :  { %v11101_v16 = vadd.f32 %v10920_v35, %v1936_v12  ;;  %v7017_v0 = vmul.f32 -1.442695, %v11070_v47  ;;  %v5417_v61 = vsel %vm5414_vm9, %v5416_v24, %v5412_v39  ;;  %vm5424_vm6 = vweird.f32 %v15573_v58  ;;  %v15611_v58 = vld [vmem:[#allocation78_spill] sm:$0xff]  ;;  %v15622_v6 = vld [vmem:[#allocation63_spill] sm:$0xff] }
 0x5a2   :  { %v7778_v4 = vpop.eup %7777  ;;  %v15608_v34 = vsel %vm10314_vm5, %v15606_v27, %v15607_v38  ;;  %v4117_v48 = vsel %vm11096_vm8, %v15578_v49, %v15610_v29  ;;  %v5390_v15 = vmul.f32 %v15612_v1, %v15611_v58  ;;  %v5000_v20 = vmul.f32 %v4137_v19, %v15613_v42  ;;  %vm5426_vm14 = vmor %vm5424_vm6, %vm5425_vm0  ;;  %v3660_v19 = vpop.f32.mrf.mxu2  ;;  %v7433_v29 = vld [vmem:[%s15060_s3 + $0x10] sm:$0xff]  }
 0x5a3   :  { %v4107_v36 = vsel %vm11037_vm1, %v15609_v55, %v15608_v34  ;;  %v5001_v18 = vmul.f32 %v4152_v59, %v15614_v52  ;;  %v3659_v37 = vadd.f32 %v3658_v44, %v15615_v32  ;;  %v5427_v41 = vsel %vm5426_vm14, %v15574_v8, %v5423_v57  ;;  %v1347_v38 = vpop.f32.mrf.mxu3  ;;  %v3494_v52 = vpop.f32.mrf.mxu1 }
 0x5a4   :  { %v5431_v33 = vor.u32 1.1754944e-38, %v5430_v60  ;;  %vm5429_vm5 = vcmp.eq.f32.partialorder %v5428_v14, 8.507059e+37  ;;  %v6280_v25 = vmul.f32 %v5417_v61, %v5000_v20  ;;  %v7318_v43 = vunpack.c.l.bf16 %v7434_v21 }
 0x5a5   :  { %v7319_v49 = vunpack.c.h.bf16 %v7434_v21  ;;  %v11128_v54 = vpop.eup %7779  ;;  %v15616_v63 = vand.u32 2147483647, %v15585_v10  ;;  %v7016_v5 = vmul.f32 -1.442695, %v11101_v16  ;;  %7783 = vpow2.f32 %v7017_v0 }
 0x5a6   :  { %v5432_v7 = vsel %vm5429_vm5, %v5431_v33, %v5427_v41  ;;  %v11133_v30 = vpop.eup %7781  ;;  %v11136_v8 = vadd.f32 1.0, %v7778_v4  ;;  %v15619_v62 = vsub.f32 1.0, %v15618_v50  ;;  %v4998_v28 = vmul.f32 %v4107_v36, %v15621_v13  ;;  %v7285_v41 = vld [vmem:[%s15059_s2 + $0xf0] sm:$0xff]  ;;  %v1844_v13 = vpop.f32.mrf.mxu0 }
 0x5a7   :  { %vm4119_vm11 = vcmp.eq.f32.partialorder %v15616_v63, 8.507059e+37  ;;  %v6281_v46 = vmul.f32 %v5432_v7, %v5001_v18  ;;  %v5391_v51 = vsub.f32 1.0, %v5390_v15  ;;  %v7182_v10 = vmul.f32 -1.442695, %v3659_v37  ;;  %v15628_v63 = vld [vmem:[#allocation26_spill] sm:$0xff]  ;;  %6972 = vmatmul.msk.bf16.gmra.mxu0 %vm288_vm4, %v7285_v41 }
 0x5a8   :  { %v4122_v26 = vsel %vm4119_vm11, %v15617_v40, %v4117_v48  ;;  %v5377_v12 = vmul.f32 %v15620_v53, %v15619_v62  ;;  %v11143_v17 = vadd.f32 %v3491_v9, %v15565_v11  ;;  %v6472_v59 = vmul.f32 %v7318_v43, %v6280_v25  ;;  %v15630_v7 = vld [vmem:[#allocation54_spill] sm:$0xff]  ;;  %v15639_v25 = vld [vmem:[#allocation19_spill] sm:$0xff] }
 0x5a9   :  { %v6473_v44 = vmul.f32 %v7319_v49, %v6281_v46  ;;  %vm5380_vm1 = vweird.f32 %v15620_v53  ;;  %v4999_v24 = vmul.f32 %v4122_v26, %v15622_v6  ;;  %v2883_v60 = vmul.f32 %v11128_v54, %v11061_v56 }
 0x5aa   :  { %v5378_v39 = vadd.f32 %v15620_v53, %v5377_v12  ;;  %v2898_v57 = vmul.f32 %v11133_v30, %v11064_v45  ;;  %7785 = vpow2.f32 %v7016_v5  ;;  %vm5379_vm10 = vweird.f32 %v15623_v22 }
 0x5ab   :  { %7787 = vrcp.f32 %v11136_v8  ;;  %v6535_v14 = vpack.c.bf16 %v6473_v44, %v6472_v59  ;;  %v5383_v0 = vand.u32 2147483647, %v15623_v22  ;;  %v7784_v61 = vpop.eup %7783  ;;  %v7119_v21 = vmul.f32 -1.442695, %v11143_v17  ;;  %vm11157_vm15 = vmor %vm5379_vm10, %vm5380_vm1 }
 0x5ac   :  { %7789 = vpow2.f32 %v7182_v10  ;;  %v3661_v4 = vadd.f32 %v3660_v19, %v15615_v32  ;;  %v5385_v27 = vand.u32 2147483648, %v15623_v22  ;;  %v5382_v34 = vsel %vm11157_vm15, %v15620_v53, %v5378_v39  ;;  %v15631_v22 = vld [vmem:[#allocation50_spill] sm:$0xff] }
 0x5ad   :  { %6568 = vmatpush.bf16.msra.mxu3 %v6535_v14  ;;  %v5392_v55 = vmul.f32 %v15612_v1, %v5391_v51  ;;  %vm5395_vm7 = vweird.f32 %v15612_v1  ;;  %v5398_v36 = vand.u32 2147483647, %v15611_v58  ;;  %v2884_v48 = vsub.f32 1.0, %v2883_v60 }
 0x5ae   :  { %v2899_v15 = vsub.f32 1.0, %v2898_v57  ;;  %v5386_v42 = vor.u32 1.1754944e-38, %v5385_v27  ;;  %v5400_v20 = vand.u32 2147483648, %v15611_v58  ;;  %v11172_v18 = vadd.f32 1.0, %v7784_v61  ;;  %v11216_v61 = vpop.f32.mrf.mxu2  ;;  %v15634_v27 = vld [vmem:[#allocation30_spill] sm:$0xff] }
 0x5af   :  { %vm5384_vm0 = vcmp.eq.f32.partialorder %v5383_v0, 8.507059e+37  ;;  %v5393_v37 = vadd.f32 %v15612_v1, %v5392_v55  ;;  %vm5394_vm9 = vweird.f32 %v15611_v58  ;;  %v7314_v49 = vunpack.c.l.bf16 %v7433_v29  ;;  %v1349_v55 = vpop.f32.mrf.mxu3 }
 0x5b0   :  { %v7786_v33 = vpop.eup %7785  ;;  %v5387_v9 = vsel %vm5384_vm0, %v5386_v42, %v5382_v34  ;;  %vm11181_vm8 = vmor %vm5394_vm9, %vm5395_vm7  ;;  %v5401_v43 = vor.u32 1.1754944e-38, %v5400_v20  ;;  %v15629_v5 = vsub.f32 1.0, %v15628_v63  ;;  %vm5399_vm6 = vcmp.eq.f32.partialorder %v5398_v36, 8.507059e+37 }
 0x5b1   :  { %v11188_v26 = vpop.eup %7787  ;;  %v5397_v58 = vsel %vm11181_vm8, %v15612_v1, %v5393_v37  ;;  %v6278_v46 = vmul.f32 %v5387_v9, %v4998_v28  ;;  %v7315_v50 = vunpack.c.h.bf16 %v7433_v29  ;;  %7791 = vpow2.f32 %v7119_v21  ;;  %v15635_v29 = vld [vmem:[#allocation17_spill] sm:$0xff]  ;;  %v15636_v37 = vld [vmem:[#allocation20_spill] sm:$0xff] }
 0x5b2   :  { %v5347_v40 = vmul.f32 %v15630_v7, %v15629_v5  ;;  %v11194_v62 = vpop.eup %7789  ;;  %v11196_v53 = vmul.f32 -1.442695, %v3661_v4  ;;  %v11199_v12 = vadd.f32 %v3494_v52, %v15565_v11  ;;  %v5402_v51 = vsel %vm5399_vm6, %v5401_v43, %v5397_v58  ;;  %v15632_v4 = vld [vmem:[#allocation71_spill] sm:$0xff]  ;;  %v15658_v58 = vld [vmem:[#allocation45_spill] sm:$0xff] }
 0x5b3   :  { %v2891_v10 = vand.u32 2147483647, %v11061_v56  ;;  %v2893_v19 = vand.u32 2147483648, %v11061_v56  ;;  %v11203_v1 = vadd.f32 1.0, %v7786_v33  ;;  %v6279_v28 = vmul.f32 %v5402_v51, %v4999_v24  ;;  %v15646_v51 = vld [vmem:[#allocation66_spill] sm:$0xff] }
 0x5b4   :  { %v2885_v59 = vmul.f32 %v11128_v54, %v2884_v48  ;;  %v2906_v44 = vand.u32 2147483647, %v11064_v45  ;;  %v2908_v39 = vand.u32 2147483648, %v11064_v45  ;;  %v5348_v6 = vadd.f32 %v15630_v7, %v5347_v40  ;;  %v7432_v40 = vld [vmem:[%s15060_s3 + $0x8] sm:$0xff]  }
 0x5b5   :  { %vm2887_vm14 = vweird.f32 %v11061_v56  ;;  %v2900_v60 = vmul.f32 %v11133_v30, %v2899_v15  ;;  %7793 = vrcp.f32 %v11172_v18  ;;  %v6470_v57 = vmul.f32 %v7314_v49, %v6278_v46 }
 0x5b6   :  { %v6471_v14 = vmul.f32 %v7315_v50, %v6279_v28  ;;  %vm5349_vm5 = vweird.f32 %v15631_v22  ;;  %vm5350_vm11 = vweird.f32 %v15630_v7  ;;  %v5353_v24 = vand.u32 2147483647, %v15631_v22 }
 0x5b7   :  { %v5355_v0 = vand.u32 2147483648, %v15631_v22  ;;  %vm2903_vm1 = vweird.f32 %v11133_v30  ;;  %7795 = vrcp.f32 %v11203_v1  ;;  %vm5351_vm10 = vmor %vm5349_vm5, %vm5350_vm11  ;;  %v15633_v3 = vsub.f32 1.0, %v15632_v4  ;;  %v11223_v36 = vpop.eup %7791  ;;  %v15649_v22 = vld [vmem:[#allocation31_spill] sm:$0xff] }
 0x5b8   :  { %v6534_v21 = vpack.c.bf16 %v6471_v14, %v6470_v57  ;;  %v1348_v48 = vadd.f32 %v1347_v38, %v15635_v29  ;;  %v5352_v15 = vsel %vm5351_vm10, %v15630_v7, %v5348_v6  ;;  %vm5365_vm15 = vweird.f32 %v15634_v27  ;;  %v15647_v57 = vld [vmem:[#allocation35_spill] sm:$0xff]  ;;  %v15656_v7 = vld [vmem:[#allocation48_spill] sm:$0xff] }
 0x5b9   :  { %v5362_v34 = vmul.f32 %v15634_v27, %v15633_v3  ;;  %v5356_v42 = vor.u32 1.1754944e-38, %v5355_v0  ;;  %v2901_v20 = vadd.f32 %v11133_v30, %v2900_v60  ;;  %vm5354_vm7 = vcmp.eq.f32.partialorder %v5353_v24, 8.507059e+37  ;;  %v15652_v29 = vld [vmem:[#allocation27_spill] sm:$0xff] }
 0x5ba   :  { %6569 = vmatpush.bf16.msra.mxu3 %v6534_v21  ;;  %v5370_v41 = vand.u32 2147483648, %v15636_v37  ;;  %vm11231_vm0 = vcmp.eq.f32.partialorder %v2891_v10, 8.507059e+37  ;;  %vm5364_vm9 = vweird.f32 %v15636_v37  ;;  %v5368_v38 = vand.u32 2147483647, %v15636_v37 }
 0x5bb   :  { %v5363_v52 = vadd.f32 %v15634_v27, %v5362_v34  ;;  %v5357_v9 = vsel %vm5354_vm7, %v5356_v42, %v5352_v15  ;;  %v1350_v43 = vadd.f32 %v1349_v55, %v15639_v25  ;;  %v11238_v49 = vpop.eup %7793  ;;  %v2886_v63 = vadd.f32 %v11128_v54, %v2885_v59  ;;  %vm11245_vm5 = vmor %vm5364_vm9, %vm5365_vm15  ;;  %v3496_v59 = vpop.f32.mrf.mxu1 }
 0x5bc   :  { %vm2888_vm8 = vweird.f32 %v11128_v54  ;;  %v2894_v5 = vor.u32 1.1754944e-38, %v2893_v19  ;;  %vm2902_vm6 = vweird.f32 %v11064_v45  ;;  %vm11258_vm10 = vcmp.eq.f32.partialorder %v2906_v44, 8.507059e+37  ;;  %v1846_v19 = vpop.f32.mrf.mxu0  ;;  %v11298_v15 = vpop.f32.mrf.mxu2 }
 0x5bd   :  { %vm11254_vm11 = vmor %vm2902_vm6, %vm2903_vm1  ;;  %v1938_v45 = vadd.f32 %v1844_v13, %v1348_v48  ;;  %v5367_v50 = vsel %vm11245_vm5, %v15634_v27, %v5363_v52  ;;  %v6276_v10 = vmul.f32 %v5357_v9, %v15646_v51  ;;  %v11266_v28 = vpop.eup %7795  ;;  %v5371_v60 = vor.u32 1.1754944e-38, %v5370_v41 }
 0x5be   :  { %v2905_v6 = vsel %vm11254_vm11, %v11133_v30, %v2901_v20  ;;  %v1939_v44 = vadd.f32 %v1846_v19, %v1350_v43  ;;  %v15648_v14 = vsub.f32 1.0, %v15647_v57  ;;  %vm11278_vm1 = vmor %vm2887_vm14, %vm2888_vm8  ;;  %v2909_v0 = vor.u32 1.1754944e-38, %v2908_v39  ;;  %v15653_v20 = vld [vmem:[#allocation42_spill] sm:$0xff] }
 0x5bf   :  { %vm5369_vm15 = vcmp.eq.f32.partialorder %v5368_v38, 8.507059e+37  ;;  %v7310_v21 = vunpack.c.l.bf16 %v7432_v40  ;;  %v7311_v4 = vunpack.c.h.bf16 %v7432_v40  ;;  %v2890_v30 = vsel %vm11278_vm1, %v11128_v54, %v2886_v63 }
 0x5c0   :  { %v5317_v13 = vmul.f32 %v15649_v22, %v15648_v14  ;;  %v2928_v3 = vmul.f32 %v11238_v49, %v11172_v18  ;;  %v5372_v27 = vsel %vm5369_vm15, %v5371_v60, %v5367_v50  ;;  %v11288_v34 = vadd.f32 %v10920_v35, %v1939_v44 }
 0x5c1   :  { %v2910_v56 = vsel %vm11258_vm10, %v2909_v0, %v2905_v6  ;;  %v2913_v39 = vmul.f32 %v11266_v28, %v11203_v1  ;;  %v11295_v55 = vadd.f32 %v10920_v35, %v1938_v45  ;;  %v6277_v48 = vmul.f32 %v5372_v27, %v15652_v29  ;;  %v15659_v6 = vld [vmem:[#allocation29_spill] sm:$0xff] }
 0x5c2   :  { %v7019_v54 = vmul.f32 -1.442695, %v11288_v34  ;;  %v5318_v42 = vadd.f32 %v15649_v22, %v5317_v13  ;;  %vm5319_vm14 = vweird.f32 %v15653_v20  ;;  %vm5320_vm7 = vweird.f32 %v15649_v22 }
 0x5c3   :  { %v6468_v52 = vmul.f32 %v7310_v21, %v6276_v10  ;;  %v6469_v37 = vmul.f32 %v7311_v4, %v6277_v48  ;;  %v5323_v41 = vand.u32 2147483647, %v15653_v20  ;;  %v5325_v9 = vand.u32 2147483648, %v15653_v20  ;;  %vm11309_vm9 = vmor %vm5319_vm14, %vm5320_vm7  ;;  %v11326_v44 = vpop.f32.mrf.mxu1  ;;  %v7305_v4 = vld [vmem:[%s15060_s3] sm:$0xff]  }
 0x5c4   :  { %v7120_v38 = vmul.f32 -1.442695, %v11199_v12  ;;  %v2895_v25 = vsel %vm11231_vm0, %v2894_v5, %v2890_v30  ;;  %v2929_v43 = vsub.f32 1.0, %v2928_v3  ;;  %v15657_v40 = vsub.f32 1.0, %v15656_v7  ;;  %v11343_v30 = vpop.f32.mrf.mxu3  ;;  %v11351_v48 = vpop.f32.mrf.mxu2 }
 0x5c5   :  { %v3283_v45 = vmul.f32 %v2910_v56, %v10926_v23  ;;  %v7018_v50 = vmul.f32 -1.442695, %v11295_v55  ;;  %v6533_v51 = vpack.c.bf16 %v6469_v37, %v6468_v52  ;;  %v5322_v10 = vsel %vm11309_vm9, %v15649_v22, %v5318_v42 }
 0x5c6   :  { %v5332_v46 = vmul.f32 %v15658_v58, %v15657_v40  ;;  %v2914_v33 = vsub.f32 1.0, %v2913_v39  ;;  %7797 = vpow2.f32 %v7019_v54  ;;  %vm5324_vm0 = vcmp.eq.f32.partialorder %v5323_v41, 8.507059e+37 }
 0x5c7   :  { %v5326_v5 = vor.u32 1.1754944e-38, %v5325_v9  ;;  %6570 = vmatpush.bf16.msra.mxu3 %v6533_v51  ;;  %vm5334_vm8 = vweird.f32 %v15659_v6  ;;  %vm5335_vm6 = vweird.f32 %v15658_v58  ;;  %v5338_v23 = vand.u32 2147483647, %v15659_v6 }
 0x5c8   :  { %v5333_v19 = vadd.f32 %v15658_v58, %v5332_v46  ;;  %v3282_v60 = vmul.f32 %v2895_v25, %v10923_v31  ;;  %v2930_v57 = vmul.f32 %v11238_v49, %v2929_v43  ;;  %vm11329_vm5 = vmor %vm5334_vm8, %vm5335_vm6  ;;  %v5340_v13 = vand.u32 2147483648, %v15659_v6  ;;  %v15662_v31 = vld [vmem:[#allocation52_spill] sm:$0xff]  ;;  %v1849_v43 = vpop.f32.mrf.mxu0 }
 0x5c9   :  { %v5327_v14 = vsel %vm5324_vm0, %v5326_v5, %v5322_v10  ;;  %v4275_v24 = vmul.f32 %v11188_v26, %v11136_v8  ;;  %7799 = vpow2.f32 %v7018_v50  ;;  %v2915_v3 = vmul.f32 %v11266_v28, %v2914_v33 }
 0x5ca   :  { %v5337_v0 = vsel %vm11329_vm5, %v15658_v58, %v5333_v19  ;;  %v6274_v21 = vmul.f32 %v5327_v14, %v15662_v31  ;;  %7801 = vpow2.f32 %v7120_v38  ;;  %v5341_v27 = vor.u32 1.1754944e-38, %v5340_v13  ;;  %v15663_v38 = vld [vmem:[#allocation57_spill] sm:$0xff] }
 0x5cb   :  { %v3326_v56 = vpack.c.bf16 %v3283_v45, %v3282_v60  ;;  %7803 = vpow2.f32 %v11196_v53  ;;  %v11348_v39 = vadd.f32 %v3496_v59, %v15565_v11  ;;  %vm2933_vm11 = vweird.f32 %v11238_v49  ;;  %v3501_v6 = vpop.f32.mrf.mxu1 }
 0x5cc   :  { %vm5339_vm10 = vcmp.eq.f32.partialorder %v5338_v23, 8.507059e+37  ;;  %v7798_v29 = vpop.eup %7797  ;;  %v2931_v54 = vadd.f32 %v11238_v49, %v2930_v57  ;;  %v7306_v20 = vunpack.c.l.bf16 %v7305_v4  ;;  %v7307_v52 = vunpack.c.h.bf16 %v7305_v4  ;;  %v1354_v57 = vpop.f32.mrf.mxu3 }
 0x5cd   :  { %v5342_v42 = vsel %vm5339_vm10, %v5341_v27, %v5337_v0  ;;  %3548 = vmatmul.bf16.gmra.mxu1 %v3326_v56  ;;  %3717 = vmatmul.bf16.gmra.mxu2 %v3326_v56  ;;  %v4276_v37 = vsub.f32 1.0, %v4275_v24  ;;  %v11355_v41 = vadd.f32 1.0, %v11223_v36  ;;  %vm2918_vm1 = vweird.f32 %v11266_v28  ;;  %v15668_v0 = vld [vmem:[#allocation40_spill] sm:$0xff] }
 0x5ce   :  { %v2938_v53 = vand.u32 2147483648, %v11172_v18  ;;  %v2916_v59 = vadd.f32 %v11266_v28, %v2915_v3  ;;  %vm2932_vm15 = vweird.f32 %v11172_v18  ;;  %v2936_v9 = vand.u32 2147483647, %v11172_v18  ;;  %v11408_v3 = vpop.f32.mrf.mxu2 }
 0x5cf   :  { %v6275_v25 = vmul.f32 %v5342_v42, %v15663_v38  ;;  %v7800_v63 = vpop.eup %7799  ;;  %v7121_v7 = vmul.f32 -1.442695, %v11348_v39  ;;  %vm2917_vm14 = vweird.f32 %v11203_v1  ;;  %v2921_v36 = vand.u32 2147483647, %v11203_v1  ;;  %vm11369_vm7 = vmor %vm2932_vm15, %vm2933_vm11 }
 0x5d0   :  { %v2923_v40 = vand.u32 2147483648, %v11203_v1  ;;  %v7802_v46 = vpop.eup %7801  ;;  %v2935_v18 = vsel %vm11369_vm7, %v11238_v49, %v2931_v54  ;;  %v11376_v45 = vadd.f32 1.0, %v7798_v29  ;;  %v6466_v50 = vmul.f32 %v7306_v20, %v6274_v21  ;;  %vm11382_vm9 = vmor %vm2917_vm14, %vm2918_vm1  ;;  %v7286_v49 = vld [vmem:[%s15059_s2 + $0xf8] sm:$0xff]  ;;  %v15670_v29 = vld [vmem:[#allocation39_spill] sm:$0xff]  ;;  %v1851_v20 = vpop.f32.mrf.mxu0 }
 0x5d1   :  { %v6467_v51 = vmul.f32 %v7307_v52, %v6275_v25  ;;  %v7804_v10 = vpop.eup %7803  ;;  %v4277_v33 = vmul.f32 %v11188_v26, %v4276_v37  ;;  %7805 = vrcp.f32 %v11355_v41  ;;  %v2939_v5 = vor.u32 1.1754944e-38, %v2938_v53  ;;  %6973 = vmatmul.msk.bf16.gmra.mxu0 %vm288_vm4, %v7286_v49 }
 0x5d2   :  { %v2920_v19 = vsel %vm11382_vm9, %v11266_v28, %v2916_v59  ;;  %vm2937_vm0 = vcmp.eq.f32.partialorder %v2936_v9, 8.507059e+37  ;;  %v11392_v23 = vadd.f32 1.0, %v7800_v63  ;;  %v11394_v14 = vadd.f32 1.0, %v7802_v46 }
 0x5d3   :  { %v6532_v60 = vpack.c.bf16 %v6467_v51, %v6466_v50  ;;  %7807 = vpow2.f32 %v7121_v7  ;;  %v2924_v22 = vor.u32 1.1754944e-38, %v2923_v40  ;;  %v2940_v13 = vsel %vm2937_vm0, %v2939_v5, %v2935_v18  ;;  %v3504_v58 = vpop.f32.mrf.mxu1 }
 0x5d4   :  { %v11399_v24 = vadd.f32 %v11326_v44, %v15565_v11  ;;  %vm2922_vm8 = vcmp.eq.f32.partialorder %v2921_v36, 8.507059e+37  ;;  %7809 = vrcp.f32 %v11376_v45  ;;  %v1355_v31 = vadd.f32 %v1354_v57, %v15668_v0 }
 0x5d5   :  { %6571 = vmatpush.bf16.msra.mxu3 %v6532_v60  ;;  %v2925_v28 = vsel %vm2922_vm8, %v2924_v22, %v2920_v19  ;;  %vm4280_vm6 = vweird.f32 %v11188_v26  ;;  %v11405_v21 = vadd.f32 1.0, %v11194_v62  ;;  %v3285_v4 = vmul.f32 %v2940_v13, %v11070_v47 }
 0x5d6   :  { %7811 = vrcp.f32 %v11392_v23  ;;  %v4278_v27 = vadd.f32 %v11188_v26, %v4277_v33  ;;  %v3664_v56 = vadd.f32 %v11216_v61, %v15615_v32  ;;  %v1353_v54 = vadd.f32 %v11343_v30, %v15670_v29 }
 0x5d7   :  { %15669 = vst [vmem:[#allocation70_spill] sm:$0xff] %v11405_v21  ;;  %v11411_v44 = vpop.eup %7805  ;;  %7813 = vrcp.f32 %v11394_v14  ;;  %v4285_v62 = vand.u32 2147483648, %v11136_v8  ;;  %v7122_v47 = vmul.f32 -1.442695, %v11399_v24  ;;  %v3284_v42 = vmul.f32 %v2925_v28, %v11101_v16 }
 0x5d8   :  { %vm4279_vm4 = vweird.f32 %v11136_v8  ;;  %v4283_v37 = vand.u32 2147483647, %v11136_v8  ;;  %v1941_v53 = vadd.f32 %v1851_v20, %v1355_v31  ;;  %7815 = vrcp.f32 %v11405_v21 }
 0x5d9   :  { %v7808_v52 = vpop.eup %7807  ;;  %vm11428_vm5 = vmor %vm4279_vm4, %vm4280_vm6  ;;  %v11433_v30 = vadd.f32 1.0, %v7804_v10  ;;  %v3327_v16 = vpack.c.bf16 %v3285_v4, %v3284_v42  ;;  %v4290_v8 = vmul.f32 %v11411_v44, %v11355_v41  ;;  %v7184_v38 = vmul.f32 -1.442695, %v3664_v56  ;;  %v11479_v4 = vpop.f32.mrf.mxu3 }
 0x5da   :  { %v11424_v59 = vpop.eup %7809  ;;  %v4282_v9 = vsel %vm11428_vm5, %v11188_v26, %v4278_v27  ;;  %v1940_v25 = vadd.f32 %v1849_v43, %v1353_v54  ;;  %v4286_v7 = vor.u32 1.1754944e-38, %v4285_v62  ;;  %v11442_v36 = vadd.f32 1.0, %v7808_v52 }
 0x5db   :  { %15673 = vst [vmem:[#allocation16_spill] sm:$0xff] %v11433_v30  ;;  %7817 = vpow2.f32 %v7122_v47  ;;  %v11445_v40 = vadd.f32 %v3501_v6, %v15565_v11  ;;  %vm4284_vm11 = vcmp.eq.f32.partialorder %v4283_v37, 8.507059e+37  ;;  %v2958_v26 = vmul.f32 %v11424_v59, %v11376_v45  ;;  %v11469_v6 = vpop.f32.mrf.mxu2 }
 0x5dc   :  { %v11440_v63 = vpop.eup %7811  ;;  %v11452_v43 = vadd.f32 %v10920_v35, %v1941_v53  ;;  %v4287_v18 = vsel %vm4284_vm11, %v4286_v7, %v4282_v9  ;;  %v4300_v50 = vand.u32 2147483648, %v11355_v41  ;;  %7819 = vrcp.f32 %v11433_v30  ;;  %v3506_v53 = vpop.f32.mrf.mxu1 }
 0x5dd   :  { %3553 = vmatmul.bf16.gmra.mxu1 %v3327_v16  ;;  %3722 = vmatmul.bf16.gmra.mxu2 %v3327_v16  ;;  %v11447_v46 = vpop.eup %7813  ;;  %v4291_v51 = vsub.f32 1.0, %v4290_v8  ;;  %7821 = vpow2.f32 %v7184_v38  ;;  %v2943_v10 = vmul.f32 %v11440_v63, %v11392_v23  ;;  %v11459_v33 = vadd.f32 %v10920_v35, %v1940_v25 }
 0x5de   :  { %v11461_v1 = vpop.eup %7815  ;;  %v4305_v5 = vmul.f32 %v11447_v46, %v11394_v14  ;;  %7823 = vrcp.f32 %v11442_v36  ;;  %v3666_v49 = vadd.f32 %v11298_v15, %v15615_v32  ;;  %v7123_v19 = vmul.f32 -1.442695, %v11445_v40 }
 0x5df   :  { %15674 = vst [vmem:[#allocation89_spill] sm:$0xff] %v11461_v1  ;;  %v2959_v60 = vsub.f32 1.0, %v2958_v26  ;;  %v7021_v57 = vmul.f32 -1.442695, %v11452_v43  ;;  %v4298_v35 = vand.u32 2147483647, %v11355_v41  ;;  %v11474_v13 = vmul.f32 %v4287_v18, %v10982_v2 }
 0x5e0   :  { %v11476_v28 = vor.u32 1.1754944e-38, %v4300_v50  ;;  %v2944_v0 = vsub.f32 1.0, %v2943_v10  ;;  %v7020_v31 = vmul.f32 -1.442695, %v11459_v33  ;;  %v4292_v27 = vmul.f32 %v11411_v44, %v4291_v51 }
 0x5e1   :  { %v7818_v22 = vpop.eup %7817  ;;  %15675 = vst [vmem:[#allocation41_spill] sm:$0xff] %v11474_v13  ;;  %v4306_v56 = vsub.f32 1.0, %v4305_v5  ;;  %v7185_v29 = vmul.f32 -1.442695, %v3666_v49  ;;  %7825 = vpow2.f32 %v7123_v19  ;;  %v11486_v62 = vmul.f32 %v11461_v1, %v11405_v21 }
 0x5e2   :  { %v11481_v15 = vpop.eup %7819  ;;  %v11488_v2 = vadd.f32 1.0, %v7818_v22  ;;  %v2960_v47 = vmul.f32 %v11424_v59, %v2959_v60  ;;  %7827 = vpow2.f32 %v7021_v57  ;;  %vm4294_vm10 = vweird.f32 %v11355_v41 }
 0x5e3   :  { %15676 = vst [vmem:[#allocation69_spill] sm:$0xff] %v11481_v15  ;;  %v7822_v54 = vpop.eup %7821  ;;  %vm4295_vm1 = vweird.f32 %v11411_v44  ;;  %v4313_v20 = vand.u32 2147483647, %v11394_v14  ;;  %v3669_v52 = vadd.f32 %v11351_v48, %v15615_v32  ;;  %v11499_v37 = vadd.f32 %v3504_v58, %v15565_v11  ;;  %v11521_v58 = vpop.f32.mrf.mxu0 }
 0x5e4   :  { %15677 = vst [vmem:[#allocation68_spill] sm:$0xff] %v11486_v62  ;;  %v11491_v42 = vpop.eup %7823  ;;  %v11503_v61 = vmul.f32 %v11481_v15, %v11433_v30  ;;  %vm4309_vm15 = vweird.f32 %v11394_v14  ;;  %v4315_v16 = vand.u32 2147483648, %v11394_v14  ;;  %v2945_v9 = vmul.f32 %v11440_v63, %v2944_v0  ;;  %v11528_v5 = vpop.f32.mrf.mxu2  ;;  %v15720_v62 = vld [vmem:[#allocation43_spill] sm:$0xff] }
 0x5e5   :  { %7829 = vpow2.f32 %v7020_v31  ;;  %v11509_v8 = vadd.f32 %v11411_v44, %v4292_v27  ;;  %v4307_v48 = vmul.f32 %v11447_v46, %v4306_v56  ;;  %v11512_v38 = vadd.f32 1.0, %v7822_v54  ;;  %v1359_v54 = vpop.f32.mrf.mxu3 }
 0x5e6   :  { %15678 = vst [vmem:[#allocation88_spill] sm:$0xff] %v11503_v61  ;;  %7831 = vpow2.f32 %v7185_v29  ;;  %v11516_v25 = vmul.f32 %v11491_v42, %v11442_v36  ;;  %v2961_v7 = vadd.f32 %v11424_v59, %v2960_v47  ;;  %vm2963_vm14 = vweird.f32 %v11424_v59  ;;  %v15714_v61 = vld [vmem:[#allocation44_spill] sm:$0xff] }
 0x5e7   :  { %15679 = vst [vmem:[#allocation34_spill] sm:$0xff] %v11512_v38  ;;  %7833 = vrcp.f32 %v11488_v2  ;;  %v7826_v26 = vpop.eup %7825  ;;  %v7186_v18 = vmul.f32 -1.442695, %v3669_v52  ;;  %v7124_v50 = vmul.f32 -1.442695, %v11499_v37  ;;  %v11525_v51 = vadd.f32 %v3506_v53, %v15565_v11 }
 0x5e8   :  { %v2968_v10 = vand.u32 2147483648, %v11376_v45  ;;  %v7828_v49 = vpop.eup %7827  ;;  %vm11530_vm7 = vcmp.eq.f32.partialorder %v4298_v35, 8.507059e+37  ;;  %v2946_v60 = vadd.f32 %v11440_v63, %v2945_v9  ;;  %vm2948_vm9 = vweird.f32 %v11440_v63 }
 0x5e9   :  { %vm2962_vm0 = vweird.f32 %v11376_v45  ;;  %v2966_v57 = vand.u32 2147483647, %v11376_v45  ;;  %v4308_v22 = vadd.f32 %v11447_v46, %v4307_v48  ;;  %vm4310_vm8 = vweird.f32 %v11447_v46 }
 0x5ea   :  { %vm11540_vm6 = vcmp.eq.f32.partialorder %v4313_v20, 8.507059e+37  ;;  %7835 = vrcp.f32 %v11512_v38  ;;  %v2953_v35 = vand.u32 2147483648, %v11392_v23  ;;  %vm11548_vm4 = vmor %vm2962_vm0, %vm2963_vm14  ;;  %v11552_v45 = vadd.f32 1.0, %v7826_v26 }
 0x5eb   :  { %v7830_v27 = vpop.eup %7829  ;;  %vm2947_vm5 = vweird.f32 %v11392_v23  ;;  %v2951_v56 = vand.u32 2147483647, %v11392_v23  ;;  %v2965_v29 = vsel %vm11548_vm4, %v11424_v59, %v2961_v7  ;;  %v4321_v20 = vsub.f32 1.0, %v11516_v25  ;;  %vm11574_vm14 = vmor %vm4294_vm10, %vm4295_vm1 }
 0x5ec   :  { %v7832_v47 = vpop.eup %7831  ;;  %7837 = vpow2.f32 %v7186_v18  ;;  %vm11562_vm11 = vmor %vm2947_vm5, %vm2948_vm9  ;;  %v2969_v53 = vor.u32 1.1754944e-38, %v2968_v10  ;;  %v11566_v9 = vadd.f32 1.0, %v7828_v49  ;;  %v7125_v25 = vmul.f32 -1.442695, %v11525_v51  ;;  %v11590_v18 = vpop.f32.mrf.mxu1  ;;  %v15692_v10 = vld [vmem:[#allocation23_spill] sm:$0xff] }
 0x5ed   :  { %v11568_v48 = vpop.eup %7833  ;;  %7839 = vpow2.f32 %v7124_v50  ;;  %v2950_v59 = vsel %vm11562_vm11, %v11440_v63, %v2946_v60  ;;  %vm2967_vm9 = vcmp.eq.f32.partialorder %v2966_v57, 8.507059e+37  ;;  %vm11586_vm0 = vmor %vm4309_vm15, %vm4310_vm8  ;;  %v2954_v41 = vor.u32 1.1754944e-38, %v2953_v35 }
 0x5ee   :  { %v2970_v26 = vsel %vm2967_vm9, %v2969_v53, %v2965_v29  ;;  %v11592_v50 = vadd.f32 1.0, %v7830_v27  ;;  %v1360_v49 = vadd.f32 %v1359_v54, %v15692_v10  ;;  %v4297_v63 = vsel %vm11574_vm14, %v11411_v44, %v11509_v8  ;;  %v15694_v27 = vld [vmem:[#allocation21_spill] sm:$0xff]  ;;  %v11620_v53 = vpop.f32.mrf.mxu2 }
 0x5ef   :  { %v4312_v60 = vsel %vm11586_vm0, %v11447_v46, %v4308_v22  ;;  %7841 = vrcp.f32 %v11552_v45  ;;  %vm2952_vm10 = vcmp.eq.f32.partialorder %v2951_v56, 8.507059e+37  ;;  %v4335_v35 = vmul.f32 %v11568_v48, %v11488_v2  ;;  %v1856_v22 = vpop.f32.mrf.mxu0 }
 0x5f0   :  { %v11603_v57 = vpop.eup %7835  ;;  %v2955_v31 = vsel %vm2952_vm10, %v2954_v41, %v2950_v59  ;;  %7843 = vrcp.f32 %v11566_v9  ;;  %v1358_v29 = vadd.f32 %v11479_v4, %v15694_v27  ;;  %v4316_v44 = vor.u32 1.1754944e-38, %v4315_v16 }
 0x5f1   :  { %15693 = vst [vmem:[#allocation82_spill] sm:$0xff] %v11603_v57  ;;  %v11612_v8 = vadd.f32 1.0, %v7832_v47  ;;  %7845 = vpow2.f32 %v7125_v25  ;;  %v3287_v46 = vmul.f32 %v2970_v26, %v11288_v34  ;;  %v4302_v54 = vsel %vm11530_vm7, %v11476_v28, %v4297_v63 }
 0x5f2   :  { %v7838_v56 = vpop.eup %7837  ;;  %v4322_v52 = vmul.f32 %v11491_v42, %v4321_v20  ;;  %7847 = vrcp.f32 %v11592_v50  ;;  %v1943_v4 = vadd.f32 %v1856_v22, %v1360_v49  ;;  %v4317_v34 = vsel %vm11540_vm6, %v4316_v44, %v4312_v60 }
 0x5f3   :  { %15695 = vst [vmem:[#allocation37_spill] sm:$0xff] %v11612_v8  ;;  %v7840_v14 = vpop.eup %7839  ;;  %v3286_v23 = vmul.f32 %v2955_v31, %v11295_v55  ;;  %v4328_v19 = vand.u32 2147483647, %v11442_v36  ;;  %v4336_v28 = vsub.f32 1.0, %v4335_v35  ;;  %v3671_v20 = vadd.f32 %v11408_v3, %v15615_v32  ;;  %v11647_v3 = vld [vmem:[%s15064_s7] ss:$0 sm:$0xff] }
 0x5f4   :  { %v1942_v59 = vadd.f32 %v11521_v58, %v1358_v29  ;;  %v11634_v7 = vmul.f32 %v4302_v54, %v11143_v17  ;;  %v4330_v41 = vand.u32 2147483648, %v11442_v36  ;;  %7849 = vrcp.f32 %v11612_v8  ;;  %v11669_v29 = vpop.f32.mrf.mxu1 }
 0x5f5   :  { %v11631_v25 = vpop.eup %7841  ;;  %v3328_v0 = vpack.c.bf16 %v3287_v46, %v3286_v23  ;;  %v4323_v55 = vadd.f32 %v11491_v42, %v4322_v52  ;;  %vm4325_vm1 = vweird.f32 %v11491_v42  ;;  %v11642_v10 = vadd.f32 1.0, %v7838_v56 }
 0x5f6   :  { %15696 = vst [vmem:[#allocation38_spill] sm:$0xff] %v11634_v7  ;;  %v11638_v26 = vpop.eup %7843  ;;  %v11650_v17 = vadd.f32 %v11647_v3, %v1943_v4  ;;  %v11653_v49 = vmul.f32 %v4317_v34, %v11199_v12  ;;  %v11657_v63 = vmul.f32 %v11603_v57, %v11512_v38  ;;  %vm4324_vm15 = vweird.f32 %v11442_v36 }
 0x5f7   :  { %15697 = vst [vmem:[#allocation32_spill] sm:$0xff] %v11642_v10  ;;  %v7846_v58 = vpop.eup %7845  ;;  %v11660_v60 = vadd.f32 1.0, %v7840_v14  ;;  %3558 = vmatmul.bf16.gmra.mxu1 %v3328_v0  ;;  %3727 = vmatmul.bf16.gmra.mxu2 %v3328_v0  ;;  %vm11664_vm7 = vcmp.eq.f32.partialorder %v4328_v19, 8.507059e+37  ;;  %v4337_v27 = vmul.f32 %v11568_v48, %v4336_v28  ;;  %v7187_v12 = vmul.f32 -1.442695, %v3671_v20  ;;  %vm11676_vm8 = vmor %vm4324_vm15, %vm4325_vm1  ;;  %v11700_v19 = vpop.f32.mrf.mxu3 }
 0x5f8   :  { %15698 = vst [vmem:[#allocation74_spill] sm:$0xff] %v11653_v49  ;;  %v11662_v35 = vpop.eup %7847  ;;  %v11672_v44 = vadd.f32 %v11647_v3, %v1942_v59  ;;  %v4331_v46 = vor.u32 1.1754944e-38, %v4330_v41  ;;  %v4350_v22 = vmul.f32 %v11631_v25, %v11552_v45  ;;  %v3674_v56 = vadd.f32 %v11469_v6, %v15615_v32  ;;  %v11705_v20 = vpop.f32.mrf.mxu2 }
 0x5f9   :  { %15699 = vst [vmem:[#allocation86_spill] sm:$0xff] %v11657_v63  ;;  %v2988_v54 = vmul.f32 %v11638_v26, %v11566_v9  ;;  %v4327_v52 = vsel %vm11676_vm8, %v11491_v42, %v4323_v55  ;;  %v4345_v4 = vand.u32 2147483648, %v11488_v2  ;;  %7851 = vrcp.f32 %v11642_v10 }
 0x5fa   :  { %v7023_v14 = vmul.f32 -1.442695, %v11650_v17  ;;  %v11692_v34 = vpop.eup %7849  ;;  %vm4340_vm6 = vweird.f32 %v11568_v48  ;;  %7853 = vrcp.f32 %v11660_v60  ;;  %v11696_v6 = vadd.f32 1.0, %v7846_v58 }
 0x5fb   :  { %15704 = vst [vmem:[#allocation83_spill] sm:$0xff] %v11692_v34  ;;  %v2973_v23 = vmul.f32 %v11662_v35, %v11592_v50  ;;  %v4338_v42 = vadd.f32 %v11568_v48, %v4337_v27  ;;  %7855 = vpow2.f32 %v7187_v12  ;;  %v3676_v28 = vadd.f32 %v11528_v5, %v15615_v32 }
 0x5fc   :  { %v7022_v59 = vmul.f32 -1.442695, %v11672_v44  ;;  %v4351_v41 = vsub.f32 1.0, %v4350_v22  ;;  %v7188_v0 = vmul.f32 -1.442695, %v3674_v56  ;;  %v11710_v55 = vadd.f32 %v11590_v18, %v15565_v11 }
 0x5fd   :  { %v2989_v58 = vsub.f32 1.0, %v2988_v54  ;;  %v11714_v36 = vmul.f32 %v11692_v34, %v11612_v8  ;;  %vm4339_vm4 = vweird.f32 %v11488_v2  ;;  %v4343_v27 = vand.u32 2147483647, %v11488_v2 }
 0x5fe   :  { %7857 = vpow2.f32 %v7023_v14  ;;  %v4332_v5 = vsel %vm11664_vm7, %v4331_v46, %v4327_v52  ;;  %vm11722_vm5 = vmor %vm4339_vm4, %vm4340_vm6  ;;  %v4346_v18 = vor.u32 1.1754944e-38, %v4345_v4  ;;  %v2974_v22 = vsub.f32 1.0, %v2973_v23  ;;  %v11738_v23 = vpop.f32.mrf.mxu0 }
 0x5ff   :  { %15705 = vst [vmem:[#allocation22_spill] sm:$0xff] %v11714_v36  ;;  %7859 = vrcp.f32 %v11696_v6  ;;  %v11727_v56 = vpop.eup %7851  ;;  %v4342_v2 = vsel %vm11722_vm5, %v11568_v48, %v4338_v42  ;;  %v4360_v54 = vand.u32 2147483648, %v11552_v45  ;;  %v7189_v31 = vmul.f32 -1.442695, %v3676_v28  ;;  %v3514_v28 = vpop.f32.mrf.mxu1 }
 0x600   :  { %15708 = vst [vmem:[#allocation84_spill] sm:$0xff] %v11727_v56  ;;  %7861 = vpow2.f32 %v7022_v59  ;;  %v11733_v46 = vpop.eup %7853  ;;  %v4352_v52 = vmul.f32 %v11631_v25, %v4351_v41  ;;  %v7126_v4 = vmul.f32 -1.442695, %v11710_v55  ;;  %v2990_v14 = vmul.f32 %v11638_v26, %v2989_v58  ;;  %v11774_v42 = vpop.f32.mrf.mxu2 }
 0x601   :  { %7863 = vpow2.f32 %v7188_v0  ;;  %v7856_v47 = vpop.eup %7855  ;;  %v11742_v48 = vmul.f32 %v4332_v5, %v11348_v39  ;;  %vm4344_vm11 = vcmp.eq.f32.partialorder %v4343_v27, 8.507059e+37  ;;  %v11749_v41 = vmul.f32 %v11727_v56, %v11642_v10 }
 0x602   :  { %v11745_v59 = vsel %vm4344_vm11, %v4346_v18, %v4342_v2  ;;  %v4358_v0 = vand.u32 2147483647, %v11552_v45  ;;  %v2975_v58 = vmul.f32 %v11662_v35, %v2974_v22  ;;  %vm4355_vm14 = vweird.f32 %v11631_v25  ;;  %v1364_v22 = vpop.f32.mrf.mxu3 }
 0x603   :  { %15709 = vst [vmem:[#allocation73_spill] sm:$0xff] %v11742_v48  ;;  %v11754_v16 = vor.u32 1.1754944e-38, %v4360_v54  ;;  %v4365_v39 = vmul.f32 %v11733_v46, %v11660_v60  ;;  %7865 = vpow2.f32 %v7189_v31  ;;  %v11761_v5 = vadd.f32 %v11631_v25, %v4352_v52 }
 0x604   :  { %15710 = vst [vmem:[#allocation64_spill] sm:$0xff] %v11749_v41  ;;  %v7858_v12 = vpop.eup %7857  ;;  %vm4354_vm9 = vweird.f32 %v11552_v45  ;;  %7867 = vpow2.f32 %v7126_v4  ;;  %v2991_v18 = vadd.f32 %v11638_v26, %v2990_v14  ;;  %vm2993_vm0 = vweird.f32 %v11638_v26 }
 0x605   :  { %v11758_v27 = vpop.eup %7859  ;;  %v11766_v54 = vadd.f32 1.0, %v7856_v47  ;;  %vm2978_vm10 = vweird.f32 %v11662_v35  ;;  %v11771_v31 = vadd.f32 %v11669_v29, %v15565_v11  ;;  %v2998_v52 = vand.u32 2147483648, %v11566_v9  ;;  %vm11828_vm11 = vmor %vm4354_vm9, %vm4355_vm14 }
 0x606   :  { %v7862_v2 = vpop.eup %7861  ;;  %v2976_v4 = vadd.f32 %v11662_v35, %v2975_v58  ;;  %vm2992_vm1 = vweird.f32 %v11566_v9  ;;  %v2996_v14 = vand.u32 2147483647, %v11566_v9  ;;  %v11779_v13 = vadd.f32 1.0, %v7858_v12 }
 0x607   :  { %15711 = vst [vmem:[#allocation36_spill] sm:$0xff] %v11766_v54  ;;  %v7864_v7 = vpop.eup %7863  ;;  %v4366_v47 = vsub.f32 1.0, %v4365_v39  ;;  %v4380_v30 = vmul.f32 %v11758_v27, %v11696_v6  ;;  %v2983_v29 = vand.u32 2147483648, %v11592_v50  ;;  %vm11786_vm15 = vmor %vm2992_vm1, %vm2993_vm0  ;;  %v1365_v58 = vadd.f32 %v1364_v22, %v15714_v61  ;;  %v3516_v34 = vpop.f32.mrf.mxu1 }
 0x608   :  { %vm11791_vm7 = vcmp.eq.f32.partialorder %v4358_v0, 8.507059e+37  ;;  %vm2977_vm8 = vweird.f32 %v11592_v50  ;;  %v2981_v9 = vand.u32 2147483647, %v11592_v50  ;;  %v2995_v12 = vsel %vm11786_vm15, %v11638_v26, %v2991_v18  ;;  %v1861_v26 = vpop.f32.mrf.mxu0 }
 0x609   :  { %v11800_v39 = vadd.f32 1.0, %v7862_v2  ;;  %v7866_v48 = vpop.eup %7865  ;;  %v11802_v1 = vadd.f32 1.0, %v7864_v7  ;;  %vm11806_vm6 = vmor %vm2977_vm8, %vm2978_vm10  ;;  %v7127_v0 = vmul.f32 -1.442695, %v11771_v31  ;;  %v2999_v22 = vor.u32 1.1754944e-38, %v2998_v52 }
 0x60a   :  { %v1363_v50 = vadd.f32 %v11700_v19, %v15720_v62  ;;  %v7868_v49 = vpop.eup %7867  ;;  %v2980_v15 = vsel %vm11806_vm6, %v11662_v35, %v2976_v4  ;;  %vm2997_vm4 = vcmp.eq.f32.partialorder %v2996_v14, 8.507059e+37  ;;  %v11817_v7 = vadd.f32 %v3514_v28, %v15565_v11  ;;  %v11845_v14 = vpop.f32.mrf.mxu2 }
 0x60b   :  { %15717 = vst [vmem:[#allocation67_spill] sm:$0xff] %v11802_v1  ;;  %7869 = vrcp.f32 %v11779_v13  ;;  %v4381_v18 = vsub.f32 1.0, %v4380_v30  ;;  %v2984_v2 = vor.u32 1.1754944e-38, %v2983_v29  ;;  %v3000_v8 = vsel %vm2997_vm4, %v2999_v22, %v2995_v12 }
 0x60c   :  { %v1945_v52 = vadd.f32 %v1861_v26, %v1365_v58  ;;  %v4367_v36 = vmul.f32 %v11733_v46, %v4366_v47  ;;  %v11821_v62 = vadd.f32 1.0, %v7866_v48  ;;  %vm2982_vm5 = vcmp.eq.f32.partialorder %v2981_v9, 8.507059e+37 }
 0x60d   :  { %7871 = vrcp.f32 %v11800_v39  ;;  %v11833_v30 = vadd.f32 1.0, %v7868_v49  ;;  %v2985_v19 = vsel %vm2982_vm5, %v2984_v2, %v2980_v15  ;;  %v1944_v28 = vadd.f32 %v11738_v23, %v1363_v50 }
 0x60e   :  { %15721 = vst [vmem:[#allocation85_spill] sm:$0xff] %v11821_v62  ;;  %7873 = vrcp.f32 %v11766_v54  ;;  %v4357_v48 = vsel %vm11828_vm11, %v11631_v25, %v11761_v5  ;;  %v3289_v4 = vmul.f32 %v3000_v8, %v11452_v43  ;;  %v7128_v45 = vmul.f32 -1.442695, %v11817_v7 }
 0x60f   :  { %7875 = vpow2.f32 %v7127_v0  ;;  %vm4370_vm14 = vweird.f32 %v11733_v46  ;;  %v4382_v49 = vmul.f32 %v11758_v27, %v4381_v18  ;;  %v11848_v23 = vadd.f32 %v11647_v3, %v1945_v52  ;;  %v11896_v35 = vpop.f32.mrf.mxu1 }
 0x610   :  { %7877 = vrcp.f32 %v11802_v1  ;;  %v4368_v25 = vadd.f32 %v11733_v46, %v4367_v36  ;;  %v3288_v43 = vmul.f32 %v2985_v19, %v11459_v33  ;;  %v3679_v8 = vadd.f32 %v11620_v53, %v15615_v32 }
 0x611   :  { %v11850_v47 = vpop.eup %7869  ;;  %7879 = vrcp.f32 %v11821_v62  ;;  %v4362_v5 = vsel %vm11791_vm7, %v11754_v16, %v4357_v48  ;;  %vm4369_vm9 = vweird.f32 %v11660_v60  ;;  %v11863_v29 = vadd.f32 %v11647_v3, %v1944_v28 }
 0x612   :  { %7881 = vrcp.f32 %v11833_v30  ;;  %v4373_v36 = vand.u32 2147483647, %v11660_v60  ;;  %v4375_v33 = vand.u32 2147483648, %v11660_v60  ;;  %v3329_v9 = vpack.c.bf16 %v3289_v4, %v3288_v43  ;;  %vm11873_vm0 = vmor %vm4369_vm9, %vm4370_vm14  ;;  %v11882_v60 = vpop.f32.mrf.mxu3  ;;  %v11927_v21 = vpop.f32.mrf.mxu2 }
 0x613   :  { %v11865_v58 = vpop.eup %7871  ;;  %7883 = vpow2.f32 %v7128_v45  ;;  %v4383_v16 = vadd.f32 %v11758_v27, %v4382_v49  ;;  %vm4385_vm10 = vweird.f32 %v11758_v27  ;;  %v3018_v12 = vmul.f32 %v11850_v47, %v11779_v13 }
 0x614   :  { %v11869_v53 = vpop.eup %7873  ;;  %v7025_v61 = vmul.f32 -1.442695, %v11848_v23  ;;  %v4372_v22 = vsel %vm11873_vm0, %v11733_v46, %v4368_v25  ;;  %vm4384_vm1 = vweird.f32 %v11696_v6  ;;  %v4390_v50 = vand.u32 2147483648, %v11696_v6  ;;  %3563 = vmatmul.bf16.gmra.mxu1 %v3329_v9  ;;  %3732 = vmatmul.bf16.gmra.mxu2 %v3329_v9 }
 0x615   :  { %15724 = vst [vmem:[#allocation80_spill] sm:$0xff] %v11869_v53  ;;  %v7876_v0 = vpop.eup %7875  ;;  %v7190_v15 = vmul.f32 -1.442695, %v3679_v8  ;;  %v4388_v18 = vand.u32 2147483647, %v11696_v6  ;;  %v3681_v2 = vadd.f32 %v11705_v20, %v15615_v32  ;;  %v3003_v52 = vmul.f32 %v11865_v58, %v11800_v39  ;;  %vm11909_vm7 = vmor %vm4384_vm1, %vm4385_vm10  ;;  %v11929_v20 = vpop.f32.mrf.mxu0 }
 0x616   :  { %v11889_v26 = vpop.eup %7877  ;;  %v7024_v46 = vmul.f32 -1.442695, %v11863_v29  ;;  %v11903_v28 = vmul.f32 %v11869_v53, %v11766_v54  ;;  %vm4374_vm15 = vcmp.eq.f32.partialorder %v4373_v36, 8.507059e+37  ;;  %v4376_v48 = vor.u32 1.1754944e-38, %v4375_v33 }
 0x617   :  { %15727 = vst [vmem:[#allocation24_spill] sm:$0xff] %v11889_v26  ;;  %v11899_v19 = vpop.eup %7879  ;;  %v11914_v4 = vadd.f32 %v3516_v34, %v15565_v11  ;;  %v4387_v49 = vsel %vm11909_vm7, %v11758_v27, %v4383_v16  ;;  %v11921_v25 = vadd.f32 1.0, %v7876_v0  ;;  %v3019_v43 = vsub.f32 1.0, %v3018_v12 }
 0x618   :  { %15728 = vst [vmem:[#allocation77_spill] sm:$0xff] %v11899_v19  ;;  %v11916_v45 = vpop.eup %7881  ;;  %7885 = vpow2.f32 %v7025_v61  ;;  %v4377_v36 = vsel %vm4374_vm15, %v4376_v48, %v4372_v22  ;;  %v11925_v6 = vmul.f32 %v11889_v26, %v11802_v1  ;;  %v4391_v33 = vor.u32 1.1754944e-38, %v4390_v50 }
 0x619   :  { %15729 = vst [vmem:[#allocation72_spill] sm:$0xff] %v11903_v28  ;;  %v7884_v8 = vpop.eup %7883  ;;  %7887 = vpow2.f32 %v7190_v15  ;;  %vm4389_vm8 = vcmp.eq.f32.partialorder %v4388_v18, 8.507059e+37  ;;  %v7191_v34 = vmul.f32 -1.442695, %v3681_v2  ;;  %v3004_v9 = vsub.f32 1.0, %v3003_v52 }
 0x61a   :  { %15732 = vst [vmem:[#allocation81_spill] sm:$0xff] %v11925_v6  ;;  %7889 = vpow2.f32 %v7024_v46  ;;  %v4392_v27 = vsel %vm4389_vm8, %v4391_v33, %v4387_v49  ;;  %v11933_v16 = vmul.f32 %v11899_v19, %v11821_v62  ;;  %v4395_v12 = vmul.f32 %v11916_v45, %v11833_v30  ;;  %v1369_v49 = vpop.f32.mrf.mxu3  ;;  %v11997_v38 = vpop.f32.mrf.mxu2 }
 0x61b   :  { %v7129_v61 = vmul.f32 -1.442695, %v11914_v4  ;;  %v11940_v0 = vmul.f32 %v11745_v59, %v11399_v24  ;;  %7891 = vrcp.f32 %v11921_v25  ;;  %v11943_v22 = vadd.f32 1.0, %v7884_v8 }
 0x61c   :  { %15733 = vst [vmem:[#allocation78_spill] sm:$0xff] %v11933_v16  ;;  %v3020_v50 = vmul.f32 %v11850_v47, %v3019_v43  ;;  %v11948_v18 = vmul.f32 %v4362_v5, %v11445_v40  ;;  %v11952_v52 = vmul.f32 %v4377_v36, %v11499_v37  ;;  %v11956_v59 = vmul.f32 %v4392_v27, %v11525_v51  ;;  %v3521_v36 = vpop.f32.mrf.mxu1 }
 0x61d   :  { %15734 = vst [vmem:[#allocation87_spill] sm:$0xff] %v11940_v0  ;;  %7893 = vpow2.f32 %v7191_v34  ;;  %v3005_v48 = vmul.f32 %v11865_v58, %v3004_v9  ;;  %v4396_v40 = vsub.f32 1.0, %v4395_v12  ;;  %v3684_v37 = vadd.f32 %v11774_v42, %v15615_v32  ;;  %v15738_v12 = vld [vmem:[#allocation47_spill] sm:$0xff] }
 0x61e   :  { %15735 = vst [vmem:[#allocation65_spill] sm:$0xff] %v11948_v18  ;;  %v7886_v46 = vpop.eup %7885  ;;  %7895 = vpow2.f32 %v7129_v61  ;;  %v3021_v51 = vadd.f32 %v11850_v47, %v3020_v50  ;;  %vm3023_vm6 = vweird.f32 %v11850_v47  ;;  %v3013_v34 = vand.u32 2147483648, %v11800_v39 }
 0x61f   :  { %15736 = vst [vmem:[#allocation18_spill] sm:$0xff] %v11952_v52  ;;  %v7888_v43 = vpop.eup %7887  ;;  %7897 = vrcp.f32 %v11943_v22  ;;  %v3028_v9 = vand.u32 2147483648, %v11779_v13  ;;  %v11968_v27 = vadd.f32 1.0, %v7886_v46  ;;  %v1370_v2 = vadd.f32 %v1369_v49, %v15738_v12  ;;  %v15742_v12 = vld [vmem:[#allocation46_spill] sm:$0xff] }
 0x620   :  { %15737 = vst [vmem:[#allocation25_spill] sm:$0xff] %v11956_v59  ;;  %v7890_v33 = vpop.eup %7889  ;;  %v3006_v15 = vadd.f32 %v11865_v58, %v3005_v48  ;;  %vm3008_vm4 = vweird.f32 %v11865_v58  ;;  %vm3022_vm5 = vweird.f32 %v11779_v13  ;;  %v3026_v42 = vand.u32 2147483647, %v11779_v13 }
 0x621   :  { %v11971_v61 = vpop.eup %7891  ;;  %v11977_v50 = vadd.f32 1.0, %v7888_v43  ;;  %vm11979_vm11 = vmor %vm3022_vm5, %vm3023_vm6  ;;  %v11985_v46 = vadd.f32 %v11896_v35, %v15565_v11  ;;  %v11987_v49 = vadd.f32 1.0, %v7890_v33  ;;  %v1368_v48 = vadd.f32 %v11882_v60, %v15742_v12  ;;  %v1866_v35 = vpop.f32.mrf.mxu0 }
 0x622   :  { %v4397_v5 = vmul.f32 %v11916_v45, %v4396_v40  ;;  %vm3007_vm14 = vweird.f32 %v11800_v39  ;;  %v3011_v13 = vand.u32 2147483647, %v11800_v39  ;;  %v3025_v43 = vsel %vm11979_vm11, %v11850_v47, %v3021_v51 }
 0x623   :  { %15739 = vst [vmem:[#allocation79_spill] sm:$0xff] %v11977_v50  ;;  %v7894_v24 = vpop.eup %7893  ;;  %v4410_v33 = vmul.f32 %v11971_v61, %v11921_v25  ;;  %vm12003_vm9 = vmor %vm3007_vm14, %vm3008_vm4  ;;  %v3029_v40 = vor.u32 1.1754944e-38, %v3028_v9  ;;  %7899 = vrcp.f32 %v11968_v27  ;;  %v1947_v39 = vadd.f32 %v1866_v35, %v1370_v2 }
 0x624   :  { %v7896_v18 = vpop.eup %7895  ;;  %v3010_v47 = vsel %vm12003_vm9, %v11865_v58, %v3006_v15  ;;  %v3014_v8 = vor.u32 1.1754944e-38, %v3013_v34  ;;  %v7192_v51 = vmul.f32 -1.442695, %v3684_v37  ;;  %vm3027_vm0 = vcmp.eq.f32.partialorder %v3026_v42, 8.507059e+37 }
 0x625   :  { %v12008_v12 = vpop.eup %7897  ;;  %v3030_v57 = vsel %vm3027_vm0, %v3029_v40, %v3025_v43  ;;  %v7130_v63 = vmul.f32 -1.442695, %v11985_v46  ;;  %7901 = vrcp.f32 %v11987_v49  ;;  %v1946_v0 = vadd.f32 %v11929_v20, %v1368_v48  ;;  %v12064_v40 = vpop.f32.mrf.mxu2 }
 0x626   :  { %7903 = vrcp.f32 %v11977_v50  ;;  %vm3012_vm10 = vcmp.eq.f32.partialorder %v3011_v13, 8.507059e+37  ;;  %v12017_v2 = vadd.f32 1.0, %v7896_v18  ;;  %v3686_v9 = vadd.f32 %v11845_v14, %v15615_v32  ;;  %v3524_v18 = vpop.f32.mrf.mxu1 }
 0x627   :  { %v4405_v58 = vand.u32 2147483648, %v11833_v30  ;;  %v12022_v15 = vadd.f32 1.0, %v7894_v24  ;;  %v3015_v37 = vsel %vm3012_vm10, %v3014_v8, %v3010_v47  ;;  %v12025_v34 = vadd.f32 %v11647_v3, %v1947_v39 }
 0x628   :  { %v4398_v42 = vadd.f32 %v11916_v45, %v4397_v5  ;;  %vm4400_vm1 = vweird.f32 %v11916_v45  ;;  %7905 = vpow2.f32 %v7192_v51  ;;  %v3291_v20 = vmul.f32 %v3030_v57, %v11650_v17 }
 0x629   :  { %15745 = vst [vmem:[#allocation76_spill] sm:$0xff] %v12022_v15  ;;  %v12030_v48 = vpop.eup %7899  ;;  %v4411_v13 = vsub.f32 1.0, %v4410_v33  ;;  %v4425_v14 = vmul.f32 %v12008_v12, %v11943_v22  ;;  %7907 = vpow2.f32 %v7130_v63  ;;  %v12035_v24 = vadd.f32 %v11647_v3, %v1946_v0 }
 0x62a   :  { %v3290_v43 = vmul.f32 %v3015_v37, %v11672_v44  ;;  %7909 = vrcp.f32 %v12017_v2  ;;  %v7193_v5 = vmul.f32 -1.442695, %v3686_v9  ;;  %v12040_v35 = vadd.f32 %v3521_v36, %v15565_v11 }
 0x62b   :  { %v12042_v57 = vpop.eup %7901  ;;  %vm4399_vm15 = vweird.f32 %v11833_v30  ;;  %v15746_v17 = vand.u32 2147483647, %v11833_v30  ;;  %7911 = vrcp.f32 %v12022_v15  ;;  %v7027_v63 = vmul.f32 -1.442695, %v12025_v34 }
 0x62c   :  { %v12053_v44 = vpop.eup %7903  ;;  %vm12057_vm8 = vmor %vm4399_vm15, %vm4400_vm1  ;;  %v4406_v36 = vor.u32 1.1754944e-38, %v4405_v58  ;;  %v4420_v60 = vand.u32 2147483648, %v11921_v25  ;;  %v3048_v30 = vmul.f32 %v12030_v48, %v11968_v27  ;;  %v3330_v39 = vpack.c.bf16 %v3291_v20, %v3290_v43 }
 0x62d   :  { %vm12047_vm7 = vcmp.eq.f32.partialorder %v15746_v17, 8.507059e+37  ;;  %v4402_v47 = vsel %vm12057_vm8, %v11916_v45, %v4398_v42  ;;  %v4412_v8 = vmul.f32 %v11971_v61, %v4411_v13  ;;  %vm4414_vm6 = vweird.f32 %v11921_v25 }
 0x62e   :  { %v7026_v51 = vmul.f32 -1.442695, %v12035_v24  ;;  %v7906_v9 = vpop.eup %7905  ;;  %v4426_v58 = vsub.f32 1.0, %v4425_v14  ;;  %7913 = vpow2.f32 %v7193_v5  ;;  %v3033_v37 = vmul.f32 %v12042_v57, %v11987_v49  ;;  %3568 = vmatmul.bf16.gmra.mxu1 %v3330_v39  ;;  %3737 = vmatmul.bf16.gmra.mxu2 %v3330_v39 }
 0x62f   :  { %v7131_v17 = vmul.f32 -1.442695, %v12040_v35  ;;  %v7908_v20 = vpop.eup %7907  ;;  %v12077_v45 = vmul.f32 %v12053_v44, %v11977_v50  ;;  %v4418_v42 = vand.u32 2147483647, %v11921_v25  ;;  %v3689_v13 = vadd.f32 %v11927_v21, %v15615_v32 }
 0x630   :  { %7915 = vpow2.f32 %v7027_v63  ;;  %v12082_v14 = vpop.eup %7909  ;;  %v4407_v43 = vsel %vm12047_vm7, %v4406_v36, %v4402_v47  ;;  %vm4415_vm4 = vweird.f32 %v11971_v61  ;;  %v12087_v5 = vor.u32 1.1754944e-38, %v4420_v60  ;;  %v3526_v60 = vpop.f32.mrf.mxu1 }
 0x631   :  { %v3049_v0 = vsub.f32 1.0, %v3048_v30  ;;  %v12089_v39 = vpop.eup %7911  ;;  %v12092_v54 = vadd.f32 %v11971_v61, %v4412_v8  ;;  %v12094_v53 = vadd.f32 1.0, %v7906_v9  ;;  %v12097_v21 = vadd.f32 %v3524_v18, %v15565_v11  ;;  %vm12112_vm5 = vmor %vm4414_vm6, %vm4415_vm4  ;;  %v3695_v18 = vpop.f32.mrf.mxu2 }
 0x632   :  { %15751 = vst [vmem:[#allocation75_spill] sm:$0xff] %v12089_v39  ;;  %7917 = vpow2.f32 %v7026_v51  ;;  %v4427_v63 = vmul.f32 %v12008_v12, %v4426_v58  ;;  %v12100_v33 = vadd.f32 1.0, %v7908_v20  ;;  %v3034_v36 = vsub.f32 1.0, %v3033_v37 }
 0x633   :  { %7919 = vpow2.f32 %v7131_v17  ;;  %v12103_v30 = vmul.f32 %v4407_v43, %v11710_v55  ;;  %v4440_v8 = vmul.f32 %v12082_v14, %v12017_v2  ;;  %v7194_v9 = vmul.f32 -1.442695, %v3689_v13 }
 0x634   :  { %v7914_v28 = vpop.eup %7913  ;;  %vm12116_vm11 = vcmp.eq.f32.partialorder %v4418_v42, 8.507059e+37  ;;  %v12122_v55 = vmul.f32 %v12089_v39, %v12022_v15  ;;  %v4433_v58 = vand.u32 2147483647, %v11943_v22  ;;  %v3050_v17 = vmul.f32 %v12030_v48, %v3049_v0 }
 0x635   :  { %15752 = vst [vmem:[#allocation33_spill] sm:$0xff] %v12103_v30  ;;  %v4417_v25 = vsel %vm12112_vm5, %v11971_v61, %v12092_v54  ;;  %7921 = vrcp.f32 %v12094_v53  ;;  %v7132_v42 = vmul.f32 -1.442695, %v12097_v21  ;;  %v12134_v13 = vadd.f32 %v3526_v60, %v15565_v11 }
 0x636   :  { %15757 = vst [vmem:[#allocation63_spill] sm:$0xff] %v12122_v55  ;;  %v7916_v20 = vpop.eup %7915  ;;  %v12137_v43 = vadd.f32 %v12008_v12, %v4427_v63  ;;  %vm4429_vm14 = vweird.f32 %v11943_v22  ;;  %vm4430_vm9 = vweird.f32 %v12008_v12  ;;  %7923 = vrcp.f32 %v12100_v33 }
 0x637   :  { %v3035_v0 = vmul.f32 %v12042_v57, %v3034_v36  ;;  %v4441_v61 = vsub.f32 1.0, %v4440_v8  ;;  %v12143_v47 = vadd.f32 1.0, %v7914_v28  ;;  %vm3038_vm0 = vweird.f32 %v12042_v57  ;;  %vm12202_vm5 = vmor %vm4429_vm14, %vm4430_vm9 }
 0x638   :  { %v7918_v54 = vpop.eup %7917  ;;  %7925 = vpow2.f32 %v7194_v9  ;;  %v3051_v63 = vadd.f32 %v12030_v48, %v3050_v17  ;;  %vm3053_vm10 = vweird.f32 %v12030_v48  ;;  %v3694_v37 = vadd.f32 %v12064_v40, %v15615_v32  ;;  %v3529_v51 = vpop.f32.mrf.mxu1 }
 0x639   :  { %v7920_v60 = vpop.eup %7919  ;;  %v12150_v10 = vadd.f32 1.0, %v7916_v20  ;;  %v3058_v36 = vand.u32 2147483648, %v11968_v27  ;;  %7927 = vpow2.f32 %v7132_v42  ;;  %v7133_v8 = vmul.f32 -1.442695, %v12134_v13 }
 0x63a   :  { %v3696_v28 = vadd.f32 %v3695_v18, %v15615_v32  ;;  %v3036_v59 = vadd.f32 %v12042_v57, %v3035_v0  ;;  %vm3052_vm1 = vweird.f32 %v11968_v27  ;;  %v3056_v9 = vand.u32 2147483647, %v11968_v27 }
 0x63b   :  { %v12158_v17 = vadd.f32 1.0, %v7918_v54  ;;  %v12160_v56 = vpop.eup %7921  ;;  %7929 = vrcp.f32 %v12143_v47  ;;  %vm3037_vm15 = vweird.f32 %v11987_v49  ;;  %v3043_v40 = vand.u32 2147483648, %v11987_v49  ;;  %vm12169_vm7 = vmor %vm3052_vm1, %vm3053_vm10 }
 0x63c   :  { %v12165_v20 = vadd.f32 1.0, %v7920_v60  ;;  %v12173_v0 = vpop.eup %7923  ;;  %vm12175_vm8 = vcmp.eq.f32.partialorder %v4433_v58, 8.507059e+37  ;;  %v3041_v18 = vand.u32 2147483647, %v11987_v49  ;;  %v3055_v54 = vsel %vm12169_vm7, %v12030_v48, %v3051_v63  ;;  %vm12189_vm6 = vmor %vm3037_vm15, %vm3038_vm0 }
 0x63d   :  { %v7196_v60 = vmul.f32 -1.442695, %v3694_v37  ;;  %7931 = vrcp.f32 %v12150_v10  ;;  %v4422_v52 = vsel %vm12116_vm11, %v12087_v5, %v4417_v25  ;;  %v3059_v62 = vor.u32 1.1754944e-38, %v3058_v36  ;;  %v1372_v37 = vpop.f32.mrf.mxu3 }
 0x63e   :  { %v7926_v41 = vpop.eup %7925  ;;  %7933 = vpow2.f32 %v7133_v8  ;;  %v7197_v49 = vmul.f32 -1.442695, %v3696_v28  ;;  %v4442_v42 = vmul.f32 %v12082_v14, %v4441_v61  ;;  %v3040_v48 = vsel %vm12189_vm6, %v12042_v57, %v3036_v59 }
 0x63f   :  { %vm3057_vm4 = vcmp.eq.f32.partialorder %v3056_v9, 8.507059e+37  ;;  %7935 = vrcp.f32 %v12158_v17  ;;  %v7928_v5 = vpop.eup %7927  ;;  %v4455_v25 = vmul.f32 %v12173_v0, %v12100_v33  ;;  %v3044_v61 = vor.u32 1.1754944e-38, %v3043_v40 }
 0x640   :  { %7937 = vrcp.f32 %v12165_v20  ;;  %v3060_v59 = vsel %vm3057_vm4, %v3059_v62, %v3055_v54  ;;  %v4432_v57 = vsel %vm12202_vm5, %v12008_v12, %v12137_v43  ;;  %vm3042_vm11 = vcmp.eq.f32.partialorder %v3041_v18, 8.507059e+37 }
 0x641   :  { %v3691_v63 = vadd.f32 %v11997_v38, %v15615_v32  ;;  %7939 = vpow2.f32 %v7196_v60  ;;  %v12215_v36 = vpop.eup %7929  ;;  %v4448_v8 = vand.u32 2147483647, %v12017_v2  ;;  %v3045_v28 = vsel %vm3042_vm11, %v3044_v61, %v3040_v48 }
 0x642   :  { %7941 = vpow2.f32 %v7197_v49  ;;  %v12219_v9 = vadd.f32 %v3529_v51, %v15565_v11  ;;  %v4443_v40 = vadd.f32 %v12082_v14, %v4442_v42  ;;  %vm4445_vm14 = vweird.f32 %v12082_v14 }
 0x643   :  { %v12221_v62 = vpop.eup %7931  ;;  %v12225_v12 = vadd.f32 1.0, %v7926_v41  ;;  %v3293_v38 = vmul.f32 %v3060_v59, %v11848_v23  ;;  %v15766_v54 = vand.u32 2147483648, %v11943_v22  ;;  %v4456_v58 = vsub.f32 1.0, %v4455_v25 }
 0x644   :  { %v7934_v43 = vpop.eup %7933  ;;  %v12231_v49 = vadd.f32 1.0, %v7928_v5  ;;  %vm4444_vm9 = vweird.f32 %v12017_v2  ;;  %v4450_v42 = vand.u32 2147483648, %v12017_v2  ;;  %v3292_v41 = vmul.f32 %v3045_v28, %v11863_v29 }
 0x645   :  { %v4436_v60 = vor.u32 1.1754944e-38, %v15766_v54  ;;  %v12233_v48 = vpop.eup %7935  ;;  %v7195_v51 = vmul.f32 -1.442695, %v3691_v63  ;;  %v12241_v61 = vmul.f32 %v4422_v52, %v11771_v31  ;;  %vm12247_vm0 = vmor %vm4444_vm9, %vm4445_vm14  ;;  %v3078_v2 = vmul.f32 %v12221_v62, %v12150_v10 }
 0x646   :  { %v12238_v23 = vpop.eup %7937  ;;  %v7134_v29 = vmul.f32 -1.442695, %v12219_v9  ;;  %v4447_v31 = vsel %vm12247_vm0, %v12082_v14, %v4443_v40  ;;  %vm12257_vm10 = vcmp.eq.f32.partialorder %v4448_v8, 8.507059e+37  ;;  %7943 = vrcp.f32 %v12225_v12 }
 0x647   :  { %15767 = vst [vmem:[#allocation28_spill] sm:$0xff] %v12241_v61  ;;  %v4437_v22 = vsel %vm12175_vm8, %v4436_v60, %v4432_v57  ;;  %v7940_v25 = vpop.eup %7939  ;;  %v3331_v27 = vpack.c.bf16 %v3293_v38, %v3292_v41  ;;  %v4457_v57 = vmul.f32 %v12173_v0, %v4456_v58  ;;  %7945 = vrcp.f32 %v12231_v49  ;;  %v1869_v41 = vpop.f32.mrf.mxu0 }
 0x648   :  { %v7942_v59 = vpop.eup %7941  ;;  %v3063_v63 = vmul.f32 %v12233_v48, %v12158_v17  ;;  %v12266_v28 = vadd.f32 1.0, %v7934_v43  ;;  %v12270_v14 = vmul.f32 %v12160_v56, %v12094_v53  ;;  %v4451_v8 = vor.u32 1.1754944e-38, %v4450_v42 }
 0x649   :  { %v4470_v40 = vmul.f32 %v12238_v23, %v12165_v20  ;;  %7947 = vpow2.f32 %v7195_v51  ;;  %3573 = vmatmul.bf16.gmra.mxu1 %v3331_v27  ;;  %3742 = vmatmul.bf16.gmra.mxu2 %v3331_v27  ;;  %v4465_v38 = vand.u32 2147483648, %v12100_v33  ;;  %v12275_v54 = vadd.f32 1.0, %v7940_v25 }
 0x64a   :  { %v3079_v60 = vsub.f32 1.0, %v3078_v2  ;;  %7949 = vpow2.f32 %v7134_v29  ;;  %v4452_v43 = vsel %vm12257_vm10, %v4451_v8, %v4447_v31  ;;  %v12281_v58 = vmul.f32 %v12215_v36, %v12143_v47  ;;  %v15772_v2 = vld [vmem:[#allocation49_spill] sm:$0xff] }
 0x64b   :  { %vm4460_vm1 = vweird.f32 %v12173_v0  ;;  %v12284_v42 = vadd.f32 1.0, %v7942_v59  ;;  %v12287_v51 = vadd.f32 %v12173_v0, %v4457_v57  ;;  %v3064_v5 = vsub.f32 1.0, %v3063_v63 }
 0x64c   :  { %7951 = vrcp.f32 %v12266_v28  ;;  %v1373_v29 = vadd.f32 %v1372_v37, %v15772_v2  ;;  %v12291_v25 = vpop.eup %7943  ;;  %v12294_v31 = vmul.f32 %v4437_v22, %v11817_v7  ;;  %v4463_v52 = vand.u32 2147483647, %v12100_v33 }
 0x64d   :  { %v4471_v27 = vsub.f32 1.0, %v4470_v40  ;;  %v4480_v59 = vand.u32 2147483648, %v12165_v20  ;;  %v12298_v8 = vpop.eup %7945  ;;  %vm4459_vm15 = vweird.f32 %v12100_v33  ;;  %7953 = vrcp.f32 %v12275_v54  ;;  %v1374_v33 = vpop.f32.mrf.mxu3 }
 0x64e   :  { %v3080_v37 = vmul.f32 %v12221_v62, %v3079_v60  ;;  %v12305_v2 = vmul.f32 %v4452_v43, %v11914_v4  ;;  %vm12310_vm7 = vmor %vm4459_vm15, %vm4460_vm1  ;;  %v4466_v40 = vor.u32 1.1754944e-38, %v4465_v38  ;;  %7955 = vrcp.f32 %v12284_v42 }
 0x64f   :  { %v7948_v63 = vpop.eup %7947  ;;  %v4462_v60 = vsel %vm12310_vm7, %v12173_v0, %v12287_v51  ;;  %v4478_v4 = vand.u32 2147483647, %v12165_v20  ;;  %v3065_v43 = vmul.f32 %v12233_v48, %v3064_v5  ;;  %v1948_v7 = vadd.f32 %v1869_v41, %v1373_v29  ;;  %v15777_v5 = vld [vmem:[#allocation51_spill] sm:$0xff]  ;;  %v1871_v6 = vpop.f32.mrf.mxu0 }
 0x650   :  { %v7950_v18 = vpop.eup %7949  ;;  %vm12321_vm8 = vcmp.eq.f32.partialorder %v4463_v52, 8.507059e+37  ;;  %v12327_v38 = vmul.f32 %v12291_v25, %v12225_v12  ;;  %v4472_v19 = vmul.f32 %v12238_v23, %v4471_v27  ;;  %vm4474_vm6 = vweird.f32 %v12165_v20 }
 0x651   :  { %v12331_v16 = vor.u32 1.1754944e-38, %v4480_v59  ;;  %v4485_v0 = vmul.f32 %v12298_v8, %v12231_v49  ;;  %vm4475_vm4 = vweird.f32 %v12238_v23  ;;  %v3081_v41 = vadd.f32 %v12221_v62, %v3080_v37 }
 0x652   :  { %v12335_v51 = vpop.eup %7951  ;;  %vm3083_vm5 = vweird.f32 %v12221_v62  ;;  %v1375_v29 = vadd.f32 %v1374_v33, %v15777_v5  ;;  %v12341_v52 = vadd.f32 1.0, %v7948_v63  ;;  %v3086_v27 = vand.u32 2147483647, %v12150_v10  ;;  %vm12404_vm7 = vmor %vm4474_vm6, %vm4475_vm4 }
 0x653   :  { %v3088_v59 = vand.u32 2147483648, %v12150_v10  ;;  %v12345_v22 = vadd.f32 1.0, %v7950_v18  ;;  %v12347_v1 = vpop.eup %7953  ;;  %v3066_v61 = vadd.f32 %v12233_v48, %v3065_v43  ;;  %vm3068_vm11 = vweird.f32 %v12233_v48 }
 0x654   :  { %vm3082_vm14 = vweird.f32 %v12150_v10  ;;  %v12353_v37 = vadd.f32 %v11647_v3, %v1948_v7  ;;  %v12355_v33 = vpop.eup %7955  ;;  %v4473_v63 = vadd.f32 %v12238_v23, %v4472_v19  ;;  %v4486_v5 = vsub.f32 1.0, %v4485_v0  ;;  %v3698_v10 = vpop.f32.mrf.mxu2 }
 0x655   :  { %v3073_v26 = vand.u32 2147483648, %v12158_v17  ;;  %v4500_v18 = vmul.f32 %v12335_v51, %v12266_v28  ;;  %vm12363_vm9 = vmor %vm3082_vm14, %vm3083_vm5  ;;  %vm12367_vm0 = vcmp.eq.f32.partialorder %v4478_v4, 8.507059e+37  ;;  %vm3067_vm10 = vweird.f32 %v12158_v17  ;;  %v3531_v0 = vpop.f32.mrf.mxu1 }
 0x656   :  { %v3071_v19 = vand.u32 2147483647, %v12158_v17  ;;  %v3085_v7 = vsel %vm12363_vm9, %v12221_v62, %v3081_v41  ;;  %v1949_v30 = vadd.f32 %v1871_v6, %v1375_v29  ;;  %vm12378_vm1 = vmor %vm3067_vm10, %vm3068_vm11  ;;  %v5765_v4 = vmul.f32 %v12347_v1, %v12275_v54 }
 0x657   :  { %vm3087_vm15 = vcmp.eq.f32.partialorder %v3086_v27, 8.507059e+37  ;;  %v3089_v39 = vor.u32 1.1754944e-38, %v3088_v59  ;;  %7957 = vrcp.f32 %v12345_v22  ;;  %v3070_v17 = vsel %vm12378_vm1, %v12233_v48, %v3066_v61 }
 0x658   :  { %v5780_v6 = vmul.f32 %v12355_v33, %v12284_v42  ;;  %v7028_v62 = vmul.f32 -1.442695, %v12353_v37  ;;  %v3699_v41 = vadd.f32 %v3698_v10, %v15615_v32  ;;  %v3074_v29 = vor.u32 1.1754944e-38, %v3073_v26  ;;  %v12411_v26 = vld [vmem:[%s15064_s7] ss:$0 sm:$0xff] }
 0x659   :  { %v4501_v43 = vsub.f32 1.0, %v4500_v18  ;;  %v3090_v55 = vsel %vm3087_vm15, %v3089_v39, %v3085_v7  ;;  %v12393_v50 = vadd.f32 %v3531_v0, %v15565_v11  ;;  %v12397_v27 = vsel %vm12321_vm8, %v4466_v40, %v4462_v60 }
 0x65a   :  { %v5736_v15 = vsub.f32 1.0, %v12327_v38  ;;  %vm3072_vm5 = vcmp.eq.f32.partialorder %v3071_v19, 8.507059e+37  ;;  %v12414_v39 = vadd.f32 %v12411_v26, %v1949_v30  ;;  %v4477_v61 = vsel %vm12404_vm7, %v12238_v23, %v4473_v63 }
 0x65b   :  { %v4487_v57 = vmul.f32 %v12298_v8, %v4486_v5  ;;  %v3075_v20 = vsel %vm3072_vm5, %v3074_v29, %v3070_v17  ;;  %v5766_v40 = vsub.f32 1.0, %v5765_v4  ;;  %v3295_v60 = vmul.f32 %v3090_v55, %v12025_v34 }
 0x65c   :  { %v5781_v59 = vsub.f32 1.0, %v5780_v6  ;;  %7959 = vpow2.f32 %v7028_v62  ;;  %v7198_v18 = vmul.f32 -1.442695, %v3699_v41  ;;  %v4495_v30 = vand.u32 2147483648, %v12231_v49 }
 0x65d   :  { %v12421_v10 = vpop.eup %7957  ;;  %7961 = vrcp.f32 %v12341_v52  ;;  %v4502_v19 = vmul.f32 %v12335_v51, %v4501_v43  ;;  %v7135_v7 = vmul.f32 -1.442695, %v12393_v50  ;;  %vm4489_vm8 = vweird.f32 %v12231_v49  ;;  %v7446_v43 = vld [vmem:[%s15060_s3 + $0x78] sm:$0xff]  }
 0x65e   :  { %v4493_v23 = vand.u32 2147483647, %v12231_v49  ;;  %v3294_v63 = vmul.f32 %v3075_v20, %v12035_v24  ;;  %v7029_v34 = vmul.f32 -1.442695, %v12414_v39  ;;  %v12434_v55 = vsel %vm12367_vm0, %v12331_v16, %v4477_v61 }
 0x65f   :  { %v4488_v5 = vadd.f32 %v12298_v8, %v4487_v57  ;;  %vm4490_vm6 = vweird.f32 %v12298_v8  ;;  %v5767_v0 = vmul.f32 %v12347_v1, %v5766_v40  ;;  %v5782_v4 = vmul.f32 %v12355_v33, %v5781_v59 }
 0x660   :  { %v4515_v17 = vmul.f32 %v12421_v10, %v12345_v22  ;;  %7963 = vpow2.f32 %v7198_v18  ;;  %v3332_v24 = vpack.c.bf16 %v3295_v60, %v3294_v63  ;;  %v4496_v6 = vor.u32 1.1754944e-38, %v4495_v30  ;;  %vm12453_vm14 = vmor %vm4489_vm8, %vm4490_vm6 }
 0x661   :  { %v4503_v62 = vadd.f32 %v12335_v51, %v4502_v19  ;;  %vm4505_vm4 = vweird.f32 %v12335_v51  ;;  %7965 = vpow2.f32 %v7135_v7  ;;  %vm5769_vm11 = vweird.f32 %v12275_v54 }
 0x662   :  { %v7960_v16 = vpop.eup %7959  ;;  %v5775_v3 = vand.u32 2147483648, %v12275_v54  ;;  %v4510_v41 = vand.u32 2147483648, %v12266_v28  ;;  %7967 = vpow2.f32 %v7029_v34  ;;  %3578 = vmatmul.bf16.gmra.mxu1 %v3332_v24  ;;  %3747 = vmatmul.bf16.gmra.mxu2 %v3332_v24  ;;  %vm5770_vm9 = vweird.f32 %v12347_v1 }
 0x663   :  { %v12447_v29 = vpop.eup %7961  ;;  %vm4504_vm0 = vweird.f32 %v12266_v28  ;;  %v4508_v48 = vand.u32 2147483647, %v12266_v28  ;;  %v5768_v61 = vadd.f32 %v12347_v1, %v5767_v0  ;;  %v4492_v57 = vsel %vm12453_vm14, %v12298_v8, %v4488_v5  ;;  %vm12483_vm7 = vmor %vm5769_vm11, %vm5770_vm9 }
 0x664   :  { %vm12466_vm10 = vmor %vm4504_vm0, %vm4505_vm4  ;;  %v5790_v20 = vand.u32 2147483648, %v12284_v42  ;;  %v4516_v40 = vsub.f32 1.0, %v4515_v17  ;;  %v5783_v60 = vadd.f32 %v12355_v33, %v5782_v4  ;;  %v12475_v59 = vadd.f32 1.0, %v7960_v16  ;;  %v3700_v17 = vpop.f32.mrf.mxu2 }
 0x665   :  { %v4507_v28 = vsel %vm12466_vm10, %v12335_v51, %v4503_v62  ;;  %v5773_v18 = vand.u32 2147483647, %v12275_v54  ;;  %vm5785_vm1 = vweird.f32 %v12355_v33  ;;  %vm4494_vm15 = vcmp.eq.f32.partialorder %v4493_v23, 8.507059e+37  ;;  %v3534_v62 = vpop.f32.mrf.mxu1 }
 0x666   :  { %v7964_v8 = vpop.eup %7963  ;;  %v4511_v19 = vor.u32 1.1754944e-38, %v4510_v41  ;;  %vm5784_vm5 = vweird.f32 %v12284_v42  ;;  %v5788_v51 = vand.u32 2147483647, %v12284_v42  ;;  %v12491_v63 = vmul.f32 %v12447_v29, %v12341_v52 }
 0x667   :  { %v7966_v7 = vpop.eup %7965  ;;  %v4497_v34 = vsel %vm4494_vm15, %v4496_v6, %v4492_v57  ;;  %vm4509_vm8 = vcmp.eq.f32.partialorder %v4508_v48, 8.507059e+37  ;;  %v5772_v54 = vsel %vm12483_vm7, %v12347_v1, %v5768_v61  ;;  %vm12496_vm6 = vmor %vm5784_vm5, %vm5785_vm1  ;;  %v5776_v0 = vor.u32 1.1754944e-38, %v5775_v3 }
 0x668   :  { %v7968_v5 = vpop.eup %7967  ;;  %v4512_v4 = vsel %vm4509_vm8, %v4511_v19, %v4507_v28  ;;  %v4517_v42 = vmul.f32 %v12421_v10, %v4516_v40  ;;  %v5787_v24 = vsel %vm12496_vm6, %v12355_v33, %v5783_v60  ;;  %7969 = vrcp.f32 %v12475_v59 }
 0x669   :  { %v12505_v6 = vadd.f32 1.0, %v7964_v8  ;;  %vm5774_vm4 = vcmp.eq.f32.partialorder %v5773_v18, 8.507059e+37  ;;  %v5791_v1 = vor.u32 1.1754944e-38, %v5790_v20  ;;  %v5024_v16 = vmul.f32 %v4497_v34, %v12097_v21 }
 0x66a   :  { %v12508_v41 = vadd.f32 1.0, %v7966_v7  ;;  %v5777_v3 = vsel %vm5774_vm4, %v5776_v0, %v5772_v54  ;;  %vm5789_vm11 = vcmp.eq.f32.partialorder %v5788_v51, 8.507059e+37  ;;  %v4525_v48 = vand.u32 2147483648, %v12345_v22  ;;  %v1377_v7 = vpop.f32.mrf.mxu3 }
 0x66b   :  { %15794 = vst [vmem:[#allocation26_spill] sm:$0xff] %v12505_v6  ;;  %v12514_v33 = vadd.f32 1.0, %v7968_v5  ;;  %v3701_v61 = vadd.f32 %v3700_v17, %v15615_v32  ;;  %v5792_v57 = vsel %vm5789_vm11, %v5791_v1, %v5787_v24  ;;  %v5025_v49 = vmul.f32 %v4512_v4, %v12134_v13 }
 0x66c   :  { %v4518_v20 = vadd.f32 %v12421_v10, %v4517_v42  ;;  %vm4520_vm14 = vweird.f32 %v12421_v10  ;;  %v12521_v21 = vadd.f32 %v3534_v62, %v15565_v11  ;;  %7971 = vrcp.f32 %v12505_v6 }
 0x66d   :  { %v6304_v40 = vmul.f32 %v5777_v3, %v5024_v16  ;;  %v7366_v60 = vunpack.c.l.bf16 %v7446_v43  ;;  %v7367_v28 = vunpack.c.h.bf16 %v7446_v43  ;;  %vm4519_vm9 = vweird.f32 %v12345_v22 }
 0x66e   :  { %v4523_v18 = vand.u32 2147483647, %v12345_v22  ;;  %7973 = vrcp.f32 %v12508_v41  ;;  %v6305_v8 = vmul.f32 %v5792_v57, %v5025_v49  ;;  %v12527_v13 = vpop.eup %7969  ;;  %v12531_v30 = vmul.f32 %v12397_v27, %v11985_v46  ;;  %vm12537_vm0 = vmor %vm4519_vm9, %vm4520_vm14 }
 0x66f   :  { %v12535_v19 = vmul.f32 %v12434_v55, %v12040_v35  ;;  %7975 = vrcp.f32 %v12514_v33  ;;  %v7199_v22 = vmul.f32 -1.442695, %v3701_v61  ;;  %v4522_v34 = vsel %vm12537_vm0, %v12421_v10, %v4518_v20  ;;  %v15797_v10 = vld [vmem:[#allocation53_spill] sm:$0xff] }
 0x670   :  { %v4526_v54 = vor.u32 1.1754944e-38, %v4525_v48  ;;  %v3103_v46 = vand.u32 2147483648, %v12475_v59  ;;  %v7136_v27 = vmul.f32 -1.442695, %v12521_v21  ;;  %v4540_v35 = vand.u32 2147483648, %v12508_v41  ;;  %v1874_v48 = vpop.f32.mrf.mxu0 }
 0x671   :  { %v6496_v55 = vmul.f32 %v7366_v60, %v6304_v40  ;;  %v6497_v23 = vmul.f32 %v7367_v28, %v6305_v8  ;;  %v5737_v5 = vmul.f32 %v12291_v25, %v5736_v15  ;;  %v5751_v0 = vsub.f32 1.0, %v12491_v63 }
 0x672   :  { %vm4524_vm10 = vcmp.eq.f32.partialorder %v4523_v18, 8.507059e+37  ;;  %v3093_v4 = vmul.f32 %v12527_v13, %v12475_v59  ;;  %v1378_v42 = vadd.f32 %v1377_v7, %v15797_v10  ;;  %v12555_v17 = vpop.eup %7971  ;;  %7977 = vpow2.f32 %v7199_v22  ;;  %v1379_v10 = vpop.f32.mrf.mxu3 }
 0x673   :  { %15798 = vst [vmem:[#allocation54_spill] sm:$0xff] %v12555_v17  ;;  %v4527_v24 = vsel %vm4524_vm10, %v4526_v54, %v4522_v34  ;;  %v6547_v62 = vpack.c.bf16 %v6497_v23, %v6496_v55  ;;  %v5738_v1 = vadd.f32 %v12291_v25, %v5737_v5  ;;  %v3101_v38 = vand.u32 2147483647, %v12475_v59  ;;  %v7445_v34 = vld [vmem:[%s15060_s3 + $0x70] sm:$0xff]   ;;  %v15879_v5 = vld [vmem:[#allocation65_spill] sm:$0xff] }
 0x674   :  { %v12558_v16 = vpop.eup %7973  ;;  %v12561_v15 = vor.u32 1.1754944e-38, %v3103_v46  ;;  %v4538_v63 = vand.u32 2147483647, %v12508_v41  ;;  %7979 = vpow2.f32 %v7136_v27  ;;  %v12566_v43 = vor.u32 1.1754944e-38, %v4540_v35 }
 0x675   :  { %v12564_v3 = vpop.eup %7975  ;;  %6578 = vmatpush.bf16.msrb.mxu3 %v6547_v62  ;;  %vm5739_vm1 = vweird.f32 %v12225_v12  ;;  %vm5740_vm15 = vweird.f32 %v12291_v25  ;;  %v5743_v61 = vand.u32 2147483647, %v12225_v12  ;;  %v12572_v57 = vmul.f32 %v4527_v24, %v12219_v9 }
 0x676   :  { %v3094_v49 = vsub.f32 1.0, %v3093_v4  ;;  %v1950_v20 = vadd.f32 %v1874_v48, %v1378_v42  ;;  %vm12574_vm7 = vmor %vm5739_vm1, %vm5740_vm15  ;;  %v5745_v60 = vand.u32 2147483648, %v12225_v12  ;;  %v12581_v28 = vmul.f32 %v12555_v17, %v12505_v6 }
 0x677   :  { %15799 = vst [vmem:[#allocation50_spill] sm:$0xff] %v12572_v57  ;;  %v4530_v18 = vmul.f32 %v12558_v16, %v12508_v41  ;;  %v5742_v9 = vsel %vm12574_vm7, %v12291_v25, %v5738_v1  ;;  %v5752_v8 = vmul.f32 %v12447_v29, %v5751_v0  ;;  %vm3097_vm5 = vweird.f32 %v12475_v59  ;;  %v15899_v57 = vld [vmem:[#allocation89_spill] sm:$0xff] }
 0x678   :  { %15802 = vst [vmem:[#allocation71_spill] sm:$0xff] %v12581_v28  ;;  %vm3098_vm8 = vweird.f32 %v12527_v13  ;;  %v3108_v12 = vmul.f32 %v12564_v3, %v12514_v33  ;;  %vm5744_vm6 = vcmp.eq.f32.partialorder %v5743_v61, 8.507059e+37  ;;  %v5746_v51 = vor.u32 1.1754944e-38, %v5745_v60  ;;  %v7978_v22 = vpop.eup %7977 }
 0x679   :  { %v5753_v7 = vadd.f32 %v12447_v29, %v5752_v8  ;;  %vm5754_vm4 = vweird.f32 %v12341_v52  ;;  %vm5755_vm11 = vweird.f32 %v12447_v29  ;;  %v5758_v25 = vand.u32 2147483647, %v12341_v52  ;;  %vm12641_vm15 = vmor %vm3097_vm5, %vm3098_vm8 }
 0x67a   :  { %v7980_v54 = vpop.eup %7979  ;;  %v3095_v46 = vmul.f32 %v12527_v13, %v3094_v49  ;;  %v12602_v27 = vadd.f32 %v12411_v26, %v1950_v20  ;;  %v5747_v35 = vsel %vm5744_vm6, %v5746_v51, %v5742_v9  ;;  %vm12604_vm14 = vmor %vm5754_vm4, %vm5755_vm11  ;;  %v5760_v23 = vand.u32 2147483648, %v12341_v52  ;;  %v3703_v49 = vpop.f32.mrf.mxu2  ;;  %v15807_v9 = vld [vmem:[#allocation55_spill] sm:$0xff] }
 0x67b   :  { %v4531_v0 = vsub.f32 1.0, %v4530_v18  ;;  %v3116_v4 = vand.u32 2147483647, %v12514_v33  ;;  %v5757_v42 = vsel %vm12604_vm14, %v12447_v29, %v5753_v7  ;;  %v3109_v24 = vsub.f32 1.0, %v3108_v12 }
 0x67c   :  { %v5761_v62 = vor.u32 1.1754944e-38, %v5760_v23  ;;  %v6302_v1 = vmul.f32 %v5747_v35, %v12531_v30  ;;  %v7362_v48 = vunpack.c.l.bf16 %v7445_v34  ;;  %v3118_v61 = vand.u32 2147483648, %v12514_v33 }
 0x67d   :  { %vm5759_vm9 = vcmp.eq.f32.partialorder %v5758_v25, 8.507059e+37  ;;  %v7363_v52 = vunpack.c.h.bf16 %v7445_v34  ;;  %v15805_v20 = vsub.f32 1.0, %v12270_v14  ;;  %v3096_v60 = vadd.f32 %v12527_v13, %v3095_v46 }
 0x67e   :  { %v12620_v18 = vadd.f32 1.0, %v7978_v22  ;;  %v1380_v29 = vadd.f32 %v1379_v10, %v15807_v9  ;;  %v5762_v8 = vsel %vm5759_vm9, %v5761_v62, %v5757_v42  ;;  %vm12623_vm0 = vcmp.eq.f32.partialorder %v3101_v38, 8.507059e+37 }
 0x67f   :  { %v5707_v40 = vmul.f32 %v12160_v56, %v15805_v20  ;;  %vm3112_vm10 = vweird.f32 %v12514_v33  ;;  %v12628_v30 = vadd.f32 1.0, %v7980_v54  ;;  %v7030_v51 = vmul.f32 -1.442695, %v12602_v27 }
 0x680   :  { %15806 = vst [vmem:[#allocation30_spill] sm:$0xff] %v12620_v18  ;;  %v6303_v14 = vmul.f32 %v5762_v8, %v12535_v19  ;;  %v4532_v22 = vmul.f32 %v12558_v16, %v4531_v0  ;;  %vm4535_vm1 = vweird.f32 %v12558_v16  ;;  %v3110_v25 = vmul.f32 %v12564_v3, %v3109_v24  ;;  %v1876_v19 = vpop.f32.mrf.mxu0  ;;  %v15829_v24 = vld [vmem:[#allocation63_spill] sm:$0xff] }
 0x681   :  { %v5708_v7 = vadd.f32 %v12160_v56, %v5707_v40  ;;  %v3704_v38 = vadd.f32 %v3703_v49, %v15615_v32  ;;  %v6494_v34 = vmul.f32 %v7362_v48, %v6302_v1  ;;  %vm5709_vm7 = vweird.f32 %v12094_v53 }
 0x682   :  { %v6495_v46 = vmul.f32 %v7363_v52, %v6303_v14  ;;  %vm5710_vm6 = vweird.f32 %v12160_v56  ;;  %v5713_v35 = vand.u32 2147483647, %v12094_v53  ;;  %v3100_v55 = vsel %vm12641_vm15, %v12527_v13, %v3096_v60  ;;  %v7444_v60 = vld [vmem:[%s15060_s3 + $0x68] sm:$0xff]  }
 0x683   :  { %vm4534_vm4 = vweird.f32 %v12508_v41  ;;  %v1951_v23 = vadd.f32 %v1876_v19, %v1380_v29  ;;  %vm12652_vm11 = vmor %vm5709_vm7, %vm5710_vm6  ;;  %v5715_v0 = vand.u32 2147483648, %v12094_v53  ;;  %v15814_v10 = vsub.f32 1.0, %v12281_v58  ;;  %v1382_v19 = vpop.f32.mrf.mxu3 }
 0x684   :  { %vm12660_vm5 = vcmp.eq.f32.partialorder %v3116_v4, 8.507059e+37  ;;  %7981 = vrcp.f32 %v12628_v30  ;;  %v6546_v13 = vpack.c.bf16 %v6495_v46, %v6494_v34  ;;  %v5712_v62 = vsel %vm12652_vm11, %v12160_v56, %v5708_v7 }
 0x685   :  { %v5722_v42 = vmul.f32 %v12215_v36, %v15814_v10  ;;  %vm5724_vm8 = vweird.f32 %v12143_v47  ;;  %v5716_v1 = vor.u32 1.1754944e-38, %v5715_v0  ;;  %vm5725_vm14 = vweird.f32 %v12215_v36 }
 0x686   :  { %v5728_v58 = vand.u32 2147483647, %v12143_v47  ;;  %v3111_v4 = vadd.f32 %v12564_v3, %v3110_v25  ;;  %vm3113_vm9 = vweird.f32 %v12564_v3  ;;  %6579 = vmatpush.bf16.msrb.mxu3 %v6546_v13  ;;  %vm5714_vm15 = vcmp.eq.f32.partialorder %v5713_v35, 8.507059e+37  ;;  %vm12674_vm7 = vmor %vm5724_vm8, %vm5725_vm14 }
 0x687   :  { %v5723_v53 = vadd.f32 %v12215_v36, %v5722_v42  ;;  %v5730_v56 = vand.u32 2147483648, %v12143_v47  ;;  %v3119_v49 = vor.u32 1.1754944e-38, %v3118_v61  ;;  %v12680_v52 = vadd.f32 %v12411_v26, %v1951_v23  ;;  %vm12700_vm6 = vmor %vm3112_vm10, %vm3113_vm9  ;;  %v15826_v42 = vld [vmem:[#allocation79_spill] sm:$0xff] }
 0x688   :  { %v5717_v20 = vsel %vm5714_vm15, %v5716_v1, %v5712_v62  ;;  %7983 = vpow2.f32 %v7030_v51  ;;  %v15819_v8 = vsub.f32 1.0, %v12077_v45  ;;  %v3105_v61 = vsel %vm12623_vm0, %v12561_v15, %v3100_v55  ;;  %v3536_v51 = vpop.f32.mrf.mxu1  ;;  %vm12723_vm0 = vmor %vm4534_vm4, %vm4535_vm1  ;;  %v15831_v1 = vld [vmem:[#allocation75_spill] sm:$0xff] }
 0x689   :  { %v5727_v40 = vsel %vm12674_vm7, %v12215_v36, %v5723_v53  ;;  %v5731_v9 = vor.u32 1.1754944e-38, %v5730_v56  ;;  %v6300_v29 = vmul.f32 %v5717_v20, %v12294_v31  ;;  %v4533_v14 = vadd.f32 %v12558_v16, %v4532_v22  ;;  %v7443_v36 = vld [vmem:[%s15060_s3 + $0x60] sm:$0xff]  }
 0x68a   :  { %v5677_v47 = vmul.f32 %v12053_v44, %v15819_v8  ;;  %v4555_v31 = vand.u32 2147483648, %v12628_v30  ;;  %vm5729_vm11 = vcmp.eq.f32.partialorder %v5728_v58, 8.507059e+37  ;;  %v12705_v45 = vpop.eup %7981  ;;  %vm12709_vm8 = vcmp.eq.f32.partialorder %v4538_v63, 8.507059e+37  ;;  %v15840_v63 = vld [vmem:[#allocation24_spill] sm:$0xff] }
 0x68b   :  { %v3115_v33 = vsel %vm12700_vm6, %v12564_v3, %v3111_v4  ;;  %v5732_v12 = vsel %vm5729_vm11, %v5731_v9, %v5727_v40  ;;  %v7358_v7 = vunpack.c.l.bf16 %v7444_v60  ;;  %v7359_v22 = vunpack.c.h.bf16 %v7444_v60  ;;  %v1879_v40 = vpop.f32.mrf.mxu0 }
 0x68c   :  { %7985 = vrcp.f32 %v12620_v18  ;;  %v4553_v25 = vand.u32 2147483647, %v12628_v30  ;;  %v7200_v34 = vmul.f32 -1.442695, %v3704_v38  ;;  %v7031_v54 = vmul.f32 -1.442695, %v12680_v52 }
 0x68d   :  { %v12728_v3 = vadd.f32 %v3536_v51, %v15565_v11  ;;  %v6301_v46 = vmul.f32 %v5732_v12, %v12305_v2  ;;  %v5678_v35 = vadd.f32 %v12053_v44, %v5677_v47  ;;  %vm5680_vm10 = vweird.f32 %v12053_v44  ;;  %v15837_v51 = vld [vmem:[#allocation33_spill] sm:$0xff]  ;;  %v1384_v12 = vpop.f32.mrf.mxu3 }
 0x68e   :  { %v3296_v38 = vmul.f32 %v3105_v61, %v12353_v37  ;;  %v4537_v55 = vsel %vm12723_vm0, %v12558_v16, %v4533_v14  ;;  %v3120_v41 = vsel %vm12660_vm5, %v3119_v49, %v3115_v33  ;;  %v12739_v23 = vor.u32 1.1754944e-38, %v4555_v31  ;;  %v7984_v59 = vpop.eup %7983 }
 0x68f   :  { %v6492_v0 = vmul.f32 %v7358_v7, %v6300_v29  ;;  %v6493_v10 = vmul.f32 %v7359_v22, %v6301_v46  ;;  %vm5679_vm1 = vweird.f32 %v15826_v42  ;;  %v5683_v2 = vand.u32 2147483647, %v15826_v42  ;;  %v15833_v29 = vld [vmem:[#allocation76_spill] sm:$0xff] }
 0x690   :  { %v4545_v13 = vmul.f32 %v12705_v45, %v12628_v30  ;;  %7987 = vpow2.f32 %v7031_v54  ;;  %vm12745_vm4 = vmor %vm5679_vm1, %vm5680_vm10  ;;  %v5685_v16 = vand.u32 2147483648, %v15826_v42  ;;  %v15830_v62 = vsub.f32 1.0, %v15829_v24  ;;  %v15843_v24 = vld [vmem:[#allocation58_spill] sm:$0xff] }
 0x691   :  { %v7137_v58 = vmul.f32 -1.442695, %v12728_v3  ;;  %v6545_v4 = vpack.c.bf16 %v6493_v10, %v6492_v0  ;;  %v5682_v48 = vsel %vm12745_vm4, %v12053_v44, %v5678_v35  ;;  %vm5695_vm5 = vweird.f32 %v15831_v1  ;;  %v3705_v35 = vpop.f32.mrf.mxu2 }
 0x692   :  { %v5692_v53 = vmul.f32 %v15831_v1, %v15830_v62  ;;  %v12758_v56 = vpop.eup %7985  ;;  %v3297_v49 = vmul.f32 %v3120_v41, %v12414_v39  ;;  %v12761_v20 = vadd.f32 1.0, %v7984_v59  ;;  %v5686_v60 = vor.u32 1.1754944e-38, %v5685_v16  ;;  %v15841_v41 = vld [vmem:[#allocation56_spill] sm:$0xff] }
 0x693   :  { %15832 = vst [vmem:[#allocation17_spill] sm:$0xff] %v12758_v56  ;;  %7989 = vpow2.f32 %v7200_v34  ;;  %6580 = vmatpush.bf16.msrb.mxu3 %v6545_v4  ;;  %vm5684_vm14 = vcmp.eq.f32.partialorder %v5683_v2, 8.507059e+37  ;;  %vm5694_vm9 = vweird.f32 %v15833_v29  ;;  %v5698_v8 = vand.u32 2147483647, %v15833_v29  ;;  %v15838_v34 = vld [vmem:[#allocation81_spill] sm:$0xff]  ;;  %v15844_v62 = vld [vmem:[#allocation28_spill] sm:$0xff] }
 0x694   :  { %v5693_v9 = vadd.f32 %v15831_v1, %v5692_v53  ;;  %v4542_v44 = vsel %vm12709_vm8, %v12566_v43, %v4537_v55  ;;  %v4546_v47 = vsub.f32 1.0, %v4545_v13  ;;  %v5687_v61 = vsel %vm5684_vm14, %v5686_v60, %v5682_v48  ;;  %vm12771_vm15 = vmor %vm5694_vm9, %vm5695_vm5  ;;  %v3539_v55 = vpop.f32.mrf.mxu1 }
 0x695   :  { %v5700_v14 = vand.u32 2147483648, %v15833_v29  ;;  %v12781_v31 = vmul.f32 %v12758_v56, %v12620_v18  ;;  %7991 = vpow2.f32 %v7137_v58  ;;  %v6298_v15 = vmul.f32 %v5687_v61, %v15837_v51  ;;  %v15846_v61 = vld [vmem:[#allocation67_spill] sm:$0xff] }
 0x696   :  { %v5697_v43 = vsel %vm12771_vm15, %v15831_v1, %v5693_v9  ;;  %v7988_v33 = vpop.eup %7987  ;;  %7993 = vrcp.f32 %v12761_v20  ;;  %v3333_v22 = vpack.c.bf16 %v3297_v49, %v3296_v38  ;;  %v15839_v54 = vsub.f32 1.0, %v15838_v34  ;;  %v15854_v34 = vld [vmem:[#allocation85_spill] sm:$0xff] }
 0x697   :  { %15836 = vst [vmem:[#allocation20_spill] sm:$0xff] %v12781_v31  ;;  %v5701_v7 = vor.u32 1.1754944e-38, %v5700_v14  ;;  %v1383_v59 = vadd.f32 %v1382_v19, %v15841_v41  ;;  %vm5699_vm7 = vcmp.eq.f32.partialorder %v5698_v8, 8.507059e+37  ;;  %v7354_v0 = vunpack.c.l.bf16 %v7443_v36 }
 0x698   :  { %v5647_v46 = vmul.f32 %v15840_v63, %v15839_v54  ;;  %v7355_v10 = vunpack.c.h.bf16 %v7443_v36  ;;  %v12793_v42 = vmul.f32 %v4542_v44, %v12393_v50  ;;  %v4547_v2 = vmul.f32 %v12705_v45, %v4546_v47  ;;  %3583 = vmatmul.bf16.gmra.mxu1 %v3333_v22  ;;  %3752 = vmatmul.bf16.gmra.mxu2 %v3333_v22  ;;  %v1881_v47 = vpop.f32.mrf.mxu0 }
 0x699   :  { %vm4550_vm6 = vweird.f32 %v12705_v45  ;;  %v5702_v13 = vsel %vm5699_vm7, %v5701_v7, %v5697_v43  ;;  %v7990_v38 = vpop.eup %7989  ;;  %v12798_v16 = vadd.f32 1.0, %v7988_v33  ;;  %v1385_v19 = vadd.f32 %v1384_v12, %v15843_v24  ;;  %v15851_v33 = vld [vmem:[#allocation78_spill] sm:$0xff]  ;;  %v15853_v7 = vld [vmem:[#allocation77_spill] sm:$0xff] }
 0x69a   :  { %15842 = vst [vmem:[#allocation19_spill] sm:$0xff] %v12793_v42  ;;  %v6299_v1 = vmul.f32 %v5702_v13, %v15844_v62  ;;  %vm4549_vm11 = vweird.f32 %v12628_v30  ;;  %v3706_v50 = vadd.f32 %v3705_v35, %v15615_v32  ;;  %v12805_v53 = vadd.f32 %v3539_v55, %v15565_v11  ;;  %v15855_v24 = vld [vmem:[#allocation18_spill] sm:$0xff] }
 0x69b   :  { %v5648_v58 = vadd.f32 %v15840_v63, %v5647_v46  ;;  %vm5650_vm8 = vweird.f32 %v15840_v63  ;;  %v7992_v4 = vpop.eup %7991  ;;  %v3133_v48 = vand.u32 2147483648, %v12761_v20  ;;  %v1952_v49 = vadd.f32 %v1879_v40, %v1383_v59  ;;  %v7442_v46 = vld [vmem:[%s15060_s3 + $0x58] sm:$0xff]   ;;  %vm12863_vm7 = vmor %vm4549_vm11, %vm4550_vm6 }
 0x69c   :  { %v6490_v60 = vmul.f32 %v7354_v0, %v6298_v15  ;;  %v6491_v9 = vmul.f32 %v7355_v10, %v6299_v1  ;;  %v12810_v29 = vpop.eup %7993  ;;  %v4548_v8 = vadd.f32 %v12705_v45, %v4547_v2  ;;  %v12813_v44 = vadd.f32 1.0, %v7990_v38  ;;  %v3541_v40 = vpop.f32.mrf.mxu1 }
 0x69d   :  { %vm5649_vm0 = vweird.f32 %v15846_v61  ;;  %v5653_v39 = vand.u32 2147483647, %v15846_v61  ;;  %7995 = vrcp.f32 %v12798_v16  ;;  %v1953_v14 = vadd.f32 %v1881_v47, %v1385_v19 }
 0x69e   :  { %15845 = vst [vmem:[#allocation66_spill] sm:$0xff] %v12813_v44  ;;  %v6544_v36 = vpack.c.bf16 %v6491_v9, %v6490_v60  ;;  %vm12820_vm10 = vmor %vm5649_vm0, %vm5650_vm8  ;;  %v5655_v43 = vand.u32 2147483648, %v15846_v61  ;;  %vm12827_vm1 = vcmp.eq.f32.partialorder %v4553_v25, 8.507059e+37  ;;  %v15852_v12 = vsub.f32 1.0, %v15851_v33  ;;  %v15858_v9 = vld [vmem:[#allocation64_spill] sm:$0xff] }
 0x69f   :  { %v5652_v15 = vsel %vm12820_vm10, %v15840_v63, %v5648_v58  ;;  %vm5665_vm4 = vweird.f32 %v15853_v7  ;;  %v5668_v54 = vand.u32 2147483647, %v15854_v34  ;;  %v12842_v25 = vadd.f32 1.0, %v7992_v4  ;;  %v15860_v61 = vld [vmem:[#allocation84_spill] sm:$0xff] }
 0x6a0   :  { %v5662_v22 = vmul.f32 %v15853_v7, %v15852_v12  ;;  %v12845_v35 = vadd.f32 %v12411_v26, %v1952_v49  ;;  %6581 = vmatpush.bf16.msrb.mxu3 %v6544_v36  ;;  %v5656_v55 = vor.u32 1.1754944e-38, %v5655_v43  ;;  %v5670_v63 = vand.u32 2147483648, %v15854_v34  ;;  %v12869_v49 = vpop.f32.mrf.mxu2  ;;  %v15861_v43 = vld [vmem:[#allocation25_spill] sm:$0xff] }
 0x6a1   :  { %v3123_v41 = vmul.f32 %v12810_v29, %v12761_v20  ;;  %vm5654_vm5 = vcmp.eq.f32.partialorder %v5653_v39, 8.507059e+37  ;;  %vm5664_vm14 = vweird.f32 %v15854_v34  ;;  %v12853_v0 = vadd.f32 %v12411_v26, %v1953_v14 }
 0x6a2   :  { %v5663_v59 = vadd.f32 %v15853_v7, %v5662_v22  ;;  %v5657_v10 = vsel %vm5654_vm5, %v5656_v55, %v5652_v15  ;;  %vm5666_vm9 = vmor %vm5664_vm14, %vm5665_vm4  ;;  %v5671_v2 = vor.u32 1.1754944e-38, %v5670_v63  ;;  %v7350_v13 = vunpack.c.l.bf16 %v7442_v46 }
 0x6a3   :  { %vm5669_vm15 = vcmp.eq.f32.partialorder %v5668_v54, 8.507059e+37  ;;  %v6296_v19 = vmul.f32 %v5657_v10, %v15855_v24  ;;  %v7351_v62 = vunpack.c.h.bf16 %v7442_v46  ;;  %v12857_v1 = vpop.eup %7995  ;;  %7997 = vrcp.f32 %v12813_v44  ;;  %v15868_v24 = vld [vmem:[#allocation80_spill] sm:$0xff] }
 0x6a4   :  { %v5667_v38 = vsel %vm5666_vm9, %v15853_v7, %v5663_v59  ;;  %v7032_v4 = vmul.f32 -1.442695, %v12845_v35  ;;  %v15859_v47 = vsub.f32 1.0, %v15858_v9  ;;  %v4552_v14 = vsel %vm12863_vm7, %v12705_v45, %v4548_v8 }
 0x6a5   :  { %v5672_v60 = vsel %vm5669_vm15, %v5671_v2, %v5667_v38  ;;  %v3131_v30 = vand.u32 2147483647, %v12761_v20  ;;  %v7138_v36 = vmul.f32 -1.442695, %v12805_v53  ;;  %v12880_v33 = vor.u32 1.1754944e-38, %v3133_v48 }
 0x6a6   :  { %v5617_v39 = vmul.f32 %v15860_v61, %v15859_v47  ;;  %v6297_v15 = vmul.f32 %v5672_v60, %v15861_v43  ;;  %7999 = vrcp.f32 %v12842_v25  ;;  %v7201_v12 = vmul.f32 -1.442695, %v3706_v50  ;;  %v15862_v50 = vld [vmem:[#allocation32_spill] sm:$0xff]  ;;  %v1387_v60 = vpop.f32.mrf.mxu3 }
 0x6a7   :  { %v7033_v7 = vmul.f32 -1.442695, %v12853_v0  ;;  %v3124_v22 = vsub.f32 1.0, %v3123_v41  ;;  %v6488_v54 = vmul.f32 %v7350_v13, %v6296_v19  ;;  %v4557_v45 = vsel %vm12827_vm1, %v12739_v23, %v4552_v14  ;;  %v15866_v13 = vld [vmem:[#allocation72_spill] sm:$0xff] }
 0x6a8   :  { %v6489_v46 = vmul.f32 %v7351_v62, %v6297_v15  ;;  %v3138_v8 = vmul.f32 %v12857_v1, %v12798_v16  ;;  %8001 = vpow2.f32 %v7032_v4  ;;  %v5618_v48 = vadd.f32 %v15860_v61, %v5617_v39  ;;  %v12921_v14 = vpop.f32.mrf.mxu2 }
 0x6a9   :  { %8003 = vpow2.f32 %v7138_v36  ;;  %vm5619_vm6 = vweird.f32 %v15862_v50  ;;  %vm5620_vm11 = vweird.f32 %v15860_v61  ;;  %v12893_v63 = vpop.eup %7997  ;;  %v5623_v23 = vand.u32 2147483647, %v15862_v50 }
 0x6aa   :  { %v6543_v55 = vpack.c.bf16 %v6489_v46, %v6488_v54  ;;  %15863 = vst [vmem:[#allocation35_spill] sm:$0xff] %v12893_v63  ;;  %8005 = vpow2.f32 %v7033_v7  ;;  %vm12896_vm8 = vmor %vm5619_vm6, %vm5620_vm11  ;;  %v5625_v59 = vand.u32 2147483648, %v15862_v50  ;;  %v3125_v10 = vmul.f32 %v12810_v29, %v3124_v22  ;;  %v12934_v54 = vpop.f32.mrf.mxu1  ;;  %v15872_v46 = vld [vmem:[#allocation59_spill] sm:$0xff]  ;;  %v7441_v50 = vld [vmem:[%s15060_s3 + $0x50] sm:$0xff]  }
 0x6ab   :  { %8007 = vpow2.f32 %v7201_v12  ;;  %v5622_v2 = vsel %vm12896_vm8, %v15860_v61, %v5618_v48  ;;  %v15867_v38 = vsub.f32 1.0, %v15866_v13  ;;  %v12912_v58 = vmul.f32 %v4557_v45, %v12521_v21  ;;  %v15871_v21 = vld [vmem:[#allocation36_spill] sm:$0xff]  ;;  %v15875_v48 = vld [vmem:[#allocation87_spill] sm:$0xff] }
 0x6ac   :  { %6582 = vmatpush.bf16.msrb.mxu3 %v6543_v55  ;;  %v12909_v62 = vpop.eup %7999  ;;  %v3139_v4 = vsub.f32 1.0, %v3138_v8  ;;  %v5626_v9 = vor.u32 1.1754944e-38, %v5625_v59  ;;  %vm5635_vm0 = vweird.f32 %v15868_v24  ;;  %vm3128_vm10 = vweird.f32 %v12810_v29 }
 0x6ad   :  { %v5632_v19 = vmul.f32 %v15868_v24, %v15867_v38  ;;  %15869 = vst [vmem:[#allocation31_spill] sm:$0xff] %v12912_v58  ;;  %v12918_v47 = vmul.f32 %v12893_v63, %v12813_v44  ;;  %vm5624_vm1 = vcmp.eq.f32.partialorder %v5623_v23, 8.507059e+37  ;;  %vm5634_vm4 = vweird.f32 %v15871_v21  ;;  %v15878_v38 = vld [vmem:[#allocation82_spill] sm:$0xff] }
 0x6ae   :  { %v8002_v39 = vpop.eup %8001  ;;  %v5627_v36 = vsel %vm5624_vm1, %v5626_v9, %v5622_v2  ;;  %v5638_v43 = vand.u32 2147483647, %v15871_v21  ;;  %v5640_v15 = vand.u32 2147483648, %v15871_v21  ;;  %v12927_v7 = vadd.f32 %v12810_v29, %v3125_v10  ;;  %vm12939_vm14 = vmor %vm5634_vm4, %vm5635_vm0  ;;  %v15876_v2 = vld [vmem:[#allocation86_spill] sm:$0xff]  ;;  %v15897_v9 = vld [vmem:[#allocation68_spill] sm:$0xff] }
 0x6af   :  { %15870 = vst [vmem:[#allocation27_spill] sm:$0xff] %v12918_v47  ;;  %v5633_v61 = vadd.f32 %v15868_v24, %v5632_v19  ;;  %v8004_v12 = vpop.eup %8003  ;;  %vm3127_vm5 = vweird.f32 %v12761_v20  ;;  %v12932_v22 = vmul.f32 %v12909_v62, %v12842_v25  ;;  %v1388_v45 = vadd.f32 %v1387_v60, %v15872_v46  ;;  %v1884_v46 = vpop.f32.mrf.mxu0 }
 0x6b0   :  { %v6294_v55 = vmul.f32 %v5627_v36, %v15875_v48  ;;  %v8006_v51 = vpop.eup %8005  ;;  %v3140_v23 = vmul.f32 %v12857_v1, %v3139_v4  ;;  %v12949_v59 = vadd.f32 %v3541_v40, %v15565_v11  ;;  %v15877_v13 = vsub.f32 1.0, %v15876_v2  ;;  %vm13003_vm4 = vmor %vm3127_vm5, %vm3128_vm10 }
 0x6b1   :  { %v5637_v10 = vsel %vm12939_vm14, %v15868_v24, %v5633_v61  ;;  %v12957_v60 = vpop.eup %8007  ;;  %vm3142_vm9 = vweird.f32 %v12798_v16  ;;  %v3148_v36 = vand.u32 2147483648, %v12798_v16  ;;  %v12962_v4 = vadd.f32 1.0, %v8002_v39 }
 0x6b2   :  { %v5587_v19 = vmul.f32 %v15878_v38, %v15877_v13  ;;  %v5641_v40 = vor.u32 1.1754944e-38, %v5640_v15  ;;  %v12964_v21 = vadd.f32 1.0, %v8004_v12  ;;  %vm5639_vm15 = vcmp.eq.f32.partialorder %v5638_v43, 8.507059e+37  ;;  %v15882_v12 = vld [vmem:[#allocation34_spill] sm:$0xff] }
 0x6b3   :  { %v7346_v24 = vunpack.c.l.bf16 %v7441_v50  ;;  %v7347_v61 = vunpack.c.h.bf16 %v7441_v50  ;;  %vm3143_vm7 = vweird.f32 %v12857_v1  ;;  %v12967_v8 = vadd.f32 1.0, %v8006_v51 }
 0x6b4   :  { %v1954_v48 = vadd.f32 %v1884_v46, %v1388_v45  ;;  %v5642_v2 = vsel %vm5639_vm15, %v5641_v40, %v5637_v10  ;;  %v3141_v13 = vadd.f32 %v12857_v1, %v3140_v23  ;;  %v7139_v37 = vmul.f32 -1.442695, %v12949_v59  ;;  %vm13032_vm10 = vmor %vm3142_vm9, %vm3143_vm7 }
 0x6b5   :  { %v6295_v39 = vmul.f32 %v5642_v2, %v15879_v5  ;;  %v5588_v15 = vadd.f32 %v15878_v38, %v5587_v19  ;;  %vm12975_vm6 = vcmp.eq.f32.partialorder %v3131_v30, 8.507059e+37  ;;  %8009 = vrcp.f32 %v12962_v4  ;;  %v15885_v30 = vld [vmem:[#allocation22_spill] sm:$0xff]  ;;  %v15887_v19 = vld [vmem:[#allocation83_spill] sm:$0xff]  ;;  %v13007_v2 = vpop.f32.mrf.mxu2 }
 0x6b6   :  { %vm5589_vm11 = vweird.f32 %v15882_v12  ;;  %vm5590_vm8 = vweird.f32 %v15878_v38  ;;  %v5593_v45 = vand.u32 2147483647, %v15882_v12  ;;  %v6486_v50 = vmul.f32 %v7346_v24, %v6294_v55  ;;  %v15888_v24 = vld [vmem:[#allocation37_spill] sm:$0xff] }
 0x6b7   :  { %v6487_v51 = vmul.f32 %v7347_v61, %v6295_v39  ;;  %vm12983_vm0 = vmor %vm5589_vm11, %vm5590_vm8  ;;  %v5595_v23 = vand.u32 2147483648, %v15882_v12  ;;  %v15886_v10 = vsub.f32 1.0, %v15885_v30  ;;  %8011 = vrcp.f32 %v12967_v8  ;;  %v15895_v61 = vld [vmem:[#allocation74_spill] sm:$0xff] }
 0x6b8   :  { %v12993_v46 = vadd.f32 %v12411_v26, %v1954_v48  ;;  %v5592_v55 = vsel %vm12983_vm0, %v15878_v38, %v5588_v15  ;;  %vm5604_vm1 = vweird.f32 %v15888_v24  ;;  %vm5605_vm14 = vweird.f32 %v15887_v19  ;;  %v13012_v38 = vpop.f32.mrf.mxu1 }
 0x6b9   :  { %v5602_v40 = vmul.f32 %v15887_v19, %v15886_v10  ;;  %v6542_v39 = vpack.c.bf16 %v6487_v51, %v6486_v50  ;;  %v5596_v12 = vor.u32 1.1754944e-38, %v5595_v23  ;;  %8013 = vrcp.f32 %v12964_v21  ;;  %vm13014_vm11 = vmor %vm5604_vm1, %vm5605_vm14  ;;  %v7440_v50 = vld [vmem:[%s15060_s3 + $0x48] sm:$0xff]   ;;  %v1389_v51 = vpop.f32.mrf.mxu3 }
 0x6ba   :  { %vm5594_vm15 = vcmp.eq.f32.partialorder %v5593_v45, 8.507059e+37  ;;  %v5608_v20 = vand.u32 2147483647, %v15888_v24  ;;  %v5610_v5 = vand.u32 2147483648, %v15888_v24  ;;  %v3130_v23 = vsel %vm13003_vm4, %v12810_v29, %v12927_v7 }
 0x6bb   :  { %v5603_v48 = vadd.f32 %v15887_v19, %v5602_v40  ;;  %6583 = vmatpush.bf16.msrb.mxu3 %v6542_v39  ;;  %v5597_v10 = vsel %vm5594_vm15, %v5596_v12, %v5592_v55  ;;  %v13039_v24 = vpop.eup %8009  ;;  %v3145_v29 = vsel %vm13032_vm10, %v12857_v1, %v3141_v13  ;;  %8015 = vpow2.f32 %v7139_v37  ;;  %v15896_v39 = vld [vmem:[#allocation60_spill] sm:$0xff] }
 0x6bc   :  { %v5611_v7 = vor.u32 1.1754944e-38, %v5610_v5  ;;  %v6292_v41 = vmul.f32 %v5597_v10, %v15895_v61  ;;  %v7034_v34 = vmul.f32 -1.442695, %v12993_v46  ;;  %vm5609_vm5 = vcmp.eq.f32.partialorder %v5608_v20, 8.507059e+37  ;;  %v15913_v61 = vld [vmem:[#allocation41_spill] sm:$0xff] }
 0x6bd   :  { %v5607_v40 = vsel %vm13014_vm11, %v15887_v19, %v5603_v48  ;;  %v7342_v45 = vunpack.c.l.bf16 %v7440_v50  ;;  %v1390_v55 = vadd.f32 %v1389_v51, %v15896_v39  ;;  %v13047_v12 = vpop.eup %8011  ;;  %v3149_v15 = vor.u32 1.1754944e-38, %v3148_v36  ;;  %v1886_v36 = vpop.f32.mrf.mxu0 }
 0x6be   :  { %v5612_v19 = vsel %vm5609_vm5, %v5611_v7, %v5607_v40  ;;  %v7343_v48 = vunpack.c.h.bf16 %v7440_v50  ;;  %v15898_v42 = vsub.f32 1.0, %v15897_v9  ;;  %v3135_v37 = vsel %vm12975_vm6, %v12880_v33, %v3130_v23  ;;  %v15902_v9 = vld [vmem:[#allocation73_spill] sm:$0xff]  ;;  %v15903_v40 = vld [vmem:[#allocation70_spill] sm:$0xff] }
 0x6bf   :  { %v15900_v1 = vand.u32 2147483647, %v12798_v16  ;;  %v13058_v13 = vadd.f32 1.0, %v12957_v60  ;;  %v3709_v20 = vadd.f32 %v12869_v49, %v15615_v32  ;;  %v13062_v5 = vpop.eup %8013  ;;  %v6293_v51 = vmul.f32 %v5612_v19, %v15902_v9  ;;  %v15908_v9 = vld [vmem:[#allocation69_spill] sm:$0xff] }
 0x6c0   :  { %v5557_v30 = vmul.f32 %v15899_v57, %v15898_v42  ;;  %v1955_v42 = vadd.f32 %v1886_v36, %v1390_v55  ;;  %v3153_v33 = vmul.f32 %v13039_v24, %v12962_v4  ;;  %v3168_v16 = vmul.f32 %v13047_v12, %v12967_v8  ;;  %v13087_v55 = vpop.f32.mrf.mxu2  ;;  %v13092_v19 = vpop.f32.mrf.mxu1 }
 0x6c1   :  { %vm3147_vm9 = vcmp.eq.f32.partialorder %v15900_v1, 8.507059e+37  ;;  %15901 = vst [vmem:[#allocation42_spill] sm:$0xff] %v13058_v13  ;;  %8017 = vpow2.f32 %v7034_v34  ;;  %v6484_v60 = vmul.f32 %v7342_v45, %v6292_v41  ;;  %v8016_v43 = vpop.eup %8015  ;;  %v6485_v23 = vmul.f32 %v7343_v48, %v6293_v51 }
 0x6c2   :  { %v3150_v50 = vsel %vm3147_vm9, %v3149_v15, %v3145_v29  ;;  %v5558_v10 = vadd.f32 %v15899_v57, %v5557_v30  ;;  %v13071_v49 = vadd.f32 %v12411_v26, %v1955_v42  ;;  %vm5559_vm7 = vweird.f32 %v15903_v40 }
 0x6c3   :  { %vm5560_vm6 = vweird.f32 %v15899_v57  ;;  %v13077_v29 = vmul.f32 %v13062_v5, %v12964_v21  ;;  %v7202_v7 = vmul.f32 -1.442695, %v3709_v20  ;;  %v5563_v34 = vand.u32 2147483647, %v15903_v40  ;;  %v15906_v20 = vld [vmem:[#allocation88_spill] sm:$0xff] }
 0x6c4   :  { %vm13079_vm8 = vmor %vm5559_vm7, %vm5560_vm6  ;;  %v5565_v41 = vand.u32 2147483648, %v15903_v40  ;;  %v3299_v26 = vmul.f32 %v3150_v50, %v12680_v52  ;;  %v6541_v45 = vpack.c.bf16 %v6485_v23, %v6484_v60  ;;  %v7035_v39 = vmul.f32 -1.442695, %v13071_v49  ;;  %v15909_v50 = vld [vmem:[#allocation16_spill] sm:$0xff] }
 0x6c5   :  { %v5562_v15 = vsel %vm13079_vm8, %v15899_v57, %v5558_v10  ;;  %v13094_v48 = vadd.f32 1.0, %v8016_v43  ;;  %v3169_v30 = vsub.f32 1.0, %v3168_v16  ;;  %v15907_v36 = vsub.f32 1.0, %v15906_v20  ;;  %v1889_v20 = vpop.f32.mrf.mxu0 }
 0x6c6   :  { %v5566_v1 = vor.u32 1.1754944e-38, %v5565_v41  ;;  %v3154_v52 = vsub.f32 1.0, %v3153_v33  ;;  %6584 = vmatpush.bf16.msrb.mxu3 %v6541_v45  ;;  %8019 = vpow2.f32 %v7035_v39  ;;  %vm5564_vm0 = vcmp.eq.f32.partialorder %v5563_v34, 8.507059e+37  ;;  %v1392_v41 = vpop.f32.mrf.mxu3 }
 0x6c7   :  { %v5572_v51 = vmul.f32 %v15908_v9, %v15907_v36  ;;  %vm5574_vm1 = vweird.f32 %v15909_v50  ;;  %v8018_v42 = vpop.eup %8017  ;;  %vm5575_vm4 = vweird.f32 %v15908_v9  ;;  %v5578_v10 = vand.u32 2147483647, %v15909_v50 }
 0x6c8   :  { %v5567_v60 = vsel %vm5564_vm0, %v5566_v1, %v5562_v15  ;;  %v3298_v16 = vmul.f32 %v3135_v37, %v12602_v27  ;;  %v15910_v43 = vsub.f32 1.0, %v12932_v22  ;;  %vm13109_vm14 = vmor %vm5574_vm1, %vm5575_vm4  ;;  %v5580_v40 = vand.u32 2147483648, %v15909_v50  ;;  %v7439_v22 = vld [vmem:[%s15060_s3 + $0x40] sm:$0xff]   ;;  %v13143_v33 = vpop.f32.mrf.mxu1 }
 0x6c9   :  { %v5573_v57 = vadd.f32 %v15908_v9, %v5572_v51  ;;  %v6290_v34 = vmul.f32 %v5567_v60, %v15913_v61  ;;  %v4576_v45 = vsub.f32 1.0, %v13077_v29  ;;  %8021 = vpow2.f32 %v7202_v7 }
 0x6ca   :  { %v13107_v23 = vmul.f32 %v12909_v62, %v15910_v43  ;;  %v3170_v39 = vmul.f32 %v13047_v12, %v3169_v30  ;;  %8023 = vrcp.f32 %v13094_v48  ;;  %v13124_v37 = vadd.f32 1.0, %v8018_v42  ;;  %v15914_v30 = vld [vmem:[#allocation61_spill] sm:$0xff]  ;;  %v13141_v43 = vpop.f32.mrf.mxu2 }
 0x6cb   :  { %v5577_v27 = vsel %vm13109_vm14, %v15908_v9, %v5573_v57  ;;  %v5581_v15 = vor.u32 1.1754944e-38, %v5580_v40  ;;  %v3334_v1 = vpack.c.bf16 %v3299_v26, %v3298_v16  ;;  %v3155_v29 = vmul.f32 %v13039_v24, %v3154_v52  ;;  %v15915_v52 = vld [vmem:[#allocation38_spill] sm:$0xff] }
 0x6cc   :  { %v13129_v7 = vadd.f32 %v12934_v54, %v15565_v11  ;;  %vm5579_vm15 = vcmp.eq.f32.partialorder %v5578_v10, 8.507059e+37  ;;  %v1393_v36 = vadd.f32 %v1392_v41, %v15914_v30  ;;  %v8020_v9 = vpop.eup %8019  ;;  %vm3173_vm11 = vweird.f32 %v13047_v12 }
 0x6cd   :  { %v5582_v51 = vsel %vm5579_vm15, %v5581_v15, %v5577_v27  ;;  %v7338_v50 = vunpack.c.l.bf16 %v7439_v22  ;;  %v7339_v60 = vunpack.c.h.bf16 %v7439_v22  ;;  %3588 = vmatmul.bf16.gmra.mxu1 %v3334_v1  ;;  %3757 = vmatmul.bf16.gmra.mxu2 %v3334_v1  ;;  %v3171_v26 = vadd.f32 %v13047_v12, %v3170_v39  ;;  %v1891_v27 = vpop.f32.mrf.mxu0 }
 0x6ce   :  { %v13134_v42 = vadd.f32 1.0, %v8020_v9  ;;  %v6291_v57 = vmul.f32 %v5582_v51, %v15915_v52  ;;  %v1956_v16 = vadd.f32 %v1889_v20, %v1393_v36  ;;  %vm3158_vm10 = vweird.f32 %v13039_v24  ;;  %v8258_v20 = vld [vmem:[%s15064_s7] ss:$0 sm:$0xff] }
 0x6cf   :  { %v3163_v54 = vand.u32 2147483648, %v12962_v4  ;;  %v3178_v10 = vand.u32 2147483648, %v12967_v8  ;;  %8025 = vrcp.f32 %v13124_v37  ;;  %v8022_v40 = vpop.eup %8021  ;;  %v3156_v61 = vadd.f32 %v13039_v24, %v3155_v29 }
 0x6d0   :  { %vm3172_vm5 = vweird.f32 %v12967_v8  ;;  %v3176_v41 = vand.u32 2147483647, %v12967_v8  ;;  %8027 = vrcp.f32 %v13134_v42  ;;  %v13149_v39 = vpop.eup %8023  ;;  %v3711_v22 = vadd.f32 %v12921_v14, %v15615_v32 }
 0x6d1   :  { %vm13153_vm9 = vmor %vm3172_vm5, %vm3173_vm11  ;;  %v6482_v15 = vmul.f32 %v7338_v50, %v6290_v34  ;;  %v6483_v1 = vmul.f32 %v7339_v60, %v6291_v57  ;;  %v13162_v8 = vadd.f32 %v8258_v20, %v1956_v16  ;;  %vm3157_vm7 = vweird.f32 %v12962_v4  ;;  %v1394_v50 = vpop.f32.mrf.mxu3 }
 0x6d2   :  { %v3161_v29 = vand.u32 2147483647, %v12962_v4  ;;  %v3175_v30 = vsel %vm13153_vm9, %v13047_v12, %v3171_v26  ;;  %v7140_v36 = vmul.f32 -1.442695, %v13129_v7  ;;  %vm4564_vm6 = vweird.f32 %v12842_v25  ;;  %vm13174_vm8 = vmor %vm3157_vm7, %vm3158_vm10 }
 0x6d3   :  { %v4577_v14 = vmul.f32 %v13062_v5, %v4576_v45  ;;  %v3179_v9 = vor.u32 1.1754944e-38, %v3178_v10  ;;  %v6540_v51 = vpack.c.bf16 %v6483_v1, %v6482_v15  ;;  %v7036_v4 = vmul.f32 -1.442695, %v13162_v8  ;;  %v15920_v45 = vld [vmem:[#allocation62_spill] sm:$0xff] }
 0x6d4   :  { %v3160_v12 = vsel %vm13174_vm8, %v13039_v24, %v3156_v61  ;;  %vm3177_vm0 = vcmp.eq.f32.partialorder %v3176_v41, 8.507059e+37  ;;  %v13184_v60 = vadd.f32 %v13012_v38, %v15565_v11  ;;  %v1395_v26 = vadd.f32 %v1394_v50, %v15920_v45  ;;  %v13197_v41 = vpop.f32.mrf.mxu2 }
 0x6d5   :  { %v13187_v52 = vpop.eup %8025  ;;  %v3164_v57 = vor.u32 1.1754944e-38, %v3163_v54  ;;  %v3180_v16 = vsel %vm3177_vm0, %v3179_v9, %v3175_v30  ;;  %v7203_v10 = vmul.f32 -1.442695, %v3711_v22  ;;  %6585 = vmatpush.bf16.msrb.mxu3 %v6540_v51  ;;  %8029 = vpow2.f32 %v7036_v4  ;;  %v13199_v22 = vpop.f32.mrf.mxu1 }
 0x6d6   :  { %v13189_v15 = vpop.eup %8027  ;;  %vm3162_vm1 = vcmp.eq.f32.partialorder %v3161_v29, 8.507059e+37  ;;  %v4590_v24 = vmul.f32 %v13149_v39, %v13094_v48  ;;  %8031 = vpow2.f32 %v7140_v36  ;;  %v1957_v61 = vadd.f32 %v1891_v27, %v1395_v26 }
 0x6d7   :  { %vm4565_vm4 = vweird.f32 %v12909_v62  ;;  %8033 = vrcp.f32 %v13058_v13  ;;  %v3165_v38 = vsel %vm3162_vm1, %v3164_v57, %v3160_v12  ;;  %v3198_v54 = vmul.f32 %v13189_v15, %v13134_v42 }
 0x6d8   :  { %vm4579_vm14 = vweird.f32 %v12964_v21  ;;  %v3301_v1 = vmul.f32 %v3180_v16, %v12853_v0  ;;  %v3183_v29 = vmul.f32 %v13187_v52, %v13124_v37  ;;  %v7141_v30 = vmul.f32 -1.442695, %v13184_v60  ;;  %vm13222_vm11 = vmor %vm4564_vm6, %vm4565_vm4 }
 0x6d9   :  { %v4563_v36 = vadd.f32 %v12909_v62, %v13107_v23  ;;  %vm4580_vm15 = vweird.f32 %v13062_v5  ;;  %8035 = vpow2.f32 %v7203_v10  ;;  %v13209_v34 = vadd.f32 %v8258_v20, %v1957_v61 }
 0x6da   :  { %v4578_v9 = vadd.f32 %v13062_v5, %v4577_v14  ;;  %v3300_v51 = vmul.f32 %v3165_v38, %v12845_v35  ;;  %v4591_v4 = vsub.f32 1.0, %v4590_v24  ;;  %v3199_v50 = vsub.f32 1.0, %v3198_v54  ;;  %vm13245_vm5 = vmor %vm4579_vm14, %vm4580_vm15 }
 0x6db   :  { %v8030_v0 = vpop.eup %8029  ;;  %v4583_v12 = vand.u32 2147483647, %v12964_v21  ;;  %v4585_v45 = vand.u32 2147483648, %v12964_v21  ;;  %v13215_v26 = vadd.f32 1.0, %v8022_v40  ;;  %v7037_v23 = vmul.f32 -1.442695, %v13209_v34 }
 0x6dc   :  { %v8032_v57 = vpop.eup %8031  ;;  %v3184_v35 = vsub.f32 1.0, %v3183_v29  ;;  %8037 = vpow2.f32 %v7141_v30  ;;  %v13226_v14 = vadd.f32 1.0, %v8030_v0  ;;  %v3335_v16 = vpack.c.bf16 %v3301_v1, %v3300_v51  ;;  %v13259_v51 = vpop.f32.mrf.mxu2 }
 0x6dd   :  { %15921 = vst [vmem:[#allocation48_spill] sm:$0xff] %v13215_v26  ;;  %v13228_v10 = vpop.eup %8033  ;;  %v4567_v40 = vsel %vm13222_vm11, %v12909_v62, %v4563_v36  ;;  %v15925_v27 = vand.u32 2147483647, %v12842_v25  ;;  %v15928_v61 = vand.u32 2147483648, %v12842_v25  ;;  %8039 = vpow2.f32 %v7037_v23  ;;  %v13261_v0 = vpop.f32.mrf.mxu1 }
 0x6de   :  { %15924 = vst [vmem:[#allocation45_spill] sm:$0xff] %v13228_v10  ;;  %v4582_v62 = vsel %vm13245_vm5, %v13062_v5, %v4578_v9  ;;  %v4592_v1 = vmul.f32 %v13149_v39, %v4591_v4  ;;  %v3200_v29 = vmul.f32 %v13189_v15, %v3199_v50  ;;  %8041 = vrcp.f32 %v13226_v14  ;;  %3593 = vmatmul.bf16.gmra.mxu1 %v3335_v16 }
 0x6df   :  { %vm13235_vm10 = vcmp.eq.f32.partialorder %v15925_v27, 8.507059e+37  ;;  %v4571_v38 = vor.u32 1.1754944e-38, %v15928_v61  ;;  %3762 = vmatmul.bf16.gmra.mxu2 %v3335_v16  ;;  %v8036_v25 = vpop.eup %8035  ;;  %v4586_v30 = vor.u32 1.1754944e-38, %v4585_v45  ;;  %8043 = vrcp.f32 %v13215_v26 }
 0x6e0   :  { %v13257_v36 = vadd.f32 1.0, %v8032_v57  ;;  %v13269_v9 = vmul.f32 %v13228_v10, %v13058_v13  ;;  %vm4584_vm9 = vcmp.eq.f32.partialorder %v4583_v12, 8.507059e+37  ;;  %v3185_v4 = vmul.f32 %v13187_v52, %v3184_v35 }
 0x6e1   :  { %v13265_v5 = vsel %vm13235_vm10, %v4571_v38, %v4567_v40  ;;  %v13272_v50 = vsel %vm4584_vm9, %v4586_v30, %v4582_v62  ;;  %vm4594_vm7 = vweird.f32 %v13094_v48  ;;  %vm4595_vm6 = vweird.f32 %v13149_v39 }
 0x6e2   :  { %15931 = vst [vmem:[#allocation29_spill] sm:$0xff] %v13269_v9  ;;  %v4600_v45 = vand.u32 2147483648, %v13094_v48  ;;  %v8038_v23 = vpop.eup %8037  ;;  %v4593_v57 = vadd.f32 %v13149_v39, %v4592_v1  ;;  %v13278_v20 = vadd.f32 1.0, %v8036_v25  ;;  %v3201_v16 = vadd.f32 %v13189_v15, %v3200_v29  ;;  %vm13336_vm11 = vmor %vm4594_vm7, %vm4595_vm6 }
 0x6e3   :  { %vm3203_vm8 = vweird.f32 %v13189_v15  ;;  %v8040_v12 = vpop.eup %8039  ;;  %8045 = vrcp.f32 %v13257_v36  ;;  %vm3188_vm0 = vweird.f32 %v13187_v52  ;;  %v3208_v35 = vand.u32 2147483648, %v13134_v42 }
 0x6e4   :  { %15932 = vst [vmem:[#allocation52_spill] sm:$0xff] %v13278_v20  ;;  %v13287_v40 = vadd.f32 %v13092_v19, %v15565_v11  ;;  %v13289_v27 = vpop.eup %8041  ;;  %v3186_v24 = vadd.f32 %v13187_v52, %v3185_v4  ;;  %vm3202_vm1 = vweird.f32 %v13134_v42  ;;  %v3206_v61 = vand.u32 2147483647, %v13134_v42  ;;  %v13345_v29 = vpop.f32.mrf.mxu2 }
 0x6e5   :  { %v13294_v38 = vadd.f32 1.0, %v8040_v12  ;;  %v13296_v54 = vpop.eup %8043  ;;  %vm3187_vm4 = vweird.f32 %v13124_v37  ;;  %v3191_v62 = vand.u32 2147483647, %v13124_v37  ;;  %v3193_v1 = vand.u32 2147483648, %v13124_v37  ;;  %vm13305_vm14 = vmor %vm3202_vm1, %vm3203_vm8  ;;  %v13347_v21 = vpop.f32.mrf.mxu1 }
 0x6e6   :  { %15933 = vst [vmem:[#allocation57_spill] sm:$0xff] %v13296_v54  ;;  %v13301_v19 = vadd.f32 1.0, %v8038_v23  ;;  %v3205_v42 = vsel %vm13305_vm14, %v13189_v15, %v3201_v16  ;;  %v3213_v25 = vmul.f32 %v13289_v27, %v13226_v14  ;;  %v13316_v30 = vadd.f32 %v13143_v33, %v15565_v11  ;;  %vm13323_vm15 = vmor %vm3187_vm4, %vm3188_vm0 }
 0x6e7   :  { %8047 = vrcp.f32 %v13294_v38  ;;  %v4598_v37 = vand.u32 2147483647, %v13094_v48  ;;  %v3209_v15 = vor.u32 1.1754944e-38, %v3208_v35  ;;  %v7142_v23 = vmul.f32 -1.442695, %v13287_v40 }
 0x6e8   :  { %8049 = vrcp.f32 %v13278_v20  ;;  %v13330_v16 = vmul.f32 %v13296_v54, %v13215_v26  ;;  %v3190_v12 = vsel %vm13323_vm15, %v13187_v52, %v3186_v24  ;;  %v3714_v35 = vadd.f32 %v13007_v2, %v15615_v32 }
 0x6e9   :  { %vm3207_vm10 = vcmp.eq.f32.partialorder %v3206_v61, 8.507059e+37  ;;  %v13349_v18 = vpop.eup %8045  ;;  %v4597_v48 = vsel %vm13336_vm11, %v13149_v39, %v4593_v57  ;;  %v4601_v56 = vor.u32 1.1754944e-38, %v4600_v45  ;;  %v3194_v31 = vor.u32 1.1754944e-38, %v3193_v1 }
 0x6ea   :  { %15938 = vst [vmem:[#allocation40_spill] sm:$0xff] %v13330_v16  ;;  %v3210_v6 = vsel %vm3207_vm10, %v3209_v15, %v3205_v42  ;;  %vm3192_vm5 = vcmp.eq.f32.partialorder %v3191_v62, 8.507059e+37  ;;  %8051 = vrcp.f32 %v13301_v19  ;;  %v3214_v52 = vsub.f32 1.0, %v3213_v25 }
 0x6eb   :  { %v7143_v2 = vmul.f32 -1.442695, %v13316_v30  ;;  %vm4599_vm9 = vcmp.eq.f32.partialorder %v4598_v37, 8.507059e+37  ;;  %v3195_v24 = vsel %vm3192_vm5, %v3194_v31, %v3190_v12  ;;  %v3716_v61 = vadd.f32 %v13087_v55, %v15615_v32 }
 0x6ec   :  { %8053 = vpow2.f32 %v7142_v23  ;;  %v4602_v17 = vsel %vm4599_vm9, %v4601_v56, %v4597_v48  ;;  %v4605_v39 = vmul.f32 %v13349_v18, %v13257_v36  ;;  %v7204_v45 = vmul.f32 -1.442695, %v3714_v35 }
 0x6ed   :  { %v8048_v4 = vpop.eup %8047  ;;  %v3303_v57 = vmul.f32 %v3210_v6, %v13071_v49  ;;  %v13365_v1 = vmul.f32 %v13265_v5, %v12728_v3  ;;  %v13371_v55 = vadd.f32 %v13199_v22, %v15565_v11  ;;  %v13375_v56 = vmul.f32 %v13272_v50, %v12805_v53  ;;  %v13391_v23 = vpop.f32.mrf.mxu1 }
 0x6ee   :  { %v13361_v62 = vpop.eup %8049  ;;  %v3228_v42 = vmul.f32 %v8048_v4, %v13294_v38  ;;  %v3302_v6 = vmul.f32 %v3195_v24, %v12993_v46  ;;  %v3215_v49 = vmul.f32 %v13289_v27, %v3214_v52  ;;  %8055 = vpow2.f32 %v7143_v2  ;;  %v13389_v46 = vpop.f32.mrf.mxu2 }
 0x6ef   :  { %15941 = vst [vmem:[#allocation39_spill] sm:$0xff] %v13361_v62  ;;  %v13381_v5 = vmul.f32 %v4602_v17, %v12949_v59  ;;  %v7205_v25 = vmul.f32 -1.442695, %v3716_v61  ;;  %v13387_v22 = vmul.f32 %v13361_v62, %v13278_v20  ;;  %v4606_v53 = vsub.f32 1.0, %v4605_v39 }
 0x6f0   :  { %15942 = vst [vmem:[#allocation23_spill] sm:$0xff] %v13365_v1  ;;  %v3229_v37 = vsub.f32 1.0, %v3228_v42  ;;  %v13383_v15 = vpop.eup %8051  ;;  %8057 = vpow2.f32 %v7204_v45  ;;  %v3336_v50 = vpack.c.bf16 %v3303_v57, %v3302_v6  ;;  %vm3233_vm7 = vweird.f32 %v8048_v4 }
 0x6f1   :  { %15943 = vst [vmem:[#allocation21_spill] sm:$0xff] %v13375_v56  ;;  %v3238_v17 = vand.u32 2147483648, %v13294_v38  ;;  %v7144_v59 = vmul.f32 -1.442695, %v13371_v55  ;;  %v3216_v35 = vadd.f32 %v13289_v27, %v3215_v49  ;;  %vm3218_vm6 = vweird.f32 %v13289_v27 }
 0x6f2   :  { %15944 = vst [vmem:[#allocation44_spill] sm:$0xff] %v13381_v5  ;;  %v8054_v33 = vpop.eup %8053  ;;  %v3230_v12 = vmul.f32 %v8048_v4, %v3229_v37  ;;  %v3236_v48 = vand.u32 2147483647, %v13294_v38  ;;  %v13400_v52 = vadd.f32 %v13261_v0, %v15565_v11  ;;  %3598 = vmatmul.bf16.gmra.mxu1 %v3336_v50  ;;  %3767 = vmatmul.bf16.gmra.mxu2 %v3336_v50  ;;  %8059 = vpow2.f32 %v7205_v25 }
 0x6f3   :  { %15945 = vst [vmem:[#allocation43_spill] sm:$0xff] %v13387_v22  ;;  %v3223_v2 = vand.u32 2147483648, %v13226_v14  ;;  %vm3232_vm8 = vweird.f32 %v13294_v38  ;;  %v4620_v39 = vmul.f32 %v13383_v15, %v13301_v19  ;;  %v13406_v45 = vadd.f32 1.0, %v8054_v33 }
 0x6f4   :  { %v3231_v24 = vadd.f32 %v8048_v4, %v3230_v12  ;;  %v8056_v61 = vpop.eup %8055  ;;  %vm3217_vm0 = vweird.f32 %v13226_v14  ;;  %v3221_v57 = vand.u32 2147483647, %v13226_v14  ;;  %vm3234_vm1 = vmor %vm3232_vm8, %vm3233_vm7  ;;  %v4607_v0 = vmul.f32 %v13349_v18, %v4606_v53 }
 0x6f5   :  { %v4613_v42 = vand.u32 2147483647, %v13257_v36  ;;  %vm13415_vm4 = vmor %vm3217_vm0, %vm3218_vm6  ;;  %v3239_v49 = vor.u32 1.1754944e-38, %v3238_v17  ;;  %vm3237_vm14 = vcmp.eq.f32.partialorder %v3236_v48, 8.507059e+37  ;;  %8061 = vpow2.f32 %v7144_v59 }
 0x6f6   :  { %v3235_v6 = vsel %vm3234_vm1, %v8048_v4, %v3231_v24  ;;  %v8058_v25 = vpop.eup %8057  ;;  %v3220_v37 = vsel %vm13415_vm4, %v13289_v27, %v3216_v35  ;;  %v7145_v14 = vmul.f32 -1.442695, %v13400_v52  ;;  %v3224_v53 = vor.u32 1.1754944e-38, %v3223_v2  ;;  %v13430_v17 = vpop.f32.mrf.mxu2 }
 0x6f7   :  { %v3719_v50 = vadd.f32 %v13141_v43, %v15615_v32  ;;  %v13425_v33 = vadd.f32 1.0, %v8056_v61  ;;  %v3240_v12 = vsel %vm3237_vm14, %v3239_v49, %v3235_v6  ;;  %v4621_v31 = vsub.f32 1.0, %v4620_v39  ;;  %v3564_v27 = vpop.f32.mrf.mxu1 }
 0x6f8   :  { %8063 = vrcp.f32 %v13406_v45  ;;  %vm3222_vm15 = vcmp.eq.f32.partialorder %v3221_v57, 8.507059e+37  ;;  %v3721_v4 = vadd.f32 %v13197_v41, %v15615_v32  ;;  %v8060_v59 = vpop.eup %8059  ;;  %vm4610_vm11 = vweird.f32 %v13349_v18 }
 0x6f9   :  { %v4615_v35 = vand.u32 2147483648, %v13257_v36  ;;  %v13434_v48 = vadd.f32 1.0, %v8058_v25  ;;  %v3225_v43 = vsel %vm3222_vm15, %v3224_v53, %v3220_v37  ;;  %v4608_v2 = vadd.f32 %v13349_v18, %v4607_v0 }
 0x6fa   :  { %v3305_v24 = vmul.f32 %v3240_v12, %v13209_v34  ;;  %8065 = vpow2.f32 %v7145_v14  ;;  %v13440_v61 = vadd.f32 %v13347_v21, %v15565_v11  ;;  %vm4609_vm10 = vweird.f32 %v13257_v36 }
 0x6fb   :  { %15948 = vst [vmem:[#allocation47_spill] sm:$0xff] %v13434_v48  ;;  %vm13443_vm5 = vcmp.eq.f32.partialorder %v4613_v42, 8.507059e+37  ;;  %v7206_v39 = vmul.f32 -1.442695, %v3719_v50  ;;  %8067 = vrcp.f32 %v13425_v33  ;;  %v8062_v57 = vpop.eup %8061  ;;  %v4622_v38 = vmul.f32 %v13383_v15, %v4621_v31  ;;  %vm13454_vm9 = vmor %vm4609_vm10, %vm4610_vm11 }
 0x6fc   :  { %v3304_v0 = vmul.f32 %v3225_v43, %v13162_v8  ;;  %v7207_v34 = vmul.f32 -1.442695, %v3721_v4  ;;  %v3724_v6 = vadd.f32 %v13259_v51, %v15615_v32  ;;  %v4616_v36 = vor.u32 1.1754944e-38, %v4615_v35 }
 0x6fd   :  { %8069 = vrcp.f32 %v13434_v48  ;;  %v13459_v42 = vadd.f32 1.0, %v8060_v59  ;;  %v3726_v31 = vadd.f32 %v13345_v29, %v15615_v32  ;;  %v4612_v8 = vsel %vm13454_vm9, %v13349_v18, %v4608_v2 }
 0x6fe   :  { %v13463_v49 = vpop.eup %8063  ;;  %v7146_v51 = vmul.f32 -1.442695, %v13440_v61  ;;  %v13470_v25 = vadd.f32 %v3564_v27, %v15565_v11  ;;  %v3337_v37 = vpack.c.bf16 %v3305_v24, %v3304_v0  ;;  %vm4624_vm7 = vweird.f32 %v13301_v19  ;;  %v3733_v12 = vpop.f32.mrf.mxu2 }
 0x6ff   :  { %15953 = vst [vmem:[#allocation46_spill] sm:$0xff] %v13459_v42  ;;  %vm4625_vm6 = vweird.f32 %v13383_v15  ;;  %8071 = vpow2.f32 %v7206_v39  ;;  %v13474_v14 = vadd.f32 1.0, %v8062_v57  ;;  %v4623_v53 = vadd.f32 %v13383_v15, %v4622_v38  ;;  %v3566_v4 = vpop.f32.mrf.mxu1 }
 0x700   :  { %v8066_v29 = vpop.eup %8065  ;;  %8073 = vpow2.f32 %v7207_v34  ;;  %v7208_v50 = vmul.f32 -1.442695, %v3724_v6  ;;  %v13479_v18 = vadd.f32 %v13391_v23, %v15565_v11  ;;  %v4630_v59 = vand.u32 2147483648, %v13301_v19  ;;  %vm13498_vm8 = vmor %vm4624_vm7, %vm4625_vm6 }
 0x701   :  { %v13481_v27 = vpop.eup %8067  ;;  %8075 = vrcp.f32 %v13459_v42  ;;  %v4635_v35 = vmul.f32 %v13463_v49, %v13406_v45  ;;  %v7209_v43 = vmul.f32 -1.442695, %v3726_v31  ;;  %v4628_v2 = vand.u32 2147483647, %v13301_v19 }
 0x702   :  { %8077 = vpow2.f32 %v7146_v51  ;;  %v7148_v24 = vmul.f32 -1.442695, %v13470_v25  ;;  %3603 = vmatmul.bf16.gmra.mxu1 %v3337_v37  ;;  %3772 = vmatmul.bf16.gmra.mxu2 %v3337_v37  ;;  %v3734_v23 = vadd.f32 %v3733_v12, %v15615_v32  ;;  %v4617_v57 = vsel %vm13443_vm5, %v4616_v36, %v4612_v8 }
 0x703   :  { %v13490_v39 = vpop.eup %8069  ;;  %8079 = vrcp.f32 %v13474_v14  ;;  %v13503_v0 = vadd.f32 1.0, %v8066_v29  ;;  %v13506_v34 = vadd.f32 %v3566_v4, %v15565_v11  ;;  %v4627_v41 = vsel %vm13498_vm8, %v13383_v15, %v4623_v53 }
 0x704   :  { %15954 = vst [vmem:[#allocation49_spill] sm:$0xff] %v13490_v39  ;;  %v4650_v6 = vmul.f32 %v13481_v27, %v13425_v33  ;;  %8081 = vpow2.f32 %v7208_v50  ;;  %v7147_v19 = vmul.f32 -1.442695, %v13479_v18  ;;  %v4631_v36 = vor.u32 1.1754944e-38, %v4630_v59 }
 0x705   :  { %v8072_v21 = vpop.eup %8071  ;;  %v4636_v31 = vsub.f32 1.0, %v4635_v35  ;;  %8083 = vpow2.f32 %v7209_v43  ;;  %v7212_v8 = vmul.f32 -1.442695, %v3734_v23  ;;  %v13516_v37 = vmul.f32 %v13490_v39, %v13434_v48 }
 0x706   :  { %v8074_v51 = vpop.eup %8073  ;;  %vm4629_vm0 = vcmp.eq.f32.partialorder %v4628_v2, 8.507059e+37  ;;  %8085 = vpow2.f32 %v7148_v24  ;;  %v7149_v15 = vmul.f32 -1.442695, %v13506_v34  ;;  %v13523_v50 = vmul.f32 %v4617_v57, %v13129_v7  ;;  %v3735_v2 = vpop.f32.mrf.mxu2 }
 0x707   :  { %15957 = vst [vmem:[#allocation51_spill] sm:$0xff] %v13516_v37  ;;  %v13519_v29 = vpop.eup %8075  ;;  %v4632_v12 = vsel %vm4629_vm0, %v4631_v36, %v4627_v41  ;;  %8087 = vrcp.f32 %v13503_v0  ;;  %v4643_v59 = vand.u32 2147483647, %v13406_v45  ;;  %v13527_v35 = vadd.f32 1.0, %v8072_v21  ;;  %v3569_v28 = vpop.f32.mrf.mxu1 }
 0x708   :  { %15958 = vst [vmem:[#allocation53_spill] sm:$0xff] %v13519_v29  ;;  %v8078_v4 = vpop.eup %8077  ;;  %v4651_v43 = vsub.f32 1.0, %v4650_v6  ;;  %8089 = vpow2.f32 %v7147_v19  ;;  %v4637_v23 = vmul.f32 %v13463_v49, %v4636_v31  ;;  %v13532_v38 = vadd.f32 1.0, %v8074_v51 }
 0x709   :  { %15959 = vst [vmem:[#allocation55_spill] sm:$0xff] %v13523_v50  ;;  %v13529_v24 = vpop.eup %8079  ;;  %8091 = vpow2.f32 %v7212_v8  ;;  %v3736_v7 = vadd.f32 %v3735_v2, %v15615_v32  ;;  %v4645_v36 = vand.u32 2147483648, %v13406_v45  ;;  %v3729_v21 = vadd.f32 %v13389_v46, %v15615_v32 }
 0x70a   :  { %15960 = vst [vmem:[#allocation79_spill] sm:$0xff] %v13532_v38  ;;  %v8082_v57 = vpop.eup %8081  ;;  %8093 = vpow2.f32 %v7149_v15  ;;  %v13540_v19 = vmul.f32 %v4632_v12, %v13184_v60  ;;  %v13544_v31 = vmul.f32 %v13519_v29, %v13459_v42  ;;  %vm4639_vm1 = vweird.f32 %v13406_v45 }
 0x70b   :  { %v8084_v6 = vpop.eup %8083  ;;  %v13547_v8 = vadd.f32 1.0, %v8078_v4  ;;  %vm13549_vm4 = vcmp.eq.f32.partialorder %v4643_v59, 8.507059e+37  ;;  %8095 = vrcp.f32 %v13527_v35  ;;  %v4652_v46 = vmul.f32 %v13481_v27, %v4651_v43 }
 0x70c   :  { %15961 = vst [vmem:[#allocation63_spill] sm:$0xff] %v13540_v19  ;;  %v8086_v51 = vpop.eup %8085  ;;  %v4665_v60 = vmul.f32 %v13529_v24, %v13474_v14  ;;  %v7213_v15 = vmul.f32 -1.442695, %v3736_v7  ;;  %v4638_v53 = vadd.f32 %v13463_v49, %v4637_v23  ;;  %vm4640_vm14 = vweird.f32 %v13463_v49 }
 0x70d   :  { %15962 = vst [vmem:[#allocation75_spill] sm:$0xff] %v13544_v31  ;;  %v13557_v12 = vpop.eup %8087  ;;  %8097 = vrcp.f32 %v13532_v38  ;;  %v13562_v4 = vadd.f32 1.0, %v8082_v57  ;;  %v4646_v3 = vor.u32 1.1754944e-38, %v4645_v36  ;;  %vm4654_vm15 = vweird.f32 %v13425_v33  ;;  %vm13574_vm11 = vmor %vm4639_vm1, %vm4640_vm14 }
 0x70e   :  { %v8090_v59 = vpop.eup %8089  ;;  %v7210_v41 = vmul.f32 -1.442695, %v3729_v21  ;;  %8099 = vpow2.f32 %v7213_v15  ;;  %v4658_v1 = vand.u32 2147483647, %v13425_v33  ;;  %v4660_v7 = vand.u32 2147483648, %v13425_v33 }
 0x70f   :  { %v8092_v43 = vpop.eup %8091  ;;  %8101 = vrcp.f32 %v13547_v8  ;;  %v13568_v23 = vadd.f32 1.0, %v8086_v51  ;;  %v4653_v36 = vadd.f32 %v13481_v27, %v4652_v46  ;;  %vm4655_vm10 = vweird.f32 %v13481_v27 }
 0x710   :  { %v8094_v58 = vpop.eup %8093  ;;  %v4666_v21 = vsub.f32 1.0, %v4665_v60  ;;  %v3731_v15 = vadd.f32 %v13430_v17, %v15615_v32  ;;  %v4642_v51 = vsel %vm13574_vm11, %v13463_v49, %v4638_v53  ;;  %8103 = vrcp.f32 %v13562_v4  ;;  %vm13603_vm5 = vmor %vm4654_vm15, %vm4655_vm10 }
 0x711   :  { %v13586_v13 = vadd.f32 1.0, %v8084_v6  ;;  %v13588_v45 = vadd.f32 1.0, %v8094_v58  ;;  %v13590_v10 = vpop.eup %8095  ;;  %v4680_v46 = vmul.f32 %v13557_v12, %v13503_v0  ;;  %8105 = vpow2.f32 %v7210_v41 }
 0x712   :  { %v13594_v60 = vadd.f32 1.0, %v8092_v43  ;;  %v13597_v17 = vadd.f32 %v3569_v28, %v15565_v11  ;;  %vm13607_vm9 = vcmp.eq.f32.partialorder %v4658_v1, 8.507059e+37  ;;  %v4661_v53 = vor.u32 1.1754944e-38, %v4660_v7 }
 0x713   :  { %v13599_v9 = vpop.eup %8097  ;;  %v13611_v6 = vadd.f32 1.0, %v8090_v59  ;;  %8107 = vrcp.f32 %v13568_v23  ;;  %v4657_v28 = vsel %vm13603_vm5, %v13481_v27, %v4653_v36  ;;  %v4667_v33 = vmul.f32 %v13529_v24, %v4666_v21 }
 0x714   :  { %15967 = vst [vmem:[#allocation76_spill] sm:$0xff] %v13599_v9  ;;  %v8100_v41 = vpop.eup %8099  ;;  %v7211_v43 = vmul.f32 -1.442695, %v3731_v15  ;;  %8109 = vrcp.f32 %v13588_v45  ;;  %v4647_v1 = vsel %vm13549_vm4, %v4646_v3, %v4642_v51  ;;  %v13625_v59 = vmul.f32 %v13590_v10, %v13527_v35 }
 0x715   :  { %v13619_v57 = vpop.eup %8101  ;;  %8111 = vrcp.f32 %v13586_v13  ;;  %v13628_v7 = vadd.f32 1.0, %v8100_v41  ;;  %v4673_v27 = vand.u32 2147483647, %v13474_v14  ;;  %v4681_v36 = vsub.f32 1.0, %v4680_v46 }
 0x716   :  { %8113 = vrcp.f32 %v13594_v60  ;;  %v7150_v21 = vmul.f32 -1.442695, %v13597_v17  ;;  %v13633_v15 = vpop.eup %8103  ;;  %v4662_v3 = vsel %vm13607_vm9, %v4661_v53, %v4657_v28  ;;  %v13639_v2 = vmul.f32 %v13599_v9, %v13532_v38 }
 0x717   :  { %v4675_v51 = vand.u32 2147483648, %v13474_v14  ;;  %8115 = vrcp.f32 %v13611_v6  ;;  %v8106_v49 = vpop.eup %8105  ;;  %v4668_v46 = vadd.f32 %v13529_v24, %v4667_v33  ;;  %vm4670_vm7 = vweird.f32 %v13529_v24 }
 0x718   :  { %v4695_v41 = vmul.f32 %v13619_v57, %v13547_v8  ;;  %8117 = vpow2.f32 %v7211_v43  ;;  %v13651_v53 = vmul.f32 %v4647_v1, %v13287_v40  ;;  %v4688_v28 = vand.u32 2147483647, %v13503_v0 }
 0x719   :  { %v13647_v44 = vpop.eup %8107  ;;  %8119 = vrcp.f32 %v13628_v7  ;;  %vm4669_vm6 = vweird.f32 %v13474_v14  ;;  %v4682_v33 = vmul.f32 %v13557_v12, %v4681_v36  ;;  %v4690_v56 = vand.u32 2147483648, %v13503_v0 }
 0x71a   :  { %15972 = vst [vmem:[#allocation33_spill] sm:$0xff] %v13651_v53  ;;  %v13655_v5 = vpop.eup %8109  ;;  %8121 = vpow2.f32 %v7150_v21  ;;  %v13664_v40 = vmul.f32 %v4662_v3, %v13316_v30  ;;  %vm13668_vm8 = vmor %vm4669_vm6, %vm4670_vm7  ;;  %vm13672_vm0 = vcmp.eq.f32.partialorder %v4673_v27, 8.507059e+37  ;;  %v4676_v36 = vor.u32 1.1754944e-38, %v4675_v51 }
 0x71b   :  { %v13660_v43 = vpop.eup %8111  ;;  %v4672_v30 = vsel %vm13668_vm8, %v13529_v24, %v4668_v46  ;;  %vm4684_vm1 = vweird.f32 %v13503_v0  ;;  %v4696_v3 = vsub.f32 1.0, %v4695_v41  ;;  %vm13685_vm4 = vcmp.eq.f32.partialorder %v4688_v28, 8.507059e+37  ;;  %v3738_v28 = vpop.f32.mrf.mxu2 }
 0x71c   :  { %15973 = vst [vmem:[#allocation81_spill] sm:$0xff] %v13664_v40  ;;  %v13676_v63 = vpop.eup %8113  ;;  %v4705_v27 = vand.u32 2147483648, %v13547_v8  ;;  %v4725_v51 = vmul.f32 %v13647_v44, %v13568_v23  ;;  %v4740_v21 = vmul.f32 %v13655_v5, %v13588_v45  ;;  %v4683_v24 = vadd.f32 %v13557_v12, %v4682_v33 }
 0x71d   :  { %v13683_v58 = vpop.eup %8115  ;;  %vm4685_vm14 = vweird.f32 %v13557_v12  ;;  %v4691_v46 = vor.u32 1.1754944e-38, %v4690_v56  ;;  %v13696_v41 = vadd.f32 1.0, %v8106_v49  ;;  %v13702_v62 = vsel %vm13672_vm0, %v4676_v36, %v4672_v30 }
 0x71e   :  { %v8118_v20 = vpop.eup %8117  ;;  %v13706_v22 = vmul.f32 %v13633_v15, %v13562_v4  ;;  %vm4699_vm15 = vweird.f32 %v13547_v8  ;;  %v6005_v33 = vmul.f32 %v13676_v63, %v13594_v60  ;;  %v4697_v56 = vmul.f32 %v13619_v57, %v4696_v3  ;;  %vm13718_vm11 = vmor %vm4684_vm1, %vm4685_vm14 }
 0x71f   :  { %v13698_v1 = vpop.eup %8119  ;;  %v4703_v49 = vand.u32 2147483647, %v13547_v8  ;;  %v4710_v19 = vmul.f32 %v13683_v58, %v13611_v6  ;;  %v4720_v14 = vand.u32 2147483648, %v13611_v6  ;;  %v13722_v30 = vor.u32 1.1754944e-38, %v4705_v27 }
 0x720   :  { %v8122_v26 = vpop.eup %8121  ;;  %v4726_v54 = vsub.f32 1.0, %v4725_v51  ;;  %v4741_v16 = vsub.f32 1.0, %v4740_v21  ;;  %v3739_v50 = vadd.f32 %v3738_v28, %v15615_v32  ;;  %v4687_v3 = vsel %vm13718_vm11, %v13557_v12, %v4683_v24  ;;  %v3571_v24 = vpop.f32.mrf.mxu1 }
 0x721   :  { %8123 = vrcp.f32 %v13696_v41  ;;  %v13729_v42 = vadd.f32 1.0, %v8118_v20  ;;  %v6020_v0 = vmul.f32 %v13698_v1, %v13628_v7  ;;  %v13735_v29 = vmul.f32 %v13660_v43, %v13586_v13 }
 0x722   :  { %v4718_v27 = vand.u32 2147483647, %v13611_v6  ;;  %v6006_v21 = vsub.f32 1.0, %v6005_v33  ;;  %v13738_v51 = vadd.f32 1.0, %v8122_v26  ;;  %v13741_v28 = vadd.f32 %v13619_v57, %v4697_v56 }
 0x723   :  { %vm4700_vm10 = vweird.f32 %v13619_v57  ;;  %v4711_v12 = vsub.f32 1.0, %v4710_v19  ;;  %v13744_v20 = vor.u32 1.1754944e-38, %v4720_v14  ;;  %v13748_v36 = vsel %vm13685_vm4, %v4691_v46, %v4687_v3 }
 0x724   :  { %v4727_v31 = vmul.f32 %v13647_v44, %v4726_v54  ;;  %v4742_v48 = vmul.f32 %v13655_v5, %v4741_v16  ;;  %v7214_v33 = vmul.f32 -1.442695, %v3739_v50  ;;  %vm4715_vm5 = vweird.f32 %v13683_v58  ;;  %vm13757_vm7 = vmor %vm4699_vm15, %vm4700_vm10 }
 0x725   :  { %8125 = vrcp.f32 %v13729_v42  ;;  %vm4729_vm9 = vweird.f32 %v13568_v23  ;;  %v6021_v26 = vsub.f32 1.0, %v6020_v0  ;;  %vm4714_vm6 = vweird.f32 %v13611_v6 }
 0x726   :  { %v4733_v47 = vand.u32 2147483647, %v13568_v23  ;;  %v4735_v54 = vand.u32 2147483648, %v13568_v23  ;;  %v6007_v16 = vmul.f32 %v13676_v63, %v6006_v21  ;;  %8127 = vrcp.f32 %v13738_v51 }
 0x727   :  { %v13766_v50 = vpop.eup %8123  ;;  %v4712_v46 = vmul.f32 %v13683_v58, %v4711_v12  ;;  %vm4730_vm8 = vweird.f32 %v13647_v44  ;;  %v13775_v56 = vadd.f32 %v3571_v24, %v15565_v11  ;;  %v4728_v14 = vadd.f32 %v13647_v44, %v4727_v31  ;;  %v3740_v24 = vpop.f32.mrf.mxu2 }
 0x728   :  { %v4743_v3 = vadd.f32 %v13655_v5, %v4742_v48  ;;  %vm4745_vm0 = vweird.f32 %v13655_v5  ;;  %8129 = vpow2.f32 %v7214_v33  ;;  %v6015_v0 = vand.u32 2147483648, %v13594_v60  ;;  %vm13790_vm14 = vmor %vm4729_vm9, %vm4730_vm8  ;;  %v3574_v31 = vpop.f32.mrf.mxu1 }
 0x729   :  { %15984 = vst [vmem:[#allocation24_spill] sm:$0xff] %v13775_v56  ;;  %vm4744_vm1 = vweird.f32 %v13588_v45  ;;  %v4750_v21 = vand.u32 2147483648, %v13588_v45  ;;  %v6022_v12 = vmul.f32 %v13698_v1, %v6021_v26  ;;  %vm13784_vm4 = vcmp.eq.f32.partialorder %v4703_v49, 8.507059e+37 }
 0x72a   :  { %vm6010_vm15 = vweird.f32 %v13676_v63  ;;  %v4748_v48 = vand.u32 2147483647, %v13588_v45  ;;  %v6008_v33 = vadd.f32 %v13676_v63, %v6007_v16  ;;  %v4713_v49 = vadd.f32 %v13683_v58, %v4712_v46  ;;  %vm13811_vm8 = vmor %vm4744_vm1, %vm4745_vm0 }
 0x72b   :  { %v13797_v40 = vpop.eup %8125  ;;  %vm13800_vm11 = vcmp.eq.f32.partialorder %v4718_v27, 8.507059e+37  ;;  %vm13804_vm10 = vcmp.eq.f32.partialorder %v4733_v47, 8.507059e+37  ;;  %vm6009_vm9 = vweird.f32 %v13594_v60  ;;  %v6030_v16 = vand.u32 2147483648, %v13628_v7 }
 0x72c   :  { %v15233_v39 = vmov 1.0|1.0   ;;  %v13819_v46 = vpop.eup %8127  ;;  %v4732_v47 = vsel %vm13790_vm14, %v13647_v44, %v4728_v14  ;;  %v4747_v37 = vsel %vm13811_vm8, %v13655_v5, %v4743_v3  ;;  %v7151_v53 = vmul.f32 -1.442695, %v13775_v56  ;;  %vm13831_vm0 = vmor %vm6009_vm9, %vm6010_vm15 }
 0x72d   :  { %7231 = vmatmul.msk.bf16.vlgmr.msra.gmra.mxu3 %vm8482_vm2, %v15233_v39  ;;  %v6013_v38 = vand.u32 2147483647, %v13594_v60  ;;  %v4736_v9 = vor.u32 1.1754944e-38, %v4735_v54  ;;  %v4751_v39 = vor.u32 1.1754944e-38, %v4750_v21  ;;  %vm6025_vm2 = vweird.f32 %v13698_v1  ;;  %vm13845_vm14 = vmor %vm4714_vm6, %vm4715_vm5 }
 0x72e   :  { %v6023_v44 = vadd.f32 %v13698_v1, %v6022_v12  ;;  %v8130_v14 = vpop.eup %8129  ;;  %v6016_v45 = vor.u32 1.1754944e-38, %v6015_v0  ;;  %vm4749_vm1 = vcmp.eq.f32.partialorder %v4748_v48, 8.507059e+37  ;;  %v6012_v5 = vsel %vm13831_vm0, %v13676_v63, %v6008_v33 }
 0x72f   :  { %v6028_v60 = vand.u32 2147483647, %v13628_v7  ;;  %v4737_v3 = vsel %vm13804_vm10, %v4736_v9, %v4732_v47  ;;  %v4752_v21 = vsel %vm4749_vm1, %v4751_v39, %v4747_v37  ;;  %vm6024_vm15 = vweird.f32 %v13628_v7  ;;  %v7454_v7 = vld [vmem:[%s15060_s3 + $0xb8] sm:$0xff]  }
 0x730   :  { %v4755_v0 = vmul.f32 %v13819_v46, %v13738_v51  ;;  %v4717_v63 = vsel %vm13845_vm14, %v13683_v58, %v4713_v49  ;;  %vm13857_vm9 = vmor %vm6024_vm15, %vm6025_vm2  ;;  %v6031_v6 = vor.u32 1.1754944e-38, %v6030_v16  ;;  %8131 = vpow2.f32 %v7151_v53 }
 0x731   :  { %vm6014_vm5 = vcmp.eq.f32.partialorder %v6013_v38, 8.507059e+37  ;;  %v13861_v48 = vadd.f32 1.0, %v8130_v14  ;;  %v3741_v9 = vadd.f32 %v3740_v24, %v15615_v32  ;;  %v6027_v37 = vsel %vm13857_vm9, %v13698_v1, %v6023_v44 }
 0x732   :  { %v6017_v39 = vsel %vm6014_vm5, %v6016_v45, %v6012_v5  ;;  %v5975_v58 = vmul.f32 %v13766_v50, %v13696_v41  ;;  %v5040_v33 = vmul.f32 %v4737_v3, %v13470_v25  ;;  %v5041_v38 = vmul.f32 %v4752_v21, %v13506_v34  ;;  %v3743_v34 = vpop.f32.mrf.mxu2 }
 0x733   :  { %16002 = vst [vmem:[#allocation56_spill] sm:$0xff] %v13861_v48  ;;  %vm6029_vm6 = vcmp.eq.f32.partialorder %v6028_v60, 8.507059e+37  ;;  %v16003_v53 = vsel %vm13757_vm7, %v13619_v57, %v13741_v28  ;;  %v5990_v24 = vmul.f32 %v13797_v40, %v13729_v42  ;;  %v4756_v49 = vsub.f32 1.0, %v4755_v0  ;;  %v3576_v60 = vpop.f32.mrf.mxu1 }
 0x734   :  { %v4707_v1 = vsel %vm13784_vm4, %v13722_v30, %v16003_v53  ;;  %v6032_v23 = vsel %vm6029_vm6, %v6031_v6, %v6027_v37  ;;  %v4722_v25 = vsel %vm13800_vm11, %v13744_v20, %v4717_v63  ;;  %v6320_v16 = vmul.f32 %v6017_v39, %v5040_v33 }
 0x735   :  { %v6321_v47 = vmul.f32 %v6032_v23, %v5041_v38  ;;  %v7398_v19 = vunpack.c.l.bf16 %v7454_v7  ;;  %8133 = vrcp.f32 %v13861_v48  ;;  %v7215_v57 = vmul.f32 -1.442695, %v3741_v9 }
 0x736   :  { %v13889_v28 = vadd.f32 %v3574_v31, %v15565_v11  ;;  %v7399_v30 = vunpack.c.h.bf16 %v7454_v7  ;;  %v8132_v8 = vpop.eup %8131  ;;  %v13893_v27 = vmul.f32 %v13702_v62, %v13371_v55  ;;  %v5946_v44 = vsub.f32 1.0, %v13706_v22 }
 0x737   :  { %v5961_v20 = vsub.f32 1.0, %v13735_v29  ;;  %v5976_v26 = vsub.f32 1.0, %v5975_v58  ;;  %v13899_v14 = vmul.f32 %v13748_v36, %v13400_v52  ;;  %v13902_v45 = vmul.f32 %v4707_v1, %v13440_v61 }
 0x738   :  { %v4757_v31 = vmul.f32 %v13819_v46, %v4756_v49  ;;  %v3744_v5 = vadd.f32 %v3743_v34, %v15615_v32  ;;  %v13907_v62 = vmul.f32 %v4722_v25, %v13479_v18  ;;  %v5991_v55 = vsub.f32 1.0, %v5990_v24 }
 0x739   :  { %v6512_v54 = vmul.f32 %v7398_v19, %v6320_v16  ;;  %v6513_v3 = vmul.f32 %v7399_v30, %v6321_v47  ;;  %v4763_v21 = vand.u32 2147483647, %v13738_v51  ;;  %v4765_v0 = vand.u32 2147483648, %v13738_v51 }
 0x73a   :  { %8135 = vpow2.f32 %v7215_v57  ;;  %v7152_v52 = vmul.f32 -1.442695, %v13889_v28  ;;  %v13912_v61 = vadd.f32 1.0, %v8132_v8  ;;  %v13915_v36 = vadd.f32 %v3576_v60, %v15565_v11 }
 0x73b   :  { %v6555_v63 = vpack.c.bf16 %v6513_v3, %v6512_v54  ;;  %v5977_v12 = vmul.f32 %v13766_v50, %v5976_v26  ;;  %v13918_v18 = vpop.eup %8133  ;;  %v4758_v6 = vadd.f32 %v13819_v46, %v4757_v31  ;;  %vm4760_vm7 = vweird.f32 %v13819_v46 }
 0x73c   :  { %16004 = vst [vmem:[#allocation58_spill] sm:$0xff] %v13915_v36  ;;  %v7216_v9 = vmul.f32 -1.442695, %v3744_v5  ;;  %vm5980_vm4 = vweird.f32 %v13766_v50  ;;  %v16006_v39 = vmov 1.0|1.0   ;;  %vm5979_vm11 = vweird.f32 %v13696_v41 }
 0x73d   :  { %16005 = vst [vmem:[#allocation28_spill] sm:$0xff] %v13918_v18  ;;  %7233 = vmatmul.msk.bf16.vlgmr.msrb.gmra.mxu3 %vm8490_vm3, %v16006_v39  ;;  %v5978_v7 = vadd.f32 %v13766_v50, %v5977_v12  ;;  %v5983_v58 = vand.u32 2147483647, %v13696_v41  ;;  %v5985_v33 = vand.u32 2147483648, %v13696_v41  ;;  %vm4759_vm10 = vweird.f32 %v13738_v51  ;;  %vm13935_vm0 = vmor %vm5979_vm11, %vm5980_vm4 }
 0x73e   :  { %6592 = vmatpush.bf16.msra.mxu3 %v6555_v63  ;;  %vm13931_vm8 = vcmp.eq.f32.partialorder %v4763_v21, 8.507059e+37  ;;  %v4766_v53 = vor.u32 1.1754944e-38, %v4765_v0  ;;  %8137 = vpow2.f32 %v7152_v52  ;;  %vm13939_vm3 = vmor %vm4759_vm10, %vm4760_vm7  ;;  %v13945_v49 = vmul.f32 %v13918_v18, %v13861_v48  ;;  %v3745_v21 = vpop.f32.mrf.mxu2 }
 0x73f   :  { %8139 = vrcp.f32 %v13912_v61  ;;  %v7153_v41 = vmul.f32 -1.442695, %v13915_v36  ;;  %v5982_v51 = vsel %vm13935_vm0, %v13766_v50, %v5978_v7  ;;  %v4762_v25 = vsel %vm13939_vm3, %v13819_v46, %v4758_v6  ;;  %v7453_v46 = vld [vmem:[%s15060_s3 + $0xb0] sm:$0xff]  }
 0x740   :  { %16014 = vst [vmem:[#allocation67_spill] sm:$0xff] %v13945_v49  ;;  %v8136_v23 = vpop.eup %8135  ;;  %v4780_v34 = vand.u32 2147483648, %v13912_v61  ;;  %v5986_v16 = vor.u32 1.1754944e-38, %v5985_v33  ;;  %v5992_v47 = vmul.f32 %v13797_v40, %v5991_v55  ;;  %8141 = vpow2.f32 %v7216_v9 }
 0x741   :  { %vm5984_vm2 = vcmp.eq.f32.partialorder %v5983_v58, 8.507059e+37  ;;  %vm5995_vm1 = vweird.f32 %v13797_v40  ;;  %v5998_v19 = vand.u32 2147483647, %v13729_v42  ;;  %vm5994_vm14 = vweird.f32 %v13729_v42  ;;  %v3579_v58 = vpop.f32.mrf.mxu1 }
 0x742   :  { %v5987_v57 = vsel %vm5984_vm2, %v5986_v16, %v5982_v51  ;;  %v5993_v30 = vadd.f32 %v13797_v40, %v5992_v47  ;;  %v6000_v50 = vand.u32 2147483648, %v13729_v42  ;;  %v4767_v8 = vsel %vm13931_vm8, %v4766_v53, %v4762_v25  ;;  %vm5996_vm15 = vmor %vm5994_vm14, %vm5995_vm1 }
 0x743   :  { %v4778_v26 = vand.u32 2147483647, %v13912_v61  ;;  %v13968_v31 = vadd.f32 1.0, %v8136_v23  ;;  %8143 = vpow2.f32 %v7153_v41  ;;  %v5947_v42 = vmul.f32 %v13633_v15, %v5946_v44 }
 0x744   :  { %v8138_v5 = vpop.eup %8137  ;;  %v5997_v55 = vsel %vm5996_vm15, %v13797_v40, %v5993_v30  ;;  %v6001_v54 = vor.u32 1.1754944e-38, %v6000_v50  ;;  %vm5999_vm9 = vcmp.eq.f32.partialorder %v5998_v19, 8.507059e+37  ;;  %v6318_v0 = vmul.f32 %v5987_v57, %v13902_v45 }
 0x745   :  { %16015 = vst [vmem:[#allocation78_spill] sm:$0xff] %v13968_v31  ;;  %v13975_v3 = vpop.eup %8139  ;;  %v7394_v52 = vunpack.c.l.bf16 %v7453_v46  ;;  %v7395_v63 = vunpack.c.h.bf16 %v7453_v46  ;;  %v13978_v12 = vor.u32 1.1754944e-38, %v4780_v34  ;;  %v5948_v9 = vadd.f32 %v13633_v15, %v5947_v42 }
 0x746   :  { %v6002_v6 = vsel %vm5999_vm9, %v6001_v54, %v5997_v55  ;;  %vm5950_vm5 = vweird.f32 %v13633_v15  ;;  %v8142_v40 = vpop.eup %8141  ;;  %v13982_v37 = vadd.f32 1.0, %v8138_v5  ;;  %vm5949_vm6 = vweird.f32 %v13562_v4 }
 0x747   :  { %v6319_v22 = vmul.f32 %v6002_v6, %v13907_v62  ;;  %v5953_v44 = vand.u32 2147483647, %v13562_v4  ;;  %v13988_v45 = vmul.f32 %v4767_v8, %v13597_v17  ;;  %8145 = vrcp.f32 %v13968_v31  ;;  %vm13992_vm7 = vmor %vm5949_vm6, %vm5950_vm5 }
 0x748   :  { %v3746_v7 = vadd.f32 %v3745_v21, %v15615_v32  ;;  %v5955_v38 = vand.u32 2147483648, %v13562_v4  ;;  %v6510_v62 = vmul.f32 %v7394_v52, %v6318_v0  ;;  %v5952_v24 = vsel %vm13992_vm7, %v13633_v15, %v5948_v9  ;;  %v7452_v15 = vld [vmem:[%s15060_s3 + $0xa8] sm:$0xff]  }
 0x749   :  { %16016 = vst [vmem:[#allocation77_spill] sm:$0xff] %v13988_v45  ;;  %v8144_v53 = vpop.eup %8143  ;;  %v6511_v1 = vmul.f32 %v7395_v63, %v6319_v22  ;;  %v5962_v17 = vmul.f32 %v13660_v43, %v5961_v20  ;;  %vm5965_vm4 = vweird.f32 %v13660_v43  ;;  %v5968_v51 = vand.u32 2147483647, %v13586_v13 }
 0x74a   :  { %v5956_v41 = vor.u32 1.1754944e-38, %v5955_v38  ;;  %v5970_v23 = vand.u32 2147483648, %v13586_v13  ;;  %vm5954_vm11 = vcmp.eq.f32.partialorder %v5953_v44, 8.507059e+37  ;;  %vm5964_vm10 = vweird.f32 %v13586_v13  ;;  %v16024_v38 = vld [vmem:[#allocation79_spill] sm:$0xff] }
 0x74b   :  { %v6554_v25 = vpack.c.bf16 %v6511_v1, %v6510_v62  ;;  %v5963_v4 = vadd.f32 %v13660_v43, %v5962_v17  ;;  %v4770_v29 = vmul.f32 %v13975_v3, %v13912_v61  ;;  %v14014_v20 = vadd.f32 %v3579_v58, %v15565_v11  ;;  %vm5966_vm8 = vmor %vm5964_vm10, %vm5965_vm4  ;;  %v14050_v1 = vpop.f32.mrf.mxu2  ;;  %v16025_v17 = vld [vmem:[#allocation33_spill] sm:$0xff] }
 0x74c   :  { %v5957_v34 = vsel %vm5954_vm11, %v5956_v41, %v5952_v24  ;;  %v5971_v16 = vor.u32 1.1754944e-38, %v5970_v23  ;;  %vm5969_vm0 = vcmp.eq.f32.partialorder %v5968_v51, 8.507059e+37  ;;  %v16019_v13 = vsub.f32 1.0, %v13625_v59 }
 0x74d   :  { %6593 = vmatpush.bf16.msra.mxu3 %v6554_v25  ;;  %v5967_v47 = vsel %vm5966_vm8, %v13660_v43, %v5963_v4  ;;  %v6316_v19 = vmul.f32 %v5957_v34, %v13893_v27  ;;  %v14021_v30 = vpop.eup %8145  ;;  %v7390_v46 = vunpack.c.l.bf16 %v7452_v15  ;;  %v7391_v8 = vunpack.c.h.bf16 %v7452_v15  ;;  %v16026_v25 = vld [vmem:[#allocation51_spill] sm:$0xff]  ;;  %v16028_v15 = vld [vmem:[#allocation49_spill] sm:$0xff] }
 0x74e   :  { %v5917_v57 = vmul.f32 %v13590_v10, %v16019_v13  ;;  %16020 = vst [vmem:[#allocation85_spill] sm:$0xff] %v14021_v30  ;;  %v5972_v50 = vsel %vm5969_vm0, %v5971_v16, %v5967_v47  ;;  %vm5920_vm3 = vweird.f32 %v13590_v10  ;;  %8147 = vrcp.f32 %v13982_v37 }
 0x74f   :  { %v7217_v5 = vmul.f32 -1.442695, %v3746_v7  ;;  %v6317_v55 = vmul.f32 %v5972_v50, %v13899_v14  ;;  %v4793_v27 = vand.u32 2147483647, %v13982_v37  ;;  %vm5919_vm2 = vweird.f32 %v13527_v35  ;;  %v3581_v14 = vpop.f32.mrf.mxu1  ;;  %v16023_v7 = vld [vmem:[#allocation76_spill] sm:$0xff] }
 0x750   :  { %v5918_v43 = vadd.f32 %v13590_v10, %v5917_v57  ;;  %v5923_v59 = vand.u32 2147483647, %v13527_v35  ;;  %v5925_v54 = vand.u32 2147483648, %v13527_v35  ;;  %v4771_v42 = vsub.f32 1.0, %v4770_v29  ;;  %vm5921_vm1 = vmor %vm5919_vm2, %vm5920_vm3 }
 0x751   :  { %v4795_v21 = vand.u32 2147483648, %v13982_v37  ;;  %v14032_v0 = vadd.f32 1.0, %v8142_v40  ;;  %v7154_v52 = vmul.f32 -1.442695, %v14014_v20  ;;  %vm4775_vm14 = vweird.f32 %v13975_v3 }
 0x752   :  { %v6508_v63 = vmul.f32 %v7390_v46, %v6316_v19  ;;  %v6509_v6 = vmul.f32 %v7391_v8, %v6317_v55  ;;  %v5922_v9 = vsel %vm5921_vm1, %v13590_v10, %v5918_v43  ;;  %v5926_v22 = vor.u32 1.1754944e-38, %v5925_v54  ;;  %v7451_v10 = vld [vmem:[%s15060_s3 + $0xa0] sm:$0xff]   ;;  %v16032_v43 = vld [vmem:[#allocation81_spill] sm:$0xff]  ;;  %v16033_v54 = vld [vmem:[#allocation47_spill] sm:$0xff] }
 0x753   :  { %16021 = vst [vmem:[#allocation18_spill] sm:$0xff] %v14032_v0  ;;  %v14037_v44 = vadd.f32 1.0, %v8144_v53  ;;  %8149 = vpow2.f32 %v7217_v5  ;;  %vm5924_vm15 = vcmp.eq.f32.partialorder %v5923_v59, 8.507059e+37  ;;  %v16022_v35 = vsub.f32 1.0, %v13639_v2 }
 0x754   :  { %vm4774_vm9 = vweird.f32 %v13912_v61  ;;  %v6553_v58 = vpack.c.bf16 %v6509_v6, %v6508_v63  ;;  %v5927_v33 = vsel %vm5924_vm15, %v5926_v22, %v5922_v9  ;;  %vm5935_vm5 = vweird.f32 %v16023_v7  ;;  %v14048_v53 = vpop.eup %8147  ;;  %v16038_v22 = vld [vmem:[#allocation53_spill] sm:$0xff] }
 0x755   :  { %v5932_v40 = vmul.f32 %v16023_v7, %v16022_v35  ;;  %v5938_v62 = vand.u32 2147483647, %v16024_v38  ;;  %vm5934_vm6 = vweird.f32 %v16024_v38  ;;  %v5940_v24 = vand.u32 2147483648, %v16024_v38  ;;  %vm14107_vm1 = vmor %vm4774_vm9, %vm4775_vm14 }
 0x756   :  { %v6314_v41 = vmul.f32 %v5927_v33, %v16025_v17  ;;  %v4772_v51 = vmul.f32 %v13975_v3, %v4771_v42  ;;  %v14057_v23 = vor.u32 1.1754944e-38, %v4795_v21  ;;  %8151 = vpow2.f32 %v7154_v52  ;;  %6594 = vmatpush.bf16.msra.mxu3 %v6553_v58  ;;  %vm5936_vm7 = vmor %vm5934_vm6, %vm5935_vm5 }
 0x757   :  { %v5933_v2 = vadd.f32 %v16023_v7, %v5932_v40  ;;  %v16027_v4 = vsub.f32 1.0, %v16026_v25  ;;  %8153 = vrcp.f32 %v14032_v0  ;;  %v5941_v16 = vor.u32 1.1754944e-38, %v5940_v24  ;;  %v3584_v58 = vpop.f32.mrf.mxu1 }
 0x758   :  { %v7386_v47 = vunpack.c.l.bf16 %v7451_v10  ;;  %v14066_v19 = vmul.f32 %v14021_v30, %v13968_v31  ;;  %vm5939_vm4 = vcmp.eq.f32.partialorder %v5938_v62, 8.507059e+37  ;;  %v7387_v13 = vunpack.c.h.bf16 %v7451_v10 }
 0x759   :  { %v5887_v29 = vmul.f32 %v16028_v15, %v16027_v4  ;;  %v5937_v34 = vsel %vm5936_vm7, %v16023_v7, %v5933_v2  ;;  %v8150_v50 = vpop.eup %8149  ;;  %v14071_v46 = vmul.f32 %v14048_v53, %v13982_v37  ;;  %8155 = vrcp.f32 %v14037_v44 }
 0x75a   :  { %16029 = vst [vmem:[#allocation64_spill] sm:$0xff] %v14066_v19  ;;  %v5942_v8 = vsel %vm5939_vm4, %v5941_v16, %v5937_v34  ;;  %vm5890_vm11 = vweird.f32 %v16028_v15  ;;  %v4773_v5 = vadd.f32 %v13975_v3, %v4772_v51  ;;  %vm14078_vm10 = vcmp.eq.f32.partialorder %v4778_v26, 8.507059e+37  ;;  %v16036_v26 = vld [vmem:[#allocation75_spill] sm:$0xff] }
 0x75b   :  { %v5888_v57 = vadd.f32 %v16028_v15, %v5887_v29  ;;  %v6315_v59 = vmul.f32 %v5942_v8, %v16032_v43  ;;  %vm5889_vm8 = vweird.f32 %v16033_v54  ;;  %v5893_v42 = vand.u32 2147483647, %v16033_v54  ;;  %v14125_v29 = vpop.f32.mrf.mxu2 }
 0x75c   :  { %v14086_v21 = vadd.f32 %v3581_v14, %v15565_v11  ;;  %v6506_v52 = vmul.f32 %v7386_v47, %v6314_v41  ;;  %vm14088_vm0 = vmor %vm5889_vm8, %vm5890_vm11  ;;  %v5895_v6 = vand.u32 2147483648, %v16033_v54  ;;  %v16037_v9 = vsub.f32 1.0, %v16036_v26  ;;  %v8152_v7 = vpop.eup %8151  ;;  %v16039_v14 = vld [vmem:[#allocation46_spill] sm:$0xff]  ;;  %v7450_v41 = vld [vmem:[%s15060_s3 + $0x98] sm:$0xff]  }
 0x75d   :  { %v6507_v40 = vmul.f32 %v7387_v13, %v6315_v59  ;;  %v5892_v33 = vsel %vm14088_vm0, %v16028_v15, %v5888_v57  ;;  %vm5904_vm3 = vweird.f32 %v16039_v14  ;;  %vm5905_vm2 = vweird.f32 %v16038_v22  ;;  %v14101_v38 = vpop.eup %8153  ;;  %v16044_v13 = vld [vmem:[#allocation55_spill] sm:$0xff]  ;;  %v16045_v54 = vld [vmem:[#allocation40_spill] sm:$0xff] }
 0x75e   :  { %v5902_v35 = vmul.f32 %v16038_v22, %v16037_v9  ;;  %16040 = vst [vmem:[#allocation84_spill] sm:$0xff] %v14101_v38  ;;  %v5896_v10 = vor.u32 1.1754944e-38, %v5895_v6  ;;  %v5908_v24 = vand.u32 2147483647, %v16039_v14  ;;  %v5910_v17 = vand.u32 2147483648, %v16039_v14  ;;  %vm5906_vm15 = vmor %vm5904_vm3, %vm5905_vm2  ;;  %v16048_v9 = vld [vmem:[#allocation63_spill] sm:$0xff] }
 0x75f   :  { %v4777_v51 = vsel %vm14107_vm1, %v13975_v3, %v4773_v5  ;;  %v4810_v61 = vand.u32 2147483648, %v14037_v44  ;;  %v6552_v25 = vpack.c.bf16 %v6507_v40, %v6506_v52  ;;  %vm5894_vm14 = vcmp.eq.f32.partialorder %v5893_v42, 8.507059e+37  ;;  %v14121_v4 = vpop.eup %8155  ;;  %v16047_v42 = vld [vmem:[#allocation57_spill] sm:$0xff] }
 0x760   :  { %v5903_v2 = vadd.f32 %v16038_v22, %v5902_v35  ;;  %v14123_v15 = vadd.f32 1.0, %v8150_v50  ;;  %v5897_v34 = vsel %vm5894_vm14, %v5896_v10, %v5892_v33  ;;  %v5911_v47 = vor.u32 1.1754944e-38, %v5910_v17  ;;  %v16050_v10 = vld [vmem:[#allocation48_spill] sm:$0xff] }
 0x761   :  { %6595 = vmatpush.bf16.msra.mxu3 %v6552_v25  ;;  %vm5909_vm9 = vcmp.eq.f32.partialorder %v5908_v24, 8.507059e+37  ;;  %v6312_v57 = vmul.f32 %v5897_v34, %v16044_v13  ;;  %v7382_v3 = vunpack.c.l.bf16 %v7450_v41  ;;  %v7383_v8 = vunpack.c.h.bf16 %v7450_v41  ;;  %v16053_v24 = vld [vmem:[#allocation43_spill] sm:$0xff]  ;;  %v16056_v34 = vld [vmem:[#allocation52_spill] sm:$0xff] }
 0x762   :  { %16043 = vst [vmem:[#allocation25_spill] sm:$0xff] %v14123_v15  ;;  %v5907_v16 = vsel %vm5906_vm15, %v16038_v22, %v5903_v2  ;;  %v7155_v43 = vmul.f32 -1.442695, %v14086_v21  ;;  %v16046_v50 = vsub.f32 1.0, %v16045_v54  ;;  %v4786_v6 = vsub.f32 1.0, %v14071_v46  ;;  %v16055_v41 = vld [vmem:[#allocation39_spill] sm:$0xff] }
 0x763   :  { %v5912_v59 = vsel %vm5909_vm9, %v5911_v47, %v5907_v16  ;;  %v14137_v26 = vadd.f32 %v3584_v58, %v15565_v11  ;;  %v14143_v35 = vsel %vm14078_vm10, %v13978_v12, %v4777_v51  ;;  %v14145_v40 = vor.u32 1.1754944e-38, %v4810_v61  ;;  %v3586_v61 = vpop.f32.mrf.mxu1 }
 0x764   :  { %v5857_v52 = vmul.f32 %v16047_v42, %v16046_v50  ;;  %v6313_v22 = vmul.f32 %v5912_v59, %v16048_v9  ;;  %16049 = vst [vmem:[#allocation32_spill] sm:$0xff] %v14143_v35  ;;  %8157 = vrcp.f32 %v14123_v15  ;;  %v14148_v33 = vadd.f32 1.0, %v8152_v7  ;;  %v14179_v59 = vpop.f32.mrf.mxu2  ;;  %v16062_v9 = vld [vmem:[#allocation35_spill] sm:$0xff] }
 0x765   :  { %v3749_v14 = vadd.f32 %v14050_v1, %v15615_v32  ;;  %v6504_v46 = vmul.f32 %v7382_v3, %v6312_v57  ;;  %8159 = vpow2.f32 %v7155_v43  ;;  %vm5859_vm5 = vweird.f32 %v16050_v10  ;;  %v7449_v3 = vld [vmem:[%s15060_s3 + $0x90] sm:$0xff]  }
 0x766   :  { %v6505_v62 = vmul.f32 %v7383_v8, %v6313_v22  ;;  %v5858_v58 = vadd.f32 %v16047_v42, %v5857_v52  ;;  %vm5860_vm6 = vweird.f32 %v16047_v42  ;;  %v5863_v12 = vand.u32 2147483647, %v16050_v10 }
 0x767   :  { %v7156_v55 = vmul.f32 -1.442695, %v14137_v26  ;;  %vm14157_vm7 = vmor %vm5859_vm5, %vm5860_vm6  ;;  %v5865_v1 = vand.u32 2147483648, %v16050_v10  ;;  %v16054_v17 = vsub.f32 1.0, %v16053_v24  ;;  %8161 = vrcp.f32 %v14148_v33 }
 0x768   :  { %v6551_v2 = vpack.c.bf16 %v6505_v62, %v6504_v46  ;;  %v5862_v25 = vsel %vm14157_vm7, %v16047_v42, %v5858_v58  ;;  %vm5874_vm4 = vweird.f32 %v16056_v34  ;;  %vm5875_vm11 = vweird.f32 %v16055_v41  ;;  %v16060_v42 = vld [vmem:[#allocation27_spill] sm:$0xff] }
 0x769   :  { %v5872_v51 = vmul.f32 %v16055_v41, %v16054_v17  ;;  %v5866_v16 = vor.u32 1.1754944e-38, %v5865_v1  ;;  %v5878_v13 = vand.u32 2147483647, %v16056_v34  ;;  %v5880_v57 = vand.u32 2147483648, %v16056_v34  ;;  %vm14181_vm8 = vmor %vm5874_vm4, %vm5875_vm11 }
 0x76a   :  { %6596 = vmatpush.bf16.msra.mxu3 %v6551_v2  ;;  %v14177_v8 = vpop.eup %8157  ;;  %v7218_v43 = vmul.f32 -1.442695, %v3749_v14  ;;  %vm5864_vm10 = vcmp.eq.f32.partialorder %v5863_v12, 8.507059e+37  ;;  %v14186_v50 = vadd.f32 %v3586_v61, %v15565_v11  ;;  %v16061_v52 = vsub.f32 1.0, %v16060_v42  ;;  %v16063_v12 = vld [vmem:[#allocation21_spill] sm:$0xff] }
 0x76b   :  { %v5873_v47 = vadd.f32 %v16055_v41, %v5872_v51  ;;  %16057 = vst [vmem:[#allocation72_spill] sm:$0xff] %v14177_v8  ;;  %v4787_v46 = vmul.f32 %v14048_v53, %v4786_v6  ;;  %8163 = vpow2.f32 %v7156_v55  ;;  %v5867_v62 = vsel %vm5864_vm10, %v5866_v16, %v5862_v25  ;;  %v8160_v58 = vpop.eup %8159  ;;  %v16065_v25 = vld [vmem:[#allocation44_spill] sm:$0xff]  ;;  %v16066_v16 = vld [vmem:[#allocation66_spill] sm:$0xff] }
 0x76c   :  { %v5827_v22 = vmul.f32 %v16062_v9, %v16061_v52  ;;  %v5881_v10 = vor.u32 1.1754944e-38, %v5880_v57  ;;  %v6310_v2 = vmul.f32 %v5867_v62, %v16063_v12  ;;  %v7378_v7 = vunpack.c.l.bf16 %v7449_v3  ;;  %v16071_v52 = vld [vmem:[#allocation45_spill] sm:$0xff] }
 0x76d   :  { %v5877_v14 = vsel %vm14181_vm8, %v16055_v41, %v5873_v47  ;;  %v7379_v1 = vunpack.c.h.bf16 %v7449_v3  ;;  %vm5879_vm0 = vcmp.eq.f32.partialorder %v5878_v13, 8.507059e+37  ;;  %v7157_v24 = vmul.f32 -1.442695, %v14186_v50  ;;  %v14199_v6 = vpop.eup %8161  ;;  %v3589_v3 = vpop.f32.mrf.mxu1 }
 0x76e   :  { %v5828_v17 = vadd.f32 %v16062_v9, %v5827_v22  ;;  %vm5830_vm3 = vweird.f32 %v16062_v9  ;;  %v14203_v55 = vmul.f32 %v14101_v38, %v14032_v0  ;;  %v14207_v41 = vmul.f32 %v14121_v4, %v14037_v44 }
 0x76f   :  { %8165 = vpow2.f32 %v7218_v43  ;;  %v5882_v51 = vsel %vm5879_vm0, %v5881_v10, %v5877_v14  ;;  %v3751_v61 = vadd.f32 %v14125_v29, %v15615_v32  ;;  %vm5829_vm2 = vweird.f32 %v16066_v16  ;;  %v16069_v43 = vld [vmem:[#allocation29_spill] sm:$0xff] }
 0x770   :  { %16064 = vst [vmem:[#allocation80_spill] sm:$0xff] %v14203_v55  ;;  %v6311_v34 = vmul.f32 %v5882_v51, %v16065_v25  ;;  %v5833_v47 = vand.u32 2147483647, %v16066_v16  ;;  %v14214_v13 = vadd.f32 1.0, %v8160_v58  ;;  %v6502_v57 = vmul.f32 %v7378_v7, %v6310_v2  ;;  %vm14216_vm1 = vmor %vm5829_vm2, %vm5830_vm3  ;;  %v16072_v2 = vld [vmem:[#allocation42_spill] sm:$0xff] }
 0x771   :  { %v5835_v54 = vand.u32 2147483648, %v16066_v16  ;;  %v16070_v42 = vsub.f32 1.0, %v16069_v43  ;;  %v8164_v29 = vpop.eup %8163  ;;  %8167 = vpow2.f32 %v7157_v24  ;;  %v5832_v14 = vsel %vm14216_vm1, %v16062_v9, %v5828_v17 }
 0x772   :  { %v6503_v62 = vmul.f32 %v7379_v1, %v6311_v34  ;;  %vm5845_vm14 = vweird.f32 %v16071_v52  ;;  %v14230_v58 = vmul.f32 %v14199_v6, %v14148_v33  ;;  %v5850_v7 = vand.u32 2147483648, %v16072_v2 }
 0x773   :  { %v5842_v22 = vmul.f32 %v16071_v52, %v16070_v42  ;;  %v5836_v10 = vor.u32 1.1754944e-38, %v5835_v54  ;;  %vm5834_vm15 = vcmp.eq.f32.partialorder %v5833_v47, 8.507059e+37  ;;  %vm5844_vm9 = vweird.f32 %v16072_v2  ;;  %v7448_v47 = vld [vmem:[%s15060_s3 + $0x88] sm:$0xff]  }
 0x774   :  { %v6550_v51 = vpack.c.bf16 %v6503_v62, %v6502_v57  ;;  %v5848_v1 = vand.u32 2147483647, %v16072_v2  ;;  %v14237_v9 = vadd.f32 %v14048_v53, %v4787_v46  ;;  %v7219_v25 = vmul.f32 -1.442695, %v3751_v61  ;;  %vm14240_vm5 = vmor %vm5844_vm9, %vm5845_vm14  ;;  %v3755_v57 = vpop.f32.mrf.mxu2  ;;  %v16075_v61 = vld [vmem:[#allocation31_spill] sm:$0xff]  ;;  %v16078_v2 = vld [vmem:[#allocation54_spill] sm:$0xff] }
 0x775   :  { %v5843_v12 = vadd.f32 %v16071_v52, %v5842_v22  ;;  %v8166_v24 = vpop.eup %8165  ;;  %v5837_v34 = vsel %vm5834_vm15, %v5836_v10, %v5832_v14  ;;  %8169 = vrcp.f32 %v14214_v13  ;;  %v14248_v54 = vadd.f32 1.0, %v8164_v29  ;;  %v16076_v14 = vld [vmem:[#allocation71_spill] sm:$0xff]  ;;  %v3591_v5 = vpop.f32.mrf.mxu1 }
 0x776   :  { %6597 = vmatpush.bf16.msra.mxu3 %v6550_v51  ;;  %v6308_v43 = vmul.f32 %v5837_v34, %v16075_v61  ;;  %v4816_v22 = vsub.f32 1.0, %v14230_v58  ;;  %v5851_v62 = vor.u32 1.1754944e-38, %v5850_v7  ;;  %v16077_v10 = vsub.f32 1.0, %v16076_v14  ;;  %v16079_v58 = vld [vmem:[#allocation23_spill] sm:$0xff]  ;;  %v16085_v14 = vld [vmem:[#allocation17_spill] sm:$0xff] }
 0x777   :  { %v5847_v46 = vsel %vm14240_vm5, %v16071_v52, %v5843_v12  ;;  %v8168_v60 = vpop.eup %8167  ;;  %vm5849_vm6 = vcmp.eq.f32.partialorder %v5848_v1, 8.507059e+37  ;;  %v7374_v29 = vunpack.c.l.bf16 %v7448_v47  ;;  %v7375_v17 = vunpack.c.h.bf16 %v7448_v47  ;;  %v16080_v1 = vld [vmem:[#allocation26_spill] sm:$0xff] }
 0x778   :  { %v5797_v63 = vmul.f32 %v16078_v2, %v16077_v10  ;;  %vm5800_vm7 = vweird.f32 %v16078_v2  ;;  %v14260_v51 = vadd.f32 1.0, %v8166_v24  ;;  %8171 = vpow2.f32 %v7219_v25 }
 0x779   :  { %v3754_v52 = vadd.f32 %v14179_v59, %v15615_v32  ;;  %v5852_v12 = vsel %vm5849_vm6, %v5851_v62, %v5847_v46  ;;  %vm4790_vm4 = vweird.f32 %v14048_v53  ;;  %8173 = vrcp.f32 %v14248_v54  ;;  %v16083_v62 = vld [vmem:[#allocation20_spill] sm:$0xff] }
 0x77a   :  { %v6309_v7 = vmul.f32 %v5852_v12, %v16079_v58  ;;  %v5798_v34 = vadd.f32 %v16078_v2, %v5797_v63  ;;  %vm5799_vm11 = vweird.f32 %v16080_v1  ;;  %v14269_v16 = vadd.f32 1.0, %v8168_v60  ;;  %v16086_v58 = vld [vmem:[#allocation30_spill] sm:$0xff] }
 0x77b   :  { %v3756_v24 = vadd.f32 %v3755_v57, %v15615_v32  ;;  %vm14272_vm10 = vmor %vm5799_vm11, %vm5800_vm7  ;;  %v5803_v59 = vand.u32 2147483647, %v16080_v1  ;;  %v5805_v47 = vand.u32 2147483648, %v16080_v1  ;;  %v14278_v46 = vpop.eup %8169  ;;  %vm4789_vm8 = vweird.f32 %v13982_v37 }
 0x77c   :  { %v6500_v61 = vmul.f32 %v7374_v29, %v6308_v43  ;;  %v6501_v63 = vmul.f32 %v7375_v17, %v6309_v7  ;;  %v5802_v60 = vsel %vm14272_vm10, %v16078_v2, %v5798_v34  ;;  %v16084_v57 = vsub.f32 1.0, %v16083_v62  ;;  %v7447_v43 = vld [vmem:[%s15060_s3 + $0x80] sm:$0xff]   ;;  %vm14338_vm7 = vmor %vm4789_vm8, %vm4790_vm4 }
 0x77d   :  { %v5806_v12 = vor.u32 1.1754944e-38, %v5805_v47  ;;  %vm5814_vm0 = vweird.f32 %v16086_v58  ;;  %vm5815_vm3 = vweird.f32 %v16085_v14  ;;  %v5818_v1 = vand.u32 2147483647, %v16086_v58 }
 0x77e   :  { %v5812_v10 = vmul.f32 %v16085_v14, %v16084_v57  ;;  %v6549_v17 = vpack.c.bf16 %v6501_v63, %v6500_v61  ;;  %vm5804_vm2 = vcmp.eq.f32.partialorder %v5803_v59, 8.507059e+37  ;;  %v5820_v2 = vand.u32 2147483648, %v16086_v58  ;;  %v8172_v7 = vpop.eup %8171  ;;  %vm14298_vm1 = vmor %vm5814_vm0, %vm5815_vm3  ;;  %v3758_v57 = vpop.f32.mrf.mxu2 }
 0x77f   :  { %v4830_v34 = vmul.f32 %v14278_v46, %v14214_v13  ;;  %v7220_v25 = vmul.f32 -1.442695, %v3754_v52  ;;  %8175 = vrcp.f32 %v14269_v16  ;;  %v5807_v47 = vsel %vm5804_vm2, %v5806_v12, %v5802_v60  ;;  %v14302_v61 = vpop.eup %8173  ;;  %v16091_v60 = vld [vmem:[#allocation50_spill] sm:$0xff] }
 0x780   :  { %v5813_v29 = vadd.f32 %v16085_v14, %v5812_v10  ;;  %vm14306_vm14 = vcmp.eq.f32.partialorder %v4793_v27, 8.507059e+37  ;;  %vm4805_vm15 = vweird.f32 %v14121_v4  ;;  %6598 = vmatpush.bf16.msra.mxu3 %v6549_v17  ;;  %v5821_v63 = vor.u32 1.1754944e-38, %v5820_v2  ;;  %v16092_v2 = vld [vmem:[#allocation19_spill] sm:$0xff] }
 0x781   :  { %v6306_v10 = vmul.f32 %v5807_v47, %v16091_v60  ;;  %v7370_v12 = vunpack.c.l.bf16 %v7447_v43  ;;  %vm5819_vm9 = vcmp.eq.f32.partialorder %v5818_v1, 8.507059e+37  ;;  %v7371_v58 = vunpack.c.h.bf16 %v7447_v43 }
 0x782   :  { %v5817_v52 = vsel %vm14298_vm1, %v16085_v14, %v5813_v29  ;;  %v14316_v42 = vadd.f32 %v3589_v3, %v15565_v11  ;;  %v14319_v27 = vadd.f32 %v3591_v5, %v15565_v11  ;;  %vm4804_vm5 = vweird.f32 %v14037_v44 }
 0x783   :  { %v4817_v17 = vmul.f32 %v14199_v6, %v4816_v22  ;;  %vm4819_vm6 = vweird.f32 %v14148_v33  ;;  %v7221_v62 = vmul.f32 -1.442695, %v3756_v24  ;;  %v5822_v14 = vsel %vm5819_vm9, %v5821_v63, %v5817_v52  ;;  %vm14395_vm0 = vmor %vm4804_vm5, %vm4805_vm15 }
 0x784   :  { %8177 = vrcp.f32 %v14260_v51  ;;  %v4831_v29 = vsub.f32 1.0, %v4830_v34  ;;  %v6307_v1 = vmul.f32 %v5822_v14, %v16092_v2  ;;  %v7158_v43 = vmul.f32 -1.442695, %v14316_v42 }
 0x785   :  { %v16093_v3 = vsub.f32 1.0, %v14207_v41  ;;  %v4823_v47 = vand.u32 2147483647, %v14148_v33  ;;  %8179 = vpow2.f32 %v7220_v25  ;;  %v7159_v22 = vmul.f32 -1.442695, %v14319_v27  ;;  %v14332_v60 = vpop.eup %8175 }
 0x786   :  { %v4825_v34 = vand.u32 2147483648, %v14148_v33  ;;  %v6498_v41 = vmul.f32 %v7370_v12, %v6306_v10  ;;  %v6499_v52 = vmul.f32 %v7371_v58, %v6307_v1  ;;  %8181 = vpow2.f32 %v7158_v43  ;;  %v3594_v10 = vpop.f32.mrf.mxu1 }
 0x787   :  { %v4802_v5 = vmul.f32 %v14121_v4, %v16093_v3  ;;  %v4792_v25 = vsel %vm14338_vm7, %v14048_v53, %v14237_v9  ;;  %v4818_v63 = vadd.f32 %v14199_v6, %v4817_v17  ;;  %vm4820_vm11 = vweird.f32 %v14199_v6  ;;  %v3760_v3 = vpop.f32.mrf.mxu2 }
 0x788   :  { %8183 = vpow2.f32 %v7221_v62  ;;  %v4832_v37 = vmul.f32 %v14278_v46, %v4831_v29  ;;  %v6548_v14 = vpack.c.bf16 %v6499_v52, %v6498_v41  ;;  %v3759_v2 = vadd.f32 %v3758_v57, %v15615_v32  ;;  %vm14383_vm8 = vmor %vm4819_vm6, %vm4820_vm11 }
 0x789   :  { %8185 = vpow2.f32 %v7159_v22  ;;  %v4803_v12 = vadd.f32 %v14121_v4, %v4802_v5  ;;  %v14352_v58 = vadd.f32 1.0, %v8172_v7  ;;  %v3761_v1 = vadd.f32 %v3760_v3, %v15615_v32 }
 0x78a   :  { %v14356_v53 = vadd.f32 %v3594_v10, %v15565_v11  ;;  %v14358_v9 = vpop.eup %8177  ;;  %v4797_v17 = vsel %vm14306_vm14, %v14057_v23, %v4792_v25  ;;  %vm14363_vm4 = vcmp.eq.f32.partialorder %v4823_v47, 8.507059e+37  ;;  %v4826_v62 = vor.u32 1.1754944e-38, %v4825_v34  ;;  %6599 = vmatpush.bf16.msra.mxu3 %v6548_v14 }
 0x78b   :  { %16096 = vst [vmem:[#allocation36_spill] sm:$0xff] %v14352_v58  ;;  %v4845_v7 = vmul.f32 %v14302_v61, %v14248_v54  ;;  %v8180_v29 = vpop.eup %8179  ;;  %v16099_v43 = vand.u32 2147483647, %v14037_v44  ;;  %v14377_v59 = vmul.f32 %v14177_v8, %v14123_v15  ;;  %v4840_v47 = vand.u32 2147483648, %v14214_v13 }
 0x78c   :  { %v4860_v22 = vmul.f32 %v14332_v60, %v14269_v16  ;;  %v7160_v24 = vmul.f32 -1.442695, %v14356_v53  ;;  %v8182_v34 = vpop.eup %8181  ;;  %v4822_v33 = vsel %vm14383_vm8, %v14199_v6, %v4818_v63  ;;  %v4833_v52 = vadd.f32 %v14278_v46, %v4832_v37 }
 0x78d   :  { %vm14371_vm10 = vcmp.eq.f32.partialorder %v16099_v43, 8.507059e+37  ;;  %16102 = vst [vmem:[#allocation59_spill] sm:$0xff] %v14377_v59  ;;  %vm4835_vm3 = vweird.f32 %v14278_v46  ;;  %v7222_v25 = vmul.f32 -1.442695, %v3759_v2  ;;  %v4807_v3 = vsel %vm14395_vm0, %v14121_v4, %v4803_v12  ;;  %7235 = vmatmul.msk.bf16.vlgmr.msra.gmra.mxu3 %vm8462_vm12, %v16006_v39 }
 0x78e   :  { %v8184_v14 = vpop.eup %8183  ;;  %vm4834_vm2 = vweird.f32 %v14214_v13  ;;  %8187 = vrcp.f32 %v14352_v58  ;;  %v7223_v44 = vmul.f32 -1.442695, %v3761_v1  ;;  %v4838_v63 = vand.u32 2147483647, %v14214_v13 }
 0x78f   :  { %v8186_v6 = vpop.eup %8185  ;;  %v4846_v37 = vsub.f32 1.0, %v4845_v7  ;;  %v14413_v43 = vadd.f32 1.0, %v8182_v34  ;;  %8189 = vpow2.f32 %v7160_v24  ;;  %v4827_v2 = vsel %vm14363_vm4, %v4826_v62, %v4822_v33  ;;  %vm14423_vm1 = vmor %vm4834_vm2, %vm4835_vm3  ;;  %v3763_v62 = vpop.f32.mrf.mxu2 }
 0x790   :  { %v14419_v4 = vmul.f32 %v14358_v9, %v14260_v51  ;;  %v4841_v1 = vor.u32 1.1754944e-38, %v4840_v47  ;;  %v4861_v23 = vsub.f32 1.0, %v4860_v22  ;;  %v4837_v13 = vsel %vm14423_vm1, %v14278_v46, %v4833_v52  ;;  %v3596_v24 = vpop.f32.mrf.mxu1 }
 0x791   :  { %v14430_v7 = vadd.f32 1.0, %v8180_v29  ;;  %8191 = vpow2.f32 %v7222_v25  ;;  %v14432_v57 = vadd.f32 1.0, %v8186_v6  ;;  %v14434_v34 = vadd.f32 1.0, %v8184_v14 }
 0x792   :  { %8193 = vpow2.f32 %v7223_v44  ;;  %v3764_v41 = vadd.f32 %v3763_v62, %v15615_v32  ;;  %v14438_v33 = vadd.f32 %v3596_v24, %v15565_v11  ;;  %v14441_v47 = vmul.f32 %v4797_v17, %v13889_v28 }
 0x793   :  { %vm4839_vm12 = vcmp.eq.f32.partialorder %v4838_v63, 8.507059e+37  ;;  %v4847_v46 = vmul.f32 %v14302_v61, %v4846_v37  ;;  %8195 = vrcp.f32 %v14413_v43  ;;  %v4862_v25 = vmul.f32 %v14332_v60, %v4861_v23 }
 0x794   :  { %16110 = vst [vmem:[#allocation87_spill] sm:$0xff] %v14441_v47  ;;  %v14445_v29 = vpop.eup %8187  ;;  %v4842_v52 = vsel %vm4839_vm12, %v4841_v1, %v4837_v13  ;;  %8197 = vrcp.f32 %v14432_v57  ;;  %v14453_v28 = vsel %vm14371_vm10, %v14145_v40, %v4807_v3  ;;  %v14456_v17 = vmul.f32 %v4827_v2, %v14014_v20 }
 0x795   :  { %v8190_v14 = vpop.eup %8189  ;;  %16111 = vst [vmem:[#allocation86_spill] sm:$0xff] %v14453_v28  ;;  %8199 = vrcp.f32 %v14430_v7  ;;  %v7161_v44 = vmul.f32 -1.442695, %v14438_v33  ;;  %v7224_v63 = vmul.f32 -1.442695, %v3764_v41  ;;  %v14465_v12 = vmul.f32 %v4842_v52, %v14086_v21 }
 0x796   :  { %16112 = vst [vmem:[#allocation82_spill] sm:$0xff] %v14456_v17  ;;  %8201 = vrcp.f32 %v14434_v34  ;;  %v14462_v6 = vadd.f32 1.0, %v8190_v14  ;;  %v14469_v40 = vmul.f32 %v14445_v29, %v14352_v58  ;;  %v4848_v20 = vadd.f32 %v14302_v61, %v4847_v46 }
 0x797   :  { %v8192_v37 = vpop.eup %8191  ;;  %16113 = vst [vmem:[#allocation65_spill] sm:$0xff] %v14465_v12  ;;  %vm4850_vm14 = vweird.f32 %v14302_v61  ;;  %v4855_v3 = vand.u32 2147483648, %v14248_v54  ;;  %v4863_v2 = vadd.f32 %v14332_v60, %v4862_v25  ;;  %vm4865_vm15 = vweird.f32 %v14332_v60  ;;  %v3765_v13 = vpop.f32.mrf.mxu2 }
 0x798   :  { %v8194_v5 = vpop.eup %8193  ;;  %8203 = vrcp.f32 %v14462_v6  ;;  %vm4849_vm9 = vweird.f32 %v14248_v54  ;;  %v4853_v21 = vand.u32 2147483647, %v14248_v54  ;;  %v4870_v23 = vand.u32 2147483648, %v14269_v16  ;;  %v3599_v62 = vpop.f32.mrf.mxu1 }
 0x799   :  { %v14477_v1 = vpop.eup %8195  ;;  %8205 = vpow2.f32 %v7161_v44  ;;  %vm14484_vm5 = vmor %vm4849_vm9, %vm4850_vm14  ;;  %vm4864_vm6 = vweird.f32 %v14269_v16  ;;  %v4868_v46 = vand.u32 2147483647, %v14269_v16  ;;  %v14490_v52 = vadd.f32 1.0, %v8192_v37 }
 0x79a   :  { %v14482_v24 = vpop.eup %8197  ;;  %8207 = vpow2.f32 %v7224_v63  ;;  %v4852_v14 = vsel %vm14484_vm5, %v14302_v61, %v4848_v20  ;;  %vm14500_vm7 = vmor %vm4864_vm6, %vm4865_vm15  ;;  %v3766_v22 = vadd.f32 %v3765_v13, %v15615_v32  ;;  %v14506_v16 = vadd.f32 %v3599_v62, %v15565_v11 }
 0x79b   :  { %v14492_v25 = vpop.eup %8199  ;;  %v4856_v37 = vor.u32 1.1754944e-38, %v4855_v3  ;;  %v4867_v54 = vsel %vm14500_vm7, %v14332_v60, %v4863_v2  ;;  %v4875_v61 = vmul.f32 %v14477_v1, %v14413_v43  ;;  %v14515_v20 = vadd.f32 1.0, %v8194_v5 }
 0x79c   :  { %v14508_v63 = vpop.eup %8201  ;;  %vm4854_vm11 = vcmp.eq.f32.partialorder %v4853_v21, 8.507059e+37  ;;  %v4871_v41 = vor.u32 1.1754944e-38, %v4870_v23  ;;  %v4890_v13 = vmul.f32 %v14482_v24, %v14432_v57  ;;  %v7225_v10 = vmul.f32 -1.442695, %v3766_v22 }
 0x79d   :  { %v4857_v39 = vsel %vm4854_vm11, %v4856_v37, %v4852_v14  ;;  %v14523_v3 = vmul.f32 %v14492_v25, %v14430_v7  ;;  %vm4869_vm4 = vcmp.eq.f32.partialorder %v4868_v46, 8.507059e+37  ;;  %8209 = vrcp.f32 %v14490_v52 }
 0x79e   :  { %v14519_v62 = vpop.eup %8203  ;;  %v4872_v2 = vsel %vm4869_vm4, %v4871_v41, %v4867_v54  ;;  %v14528_v5 = vmul.f32 %v14508_v63, %v14434_v34  ;;  %v7162_v22 = vmul.f32 -1.442695, %v14506_v16  ;;  %v4876_v14 = vsub.f32 1.0, %v4875_v61 }
 0x79f   :  { %v8206_v60 = vpop.eup %8205  ;;  %v4905_v21 = vmul.f32 %v14519_v62, %v14462_v6  ;;  %v4885_v44 = vand.u32 2147483648, %v14413_v43  ;;  %8211 = vrcp.f32 %v14515_v20  ;;  %v14538_v37 = vmul.f32 %v4857_v39, %v14137_v26  ;;  %v3768_v35 = vpop.f32.mrf.mxu2 }
 0x7a0   :  { %v8208_v23 = vpop.eup %8207  ;;  %v14535_v46 = vadd.f32 1.0, %v8206_v60  ;;  %v4891_v54 = vsub.f32 1.0, %v4890_v13  ;;  %8213 = vpow2.f32 %v7225_v10  ;;  %v3601_v56 = vpop.f32.mrf.mxu1  ;;  %v14542_v31 = vmul.f32 %v4872_v2, %v14186_v50 }
 0x7a1   :  { %v4906_v41 = vsub.f32 1.0, %v4905_v21  ;;  %v4883_v61 = vand.u32 2147483647, %v14413_v43  ;;  %vm4879_vm10 = vweird.f32 %v14413_v43  ;;  %v14548_v39 = vadd.f32 1.0, %v8208_v23 }
 0x7a2   :  { %16118 = vst [vmem:[#allocation34_spill] sm:$0xff] %v14542_v31  ;;  %8215 = vrcp.f32 %v14535_v46  ;;  %v4877_v10 = vmul.f32 %v14477_v1, %v4876_v14  ;;  %v4886_v13 = vor.u32 1.1754944e-38, %v4885_v44  ;;  %v3769_v21 = vadd.f32 %v3768_v35, %v15615_v32 }
 0x7a3   :  { %8217 = vpow2.f32 %v7162_v22  ;;  %v14550_v26 = vpop.eup %8209  ;;  %v14555_v50 = vadd.f32 %v3601_v56, %v15565_v11  ;;  %v4892_v2 = vmul.f32 %v14482_v24, %v4891_v54  ;;  %vm4894_vm8 = vweird.f32 %v14432_v57 }
 0x7a4   :  { %v4898_v60 = vand.u32 2147483647, %v14432_v57  ;;  %v4907_v23 = vmul.f32 %v14519_v62, %v4906_v41  ;;  %vm4880_vm0 = vweird.f32 %v14477_v1  ;;  %vm14564_vm3 = vcmp.eq.f32.partialorder %v4883_v61, 8.507059e+37 }
 0x7a5   :  { %v14561_v45 = vpop.eup %8211  ;;  %v4900_v35 = vand.u32 2147483648, %v14432_v57  ;;  %v7226_v56 = vmul.f32 -1.442695, %v3769_v21  ;;  %v7163_v14 = vmul.f32 -1.442695, %v14555_v50  ;;  %v14572_v54 = vmul.f32 %v14550_v26, %v14490_v52  ;;  %vm14598_vm12 = vmor %vm4879_vm10, %vm4880_vm0 }
 0x7a6   :  { %v8214_v44 = vpop.eup %8213  ;;  %v4913_v41 = vand.u32 2147483647, %v14462_v6  ;;  %v4915_v30 = vand.u32 2147483648, %v14462_v6  ;;  %8219 = vrcp.f32 %v14548_v39  ;;  %v4878_v19 = vadd.f32 %v14477_v1, %v4877_v10 }
 0x7a7   :  { %vm4895_vm2 = vweird.f32 %v14482_v24  ;;  %vm4910_vm1 = vweird.f32 %v14519_v62  ;;  %8221 = vpow2.f32 %v7226_v56  ;;  %v4893_v48 = vadd.f32 %v14482_v24, %v4892_v2  ;;  %v3770_v47 = vpop.f32.mrf.mxu2 }
 0x7a8   :  { %v14577_v61 = vpop.eup %8215  ;;  %v4908_v18 = vadd.f32 %v14519_v62, %v4907_v23  ;;  %8223 = vpow2.f32 %v7163_v14  ;;  %v3604_v28 = vpop.f32.mrf.mxu1  ;;  %v14586_v36 = vadd.f32 1.0, %v8214_v44  ;;  %v3771_v10 = vadd.f32 %v3770_v47, %v15615_v32  ;;  %vm14618_vm15 = vmor %vm4894_vm8, %vm4895_vm2 }
 0x7a9   :  { %v8218_v21 = vpop.eup %8217  ;;  %v4920_v49 = vmul.f32 %v14577_v61, %v14535_v46  ;;  %v14592_v8 = vadd.f32 %v3604_v28, %v15565_v11  ;;  %vm14602_vm14 = vcmp.eq.f32.partialorder %v4898_v60, 8.507059e+37  ;;  %v4901_v56 = vor.u32 1.1754944e-38, %v4900_v35 }
 0x7aa   :  { %v14588_v15 = vadd.f32 1.0, %v8218_v21  ;;  %v14608_v14 = vmul.f32 %v14561_v45, %v14515_v20  ;;  %v4882_v28 = vsel %vm14598_vm12, %v14477_v1, %v4878_v19  ;;  %vm4909_vm9 = vweird.f32 %v14462_v6 }
 0x7ab   :  { %v4921_v47 = vsub.f32 1.0, %v4920_v49  ;;  %v4897_v49 = vsel %vm14618_vm15, %v14482_v24, %v4893_v48  ;;  %vm14631_vm5 = vmor %vm4909_vm9, %vm4910_vm1  ;;  %vm14635_vm6 = vcmp.eq.f32.partialorder %v4913_v41, 8.507059e+37  ;;  %v7227_v1 = vmul.f32 -1.442695, %v3771_v10 }
 0x7ac   :  { %8225 = vrcp.f32 %v14588_v15  ;;  %v14624_v35 = vpop.eup %8219  ;;  %v7164_v6 = vmul.f32 -1.442695, %v14592_v8  ;;  %v4912_v21 = vsel %vm14631_vm5, %v14519_v62, %v4908_v18  ;;  %v4916_v2 = vor.u32 1.1754944e-38, %v4915_v30 }
 0x7ad   :  { %v8222_v44 = vpop.eup %8221  ;;  %v4922_v48 = vmul.f32 %v14577_v61, %v4921_v47  ;;  %8227 = vrcp.f32 %v14586_v36  ;;  %v4887_v41 = vsel %vm14564_vm3, %v4886_v13, %v4882_v28  ;;  %v4902_v10 = vsel %vm14602_vm14, %v4901_v56, %v4897_v49 }
 0x7ae   :  { %v8224_v24 = vpop.eup %8223  ;;  %v14648_v43 = vadd.f32 1.0, %v8222_v44  ;;  %8229 = vpow2.f32 %v7227_v1  ;;  %v4928_v19 = vand.u32 2147483647, %v14535_v46  ;;  %v4917_v30 = vsel %vm14635_vm6, %v4916_v2, %v4912_v21 }
 0x7af   :  { %v14653_v18 = vadd.f32 1.0, %v8224_v24  ;;  %8231 = vpow2.f32 %v7164_v6  ;;  %v14659_v62 = vmul.f32 %v14624_v35, %v14548_v39  ;;  %v4930_v13 = vand.u32 2147483648, %v14535_v46  ;;  %v3773_v22 = vpop.f32.mrf.mxu2 }
 0x7b0   :  { %8233 = vrcp.f32 %v14648_v43  ;;  %v3606_v47 = vpop.f32.mrf.mxu1  ;;  %v4923_v56 = vadd.f32 %v14577_v61, %v4922_v48  ;;  %vm4925_vm7 = vweird.f32 %v14577_v61  ;;  %v4943_v28 = vand.u32 2147483647, %v14588_v15 }
 0x7b1   :  { %8235 = vrcp.f32 %v14653_v18  ;;  %v14668_v49 = vmul.f32 %v4887_v41, %v14316_v42  ;;  %v14671_v57 = vmul.f32 %v4902_v10, %v14319_v27  ;;  %vm4924_vm11 = vweird.f32 %v14535_v46 }
 0x7b2   :  { %v8226_v23 = vpop.eup %8225  ;;  %vm14677_vm4 = vcmp.eq.f32.partialorder %v4928_v19, 8.507059e+37  ;;  %v4945_v21 = vand.u32 2147483648, %v14588_v15  ;;  %v3774_v2 = vadd.f32 %v3773_v22, %v15615_v32  ;;  %v14684_v42 = vadd.f32 %v3606_v47, %v15565_v11  ;;  %vm14692_vm10 = vmor %vm4924_vm11, %vm4925_vm7 }
 0x7b3   :  { %v4935_v1 = vmul.f32 %v8226_v23, %v14588_v15  ;;  %v14675_v6 = vpop.eup %8227  ;;  %v14687_v27 = vmul.f32 %v4917_v30, %v14356_v53  ;;  %v4931_v41 = vor.u32 1.1754944e-38, %v4930_v13  ;;  %v4927_v11 = vsel %vm14692_vm10, %v14577_v61, %v4923_v56 }
 0x7b4   :  { %v8230_v48 = vpop.eup %8229  ;;  %vm4939_vm8 = vweird.f32 %v14588_v15  ;;  %vm14700_vm0 = vcmp.eq.f32.partialorder %v4943_v28, 8.507059e+37  ;;  %vm4940_vm3 = vweird.f32 %v8226_v23  ;;  %v7228_v13 = vmul.f32 -1.442695, %v3774_v2 }
 0x7b5   :  { %v4936_v10 = vsub.f32 1.0, %v4935_v1  ;;  %v8232_v19 = vpop.eup %8231  ;;  %v14704_v30 = vadd.f32 1.0, %v8230_v48  ;;  %v4946_v46 = vor.u32 1.1754944e-38, %v4945_v21  ;;  %v7165_v56 = vmul.f32 -1.442695, %v14684_v42  ;;  %vm14724_vm2 = vmor %vm4939_vm8, %vm4940_vm3 }
 0x7b6   :  { %v14706_v22 = vpop.eup %8233  ;;  %v14708_v60 = vadd.f32 1.0, %v8232_v19  ;;  %v14716_v28 = vmul.f32 %v14675_v6, %v14586_v36  ;;  %v4932_v21 = vsel %vm14677_vm4, %v4931_v41, %v4927_v11  ;;  %v4958_v59 = vand.u32 2147483647, %v14653_v18 }
 0x7b7   :  { %v4937_v47 = vmul.f32 %v8226_v23, %v4936_v10  ;;  %v8236_v1 = vpop.eup %8235  ;;  %v6215_v61 = vmul.f32 %v14706_v22, %v14648_v43  ;;  %8237 = vrcp.f32 %v14704_v30  ;;  %v3775_v10 = vpop.f32.mrf.mxu2  ;;  %v4960_v12 = vand.u32 2147483648, %v14653_v18 }
 0x7b8   :  { %v4950_v24 = vmul.f32 %v8236_v1, %v14653_v18  ;;  %8239 = vrcp.f32 %v14708_v60  ;;  %v3776_v38 = vadd.f32 %v3775_v10, %v15615_v32  ;;  %vm4954_vm1 = vweird.f32 %v14653_v18 }
 0x7b9   :  { %v4938_v48 = vadd.f32 %v8226_v23, %v4937_v47  ;;  %v6216_v19 = vsub.f32 1.0, %v6215_v61  ;;  %8241 = vpow2.f32 %v7228_v13  ;;  %v4973_v15 = vand.u32 2147483647, %v14708_v60 }
 0x7ba   :  { %v4951_v0 = vsub.f32 1.0, %v4950_v24  ;;  %v4975_v44 = vand.u32 2147483648, %v14708_v60  ;;  %8243 = vpow2.f32 %v7165_v56  ;;  %v14737_v41 = vmul.f32 %v4932_v21, %v14438_v33  ;;  %v14751_v33 = vld [vmem:[%s15060_s3 + $0xf8] sm:$0xff]  }
 0x7bb   :  { %v4942_v47 = vsel %vm14724_vm2, %v8226_v23, %v4938_v48  ;;  %vm4955_vm12 = vweird.f32 %v8236_v1  ;;  %v7229_v61 = vmul.f32 -1.442695, %v3776_v38  ;;  %vm14744_vm14 = vcmp.eq.f32.partialorder %v4958_v59, 8.507059e+37 }
 0x7bc   :  { %v4952_v11 = vmul.f32 %v8236_v1, %v4951_v0  ;;  %v4947_v32 = vsel %vm14700_vm0, %v4946_v46, %v4942_v47  ;;  %v4961_v48 = vor.u32 1.1754944e-38, %v4960_v12  ;;  %v6217_v24 = vmul.f32 %v14706_v22, %v6216_v19  ;;  %vm14758_vm15 = vmor %vm4954_vm1, %vm4955_vm12 }
 0x7bd   :  { %v14739_v55 = vpop.eup %8237  ;;  %8245 = vpow2.f32 %v7229_v61  ;;  %vm4969_vm9 = vweird.f32 %v14708_v60  ;;  %vm14764_vm5 = vcmp.eq.f32.partialorder %v4973_v15, 8.507059e+37  ;;  %v4976_v53 = vor.u32 1.1754944e-38, %v4975_v44 }
 0x7be   :  { %v8240_v0 = vpop.eup %8239  ;;  %v4953_v56 = vadd.f32 %v8236_v1, %v4952_v11  ;;  %v6230_v38 = vmul.f32 %v14739_v55, %v14704_v30  ;;  %v5054_v21 = vmul.f32 %v4947_v32, %v14506_v16  ;;  %v6218_v61 = vadd.f32 %v14706_v22, %v6217_v24 }
 0x7bf   :  { %v4965_v12 = vmul.f32 %v8240_v0, %v14708_v60  ;;  %v8242_v10 = vpop.eup %8241  ;;  %vm4970_vm6 = vweird.f32 %v8240_v0  ;;  %vm6220_vm7 = vweird.f32 %v14706_v22  ;;  %v6223_v16 = vand.u32 2147483647, %v14648_v43 }
 0x7c0   :  { %v4957_v2 = vsel %vm14758_vm15, %v8236_v1, %v4953_v56  ;;  %v8244_v19 = vpop.eup %8243  ;;  %v14772_v11 = vadd.f32 1.0, %v8242_v10  ;;  %v6231_v44 = vsub.f32 1.0, %v6230_v38  ;;  %vm6219_vm11 = vweird.f32 %v14648_v43  ;;  %vm4971_vm10 = vmor %vm4969_vm9, %vm4970_vm6 }
 0x7c1   :  { %v4966_v47 = vsub.f32 1.0, %v4965_v12  ;;  %v4962_v15 = vsel %vm14744_vm14, %v4961_v48, %v4957_v2  ;;  %v14778_v23 = vadd.f32 1.0, %v8244_v19  ;;  %v6225_v32 = vand.u32 2147483648, %v14648_v43  ;;  %vm14788_vm4 = vmor %vm6219_vm11, %vm6220_vm7 }
 0x7c2   :  { %8247 = vrcp.f32 %v14772_v11  ;;  %v6255_v24 = vand.u32 2147483648, %v14772_v11  ;;  %v5055_v59 = vmul.f32 %v4962_v15, %v14555_v50  ;;  %v6222_v43 = vsel %vm14788_vm4, %v14706_v22, %v6218_v61 }
 0x7c3   :  { %v4967_v1 = vmul.f32 %v8240_v0, %v4966_v47  ;;  %v8246_v56 = vpop.eup %8245  ;;  %8249 = vrcp.f32 %v14778_v23  ;;  %v4990_v13 = vand.u32 2147483648, %v14778_v23  ;;  %v4988_v2 = vand.u32 2147483647, %v14778_v23 }
 0x7c4   :  { %v14793_v10 = vadd.f32 1.0, %v8246_v56  ;;  %v6253_v19 = vand.u32 2147483647, %v14772_v11  ;;  %vm6224_vm8 = vcmp.eq.f32.partialorder %v6223_v16, 8.507059e+37  ;;  %v6232_v47 = vmul.f32 %v14739_v55, %v6231_v44 }
 0x7c5   :  { %v4968_v12 = vadd.f32 %v8240_v0, %v4967_v1  ;;  %vm6249_vm0 = vweird.f32 %v14772_v11  ;;  %v6226_v15 = vor.u32 1.1754944e-38, %v6225_v32  ;;  %v6256_v60 = vor.u32 1.1754944e-38, %v6255_v24  ;;  %v7461_v32 = vld [vmem:[%s15060_s3 + $0xf0] sm:$0xff]  }
 0x7c6   :  { %8251 = vrcp.f32 %v14793_v10  ;;  %v6270_v50 = vand.u32 2147483648, %v14793_v10  ;;  %vm4984_vm3 = vweird.f32 %v14778_v23  ;;  %v4991_v61 = vor.u32 1.1754944e-38, %v4990_v13 }
 0x7c7   :  { %v4972_v48 = vsel %vm4971_vm10, %v8240_v0, %v4968_v12  ;;  %v6268_v1 = vand.u32 2147483647, %v14793_v10  ;;  %v6227_v56 = vsel %vm6224_vm8, %v6226_v15, %v6222_v43  ;;  %v6233_v38 = vadd.f32 %v14739_v55, %v6232_v47 }
 0x7c8   :  { %v4977_v22 = vsel %vm14764_vm5, %v4976_v53, %v4972_v48  ;;  %v8248_v16 = vpop.eup %8247  ;;  %v14812_v0 = vor.u32 1.1754944e-38, %v6270_v50  ;;  %vm14819_vm1 = vcmp.eq.f32.partialorder %v6253_v19, 8.507059e+37  ;;  %vm6234_vm12 = vweird.f32 %v14704_v30 }
 0x7c9   :  { %v5056_v44 = vmul.f32 %v4977_v22, %v14592_v8  ;;  %v8250_v46 = vpop.eup %8249  ;;  %v6245_v53 = vmul.f32 %v8248_v16, %v14772_v11  ;;  %vm6250_vm2 = vweird.f32 %v8248_v16  ;;  %vm6235_vm14 = vweird.f32 %v14739_v55 }
 0x7ca   :  { %v4980_v8 = vmul.f32 %v8250_v46, %v14778_v23  ;;  %vm4985_vm15 = vweird.f32 %v8250_v46  ;;  %vm14826_vm9 = vcmp.eq.f32.partialorder %v4988_v2, 8.507059e+37  ;;  %v6238_v48 = vand.u32 2147483647, %v14704_v30  ;;  %vm6236_vm6 = vmor %vm6234_vm12, %vm6235_vm14 }
 0x7cb   :  { %v6240_v12 = vand.u32 2147483648, %v14704_v30  ;;  %v6246_v43 = vsub.f32 1.0, %v6245_v53  ;;  %vm6264_vm5 = vweird.f32 %v14793_v10  ;;  %v6334_v19 = vmul.f32 %v6227_v56, %v5054_v21  ;;  %vm14848_vm10 = vmor %vm6249_vm0, %vm6250_vm2 }
 0x7cc   :  { %v7426_v47 = vunpack.c.l.bf16 %v7461_v32  ;;  %v7427_v50 = vunpack.c.h.bf16 %v7461_v32  ;;  %v8252_v15 = vpop.eup %8251  ;;  %v4981_v22 = vsub.f32 1.0, %v4980_v8  ;;  %vm6239_vm7 = vcmp.eq.f32.partialorder %v6238_v48, 8.507059e+37  ;;  %vm4986_vm12 = vmor %vm4984_vm3, %vm4985_vm15 }
 0x7cd   :  { %v6241_v18 = vor.u32 1.1754944e-38, %v6240_v12  ;;  %v16151_v2 = vsub.f32 1.0, %v14659_v62  ;;  %v6247_v31 = vmul.f32 %v8248_v16, %v6246_v43  ;;  %v6260_v58 = vmul.f32 %v8252_v15, %v14793_v10 }
 0x7ce   :  { %vm6265_vm11 = vweird.f32 %v8252_v15  ;;  %vm14837_vm4 = vcmp.eq.f32.partialorder %v6268_v1, 8.507059e+37  ;;  %v6237_v21 = vsel %vm6236_vm6, %v14739_v55, %v6233_v38  ;;  %v4982_v56 = vmul.f32 %v8250_v46, %v4981_v22 }
 0x7cf   :  { %v6187_v17 = vmul.f32 %v14624_v35, %v16151_v2  ;;  %v6242_v32 = vsel %vm6239_vm7, %v6241_v18, %v6237_v21  ;;  %v14842_v53 = vmul.f32 %v7426_v47, %v6334_v19  ;;  %v6261_v48 = vsub.f32 1.0, %v6260_v58  ;;  %vm6266_vm2 = vmor %vm6264_vm5, %vm6265_vm11 }
 0x7d0   :  { %v6248_v1 = vadd.f32 %v8248_v16, %v6247_v31  ;;  %v6335_v12 = vmul.f32 %v6242_v32, %v5055_v59  ;;  %vm6189_vm8 = vweird.f32 %v14548_v39  ;;  %v4983_v43 = vadd.f32 %v8250_v46, %v4982_v56 }
 0x7d1   :  { %v6188_v8 = vadd.f32 %v14624_v35, %v6187_v17  ;;  %vm6190_vm14 = vweird.f32 %v14624_v35  ;;  %v6193_v55 = vand.u32 2147483647, %v14548_v39  ;;  %v6195_v17 = vand.u32 2147483648, %v14548_v39 }
 0x7d2   :  { %v6262_v18 = vmul.f32 %v8252_v15, %v6261_v48  ;;  %v6252_v11 = vsel %vm14848_vm10, %v8248_v16, %v6248_v1  ;;  %v14861_v58 = vmul.f32 %v7427_v50, %v6335_v12  ;;  %vm14863_vm0 = vmor %vm6189_vm8, %vm6190_vm14  ;;  %v16158_v59 = vsub.f32 1.0, %v14716_v28 }
 0x7d3   :  { %v4987_v38 = vsel %vm4986_vm12, %v8250_v46, %v4983_v43  ;;  %v6257_v19 = vsel %vm14819_vm1, %v6256_v60, %v6252_v11  ;;  %v6192_v39 = vsel %vm14863_vm0, %v14624_v35, %v6188_v8  ;;  %vm14875_vm3 = vcmp.eq.f32.partialorder %v6193_v55, 8.507059e+37  ;;  %v7460_v60 = vld [vmem:[%s15060_s3 + $0xe8] sm:$0xff]  }
 0x7d4   :  { %v6202_v23 = vmul.f32 %v14675_v6, %v16158_v59  ;;  %v4992_v47 = vsel %vm14826_vm9, %v4991_v61, %v4987_v38  ;;  %v6263_v50 = vadd.f32 %v8252_v15, %v6262_v18  ;;  %v6336_v22 = vmul.f32 %v6257_v19, %v5056_v44  ;;  %v7459_v18 = vld [vmem:[%s15060_s3 + $0xe0] sm:$0xff]   ;;  %v16180_v59 = vld [vmem:[#allocation80_spill] sm:$0xff] }
 0x7d5   :  { %v6562_v28 = vpack.c.bf16 %v14861_v58, %v14842_v53  ;;  %v5057_v46 = vmul.f32 %v4992_v47, %v14684_v42  ;;  %v6196_v35 = vor.u32 1.1754944e-38, %v6195_v17  ;;  %vm6204_vm1 = vweird.f32 %v14586_v36 }
 0x7d6   :  { %v6203_v24 = vadd.f32 %v14675_v6, %v6202_v23  ;;  %v6267_v61 = vsel %vm6266_vm2, %v8252_v15, %v6263_v50  ;;  %v16161_v44 = vunpack.c.l.bf16 %v14751_v33  ;;  %vm6205_vm15 = vweird.f32 %v14675_v6 }
 0x7d7   :  { %v6208_v2 = vand.u32 2147483647, %v14586_v36  ;;  %v6272_v42 = vsel %vm14837_vm4, %v14812_v0, %v6267_v61  ;;  %v6197_v10 = vsel %vm14875_vm3, %v6196_v35, %v6192_v39  ;;  %vm14901_vm9 = vmor %vm6204_vm1, %vm6205_vm15  ;;  %v6210_v15 = vand.u32 2147483648, %v14586_v36 }
 0x7d8   :  { %v6528_v13 = vmul.f32 %v16161_v44, %v6336_v22  ;;  %v7422_v56 = vunpack.c.l.bf16 %v7460_v60  ;;  %v6337_v32 = vmul.f32 %v6272_v42, %v5057_v46  ;;  %v6207_v53 = vsel %vm14901_vm9, %v14675_v6, %v6203_v24  ;;  %v7458_v44 = vld [vmem:[%s15060_s3 + $0xd8] sm:$0xff]  }
 0x7d9   :  { %vm6209_vm5 = vcmp.eq.f32.partialorder %v6208_v2, 8.507059e+37  ;;  %v6332_v8 = vmul.f32 %v6197_v10, %v14687_v27  ;;  %v6211_v30 = vor.u32 1.1754944e-38, %v6210_v15  ;;  %v7423_v0 = vunpack.c.h.bf16 %v7460_v60 }
 0x7da   :  { %v16164_v62 = vsub.f32 1.0, %v14572_v54  ;;  %vm6159_vm6 = vweird.f32 %v14490_v52  ;;  %v16165_v1 = vunpack.c.h.bf16 %v14751_v33  ;;  %vm6160_vm7 = vweird.f32 %v14550_v26 }
 0x7db   :  { %v6524_v12 = vmul.f32 %v7422_v56, %v6332_v8  ;;  %v6163_v43 = vand.u32 2147483647, %v14490_v52  ;;  %v6212_v6 = vsel %vm6209_vm5, %v6211_v30, %v6207_v53  ;;  %v6165_v27 = vand.u32 2147483648, %v14490_v52  ;;  %vm6161_vm11 = vmor %vm6159_vm6, %vm6160_vm7 }
 0x7dc   :  { %v6157_v48 = vmul.f32 %v14550_v26, %v16164_v62  ;;  %v6529_v36 = vmul.f32 %v16165_v1, %v6337_v32  ;;  %v16166_v17 = vsub.f32 1.0, %v14608_v14  ;;  %v6333_v11 = vmul.f32 %v6212_v6, %v14737_v41 }
 0x7dd   :  { %vm6164_vm4 = vcmp.eq.f32.partialorder %v6163_v43, 8.507059e+37  ;;  %vm6174_vm10 = vweird.f32 %v14515_v20  ;;  %v6166_v31 = vor.u32 1.1754944e-38, %v6165_v27  ;;  %vm6175_vm8 = vweird.f32 %v14561_v45  ;;  %v16178_v43 = vld [vmem:[#allocation34_spill] sm:$0xff] }
 0x7de   :  { %v6158_v55 = vadd.f32 %v14550_v26, %v6157_v48  ;;  %v6172_v54 = vmul.f32 %v14561_v45, %v16166_v17  ;;  %v6563_v33 = vpack.c.bf16 %v6529_v36, %v6528_v13  ;;  %v6525_v14 = vmul.f32 %v7423_v0, %v6333_v11  ;;  %vm14931_vm12 = vmor %vm6174_vm10, %vm6175_vm8 }
 0x7df   :  { %v6178_v23 = vand.u32 2147483647, %v14515_v20  ;;  %v6180_v41 = vand.u32 2147483648, %v14515_v20  ;;  %v7418_v38 = vunpack.c.l.bf16 %v7459_v18  ;;  %v7419_v39 = vunpack.c.h.bf16 %v7459_v18 }
 0x7e0   :  { %v6162_v58 = vsel %vm6161_vm11, %v14550_v26, %v6158_v55  ;;  %v6173_v52 = vadd.f32 %v14561_v45, %v6172_v54  ;;  %6606 = vmatpush.bf16.msrb.mxu3 %v6563_v33  ;;  %v16169_v16 = vsub.f32 1.0, %v14523_v3  ;;  %v6561_v50 = vpack.c.bf16 %v6525_v14, %v6524_v12  ;;  %v16177_v12 = vld [vmem:[#allocation36_spill] sm:$0xff]  ;;  %v7456_v3 = vld [vmem:[%s15060_s3 + $0xc8] sm:$0xff]  }
 0x7e1   :  { %v6167_v19 = vsel %vm6164_vm4, %v6166_v31, %v6162_v58  ;;  %vm6179_vm14 = vcmp.eq.f32.partialorder %v6178_v23, 8.507059e+37  ;;  %v6181_v22 = vor.u32 1.1754944e-38, %v6180_v41  ;;  %vm6129_vm0 = vweird.f32 %v14430_v7  ;;  %v16182_v41 = vld [vmem:[#allocation84_spill] sm:$0xff] }
 0x7e2   :  { %v6177_v26 = vsel %vm14931_vm12, %v14561_v45, %v6173_v52  ;;  %v6127_v47 = vmul.f32 %v14492_v25, %v16169_v16  ;;  %v6330_v60 = vmul.f32 %v6167_v19, %v14668_v49  ;;  %vm6130_vm3 = vweird.f32 %v14492_v25  ;;  %v16183_v19 = vld [vmem:[#allocation18_spill] sm:$0xff] }
 0x7e3   :  { %v6133_v20 = vand.u32 2147483647, %v14430_v7  ;;  %v6182_v45 = vsel %vm6179_vm14, %v6181_v22, %v6177_v26  ;;  %vm14948_vm2 = vmor %vm6129_vm0, %vm6130_vm3  ;;  %v6135_v24 = vand.u32 2147483648, %v14430_v7  ;;  %v16172_v61 = vsub.f32 1.0, %v14528_v5 }
 0x7e4   :  { %v6128_v46 = vadd.f32 %v14492_v25, %v6127_v47  ;;  %6607 = vmatpush.bf16.msrb.mxu3 %v6562_v28  ;;  %v6522_v35 = vmul.f32 %v7418_v38, %v6330_v60  ;;  %v6331_v13 = vmul.f32 %v6182_v45, %v14671_v57  ;;  %vm6144_vm15 = vweird.f32 %v14434_v34  ;;  %v16185_v60 = vld [vmem:[#allocation59_spill] sm:$0xff] }
 0x7e5   :  { %v6142_v49 = vmul.f32 %v14508_v63, %v16172_v61  ;;  %vm6134_vm1 = vcmp.eq.f32.partialorder %v6133_v20, 8.507059e+37  ;;  %v6136_v2 = vor.u32 1.1754944e-38, %v6135_v24  ;;  %vm6145_vm9 = vweird.f32 %v14508_v63  ;;  %v16187_v20 = vld [vmem:[#allocation72_spill] sm:$0xff] }
 0x7e6   :  { %v6132_v28 = vsel %vm14948_vm2, %v14492_v25, %v6128_v46  ;;  %v6148_v5 = vand.u32 2147483647, %v14434_v34  ;;  %v6523_v42 = vmul.f32 %v7419_v39, %v6331_v13  ;;  %vm14967_vm5 = vmor %vm6144_vm15, %vm6145_vm9  ;;  %v6150_v57 = vand.u32 2147483648, %v14434_v34 }
 0x7e7   :  { %v6143_v7 = vadd.f32 %v14508_v63, %v6142_v49  ;;  %v7414_v21 = vunpack.c.l.bf16 %v7458_v44  ;;  %v7415_v15 = vunpack.c.h.bf16 %v7458_v44  ;;  %v6137_v25 = vsel %vm6134_vm1, %v6136_v2, %v6132_v28  ;;  %v16189_v2 = vld [vmem:[#allocation58_spill] sm:$0xff] }
 0x7e8   :  { %6608 = vmatpush.bf16.msrb.mxu3 %v6561_v50  ;;  %vm6149_vm6 = vcmp.eq.f32.partialorder %v6148_v5, 8.507059e+37  ;;  %v16175_v32 = vsub.f32 1.0, %v14419_v4  ;;  %v6560_v8 = vpack.c.bf16 %v6523_v42, %v6522_v35  ;;  %v6151_v30 = vor.u32 1.1754944e-38, %v6150_v57  ;;  %v16188_v35 = vld [vmem:[#allocation25_spill] sm:$0xff] }
 0x7e9   :  { %v6147_v56 = vsel %vm14967_vm5, %v14508_v63, %v6143_v7  ;;  %v6328_v0 = vmul.f32 %v6137_v25, %v14538_v37  ;;  %vm6099_vm7 = vweird.f32 %v14260_v51  ;;  %vm6100_vm11 = vweird.f32 %v14358_v9  ;;  %v7457_v37 = vld [vmem:[%s15060_s3 + $0xd0] sm:$0xff]   ;;  %v16190_v7 = vld [vmem:[#allocation86_spill] sm:$0xff]  ;;  %v16191_v25 = vld [vmem:[#allocation87_spill] sm:$0xff] }
 0x7ea   :  { %v6097_v53 = vmul.f32 %v14358_v9, %v16175_v32  ;;  %v6103_v62 = vand.u32 2147483647, %v14260_v51  ;;  %v6105_v48 = vand.u32 2147483648, %v14260_v51  ;;  %v6152_v63 = vsel %vm6149_vm6, %v6151_v30, %v6147_v56  ;;  %vm6101_vm4 = vmor %vm6099_vm7, %vm6100_vm11  ;;  %v16194_v30 = vld [vmem:[#allocation28_spill] sm:$0xff] }
 0x7eb   :  { %v6520_v1 = vmul.f32 %v7414_v21, %v6328_v0  ;;  %v16176_v4 = vsub.f32 1.0, %v14469_v40  ;;  %vm6114_vm10 = vweird.f32 %v16177_v12  ;;  %v6329_v6 = vmul.f32 %v6152_v63, %v16178_v43 }
 0x7ec   :  { %v6098_v34 = vadd.f32 %v14358_v9, %v6097_v53  ;;  %6609 = vmatpush.bf16.msrb.mxu3 %v6560_v8  ;;  %vm6104_vm8 = vcmp.eq.f32.partialorder %v6103_v62, 8.507059e+37  ;;  %v6106_v51 = vor.u32 1.1754944e-38, %v6105_v48  ;;  %vm6115_vm12 = vweird.f32 %v14445_v29  ;;  %v16192_v53 = vld [vmem:[#allocation67_spill] sm:$0xff] }
 0x7ed   :  { %v6112_v36 = vmul.f32 %v14445_v29, %v16176_v4  ;;  %v6118_v40 = vand.u32 2147483647, %v16177_v12  ;;  %v6120_v17 = vand.u32 2147483648, %v16177_v12  ;;  %v6521_v54 = vmul.f32 %v7415_v15, %v6329_v6  ;;  %vm6116_vm14 = vmor %vm6114_vm10, %vm6115_vm12 }
 0x7ee   :  { %v6102_v55 = vsel %vm6101_vm4, %v14358_v9, %v6098_v34  ;;  %v7410_v33 = vunpack.c.l.bf16 %v7457_v37  ;;  %v7411_v11 = vunpack.c.h.bf16 %v7457_v37  ;;  %v16179_v9 = vld [vmem:[#allocation82_spill] sm:$0xff]  ;;  %v16181_v23 = vsub.f32 1.0, %v16180_v59  ;;  %v16195_v34 = vld [vmem:[#allocation56_spill] sm:$0xff] }
 0x7ef   :  { %v6113_v27 = vadd.f32 %v14445_v29, %v6112_v36  ;;  %v6107_v18 = vsel %vm6104_vm8, %v6106_v51, %v6102_v55  ;;  %vm6119_vm0 = vcmp.eq.f32.partialorder %v6118_v40, 8.507059e+37  ;;  %v6121_v31 = vor.u32 1.1754944e-38, %v6120_v17  ;;  %v16198_v36 = vld [vmem:[#allocation85_spill] sm:$0xff]  ;;  %v16199_v55 = vld [vmem:[#allocation78_spill] sm:$0xff]  ;;  %v16201_v59 = vld [vmem:[#allocation24_spill] sm:$0xff] }
 0x7f0   :  { %v6326_v52 = vmul.f32 %v6107_v18, %v16179_v9  ;;  %v6559_v14 = vpack.c.bf16 %v6521_v54, %v6520_v1  ;;  %v6067_v38 = vmul.f32 %v16182_v41, %v16181_v23  ;;  %vm6069_vm3 = vweird.f32 %v16183_v19  ;;  %v16196_v1 = vld [vmem:[#allocation64_spill] sm:$0xff] }
 0x7f1   :  { %v6117_v58 = vsel %vm6116_vm14, %v14445_v29, %v6113_v27  ;;  %vm6070_vm2 = vweird.f32 %v16182_v41  ;;  %v6073_v16 = vand.u32 2147483647, %v16183_v19  ;;  %v6075_v47 = vand.u32 2147483648, %v16183_v19  ;;  %v16184_v29 = vld [vmem:[#allocation65_spill] sm:$0xff]  ;;  %v16202_v23 = vld [vmem:[#allocation32_spill] sm:$0xff] }
 0x7f2   :  { %v6122_v26 = vsel %vm6119_vm0, %v6121_v31, %v6117_v58  ;;  %v6518_v39 = vmul.f32 %v7410_v33, %v6326_v52  ;;  %6610 = vmatpush.bf16.msrb.mxu3 %v6559_v14  ;;  %v6068_v22 = vadd.f32 %v16182_v41, %v6067_v38  ;;  %v16186_v46 = vsub.f32 1.0, %v16185_v60  ;;  %vm6071_vm15 = vmor %vm6069_vm3, %vm6070_vm2  ;;  %v7455_v33 = vld [vmem:[%s15060_s3 + $0xc0] sm:$0xff]   ;;  %v16200_v52 = vld [vmem:[#allocation77_spill] sm:$0xff]  ;;  %v6573_v60 = vpop.f32.mrf.mxu3  ;;  %s8370_s3 = smov [#allocation8]  }
 0x7f3   :  { %v6327_v50 = vmul.f32 %v6122_v26, %v16184_v29  ;;  %vm6084_vm1 = vweird.f32 %v16188_v35  ;;  %vm6074_vm9 = vcmp.eq.f32.partialorder %v6073_v16, 8.507059e+37  ;;  %v6076_v24 = vor.u32 1.1754944e-38, %v6075_v47  ;;  %s6628_s2 = sshll.u32 %s8370_s3, 4  ;;  %s6629_s2 = int_to_ptr.vmem [resolvable:$true] %s6628_s2 }
 0x7f4   :  { %v6082_v45 = vmul.f32 %v16187_v20, %v16186_v46  ;;  %vm6085_vm5 = vweird.f32 %v16187_v20  ;;  %v6088_v61 = vand.u32 2147483647, %v16188_v35  ;;  %v6072_v44 = vsel %vm6071_vm15, %v16182_v41, %v6068_v22 }
 0x7f5   :  { %v6519_v49 = vmul.f32 %v7411_v11, %v6327_v50  ;;  %v6090_v28 = vand.u32 2147483648, %v16188_v35  ;;  %v5045_v5 = vmul.f32 %v16190_v7, %v16189_v2  ;;  %v6077_v42 = vsel %vm6074_vm9, %v6076_v24, %v6072_v44  ;;  %vm6086_vm6 = vmor %vm6084_vm1, %vm6085_vm5 }
 0x7f6   :  { %v6083_v13 = vadd.f32 %v16187_v20, %v6082_v45  ;;  %vm6089_vm7 = vcmp.eq.f32.partialorder %v6088_v61, 8.507059e+37  ;;  %v7406_v10 = vunpack.c.l.bf16 %v7456_v3  ;;  %v6324_v56 = vmul.f32 %v6077_v42, %v16191_v25 }
 0x7f7   :  { %v6558_v57 = vpack.c.bf16 %v6519_v49, %v6518_v39  ;;  %v6091_v15 = vor.u32 1.1754944e-38, %v6090_v28  ;;  %v7407_v32 = vunpack.c.h.bf16 %v7456_v3  ;;  %v16193_v8 = vsub.f32 1.0, %v16192_v53 }
 0x7f8   :  { %v6087_v21 = vsel %vm6086_vm6, %v16187_v20, %v6083_v13  ;;  %vm6040_vm11 = vweird.f32 %v16194_v30  ;;  %v6043_v62 = vand.u32 2147483647, %v16195_v34  ;;  %vm6039_vm4 = vweird.f32 %v16195_v34 }
 0x7f9   :  { %v6037_v0 = vmul.f32 %v16194_v30, %v16193_v8  ;;  %6611 = vmatpush.bf16.msrb.mxu3 %v6558_v57  ;;  %v6092_v48 = vsel %vm6089_vm7, %v6091_v15, %v6087_v21  ;;  %v6045_v63 = vand.u32 2147483648, %v16195_v34  ;;  %v16197_v4 = vsub.f32 1.0, %v16196_v1  ;;  %vm6041_vm8 = vmor %vm6039_vm4, %vm6040_vm11 }
 0x7fa   :  { %v6325_v37 = vmul.f32 %v6092_v48, %v5045_v5  ;;  %v6516_v43 = vmul.f32 %v7406_v10, %v6324_v56  ;;  %vm6054_vm10 = vweird.f32 %v16199_v55  ;;  %vm6055_vm12 = vweird.f32 %v16198_v36  ;;  %v6575_v46 = vpop.f32.mrf.mxu3 }
 0x7fb   :  { %v6052_v12 = vmul.f32 %v16198_v36, %v16197_v4  ;;  %v6038_v6 = vadd.f32 %v16194_v30, %v6037_v0  ;;  %v6046_v51 = vor.u32 1.1754944e-38, %v6045_v63  ;;  %v6058_v40 = vand.u32 2147483647, %v16199_v55  ;;  %vm6056_vm0 = vmor %vm6054_vm10, %vm6055_vm12 }
 0x7fc   :  { %v6517_v17 = vmul.f32 %v7407_v32, %v6325_v37  ;;  %vm6044_vm14 = vcmp.eq.f32.partialorder %v6043_v62, 8.507059e+37  ;;  %v6060_v18 = vand.u32 2147483648, %v16199_v55  ;;  %v5043_v41 = vmul.f32 %v16202_v23, %v16201_v59 }
 0x7fd   :  { %v6053_v27 = vadd.f32 %v16198_v36, %v6052_v12  ;;  %v6042_v54 = vsel %vm6041_vm8, %v16194_v30, %v6038_v6  ;;  %vm6059_vm3 = vcmp.eq.f32.partialorder %v6058_v40, 8.507059e+37  ;;  %v7402_v38 = vunpack.c.l.bf16 %v7455_v33 }
 0x7fe   :  { %v6047_v11 = vsel %vm6044_vm14, %v6046_v51, %v6042_v54  ;;  %v6557_v31 = vpack.c.bf16 %v6517_v17, %v6516_v43  ;;  %v6061_v9 = vor.u32 1.1754944e-38, %v6060_v18  ;;  %v7403_v19 = vunpack.c.h.bf16 %v7455_v33 }
 0x7ff   :  { %v6057_v58 = vsel %vm6056_vm0, %v16198_v36, %v6053_v27  ;;  %v6322_v14 = vmul.f32 %v6047_v11, %v16200_v52  ;;  %v16203_v50 = vmov 1.0|1.0  }
 0x800   :  { %6612 = vmatpush.bf16.msrb.mxu3 %v6557_v31  ;;  %v6062_v26 = vsel %vm6059_vm3, %v6061_v9, %v6057_v58 }
 0x801   :  { %v6323_v39 = vmul.f32 %v6062_v26, %v5043_v41  ;;  %v6514_v16 = vmul.f32 %v7402_v38, %v6322_v14 }
 0x802   :  { %v6587_v20 = vpop.f32.mrf.mxu3 }
 0x803   :  { %v6515_v47 = vmul.f32 %v7403_v19, %v6323_v39  ;;  %v6588_v24 = vadd.f32 %v6587_v20, %v6573_v60 }
 0x805   :  { %v6556_v29 = vpack.c.bf16 %v6515_v47, %v6514_v16 }
 0x807   :  { %6613 = vmatpush.bf16.msrb.mxu3 %v6556_v29 }
 0x80a   :  { %7237 = vmatmul.msk.bf16.vlgmr.msrb.gmra.mxu3 %vm8470_vm13, %v16203_v50  ;;  %v6589_v45 = vpop.f32.mrf.mxu3 }
 0x80b   :  { %v6590_v13 = vadd.f32 %v6589_v45, %v6575_v46 }
 0x812   :  { %v6601_v35 = vpop.f32.mrf.mxu3 }
 0x813   :  { %v6602_v61 = vadd.f32 %v6601_v35, %v6588_v24 }
 0x81a   :  { %v6603_v3 = vpop.f32.mrf.mxu3 }
 0x81b   :  { %v6604_v28 = vadd.f32 %v6603_v3, %v6590_v13 }
 0x88d   :  { %v6615_v49 = vpop.f32.mrf.mxu3 }
 0x88e   :  { %v6616_v44 = vadd.f32 %v6615_v49, %v6602_v61 }
 0x890   :  { %6622 = vst [vmem:[#allocation8] sm:$0xff] %v6616_v44 }
 0x895   :  { %v6617_v2 = vpop.f32.mrf.mxu3 }
 0x896   :  { %v6618_v7 = vadd.f32 %v6617_v2, %v6604_v28 }
 0x898   :  { %6623 = vst [vmem:[#allocation8 + $0x8] sm:$0xff] %v6618_v7 }
 0x899   :  { %6636 = dma.vmem_to_hbm [thread:$0]  %s6629_s2, 256, %s6631_s4, [#allocation4], %s8366_s29, %s8366_s29, %s8367_s30  }
 0x89a   :  { %8359 = dma.done.wait [#allocation4], 256  }
 0x89b   :  { %8360 = vsyncadd [#allocation4], 4294967040 }
 0x89c   :  { %6641 = vsyncpa [#allocation3], 1 }
 0x89d   :  { %6642 = vsyncpa [#allocation6], 1 }
 0x89e   :  { %6643 = vsyncpa [#allocation4], 1 }

</bundles_post_ra>
